<compile_context>
chip_gen: v7x
topology: tpu7x:2x2x1
jax: 0.10.0
libtpu: 0.0.40
codegen_flags: <defaults>
</compile_context>

<pallas_src>
import math
import jax
import jax.numpy as jnp
from jax.experimental import pallas as pl
from jax.experimental.pallas import tpu as pltpu

# ------------------------- small synthetic configuration -------------------------
IMG = 16                       # image side (original 224)
PATCH = 8                      # patch size (original 14)
N_PATCH = (IMG // PATCH) ** 2  # 4 patches
CLIP_SEQ = N_PATCH + 1         # class token + patches
CLIP_W = 32                    # CLIP vision width (original 1024)
CLIP_HEADS = 4
CLIP_DEPTH = 1                 # CLIP visual transformer depth (original 24)
CLIP_OUT = 32                  # clip.visual.proj output dim  -> clip_dim

V_EMBED = 32                   # v_embed_dim (original 768)
V_HEADS = 4
V_DEPTH = 2                    # v_depth (original 8)
V_MLP_RATIO = 4

QUERY_LEN = 4                  # query_len (original 100)
QUERY_LAYER = 2                # query_layer (original 30)

DIM = 32                       # llama dim (original 4096)
N_HEADS = 4
HEAD_DIM = DIM // N_HEADS
N_LAYERS = 3                   # llama depth; last QUERY_LAYER layers get the adapter
VOCAB = 64                     # vocab (original 32000; the ==32000 assert is skipped)
FFN_HIDDEN = 32 * ((int(2 * (4 * DIM) / 3) + 31) // 32)
MAX_SEQ = 8
EPS_LN = 1e-5
EPS_RMS = 1e-5
_ATTN_SCALE = 1.0 / math.sqrt(HEAD_DIM)
_NEG_INF = -1e30               # large finite negative (NaN-safe vs. -inf)
_MM_DTYPE = jnp.bfloat16       # MXU-native operand dtype; accumulation stays f32

assert CLIP_W // CLIP_HEADS == HEAD_DIM and V_EMBED // V_HEADS == HEAD_DIM

# per-head column permutation: within each head, [even (real) dims | odd (imag) dims]
_ROPE_PERM_LIST = []
for _h in range(N_HEADS):
    _ROPE_PERM_LIST += [_h * HEAD_DIM + 2 * _j for _j in range(HEAD_DIM // 2)]
    _ROPE_PERM_LIST += [_h * HEAD_DIM + 2 * _j + 1 for _j in range(HEAD_DIM // 2)]


# ------------------------------- in-kernel helpers --------------------------------
def _mm(a, b):
    """a @ b with bf16 MXU operands and f32 accumulation."""
    return jnp.dot(a.astype(_MM_DTYPE), b.astype(_MM_DTYPE),
                   preferred_element_type=jnp.float32)


def _mm_t(a, b):
    """a @ b.T without materializing a transpose (contract last dims of both)."""
    return jax.lax.dot_general(a.astype(_MM_DTYPE), b.astype(_MM_DTYPE),
                               (((1,), (1,)), ((), ())),
                               preferred_element_type=jnp.float32)


def _softmax(s):
    m = jnp.max(s, axis=-1, keepdims=True)
    e = jnp.exp(s - m)
    return e / jnp.sum(e, axis=-1, keepdims=True)


def _ln(x, g, b):
    mu = jnp.mean(x, axis=-1, keepdims=True)
    var = jnp.mean((x - mu) * (x - mu), axis=-1, keepdims=True)
    return (x - mu) * jax.lax.rsqrt(var + EPS_LN) * g + b


def _rms(x, w):
    ms = jnp.mean(x * x, axis=-1, keepdims=True)
    return x * jax.lax.rsqrt(ms + EPS_RMS) * w


def _mha_project(q2, k2, v2, wo, n_heads, mask=None):
    """Per-head SDPA; heads are merged by summing o_h @ wo[rows_h] (no concat)."""
    S, D = q2.shape
    hd = D // n_heads
    scale = 1.0 / math.sqrt(hd)
    out = None
    for h in range(n_heads):
        sl = slice(h * hd, (h + 1) * hd)
        s = _mm_t(q2[:, sl], k2[:, sl]) * scale
        if mask is not None:
            s = s + mask
        o_h = _mm(_softmax(s), v2[:, sl])
        proj = _mm(o_h, wo[sl, :])
        out = proj if out is None else out + proj
    return out


# --------------------------------- fused kernels -----------------------------------
def _clip_embed_kernel(p_ref, w_ref, cls_ref, pos_ref, lg_ref, lb_ref, o_ref):
    # patchify matmul + class token + positional embedding + ln_pre
    xp = _mm(p_ref[0], w_ref[...])                       # (N_PATCH, CLIP_W)
    pos = pos_ref[...]
    g, b = lg_ref[...], lb_ref[...]
    cls_row = cls_ref[...] + pos[0:1, :]                 # (1, CLIP_W)
    patch_rows = xp + pos[1:, :]                         # (N_PATCH, CLIP_W)
    o_ref[0, :1] = _ln(cls_row, g, b)
    o_ref[0, 1:] = _ln(patch_rows, g, b)


def _clip_block_kernel(x_ref, l1g, l1b, wq, bq, wk, bk, wv, bv, wo, bo,
                       l2g, l2b, fcw, fcb, cpw, cpb, o_ref):
    x = x_ref[0]
    y = _ln(x, l1g[...], l1b[...])
    q = _mm(y, wq[...]) + bq[...]
    k = _mm(y, wk[...]) + bk[...]
    v = _mm(y, wv[...]) + bv[...]
    x = x + _mha_project(q, k, v, wo[...], CLIP_HEADS) + bo[...]
    y = _ln(x, l2g[...], l2b[...])
    hmid = _mm(y, fcw[...]) + fcb[...]
    hmid = hmid * jax.nn.sigmoid(1.702 * hmid)           # QuickGELU
    x = x + _mm(hmid, cpw[...]) + cpb[...]
    o_ref[0] = x


def _clip_head_kernel(x_ref, lpg, lpb, proj, cpw, cpb, cng, cnb, o_ref):
    # ln_post + clip.visual.proj + clip_proj linear + clip_proj_norm
    x = _ln(x_ref[0], lpg[...], lpb[...])
    x = _mm(x, proj[...])
    x = _mm(x, cpw[...]) + cpb[...]
    o_ref[0] = _ln(x, cng[...], cnb[...])


def _vit_block_kernel(x_ref, n1g, n1b, wq, bq, wk, bk, wv, bv, pw, pb,
                      n2g, n2b, f1w, f1b, f2w, f2b, o_ref):
    x = x_ref[0]
    y = _ln(x, n1g[...], n1b[...])
    q = _mm(y, wq[...]) + bq[...]
    k = _mm(y, wk[...]) + bk[...]
    v = _mm(y, wv[...]) + bv[...]
    x = x + _mha_project(q, k, v, pw[...], V_HEADS) + pb[...]
    y = _ln(x, n2g[...], n2b[...])
    # TODO(synk): torch.nn.GELU is exact erf-GELU; tanh approximation used for Mosaic-safe lowering.
    hmid = jax.nn.gelu(_mm(y, f1w[...]) + f1b[...], approximate=True)
    x = x + _mm(hmid, f2w[...]) + f2b[...]
    o_ref[0] = x


def _visual_head_kernel(x_ref, w_ref, b_ref, g_ref, bb_ref, o_ref):
    xq = x_ref[0][:QUERY_LEN, :]
    y = _mm(xq, w_ref[...]) + b_ref[...]
    o_ref[0] = _ln(y, g_ref[...], bb_ref[...])


def _make_llama_block_kernel(with_adapter):
    def kernel(*refs):
        if with_adapter:
            (h_ref, ad_ref, cos_ref, sin_ref, anw, wq, bq, wk, wv, wo, bo, gate,
             fnw, w1, b1, w3, b3, w2, b2, o_ref) = refs
        else:
            (h_ref, cos_ref, sin_ref, anw, wq, bq, wk, wv, wo, bo,
             fnw, w1, b1, w3, b3, w2, b2, o_ref) = refs
            ad_ref = gate = None

        x = h_ref[0]                                     # (S, D)
        S = x.shape[0]
        cos, sin = cos_ref[...], sin_ref[...]            # (S, HEAD_DIM // 2)

        # ---- attention (fused rmsnorm + QKV + RoPE + SDPA + adapter prefix + out proj)
        y = _rms(x, anw[...])
        q = _mm(y, wq[...]) + bq[...]                    # per-head [real|imag] column layout
        k = _mm(y, wk[...])                              # per-head [real|imag] column layout
        v = _mm(y, wv[...])                              # original column layout
        if with_adapter:
            ad = ad_ref[0]                               # (AL, D)
            ak = _mm(ad, wk[...])                        # not RoPE'd (as in the reference)
            av = _mm(ad, wv[...])
            g = gate[...]                                # (1, N_HEADS) = tanh(gate)

        row = jax.lax.broadcasted_iota(jnp.int32, (S, S), 0)
        col = jax.lax.broadcasted_iota(jnp.int32, (S, S), 1)
        mask = jnp.where(col > row, _NEG_INF, 0.0).astype(jnp.float32)

        d2 = HEAD_DIM // 2
        wo_v = wo[...]
        attn = None
        for hh in range(N_HEADS):
            base = hh * HEAD_DIM
            qr = q[:, base:base + d2]
            qi = q[:, base + d2:base + HEAD_DIM]
            kr = k[:, base:base + d2]
            ki = k[:, base + d2:base + HEAD_DIM]
            # RoPE (interleaved complex pairing, done on the [real|imag] halves)
            qr2 = qr * cos - qi * sin
            qi2 = qr * sin + qi * cos
            kr2 = kr * cos - ki * sin
            ki2 = kr * sin + ki * cos
            s = (_mm_t(qr2, kr2) + _mm_t(qi2, ki2)) * _ATTN_SCALE + mask
            o_h = _mm(_softmax(s), v[:, base:base + HEAD_DIM])
            if with_adapter:
                akr = ak[:, base:base + d2]
                aki = ak[:, base + d2:base + HEAD_DIM]
                sa = (_mm_t(qr2, akr) + _mm_t(qi2, aki)) * _ATTN_SCALE
                oa = _mm(_softmax(sa), av[:, base:base + HEAD_DIM])
                o_h = o_h + g[:, hh:hh + 1] * oa         # per-head gated prefix attention
            proj = _mm(o_h, wo_v[base:base + HEAD_DIM, :])
            attn = proj if attn is None else attn + proj
        h1 = x + attn + bo[...]

        # ---- SwiGLU feed-forward (fused rmsnorm + w1/w3/w2)
        y2 = _rms(h1, fnw[...])
        a1 = _mm(y2, w1[...]) + b1[...]
        a1 = a1 * jax.nn.sigmoid(a1)                     # SiLU
        a3 = _mm(y2, w3[...]) + b3[...]
        o_ref[0] = h1 + _mm(a1 * a3, w2[...]) + b2[...]
    return kernel


_LLAMA_BLOCK_PLAIN = _make_llama_block_kernel(False)
_LLAMA_BLOCK_ADAPTER = _make_llama_block_kernel(True)


def _loss_kernel(h_ref, lbl_ref, nw_ref, ow_ref, loss_ref, cnt_ref):
    # fused final rmsnorm + output projection + token-shifted CE (ignore_index=0),
    # reduced to scalar loss-sum / valid-count inside the kernel.
    Sm1 = lbl_ref.shape[1]
    total = jnp.zeros((1, 1), jnp.float32)
    count = jnp.zeros((1, 1), jnp.float32)
    for b in range(h_ref.shape[0]):
        y = _rms(h_ref[b], nw_ref[...])                  # (S, D)
        logits = _mm(y[:Sm1, :], ow_ref[...])            # (S-1, V)
        lbl = lbl_ref[b]                                 # (S-1, 1) int32
        m = jnp.max(logits, axis=-1, keepdims=True)
        lse = jnp.log(jnp.sum(jnp.exp(logits - m), axis=-1, keepdims=True)) + m
        colv = jax.lax.broadcasted_iota(jnp.int32, logits.shape, 1)
        tgt = jnp.sum(jnp.where(colv == lbl, logits, 0.0), axis=-1, keepdims=True)
        valid = (lbl != 0).astype(jnp.float32)
        total = total + jnp.sum((lse - tgt) * valid, axis=0, keepdims=True)
        count = count + jnp.sum(valid, axis=0, keepdims=True)
    loss_ref[...] = total
    cnt_ref[...] = count


# ------------------------------ pallas_call plumbing --------------------------------
def _run_block(kernel, batched, shared, out_inner):
    """Grid over the leading batch axis of `batched`; `shared` arrays are resident."""
    bsz = batched[0].shape[0]

    def bspec(a):
        nd = a.ndim
        return pl.BlockSpec((1,) + tuple(a.shape[1:]),
                            lambda b, _n=nd: (b,) + (0,) * (_n - 1))

    def sspec(a):
        nd = a.ndim
        return pl.BlockSpec(tuple(a.shape), lambda b, _n=nd: (0,) * _n)

    out_nd = 1 + len(out_inner)
    return pl.pallas_call(
        kernel,
        grid=(bsz,),
        in_specs=[bspec(a) for a in batched] + [sspec(a) for a in shared],
        out_specs=pl.BlockSpec((1,) + tuple(out_inner),
                               lambda b, _n=out_nd: (b,) + (0,) * (_n - 1)),
        out_shape=jax.ShapeDtypeStruct((bsz,) + tuple(out_inner), jnp.float32),
        compiler_params=pltpu.CompilerParams(dimension_semantics=("parallel",)),
    )(*batched, *shared)


def _run_full(kernel, args, out_shapes):
    """Single invocation (grid=(1,)) with every array as one full VMEM block."""
    in_specs = [pl.BlockSpec(tuple(a.shape), lambda i, _n=a.ndim: (0,) * _n)
                for a in args]
    out_specs = tuple(pl.BlockSpec(tuple(o.shape), lambda i, _n=len(o.shape): (0,) * _n)
                      for o in out_shapes)
    return pl.pallas_call(
        kernel,
        grid=(1,),
        in_specs=in_specs,
        out_specs=out_specs,
        out_shape=tuple(out_shapes),
        compiler_params=pltpu.CompilerParams(dimension_semantics=("arbitrary",)),
    )(*args)


# ----------------------------- model components (wrappers) --------------------------
def forward_visual(p, imgs):
    B, C = imgs.shape[0], imgs.shape[1]
    N = B * C
    x = imgs.reshape(N, 3, IMG, IMG)

    # patchify conv (stride = patch, no bias) as im2col + fused embed kernel
    hp = IMG // PATCH
    patches = x.reshape(N, 3, hp, PATCH, hp, PATCH).transpose(0, 2, 4, 1, 3, 5)
    patches = patches.reshape(N, hp * hp, 3 * PATCH * PATCH)
    conv_w = p["conv1_w"].reshape(CLIP_W, 3 * PATCH * PATCH).T
    ln_pre_g, ln_pre_b = p["ln_pre"]
    xk = _run_block(
        _clip_embed_kernel, [patches],
        [conv_w, p["class_emb"].reshape(1, CLIP_W), p["pos_emb"],
         ln_pre_g.reshape(1, CLIP_W), ln_pre_b.reshape(1, CLIP_W)],
        (CLIP_SEQ, CLIP_W))

    for blk in p["clip_blocks"]:
        xk = _run_block(
            _clip_block_kernel, [xk],
            [blk["ln1"][0].reshape(1, CLIP_W), blk["ln1"][1].reshape(1, CLIP_W),
             blk["wq"], blk["bq"].reshape(1, CLIP_W),
             blk["wk"], blk["bk"].reshape(1, CLIP_W),
             blk["wv"], blk["bv"].reshape(1, CLIP_W),
             blk["wo"], blk["bo"].reshape(1, CLIP_W),
             blk["ln2"][0].reshape(1, CLIP_W), blk["ln2"][1].reshape(1, CLIP_W),
             blk["fc_w"], blk["fc_b"].reshape(1, 4 * CLIP_W),
             blk["cproj_w"], blk["cproj_b"].reshape(1, CLIP_W)],
            (CLIP_SEQ, CLIP_W))

    clip_feats = _run_block(
        _clip_head_kernel, [xk],
        [p["ln_post"][0].reshape(1, CLIP_W), p["ln_post"][1].reshape(1, CLIP_W),
         p["clip_visual_proj"],
         p["clip_proj_w"], p["clip_proj_b"].reshape(1, V_EMBED),
         p["clip_proj_norm"][0].reshape(1, V_EMBED),
         p["clip_proj_norm"][1].reshape(1, V_EMBED)],
        (CLIP_SEQ, V_EMBED))

    clip_feats = clip_feats.reshape(B, C * CLIP_SEQ, V_EMBED)
    vq = jnp.broadcast_to(p["visual_query"][None], (B, QUERY_LEN, V_EMBED))
    xv = jnp.concatenate([vq, clip_feats], axis=1)                # (B, QL + C*SEQ, V)
    seq = QUERY_LEN + C * CLIP_SEQ

    for blk in p["visual_blocks"]:
        # split fused qkv weights (layout plumbing, done in glue)
        wq = blk["qkv_w"][:, :V_EMBED]
        wk = blk["qkv_w"][:, V_EMBED:2 * V_EMBED]
        wv = blk["qkv_w"][:, 2 * V_EMBED:]
        bq = blk["qkv_b"][:V_EMBED]
        bk = blk["qkv_b"][V_EMBED:2 * V_EMBED]
        bv = blk["qkv_b"][2 * V_EMBED:]
        xv = _run_block(
            _vit_block_kernel, [xv],
            [blk["norm1"][0].reshape(1, V_EMBED), blk["norm1"][1].reshape(1, V_EMBED),
             wq, bq.reshape(1, V_EMBED), wk, bk.reshape(1, V_EMBED),
             wv, bv.reshape(1, V_EMBED),
             blk["proj_w"], blk["proj_b"].reshape(1, V_EMBED),
             blk["norm2"][0].reshape(1, V_EMBED), blk["norm2"][1].reshape(1, V_EMBED),
             blk["fc1_w"], blk["fc1_b"].reshape(1, V_MLP_RATIO * V_EMBED),
             blk["fc2_w"], blk["fc2_b"].reshape(1, V_EMBED)],
            (seq, V_EMBED))

    return _run_block(
        _visual_head_kernel, [xv],
        [p["visual_proj_w"], p["visual_proj_b"].reshape(1, DIM),
         p["visual_proj_norm"][0].reshape(1, DIM),
         p["visual_proj_norm"][1].reshape(1, DIM)],
        (QUERY_LEN, DIM))


def llama_block(h, p, cos, sin, adapter):
    S = h.shape[1]
    perm = jnp.asarray(_ROPE_PERM_LIST, dtype=jnp.int32)
    wq = jnp.take(p["wq"], perm, axis=1)
    bq = jnp.take(p["bq"], perm, axis=0).reshape(1, DIM)
    wk = jnp.take(p["wk"], perm, axis=1)

    shared = [cos, sin, p["attn_norm"].reshape(1, DIM),
              wq, bq, wk, p["wv"], p["wo"], p["bo"].reshape(1, DIM)]
    if adapter is not None:
        shared.append(jnp.tanh(p["gate"]).reshape(1, N_HEADS))
    shared += [p["ffn_norm"].reshape(1, DIM),
               p["w1"], p["b1"].reshape(1, FFN_HIDDEN),
               p["w3"], p["b3"].reshape(1, FFN_HIDDEN),
               p["w2"], p["b2"].reshape(1, DIM)]

    if adapter is None:
        return _run_block(_LLAMA_BLOCK_PLAIN, [h], shared, (S, DIM))
    return _run_block(_LLAMA_BLOCK_ADAPTER, [h, adapter], shared, (S, DIM))


def llama_adapter_forward(p, tokens, labels, imgs):
    visual_query = forward_visual(p, imgs)                         # (B, QUERY_LEN, DIM)

    B, S = tokens.shape
    h = jnp.take(p["tok_emb"], tokens, axis=0)                     # embedding gather (glue)
    cos, sin = p["rope_cos"][:S], p["rope_sin"][:S]

    layers = p["llama_layers"]
    n_plain = len(layers) - QUERY_LAYER
    for layer in layers[:n_plain]:
        h = llama_block(h, layer, cos, sin, None)

    adapter = p["adapter_query"].reshape(QUERY_LAYER, QUERY_LEN, DIM)
    for i, layer in enumerate(layers[n_plain:]):
        dyn = adapter[i][None] + visual_query                      # (B, QUERY_LEN, DIM)
        h = llama_block(h, layer, cos, sin, dyn)

    labels2 = labels[:, 1:].astype(jnp.int32)
    lbl3 = labels2[:, :, None]                                     # (B, S-1, 1)
    loss_sum, cnt = _run_full(
        _loss_kernel,
        [h, lbl3, p["norm"].reshape(1, DIM), p["output_w"]],
        [jax.ShapeDtypeStruct((1, 1), jnp.float32),
         jax.ShapeDtypeStruct((1, 1), jnp.float32)])
    ce = loss_sum[0, 0] / jnp.maximum(cnt[0, 0], 1.0)
    c_loss = jnp.where(jnp.sum(labels2) == 0, 0.0, ce)             # labels.sum()==0 branch
    return c_loss, c_loss


# ------------------------------ parameter init ------------------------------------
def init_params(key):
    keys = iter(jax.random.split(key, 512))

    def W(*shape, scale=0.02):
        return (scale * jax.random.normal(next(keys), shape)).astype(jnp.float32)

    def ones(*shape):
        return jnp.ones(shape, jnp.float32)

    p = {}
    # CLIP visual tower
    p["conv1_w"] = W(CLIP_W, 3, PATCH, PATCH)
    p["class_emb"] = W(CLIP_W)
    p["pos_emb"] = W(CLIP_SEQ, CLIP_W)
    p["ln_pre"] = (ones(CLIP_W), W(CLIP_W, scale=0.01))
    p["clip_blocks"] = [dict(
        ln1=(ones(CLIP_W), W(CLIP_W, scale=0.01)),
        wq=W(CLIP_W, CLIP_W), bq=W(CLIP_W, scale=0.01),
        wk=W(CLIP_W, CLIP_W), bk=W(CLIP_W, scale=0.01),
        wv=W(CLIP_W, CLIP_W), bv=W(CLIP_W, scale=0.01),
        wo=W(CLIP_W, CLIP_W), bo=W(CLIP_W, scale=0.01),
        ln2=(ones(CLIP_W), W(CLIP_W, scale=0.01)),
        fc_w=W(CLIP_W, 4 * CLIP_W), fc_b=W(4 * CLIP_W, scale=0.01),
        cproj_w=W(4 * CLIP_W, CLIP_W), cproj_b=W(CLIP_W, scale=0.01),
    ) for _ in range(CLIP_DEPTH)]
    p["ln_post"] = (ones(CLIP_W), W(CLIP_W, scale=0.01))
    p["clip_visual_proj"] = W(CLIP_W, CLIP_OUT)
    # adapter visual pipeline
    p["clip_proj_w"] = W(CLIP_OUT, V_EMBED); p["clip_proj_b"] = W(V_EMBED, scale=0.01)
    p["clip_proj_norm"] = (ones(V_EMBED), W(V_EMBED, scale=0.01))
    p["visual_query"] = W(QUERY_LEN, V_EMBED)
    p["visual_blocks"] = [dict(
        norm1=(ones(V_EMBED), W(V_EMBED, scale=0.01)),
        qkv_w=W(V_EMBED, 3 * V_EMBED), qkv_b=W(3 * V_EMBED, scale=0.01),
        proj_w=W(V_EMBED, V_EMBED), proj_b=W(V_EMBED, scale=0.01),
        norm2=(ones(V_EMBED), W(V_EMBED, scale=0.01)),
        fc1_w=W(V_EMBED, V_MLP_RATIO * V_EMBED), fc1_b=W(V_MLP_RATIO * V_EMBED, scale=0.01),
        fc2_w=W(V_MLP_RATIO * V_EMBED, V_EMBED), fc2_b=W(V_EMBED, scale=0.01),
    ) for _ in range(V_DEPTH)]
    p["visual_proj_w"] = W(V_EMBED, DIM); p["visual_proj_b"] = W(DIM, scale=0.01)
    p["visual_proj_norm"] = (ones(DIM), W(DIM, scale=0.01))
    p["adapter_query"] = W(QUERY_LEN * QUERY_LAYER, DIM)
    # LLaMA trunk (w_bias=True: biases on wq/wo and FFN)
    p["tok_emb"] = W(VOCAB, DIM)
    p["llama_layers"] = [dict(
        attn_norm=ones(DIM),
        wq=W(DIM, DIM), bq=W(DIM, scale=0.01),
        wk=W(DIM, DIM), wv=W(DIM, DIM),
        wo=W(DIM, DIM), bo=W(DIM, scale=0.01),
        gate=W(N_HEADS, scale=0.5),
        ffn_norm=ones(DIM),
        w1=W(DIM, FFN_HIDDEN), b1=W(FFN_HIDDEN, scale=0.01),
        w2=W(FFN_HIDDEN, DIM), b2=W(DIM, scale=0.01),
        w3=W(DIM, FFN_HIDDEN), b3=W(FFN_HIDDEN, scale=0.01),
    ) for _ in range(N_LAYERS)]
    p["norm"] = ones(DIM)
    p["output_w"] = W(DIM, VOCAB)
    # RoPE tables (llama precompute_freqs_cis with theta=10000, end=2*max_seq_len)
    freqs = 1.0 / (10000.0 ** (jnp.arange(0, HEAD_DIM, 2, dtype=jnp.float32) / HEAD_DIM))
    t = jnp.arange(MAX_SEQ * 2, dtype=jnp.float32)
    angles = jnp.outer(t, freqs)
    p["rope_cos"] = jnp.cos(angles)
    p["rope_sin"] = jnp.sin(angles)
    return p


# ------------------------------------ main -----------------------------------------
if __name__ == "__main__":
    params = init_params(jax.random.PRNGKey(0))
    k1, k2, k3 = jax.random.split(jax.random.PRNGKey(0), 3)
    B = 2
    imgs = jax.random.normal(k1, (B, 1, 3, IMG, IMG), dtype=jnp.float32)   # (B, n_imgs, 3, H, W)
    tokens = jax.random.randint(k2, (B, MAX_SEQ), 0, VOCAB)
    labels = jax.random.randint(k3, (B, MAX_SEQ), 1, VOCAB)                # nonzero -> CE branch

    fwd = jax.jit(llama_adapter_forward)
    c_loss, c_loss2 = fwd(params, tokens, labels, imgs)
    jax.block_until_ready(c_loss)
    print("KERNEL_OK")
</pallas_src>

<mosaic_0001>
module attributes {stable_mosaic.version = 11 : i64} {
  func.func @_clip_embed_kernel(%arg0: i32, %arg1: memref<1x4x192xf32, #tpu.memory_space<vmem>>, %arg2: memref<192x32xf32, #tpu.memory_space<vmem>>, %arg3: memref<1x32xf32, #tpu.memory_space<vmem>>, %arg4: memref<5x32xf32, #tpu.memory_space<vmem>>, %arg5: memref<1x32xf32, #tpu.memory_space<vmem>>, %arg6: memref<1x32xf32, #tpu.memory_space<vmem>>, %arg7: memref<1x5x32xf32, #tpu.memory_space<vmem>>) attributes {dimension_semantics = [#tpu.dimension_semantics<parallel>], iteration_bounds = array<i64: 2>, scalar_prefetch = 0 : i64, scratch_operands = 0 : i64, tpu.core_type = #tpu.core_type<tc>, window_params = [{transform_indices = @transform_0, window_bounds = array<i64: 1, 4, 192>}, {pipeline_mode = #tpu.pipeline_mode<synchronous>, transform_indices = @transform_1, window_bounds = array<i64: 192, 32>}, {pipeline_mode = #tpu.pipeline_mode<synchronous>, transform_indices = @transform_2, window_bounds = array<i64: 1, 32>}, {pipeline_mode = #tpu.pipeline_mode<synchronous>, transform_indices = @transform_3, window_bounds = array<i64: 5, 32>}, {pipeline_mode = #tpu.pipeline_mode<synchronous>, transform_indices = @transform_4, window_bounds = array<i64: 1, 32>}, {pipeline_mode = #tpu.pipeline_mode<synchronous>, transform_indices = @transform_5, window_bounds = array<i64: 1, 32>}, {transform_indices = @transform_6, window_bounds = array<i64: 1, 5, 32>}]} {
    %c0 = arith.constant 0 : index
    %c0_0 = arith.constant 0 : index
    %c0_1 = arith.constant 0 : index
    %0 = vector.load %arg1[%c0, %c0_0, %c0_1] : memref<1x4x192xf32, #tpu.memory_space<vmem>>, vector<1x4x192xf32>
    %1 = vector.shape_cast %0 : vector<1x4x192xf32> to vector<4x192xf32>
    %c0_2 = arith.constant 0 : index
    %c0_3 = arith.constant 0 : index
    %2 = vector.load %arg2[%c0_2, %c0_3] : memref<192x32xf32, #tpu.memory_space<vmem>>, vector<192x32xf32>
    %3 = arith.truncf %1 : vector<4x192xf32> to vector<4x192xbf16>
    %4 = arith.truncf %2 : vector<192x32xf32> to vector<192x32xbf16>
    %cst = arith.constant dense<0.000000e+00> : vector<4x32xf32>
    %5 = tpu.matmul %3, %4, %cst {dimension_numbers = #tpu.dot_dimension_numbers<[1], [0], [0], [1], [0, 0, 1, 1], [], []>} : vector<4x192xbf16>, vector<192x32xbf16>, vector<4x32xf32> -> vector<4x32xf32>
    %c0_4 = arith.constant 0 : index
    %c0_5 = arith.constant 0 : index
    %6 = vector.load %arg4[%c0_4, %c0_5] : memref<5x32xf32, #tpu.memory_space<vmem>>, vector<5x32xf32>
    %c0_6 = arith.constant 0 : index
    %c0_7 = arith.constant 0 : index
    %7 = vector.load %arg5[%c0_6, %c0_7] : memref<1x32xf32, #tpu.memory_space<vmem>>, vector<1x32xf32>
    %c0_8 = arith.constant 0 : index
    %c0_9 = arith.constant 0 : index
    %8 = vector.load %arg6[%c0_8, %c0_9] : memref<1x32xf32, #tpu.memory_space<vmem>>, vector<1x32xf32>
    %c0_10 = arith.constant 0 : index
    %c0_11 = arith.constant 0 : index
    %9 = vector.load %arg3[%c0_10, %c0_11] : memref<1x32xf32, #tpu.memory_space<vmem>>, vector<1x32xf32>
    %10 = vector.extract_strided_slice %6 {offsets = [0, 0], sizes = [1, 32], strides = [1, 1]} : vector<5x32xf32> to vector<1x32xf32>
    %11 = arith.addf %9, %10 : vector<1x32xf32>
    %12 = vector.extract_strided_slice %6 {offsets = [1, 0], sizes = [4, 32], strides = [1, 1]} : vector<5x32xf32> to vector<4x32xf32>
    %13 = arith.addf %5, %12 : vector<4x32xf32>
    %cst_12 = arith.constant dense<0.000000e+00> : vector<1xf32>
    %14 = vector.multi_reduction <add>, %11, %cst_12 [1] : vector<1x32xf32> to vector<1xf32>
    %15 = vector.shape_cast %14 : vector<1xf32> to vector<1x1xf32>
    %cst_13 = arith.constant 3.200000e+01 : f32
    %16 = vector.broadcast %cst_13 : f32 to vector<1x1xf32>
    %17 = arith.divf %15, %16 : vector<1x1xf32>
    %18 = vector.broadcast %17 : vector<1x1xf32> to vector<1x32xf32>
    %19 = arith.subf %11, %18 : vector<1x32xf32>
    %20 = vector.broadcast %17 : vector<1x1xf32> to vector<1x32xf32>
    %21 = arith.subf %11, %20 : vector<1x32xf32>
    %22 = arith.mulf %19, %21 : vector<1x32xf32>
    %cst_14 = arith.constant dense<0.000000e+00> : vector<1xf32>
    %23 = vector.multi_reduction <add>, %22, %cst_14 [1] : vector<1x32xf32> to vector<1xf32>
    %24 = vector.shape_cast %23 : vector<1xf32> to vector<1x1xf32>
    %cst_15 = arith.constant 3.200000e+01 : f32
    %25 = vector.broadcast %cst_15 : f32 to vector<1x1xf32>
    %26 = arith.divf %24, %25 : vector<1x1xf32>
    %27 = vector.broadcast %17 : vector<1x1xf32> to vector<1x32xf32>
    %28 = arith.subf %11, %27 : vector<1x32xf32>
    %cst_16 = arith.constant 9.99999974E-6 : f32
    %29 = vector.broadcast %cst_16 : f32 to vector<1x1xf32>
    %30 = arith.addf %26, %29 : vector<1x1xf32>
    %31 = math.rsqrt %30 : vector<1x1xf32>
    %32 = vector.broadcast %31 : vector<1x1xf32> to vector<1x32xf32>
    %33 = arith.mulf %28, %32 : vector<1x32xf32>
    %34 = arith.mulf %33, %7 : vector<1x32xf32>
    %35 = arith.addf %34, %8 : vector<1x32xf32>
    %c0_17 = arith.constant 0 : index
    %c0_18 = arith.constant 0 : index
    %c0_19 = arith.constant 0 : index
    %36 = vector.load %arg7[%c0_17, %c0_18, %c0_19] : memref<1x5x32xf32, #tpu.memory_space<vmem>>, vector<1x1x32xf32>
    %37 = vector.shape_cast %36 : vector<1x1x32xf32> to vector<1x32xf32>
    %38 = vector.shape_cast %35 : vector<1x32xf32> to vector<1x1x32xf32>
    tpu.vector_store %arg7[%c0_17, %c0_18, %c0_19], %38 {strides = array<i32>} : memref<1x5x32xf32, #tpu.memory_space<vmem>>, vector<1x1x32xf32>,
    %cst_20 = arith.constant dense<0.000000e+00> : vector<4xf32>
    %39 = vector.multi_reduction <add>, %13, %cst_20 [1] : vector<4x32xf32> to vector<4xf32>
    %40 = vector.shape_cast %39 : vector<4xf32> to vector<4x1xf32>
    %cst_21 = arith.constant 3.200000e+01 : f32
    %41 = vector.broadcast %cst_21 : f32 to vector<4x1xf32>
    %42 = arith.divf %40, %41 : vector<4x1xf32>
    %43 = vector.broadcast %42 : vector<4x1xf32> to vector<4x32xf32>
    %44 = arith.subf %13, %43 : vector<4x32xf32>
    %45 = vector.broadcast %42 : vector<4x1xf32> to vector<4x32xf32>
    %46 = arith.subf %13, %45 : vector<4x32xf32>
    %47 = arith.mulf %44, %46 : vector<4x32xf32>
    %cst_22 = arith.constant dense<0.000000e+00> : vector<4xf32>
    %48 = vector.multi_reduction <add>, %47, %cst_22 [1] : vector<4x32xf32> to vector<4xf32>
    %49 = vector.shape_cast %48 : vector<4xf32> to vector<4x1xf32>
    %cst_23 = arith.constant 3.200000e+01 : f32
    %50 = vector.broadcast %cst_23 : f32 to vector<4x1xf32>
    %51 = arith.divf %49, %50 : vector<4x1xf32>
    %52 = vector.broadcast %42 : vector<4x1xf32> to vector<4x32xf32>
    %53 = arith.subf %13, %52 : vector<4x32xf32>
    %cst_24 = arith.constant 9.99999974E-6 : f32
    %54 = vector.broadcast %cst_24 : f32 to vector<4x1xf32>
    %55 = arith.addf %51, %54 : vector<4x1xf32>
    %56 = math.rsqrt %55 : vector<4x1xf32>
    %57 = vector.broadcast %56 : vector<4x1xf32> to vector<4x32xf32>
    %58 = arith.mulf %53, %57 : vector<4x32xf32>
    %59 = vector.broadcast %7 : vector<1x32xf32> to vector<4x32xf32>
    %60 = arith.mulf %58, %59 : vector<4x32xf32>
    %61 = vector.broadcast %8 : vector<1x32xf32> to vector<4x32xf32>
    %62 = arith.addf %60, %61 : vector<4x32xf32>
    %c0_25 = arith.constant 0 : index
    %c1 = arith.constant 1 : index
    %c0_26 = arith.constant 0 : index
    %63 = vector.load %arg7[%c0_25, %c1, %c0_26] : memref<1x5x32xf32, #tpu.memory_space<vmem>>, vector<1x4x32xf32>
    %64 = vector.shape_cast %63 : vector<1x4x32xf32> to vector<4x32xf32>
    %65 = vector.shape_cast %62 : vector<4x32xf32> to vector<1x4x32xf32>
    tpu.vector_store %arg7[%c0_25, %c1, %c0_26], %65 {strides = array<i32>} : memref<1x5x32xf32, #tpu.memory_space<vmem>>, vector<1x4x32xf32>,
    return
  }
  func.func @transform_0(%arg0: i32) -> (i32, i32, i32) {
    %c0_i32 = arith.constant 0 : i32
    %c0_i32_0 = arith.constant 0 : i32
    %c0_i32_1 = arith.constant 0 : i32
    return %arg0, %c0_i32, %c0_i32_0 : i32, i32, i32
  }
  func.func @transform_1(%arg0: i32) -> (i32, i32) {
    %c0_i32 = arith.constant 0 : i32
    %c0_i32_0 = arith.constant 0 : i32
    %c0_i32_1 = arith.constant 0 : i32
    return %c0_i32, %c0_i32_0 : i32, i32
  }
  func.func @transform_2(%arg0: i32) -> (i32, i32) {
    %c0_i32 = arith.constant 0 : i32
    %c0_i32_0 = arith.constant 0 : i32
    %c0_i32_1 = arith.constant 0 : i32
    return %c0_i32, %c0_i32_0 : i32, i32
  }
  func.func @transform_3(%arg0: i32) -> (i32, i32) {
    %c0_i32 = arith.constant 0 : i32
    %c0_i32_0 = arith.constant 0 : i32
    %c0_i32_1 = arith.constant 0 : i32
    return %c0_i32, %c0_i32_0 : i32, i32
  }
  func.func @transform_4(%arg0: i32) -> (i32, i32) {
    %c0_i32 = arith.constant 0 : i32
    %c0_i32_0 = arith.constant 0 : i32
    %c0_i32_1 = arith.constant 0 : i32
    return %c0_i32, %c0_i32_0 : i32, i32
  }
  func.func @transform_5(%arg0: i32) -> (i32, i32) {
    %c0_i32 = arith.constant 0 : i32
    %c0_i32_0 = arith.constant 0 : i32
    %c0_i32_1 = arith.constant 0 : i32
    return %c0_i32, %c0_i32_0 : i32, i32
  }
  func.func @transform_6(%arg0: i32) -> (i32, i32, i32) {
    %c0_i32 = arith.constant 0 : i32
    %c0_i32_0 = arith.constant 0 : i32
    %c0_i32_1 = arith.constant 0 : i32
    return %arg0, %c0_i32, %c0_i32_0 : i32, i32, i32
  }
}

module attributes {stable_mosaic.version = 11 : i64} {
  func.func @kernel(%arg0: i32, %arg1: memref<1x8x32xf32, #tpu.memory_space<vmem>>, %arg2: memref<8x4xf32, #tpu.memory_space<vmem>>, %arg3: memref<8x4xf32, #tpu.memory_space<vmem>>, %arg4: memref<1x32xf32, #tpu.memory_space<vmem>>, %arg5: memref<32x32xf32, #tpu.memory_space<vmem>>, %arg6: memref<1x32xf32, #tpu.memory_space<vmem>>, %arg7: memref<32x32xf32, #tpu.memory_space<vmem>>, %arg8: memref<32x32xf32, #tpu.memory_space<vmem>>, %arg9: memref<32x32xf32, #tpu.memory_space<vmem>>, %arg10: memref<1x32xf32, #tpu.memory_space<vmem>>, %arg11: memref<1x32xf32, #tpu.memory_space<vmem>>, %arg12: memref<32x96xf32, #tpu.memory_space<vmem>>, %arg13: memref<1x96xf32, #tpu.memory_space<vmem>>, %arg14: memref<32x96xf32, #tpu.memory_space<vmem>>, %arg15: memref<1x96xf32, #tpu.memory_space<vmem>>, %arg16: memref<96x32xf32, #tpu.memory_space<vmem>>, %arg17: memref<1x32xf32, #tpu.memory_space<vmem>>, %arg18: memref<1x8x32xf32, #tpu.memory_space<vmem>>) attributes {dimension_semantics = [#tpu.dimension_semantics<parallel>], iteration_bounds = array<i64: 2>, scalar_prefetch = 0 : i64, scratch_operands = 0 : i64, tpu.core_type = #tpu.core_type<tc>, window_params = [{transform_indices = @transform_0, window_bounds = array<i64: 1, 8, 32>}, {pipeline_mode = #tpu.pipeline_mode<synchronous>, transform_indices = @transform_1, window_bounds = array<i64: 8, 4>}, {pipeline_mode = #tpu.pipeline_mode<synchronous>, transform_indices = @transform_2, window_bounds = array<i64: 8, 4>}, {pipeline_mode = #tpu.pipeline_mode<synchronous>, transform_indices = @transform_3, window_bounds = array<i64: 1, 32>}, {pipeline_mode = #tpu.pipeline_mode<synchronous>, transform_indices = @transform_4, window_bounds = array<i64: 32, 32>}, {pipeline_mode = #tpu.pipeline_mode<synchronous>, transform_indices = @transform_5, window_bounds = array<i64: 1, 32>}, {pipeline_mode = #tpu.pipeline_mode<synchronous>, transform_indices = @transform_6, window_bounds = array<i64: 32, 32>}, {pipeline_mode = #tpu.pipeline_mode<synchronous>, transform_indices = @transform_7, window_bounds = array<i64: 32, 32>}, {pipeline_mode = #tpu.pipeline_mode<synchronous>, transform_indices = @transform_8, window_bounds = array<i64: 32, 32>}, {pipeline_mode = #tpu.pipeline_mode<synchronous>, transform_indices = @transform_9, window_bounds = array<i64: 1, 32>}, {pipeline_mode = #tpu.pipeline_mode<synchronous>, transform_indices = @transform_10, window_bounds = array<i64: 1, 32>}, {pipeline_mode = #tpu.pipeline_mode<synchronous>, transform_indices = @transform_11, window_bounds = array<i64: 32, 96>}, {pipeline_mode = #tpu.pipeline_mode<synchronous>, transform_indices = @transform_12, window_bounds = array<i64: 1, 96>}, {pipeline_mode = #tpu.pipeline_mode<synchronous>, transform_indices = @transform_13, window_bounds = array<i64: 32, 96>}, {pipeline_mode = #tpu.pipeline_mode<synchronous>, transform_indices = @transform_14, window_bounds = array<i64: 1, 96>}, {pipeline_mode = #tpu.pipeline_mode<synchronous>, transform_indices = @transform_15, window_bounds = array<i64: 96, 32>}, {pipeline_mode = #tpu.pipeline_mode<synchronous>, transform_indices = @transform_16, window_bounds = array<i64: 1, 32>}, {transform_indices = @transform_17, window_bounds = array<i64: 1, 8, 32>}]} {
    %c0 = arith.constant 0 : index
    %c0_0 = arith.constant 0 : index
    %c0_1 = arith.constant 0 : index
    %0 = vector.load %arg1[%c0, %c0_0, %c0_1] : memref<1x8x32xf32, #tpu.memory_space<vmem>>, vector<1x8x32xf32>
    %1 = vector.shape_cast %0 : vector<1x8x32xf32> to vector<8x32xf32>
    %c0_2 = arith.constant 0 : index
    %c0_3 = arith.constant 0 : index
    %2 = vector.load %arg2[%c0_2, %c0_3] : memref<8x4xf32, #tpu.memory_space<vmem>>, vector<8x4xf32>
    %c0_4 = arith.constant 0 : index
    %c0_5 = arith.constant 0 : index
    %3 = vector.load %arg3[%c0_4, %c0_5] : memref<8x4xf32, #tpu.memory_space<vmem>>, vector<8x4xf32>
    %c0_6 = arith.constant 0 : index
    %c0_7 = arith.constant 0 : index
    %4 = vector.load %arg4[%c0_6, %c0_7] : memref<1x32xf32, #tpu.memory_space<vmem>>, vector<1x32xf32>
    %5 = arith.mulf %1, %1 : vector<8x32xf32>
    %cst = arith.constant dense<0.000000e+00> : vector<8xf32>
    %6 = vector.multi_reduction <add>, %5, %cst [1] : vector<8x32xf32> to vector<8xf32>
    %7 = vector.shape_cast %6 : vector<8xf32> to vector<8x1xf32>
    %cst_8 = arith.constant 3.200000e+01 : f32
    %8 = vector.broadcast %cst_8 : f32 to vector<8x1xf32>
    %9 = arith.divf %7, %8 : vector<8x1xf32>
    %cst_9 = arith.constant 9.99999974E-6 : f32
    %10 = vector.broadcast %cst_9 : f32 to vector<8x1xf32>
    %11 = arith.addf %9, %10 : vector<8x1xf32>
    %12 = math.rsqrt %11 : vector<8x1xf32>
    %13 = vector.broadcast %12 : vector<8x1xf32> to vector<8x32xf32>
    %14 = arith.mulf %1, %13 : vector<8x32xf32>
    %15 = vector.broadcast %4 : vector<1x32xf32> to vector<8x32xf32>
    %16 = arith.mulf %14, %15 : vector<8x32xf32>
    %c0_10 = arith.constant 0 : index
    %c0_11 = arith.constant 0 : index
    %17 = vector.load %arg5[%c0_10, %c0_11] : memref<32x32xf32, #tpu.memory_space<vmem>>, vector<32x32xf32>
    %18 = arith.truncf %16 : vector<8x32xf32> to vector<8x32xbf16>
    %19 = arith.truncf %17 : vector<32x32xf32> to vector<32x32xbf16>
    %cst_12 = arith.constant dense<0.000000e+00> : vector<8x32xf32>
    %20 = tpu.matmul %18, %19, %cst_12 {dimension_numbers = #tpu.dot_dimension_numbers<[1], [0], [0], [1], [0, 0, 1, 1], [], []>} : vector<8x32xbf16>, vector<32x32xbf16>, vector<8x32xf32> -> vector<8x32xf32>
    %c0_13 = arith.constant 0 : index
    %c0_14 = arith.constant 0 : index
    %21 = vector.load %arg6[%c0_13, %c0_14] : memref<1x32xf32, #tpu.memory_space<vmem>>, vector<1x32xf32>
    %22 = vector.broadcast %21 : vector<1x32xf32> to vector<8x32xf32>
    %23 = arith.addf %20, %22 : vector<8x32xf32>
    %c0_15 = arith.constant 0 : index
    %c0_16 = arith.constant 0 : index
    %24 = vector.load %arg7[%c0_15, %c0_16] : memref<32x32xf32, #tpu.memory_space<vmem>>, vector<32x32xf32>
    %25 = arith.truncf %16 : vector<8x32xf32> to vector<8x32xbf16>
    %26 = arith.truncf %24 : vector<32x32xf32> to vector<32x32xbf16>
    %cst_17 = arith.constant dense<0.000000e+00> : vector<8x32xf32>
    %27 = tpu.matmul %25, %26, %cst_17 {dimension_numbers = #tpu.dot_dimension_numbers<[1], [0], [0], [1], [0, 0, 1, 1], [], []>} : vector<8x32xbf16>, vector<32x32xbf16>, vector<8x32xf32> -> vector<8x32xf32>
    %c0_18 = arith.constant 0 : index
    %c0_19 = arith.constant 0 : index
    %28 = vector.load %arg8[%c0_18, %c0_19] : memref<32x32xf32, #tpu.memory_space<vmem>>, vector<32x32xf32>
    %29 = arith.truncf %16 : vector<8x32xf32> to vector<8x32xbf16>
    %30 = arith.truncf %28 : vector<32x32xf32> to vector<32x32xbf16>
    %cst_20 = arith.constant dense<0.000000e+00> : vector<8x32xf32>
    %31 = tpu.matmul %29, %30, %cst_20 {dimension_numbers = #tpu.dot_dimension_numbers<[1], [0], [0], [1], [0, 0, 1, 1], [], []>} : vector<8x32xbf16>, vector<32x32xbf16>, vector<8x32xf32> -> vector<8x32xf32>
    %32 = tpu.iota {dimensions = array<i32: 0>} : vector<8x8xi32>
    %33 = tpu.iota {dimensions = array<i32: 1>} : vector<8x8xi32>
    %34 = arith.cmpi sgt, %33, %32 : vector<8x8xi32>
    %cst_21 = arith.constant -1.000000e+30 : f32
    %cst_22 = arith.constant 0.000000e+00 : f32
    %35 = vector.broadcast %cst_21 : f32 to vector<8x8xf32>
    %36 = vector.broadcast %cst_22 : f32 to vector<8x8xf32>
    %37 = arith.select %34, %35, %36 : vector<8x8xi1>, vector<8x8xf32>
    %c0_23 = arith.constant 0 : index
    %c0_24 = arith.constant 0 : index
    %38 = vector.load %arg9[%c0_23, %c0_24] : memref<32x32xf32, #tpu.memory_space<vmem>>, vector<32x32xf32>
    %39 = vector.extract_strided_slice %23 {offsets = [0, 0], sizes = [8, 4], strides = [1, 1]} : vector<8x32xf32> to vector<8x4xf32>
    %40 = vector.extract_strided_slice %23 {offsets = [0, 4], sizes = [8, 4], strides = [1, 1]} : vector<8x32xf32> to vector<8x4xf32>
    %41 = vector.extract_strided_slice %27 {offsets = [0, 0], sizes = [8, 4], strides = [1, 1]} : vector<8x32xf32> to vector<8x4xf32>
    %42 = vector.extract_strided_slice %27 {offsets = [0, 4], sizes = [8, 4], strides = [1, 1]} : vector<8x32xf32> to vector<8x4xf32>
    %43 = arith.mulf %39, %2 : vector<8x4xf32>
    %44 = arith.mulf %40, %3 : vector<8x4xf32>
    %45 = arith.subf %43, %44 : vector<8x4xf32>
    %46 = arith.mulf %39, %3 : vector<8x4xf32>
    %47 = arith.mulf %40, %2 : vector<8x4xf32>
    %48 = arith.addf %46, %47 : vector<8x4xf32>
    %49 = arith.mulf %41, %2 : vector<8x4xf32>
    %50 = arith.mulf %42, %3 : vector<8x4xf32>
    %51 = arith.subf %49, %50 : vector<8x4xf32>
    %52 = arith.mulf %41, %3 : vector<8x4xf32>
    %53 = arith.mulf %42, %2 : vector<8x4xf32>
    %54 = arith.addf %52, %53 : vector<8x4xf32>
    %55 = arith.truncf %45 : vector<8x4xf32> to vector<8x4xbf16>
    %56 = arith.truncf %51 : vector<8x4xf32> to vector<8x4xbf16>
    %cst_25 = arith.constant dense<0.000000e+00> : vector<8x8xf32>
    %57 = tpu.matmul %55, %56, %cst_25 {dimension_numbers = #tpu.dot_dimension_numbers<[1], [1], [0], [0], [0, 0, 1, 0], [], []>} : vector<8x4xbf16>, vector<8x4xbf16>, vector<8x8xf32> -> vector<8x8xf32>
    %58 = arith.truncf %48 : vector<8x4xf32> to vector<8x4xbf16>
    %59 = arith.truncf %54 : vector<8x4xf32> to vector<8x4xbf16>
    %cst_26 = arith.constant dense<0.000000e+00> : vector<8x8xf32>
    %60 = tpu.matmul %58, %59, %cst_26 {dimension_numbers = #tpu.dot_dimension_numbers<[1], [1], [0], [0], [0, 0, 1, 0], [], []>} : vector<8x4xbf16>, vector<8x4xbf16>, vector<8x8xf32> -> vector<8x8xf32>
    %61 = arith.addf %57, %60 : vector<8x8xf32>
    %cst_27 = arith.constant 0.353553385 : f32
    %62 = vector.broadcast %cst_27 : f32 to vector<8x8xf32>
    %63 = arith.mulf %61, %62 : vector<8x8xf32>
    %64 = arith.addf %63, %37 : vector<8x8xf32>
    %cst_28 = arith.constant dense<0xFF800000> : vector<8xf32>
    %65 = vector.multi_reduction <maximumf>, %64, %cst_28 [1] : vector<8x8xf32> to vector<8xf32>
    %66 = vector.shape_cast %65 : vector<8xf32> to vector<8x1xf32>
    %67 = vector.broadcast %66 : vector<8x1xf32> to vector<8x8xf32>
    %68 = arith.subf %64, %67 : vector<8x8xf32>
    %69 = math.exp %68 : vector<8x8xf32>
    %cst_29 = arith.constant dense<0.000000e+00> : vector<8xf32>
    %70 = vector.multi_reduction <add>, %69, %cst_29 [1] : vector<8x8xf32> to vector<8xf32>
    %71 = vector.shape_cast %70 : vector<8xf32> to vector<8x1xf32>
    %72 = vector.broadcast %71 : vector<8x1xf32> to vector<8x8xf32>
    %73 = arith.divf %69, %72 : vector<8x8xf32>
    %74 = vector.extract_strided_slice %31 {offsets = [0, 0], sizes = [8, 8], strides = [1, 1]} : vector<8x32xf32> to vector<8x8xf32>
    %75 = arith.truncf %73 : vector<8x8xf32> to vector<8x8xbf16>
    %76 = arith.truncf %74 : vector<8x8xf32> to vector<8x8xbf16>
    %cst_30 = arith.constant dense<0.000000e+00> : vector<8x8xf32>
    %77 = tpu.matmul %75, %76, %cst_30 {dimension_numbers = #tpu.dot_dimension_numbers<[1], [0], [0], [1], [0, 0, 1, 1], [], []>} : vector<8x8xbf16>, vector<8x8xbf16>, vector<8x8xf32> -> vector<8x8xf32>
    %78 = vector.extract_strided_slice %38 {offsets = [0, 0], sizes = [8, 32], strides = [1, 1]} : vector<32x32xf32> to vector<8x32xf32>
    %79 = arith.truncf %77 : vector<8x8xf32> to vector<8x8xbf16>
    %80 = arith.truncf %78 : vector<8x32xf32> to vector<8x32xbf16>
    %cst_31 = arith.constant dense<0.000000e+00> : vector<8x32xf32>
    %81 = tpu.matmul %79, %80, %cst_31 {dimension_numbers = #tpu.dot_dimension_numbers<[1], [0], [0], [1], [0, 0, 1, 1], [], []>} : vector<8x8xbf16>, vector<8x32xbf16>, vector<8x32xf32> -> vector<8x32xf32>
    %82 = vector.extract_strided_slice %23 {offsets = [0, 8], sizes = [8, 4], strides = [1, 1]} : vector<8x32xf32> to vector<8x4xf32>
    %83 = vector.extract_strided_slice %23 {offsets = [0, 12], sizes = [8, 4], strides = [1, 1]} : vector<8x32xf32> to vector<8x4xf32>
    %84 = vector.extract_strided_slice %27 {offsets = [0, 8], sizes = [8, 4], strides = [1, 1]} : vector<8x32xf32> to vector<8x4xf32>
    %85 = vector.extract_strided_slice %27 {offsets = [0, 12], sizes = [8, 4], strides = [1, 1]} : vector<8x32xf32> to vector<8x4xf32>
    %86 = arith.mulf %82, %2 : vector<8x4xf32>
    %87 = arith.mulf %83, %3 : vector<8x4xf32>
    %88 = arith.subf %86, %87 : vector<8x4xf32>
    %89 = arith.mulf %82, %3 : vector<8x4xf32>
    %90 = arith.mulf %83, %2 : vector<8x4xf32>
    %91 = arith.addf %89, %90 : vector<8x4xf32>
    %92 = arith.mulf %84, %2 : vector<8x4xf32>
    %93 = arith.mulf %85, %3 : vector<8x4xf32>
    %94 = arith.subf %92, %93 : vector<8x4xf32>
    %95 = arith.mulf %84, %3 : vector<8x4xf32>
    %96 = arith.mulf %85, %2 : vector<8x4xf32>
    %97 = arith.addf %95, %96 : vector<8x4xf32>
    %98 = arith.truncf %88 : vector<8x4xf32> to vector<8x4xbf16>
    %99 = arith.truncf %94 : vector<8x4xf32> to vector<8x4xbf16>
    %cst_32 = arith.constant dense<0.000000e+00> : vector<8x8xf32>
    %100 = tpu.matmul %98, %99, %cst_32 {dimension_numbers = #tpu.dot_dimension_numbers<[1], [1], [0], [0], [0, 0, 1, 0], [], []>} : vector<8x4xbf16>, vector<8x4xbf16>, vector<8x8xf32> -> vector<8x8xf32>
    %101 = arith.truncf %91 : vector<8x4xf32> to vector<8x4xbf16>
    %102 = arith.truncf %97 : vector<8x4xf32> to vector<8x4xbf16>
    %cst_33 = arith.constant dense<0.000000e+00> : vector<8x8xf32>
    %103 = tpu.matmul %101, %102, %cst_33 {dimension_numbers = #tpu.dot_dimension_numbers<[1], [1], [0], [0], [0, 0, 1, 0], [], []>} : vector<8x4xbf16>, vector<8x4xbf16>, vector<8x8xf32> -> vector<8x8xf32>
    %104 = arith.addf %100, %103 : vector<8x8xf32>
    %cst_34 = arith.constant 0.353553385 : f32
    %105 = vector.broadcast %cst_34 : f32 to vector<8x8xf32>
    %106 = arith.mulf %104, %105 : vector<8x8xf32>
    %107 = arith.addf %106, %37 : vector<8x8xf32>
    %cst_35 = arith.constant dense<0xFF800000> : vector<8xf32>
    %108 = vector.multi_reduction <maximumf>, %107, %cst_35 [1] : vector<8x8xf32> to vector<8xf32>
    %109 = vector.shape_cast %108 : vector<8xf32> to vector<8x1xf32>
    %110 = vector.broadcast %109 : vector<8x1xf32> to vector<8x8xf32>
    %111 = arith.subf %107, %110 : vector<8x8xf32>
    %112 = math.exp %111 : vector<8x8xf32>
    %cst_36 = arith.constant dense<0.000000e+00> : vector<8xf32>
    %113 = vector.multi_reduction <add>, %112, %cst_36 [1] : vector<8x8xf32> to vector<8xf32>
    %114 = vector.shape_cast %113 : vector<8xf32> to vector<8x1xf32>
    %115 = vector.broadcast %114 : vector<8x1xf32> to vector<8x8xf32>
    %116 = arith.divf %112, %115 : vector<8x8xf32>
    %117 = vector.extract_strided_slice %31 {offsets = [0, 8], sizes = [8, 8], strides = [1, 1]} : vector<8x32xf32> to vector<8x8xf32>
    %118 = arith.truncf %116 : vector<8x8xf32> to vector<8x8xbf16>
    %119 = arith.truncf %117 : vector<8x8xf32> to vector<8x8xbf16>
    %cst_37 = arith.constant dense<0.000000e+00> : vector<8x8xf32>
    %120 = tpu.matmul %118, %119, %cst_37 {dimension_numbers = #tpu.dot_dimension_numbers<[1], [0], [0], [1], [0, 0, 1, 1], [], []>} : vector<8x8xbf16>, vector<8x8xbf16>, vector<8x8xf32> -> vector<8x8xf32>
    %121 = vector.extract_strided_slice %38 {offsets = [8, 0], sizes = [8, 32], strides = [1, 1]} : vector<32x32xf32> to vector<8x32xf32>
    %122 = arith.truncf %120 : vector<8x8xf32> to vector<8x8xbf16>
    %123 = arith.truncf %121 : vector<8x32xf32> to vector<8x32xbf16>
    %cst_38 = arith.constant dense<0.000000e+00> : vector<8x32xf32>
    %124 = tpu.matmul %122, %123, %cst_38 {dimension_numbers = #tpu.dot_dimension_numbers<[1], [0], [0], [1], [0, 0, 1, 1], [], []>} : vector<8x8xbf16>, vector<8x32xbf16>, vector<8x32xf32> -> vector<8x32xf32>
    %125 = arith.addf %81, %124 : vector<8x32xf32>
    %126 = vector.extract_strided_slice %23 {offsets = [0, 16], sizes = [8, 4], strides = [1, 1]} : vector<8x32xf32> to vector<8x4xf32>
    %127 = vector.extract_strided_slice %23 {offsets = [0, 20], sizes = [8, 4], strides = [1, 1]} : vector<8x32xf32> to vector<8x4xf32>
    %128 = vector.extract_strided_slice %27 {offsets = [0, 16], sizes = [8, 4], strides = [1, 1]} : vector<8x32xf32> to vector<8x4xf32>
    %129 = vector.extract_strided_slice %27 {offsets = [0, 20], sizes = [8, 4], strides = [1, 1]} : vector<8x32xf32> to vector<8x4xf32>
    %130 = arith.mulf %126, %2 : vector<8x4xf32>
    %131 = arith.mulf %127, %3 : vector<8x4xf32>
    %132 = arith.subf %130, %131 : vector<8x4xf32>
    %133 = arith.mulf %126, %3 : vector<8x4xf32>
    %134 = arith.mulf %127, %2 : vector<8x4xf32>
    %135 = arith.addf %133, %134 : vector<8x4xf32>
    %136 = arith.mulf %128, %2 : vector<8x4xf32>
    %137 = arith.mulf %129, %3 : vector<8x4xf32>
    %138 = arith.subf %136, %137 : vector<8x4xf32>
    %139 = arith.mulf %128, %3 : vector<8x4xf32>
    %140 = arith.mulf %129, %2 : vector<8x4xf32>
    %141 = arith.addf %139, %140 : vector<8x4xf32>
    %142 = arith.truncf %132 : vector<8x4xf32> to vector<8x4xbf16>
    %143 = arith.truncf %138 : vector<8x4xf32> to vector<8x4xbf16>
    %cst_39 = arith.constant dense<0.000000e+00> : vector<8x8xf32>
    %144 = tpu.matmul %142, %143, %cst_39 {dimension_numbers = #tpu.dot_dimension_numbers<[1], [1], [0], [0], [0, 0, 1, 0], [], []>} : vector<8x4xbf16>, vector<8x4xbf16>, vector<8x8xf32> -> vector<8x8xf32>
    %145 = arith.truncf %135 : vector<8x4xf32> to vector<8x4xbf16>
    %146 = arith.truncf %141 : vector<8x4xf32> to vector<8x4xbf16>
    %cst_40 = arith.constant dense<0.000000e+00> : vector<8x8xf32>
    %147 = tpu.matmul %145, %146, %cst_40 {dimension_numbers = #tpu.dot_dimension_numbers<[1], [1], [0], [0], [0, 0, 1, 0], [], []>} : vector<8x4xbf16>, vector<8x4xbf16>, vector<8x8xf32> -> vector<8x8xf32>
    %148 = arith.addf %144, %147 : vector<8x8xf32>
    %cst_41 = arith.constant 0.353553385 : f32
    %149 = vector.broadcast %cst_41 : f32 to vector<8x8xf32>
    %150 = arith.mulf %148, %149 : vector<8x8xf32>
    %151 = arith.addf %150, %37 : vector<8x8xf32>
    %cst_42 = arith.constant dense<0xFF800000> : vector<8xf32>
    %152 = vector.multi_reduction <maximumf>, %151, %cst_42 [1] : vector<8x8xf32> to vector<8xf32>
    %153 = vector.shape_cast %152 : vector<8xf32> to vector<8x1xf32>
    %154 = vector.broadcast %153 : vector<8x1xf32> to vector<8x8xf32>
    %155 = arith.subf %151, %154 : vector<8x8xf32>
    %156 = math.exp %155 : vector<8x8xf32>
    %cst_43 = arith.constant dense<0.000000e+00> : vector<8xf32>
    %157 = vector.multi_reduction <add>, %156, %cst_43 [1] : vector<8x8xf32> to vector<8xf32>
    %158 = vector.shape_cast %157 : vector<8xf32> to vector<8x1xf32>
    %159 = vector.broadcast %158 : vector<8x1xf32> to vector<8x8xf32>
    %160 = arith.divf %156, %159 : vector<8x8xf32>
    %161 = vector.extract_strided_slice %31 {offsets = [0, 16], sizes = [8, 8], strides = [1, 1]} : vector<8x32xf32> to vector<8x8xf32>
    %162 = arith.truncf %160 : vector<8x8xf32> to vector<8x8xbf16>
    %163 = arith.truncf %161 : vector<8x8xf32> to vector<8x8xbf16>
    %cst_44 = arith.constant dense<0.000000e+00> : vector<8x8xf32>
    %164 = tpu.matmul %162, %163, %cst_44 {dimension_numbers = #tpu.dot_dimension_numbers<[1], [0], [0], [1], [0, 0, 1, 1], [], []>} : vector<8x8xbf16>, vector<8x8xbf16>, vector<8x8xf32> -> vector<8x8xf32>
    %165 = vector.extract_strided_slice %38 {offsets = [16, 0], sizes = [8, 32], strides = [1, 1]} : vector<32x32xf32> to vector<8x32xf32>
    %166 = arith.truncf %164 : vector<8x8xf32> to vector<8x8xbf16>
    %167 = arith.truncf %165 : vector<8x32xf32> to vector<8x32xbf16>
    %cst_45 = arith.constant dense<0.000000e+00> : vector<8x32xf32>
    %168 = tpu.matmul %166, %167, %cst_45 {dimension_numbers = #tpu.dot_dimension_numbers<[1], [0], [0], [1], [0, 0, 1, 1], [], []>} : vector<8x8xbf16>, vector<8x32xbf16>, vector<8x32xf32> -> vector<8x32xf32>
    %169 = arith.addf %125, %168 : vector<8x32xf32>
    %170 = vector.extract_strided_slice %23 {offsets = [0, 24], sizes = [8, 4], strides = [1, 1]} : vector<8x32xf32> to vector<8x4xf32>
    %171 = vector.extract_strided_slice %23 {offsets = [0, 28], sizes = [8, 4], strides = [1, 1]} : vector<8x32xf32> to vector<8x4xf32>
    %172 = vector.extract_strided_slice %27 {offsets = [0, 24], sizes = [8, 4], strides = [1, 1]} : vector<8x32xf32> to vector<8x4xf32>
    %173 = vector.extract_strided_slice %27 {offsets = [0, 28], sizes = [8, 4], strides = [1, 1]} : vector<8x32xf32> to vector<8x4xf32>
    %174 = arith.mulf %170, %2 : vector<8x4xf32>
    %175 = arith.mulf %171, %3 : vector<8x4xf32>
    %176 = arith.subf %174, %175 : vector<8x4xf32>
    %177 = arith.mulf %170, %3 : vector<8x4xf32>
    %178 = arith.mulf %171, %2 : vector<8x4xf32>
    %179 = arith.addf %177, %178 : vector<8x4xf32>
    %180 = arith.mulf %172, %2 : vector<8x4xf32>
    %181 = arith.mulf %173, %3 : vector<8x4xf32>
    %182 = arith.subf %180, %181 : vector<8x4xf32>
    %183 = arith.mulf %172, %3 : vector<8x4xf32>
    %184 = arith.mulf %173, %2 : vector<8x4xf32>
    %185 = arith.addf %183, %184 : vector<8x4xf32>
    %186 = arith.truncf %176 : vector<8x4xf32> to vector<8x4xbf16>
    %187 = arith.truncf %182 : vector<8x4xf32> to vector<8x4xbf16>
    %cst_46 = arith.constant dense<0.000000e+00> : vector<8x8xf32>
    %188 = tpu.matmul %186, %187, %cst_46 {dimension_numbers = #tpu.dot_dimension_numbers<[1], [1], [0], [0], [0, 0, 1, 0], [], []>} : vector<8x4xbf16>, vector<8x4xbf16>, vector<8x8xf32> -> vector<8x8xf32>
    %189 = arith.truncf %179 : vector<8x4xf32> to vector<8x4xbf16>
    %190 = arith.truncf %185 : vector<8x4xf32> to vector<8x4xbf16>
    %cst_47 = arith.constant dense<0.000000e+00> : vector<8x8xf32>
    %191 = tpu.matmul %189, %190, %cst_47 {dimension_numbers = #tpu.dot_dimension_numbers<[1], [1], [0], [0], [0, 0, 1, 0], [], []>} : vector<8x4xbf16>, vector<8x4xbf16>, vector<8x8xf32> -> vector<8x8xf32>
    %192 = arith.addf %188, %191 : vector<8x8xf32>
    %cst_48 = arith.constant 0.353553385 : f32
    %193 = vector.broadcast %cst_48 : f32 to vector<8x8xf32>
    %194 = arith.mulf %192, %193 : vector<8x8xf32>
    %195 = arith.addf %194, %37 : vector<8x8xf32>
    %cst_49 = arith.constant dense<0xFF800000> : vector<8xf32>
    %196 = vector.multi_reduction <maximumf>, %195, %cst_49 [1] : vector<8x8xf32> to vector<8xf32>
    %197 = vector.shape_cast %196 : vector<8xf32> to vector<8x1xf32>
    %198 = vector.broadcast %197 : vector<8x1xf32> to vector<8x8xf32>
    %199 = arith.subf %195, %198 : vector<8x8xf32>
    %200 = math.exp %199 : vector<8x8xf32>
    %cst_50 = arith.constant dense<0.000000e+00> : vector<8xf32>
    %201 = vector.multi_reduction <add>, %200, %cst_50 [1] : vector<8x8xf32> to vector<8xf32>
    %202 = vector.shape_cast %201 : vector<8xf32> to vector<8x1xf32>
    %203 = vector.broadcast %202 : vector<8x1xf32> to vector<8x8xf32>
    %204 = arith.divf %200, %203 : vector<8x8xf32>
    %205 = vector.extract_strided_slice %31 {offsets = [0, 24], sizes = [8, 8], strides = [1, 1]} : vector<8x32xf32> to vector<8x8xf32>
    %206 = arith.truncf %204 : vector<8x8xf32> to vector<8x8xbf16>
    %207 = arith.truncf %205 : vector<8x8xf32> to vector<8x8xbf16>
    %cst_51 = arith.constant dense<0.000000e+00> : vector<8x8xf32>
    %208 = tpu.matmul %206, %207, %cst_51 {dimension_numbers = #tpu.dot_dimension_numbers<[1], [0], [0], [1], [0, 0, 1, 1], [], []>} : vector<8x8xbf16>, vector<8x8xbf16>, vector<8x8xf32> -> vector<8x8xf32>
    %209 = vector.extract_strided_slice %38 {offsets = [24, 0], sizes = [8, 32], strides = [1, 1]} : vector<32x32xf32> to vector<8x32xf32>
    %210 = arith.truncf %208 : vector<8x8xf32> to vector<8x8xbf16>
    %211 = arith.truncf %209 : vector<8x32xf32> to vector<8x32xbf16>
    %cst_52 = arith.constant dense<0.000000e+00> : vector<8x32xf32>
    %212 = tpu.matmul %210, %211, %cst_52 {dimension_numbers = #tpu.dot_dimension_numbers<[1], [0], [0], [1], [0, 0, 1, 1], [], []>} : vector<8x8xbf16>, vector<8x32xbf16>, vector<8x32xf32> -> vector<8x32xf32>
    %213 = arith.addf %169, %212 : vector<8x32xf32>
    %214 = arith.addf %1, %213 : vector<8x32xf32>
    %c0_53 = arith.constant 0 : index
    %c0_54 = arith.constant 0 : index
    %215 = vector.load %arg10[%c0_53, %c0_54] : memref<1x32xf32, #tpu.memory_space<vmem>>, vector<1x32xf32>
    %216 = vector.broadcast %215 : vector<1x32xf32> to vector<8x32xf32>
    %217 = arith.addf %214, %216 : vector<8x32xf32>
    %c0_55 = arith.constant 0 : index
    %c0_56 = arith.constant 0 : index
    %218 = vector.load %arg11[%c0_55, %c0_56] : memref<1x32xf32, #tpu.memory_space<vmem>>, vector<1x32xf32>
    %219 = arith.mulf %217, %217 : vector<8x32xf32>
    %cst_57 = arith.constant dense<0.000000e+00> : vector<8xf32>
    %220 = vector.multi_reduction <add>, %219, %cst_57 [1] : vector<8x32xf32> to vector<8xf32>
    %221 = vector.shape_cast %220 : vector<8xf32> to vector<8x1xf32>
    %cst_58 = arith.constant 3.200000e+01 : f32
    %222 = vector.broadcast %cst_58 : f32 to vector<8x1xf32>
    %223 = arith.divf %221, %222 : vector<8x1xf32>
    %cst_59 = arith.constant 9.99999974E-6 : f32
    %224 = vector.broadcast %cst_59 : f32 to vector<8x1xf32>
    %225 = arith.addf %223, %224 : vector<8x1xf32>
    %226 = math.rsqrt %225 : vector<8x1xf32>
    %227 = vector.broadcast %226 : vector<8x1xf32> to vector<8x32xf32>
    %228 = arith.mulf %217, %227 : vector<8x32xf32>
    %229 = vector.broadcast %218 : vector<1x32xf32> to vector<8x32xf32>
    %230 = arith.mulf %228, %229 : vector<8x32xf32>
    %c0_60 = arith.constant 0 : index
    %c0_61 = arith.constant 0 : index
    %231 = vector.load %arg12[%c0_60, %c0_61] : memref<32x96xf32, #tpu.memory_space<vmem>>, vector<32x96xf32>
    %232 = arith.truncf %230 : vector<8x32xf32> to vector<8x32xbf16>
    %233 = arith.truncf %231 : vector<32x96xf32> to vector<32x96xbf16>
    %cst_62 = arith.constant dense<0.000000e+00> : vector<8x96xf32>
    %234 = tpu.matmul %232, %233, %cst_62 {dimension_numbers = #tpu.dot_dimension_numbers<[1], [0], [0], [1], [0, 0, 1, 1], [], []>} : vector<8x32xbf16>, vector<32x96xbf16>, vector<8x96xf32> -> vector<8x96xf32>
    %c0_63 = arith.constant 0 : index
    %c0_64 = arith.constant 0 : index
    %235 = vector.load %arg13[%c0_63, %c0_64] : memref<1x96xf32, #tpu.memory_space<vmem>>, vector<1x96xf32>
    %236 = vector.broadcast %235 : vector<1x96xf32> to vector<8x96xf32>
    %237 = arith.addf %234, %236 : vector<8x96xf32>
    %238 = arith.negf %237 : vector<8x96xf32>
    %239 = math.exp %238 : vector<8x96xf32>
    %cst_65 = arith.constant 1.000000e+00 : f32
    %240 = vector.broadcast %cst_65 : f32 to vector<8x96xf32>
    %241 = arith.addf %240, %239 : vector<8x96xf32>
    %242 = arith.divf %240, %241 : vector<8x96xf32>
    %243 = arith.mulf %237, %242 : vector<8x96xf32>
    %c0_66 = arith.constant 0 : index
    %c0_67 = arith.constant 0 : index
    %244 = vector.load %arg14[%c0_66, %c0_67] : memref<32x96xf32, #tpu.memory_space<vmem>>, vector<32x96xf32>
    %245 = arith.truncf %230 : vector<8x32xf32> to vector<8x32xbf16>
    %246 = arith.truncf %244 : vector<32x96xf32> to vector<32x96xbf16>
    %cst_68 = arith.constant dense<0.000000e+00> : vector<8x96xf32>
    %247 = tpu.matmul %245, %246, %cst_68 {dimension_numbers = #tpu.dot_dimension_numbers<[1], [0], [0], [1], [0, 0, 1, 1], [], []>} : vector<8x32xbf16>, vector<32x96xbf16>, vector<8x96xf32> -> vector<8x96xf32>
    %c0_69 = arith.constant 0 : index
    %c0_70 = arith.constant 0 : index
    %248 = vector.load %arg15[%c0_69, %c0_70] : memref<1x96xf32, #tpu.memory_space<vmem>>, vector<1x96xf32>
    %249 = vector.broadcast %248 : vector<1x96xf32> to vector<8x96xf32>
    %250 = arith.addf %247, %249 : vector<8x96xf32>
    %251 = arith.mulf %243, %250 : vector<8x96xf32>
    %c0_71 = arith.constant 0 : index
    %c0_72 = arith.constant 0 : index
    %252 = vector.load %arg16[%c0_71, %c0_72] : memref<96x32xf32, #tpu.memory_space<vmem>>, vector<96x32xf32>
    %253 = arith.truncf %251 : vector<8x96xf32> to vector<8x96xbf16>
    %254 = arith.truncf %252 : vector<96x32xf32> to vector<96x32xbf16>
    %cst_73 = arith.constant dense<0.000000e+00> : vector<8x32xf32>
    %255 = tpu.matmul %253, %254, %cst_73 {dimension_numbers = #tpu.dot_dimension_numbers<[1], [0], [0], [1], [0, 0, 1, 1], [], []>} : vector<8x96xbf16>, vector<96x32xbf16>, vector<8x32xf32> -> vector<8x32xf32>
    %256 = arith.addf %217, %255 : vector<8x32xf32>
    %c0_74 = arith.constant 0 : index
    %c0_75 = arith.constant 0 : index
    %257 = vector.load %arg17[%c0_74, %c0_75] : memref<1x32xf32, #tpu.memory_space<vmem>>, vector<1x32xf32>
    %258 = vector.broadcast %257 : vector<1x32xf32> to vector<8x32xf32>
    %259 = arith.addf %256, %258 : vector<8x32xf32>
    %c0_76 = arith.constant 0 : index
    %c0_77 = arith.constant 0 : index
    %c0_78 = arith.constant 0 : index
    %260 = vector.load %arg18[%c0_76, %c0_77, %c0_78] : memref<1x8x32xf32, #tpu.memory_space<vmem>>, vector<1x8x32xf32>
    %261 = vector.shape_cast %260 : vector<1x8x32xf32> to vector<8x32xf32>
    %262 = vector.shape_cast %259 : vector<8x32xf32> to vector<1x8x32xf32>
    tpu.vector_store %arg18[%c0_76, %c0_77, %c0_78], %262 {strides = array<i32>} : memref<1x8x32xf32, #tpu.memory_space<vmem>>, vector<1x8x32xf32>,
    return
  }
  func.func @transform_0(%arg0: i32) -> (i32, i32, i32) {
    %c0_i32 = arith.constant 0 : i32
    %c0_i32_0 = arith.constant 0 : i32
    %c0_i32_1 = arith.constant 0 : i32
    return %arg0, %c0_i32, %c0_i32_0 : i32, i32, i32
  }
  func.func @transform_1(%arg0: i32) -> (i32, i32) {
    %c0_i32 = arith.constant 0 : i32
    %c0_i32_0 = arith.constant 0 : i32
    %c0_i32_1 = arith.constant 0 : i32
    return %c0_i32, %c0_i32_0 : i32, i32
  }
  func.func @transform_2(%arg0: i32) -> (i32, i32) {
    %c0_i32 = arith.constant 0 : i32
    %c0_i32_0 = arith.constant 0 : i32
    %c0_i32_1 = arith.constant 0 : i32
    return %c0_i32, %c0_i32_0 : i32, i32
  }
  func.func @transform_3(%arg0: i32) -> (i32, i32) {
    %c0_i32 = arith.constant 0 : i32
    %c0_i32_0 = arith.constant 0 : i32
    %c0_i32_1 = arith.constant 0 : i32
    return %c0_i32, %c0_i32_0 : i32, i32
  }
  func.func @transform_4(%arg0: i32) -> (i32, i32) {
    %c0_i32 = arith.constant 0 : i32
    %c0_i32_0 = arith.constant 0 : i32
    %c0_i32_1 = arith.constant 0 : i32
    return %c0_i32, %c0_i32_0 : i32, i32
  }
  func.func @transform_5(%arg0: i32) -> (i32, i32) {
    %c0_i32 = arith.constant 0 : i32
    %c0_i32_0 = arith.constant 0 : i32
    %c0_i32_1 = arith.constant 0 : i32
    return %c0_i32, %c0_i32_0 : i32, i32
  }
  func.func @transform_6(%arg0: i32) -> (i32, i32) {
    %c0_i32 = arith.constant 0 : i32
    %c0_i32_0 = arith.constant 0 : i32
    %c0_i32_1 = arith.constant 0 : i32
    return %c0_i32, %c0_i32_0 : i32, i32
  }
  func.func @transform_7(%arg0: i32) -> (i32, i32) {
    %c0_i32 = arith.constant 0 : i32
    %c0_i32_0 = arith.constant 0 : i32
    %c0_i32_1 = arith.constant 0 : i32
    return %c0_i32, %c0_i32_0 : i32, i32
  }
  func.func @transform_8(%arg0: i32) -> (i32, i32) {
    %c0_i32 = arith.constant 0 : i32
    %c0_i32_0 = arith.constant 0 : i32
    %c0_i32_1 = arith.constant 0 : i32
    return %c0_i32, %c0_i32_0 : i32, i32
  }
  func.func @transform_9(%arg0: i32) -> (i32, i32) {
    %c0_i32 = arith.constant 0 : i32
    %c0_i32_0 = arith.constant 0 : i32
    %c0_i32_1 = arith.constant 0 : i32
    return %c0_i32, %c0_i32_0 : i32, i32
  }
  func.func @transform_10(%arg0: i32) -> (i32, i32) {
    %c0_i32 = arith.constant 0 : i32
    %c0_i32_0 = arith.constant 0 : i32
    %c0_i32_1 = arith.constant 0 : i32
    return %c0_i32, %c0_i32_0 : i32, i32
  }
  func.func @transform_11(%arg0: i32) -> (i32, i32) {
    %c0_i32 = arith.constant 0 : i32
    %c0_i32_0 = arith.constant 0 : i32
    %c0_i32_1 = arith.constant 0 : i32
    return %c0_i32, %c0_i32_0 : i32, i32
  }
  func.func @transform_12(%arg0: i32) -> (i32, i32) {
    %c0_i32 = arith.constant 0 : i32
    %c0_i32_0 = arith.constant 0 : i32
    %c0_i32_1 = arith.constant 0 : i32
    return %c0_i32, %c0_i32_0 : i32, i32
  }
  func.func @transform_13(%arg0: i32) -> (i32, i32) {
    %c0_i32 = arith.constant 0 : i32
    %c0_i32_0 = arith.constant 0 : i32
    %c0_i32_1 = arith.constant 0 : i32
    return %c0_i32, %c0_i32_0 : i32, i32
  }
  func.func @transform_14(%arg0: i32) -> (i32, i32) {
    %c0_i32 = arith.constant 0 : i32
    %c0_i32_0 = arith.constant 0 : i32
    %c0_i32_1 = arith.constant 0 : i32
    return %c0_i32, %c0_i32_0 : i32, i32
  }
  func.func @transform_15(%arg0: i32) -> (i32, i32) {
    %c0_i32 = arith.constant 0 : i32
    %c0_i32_0 = arith.constant 0 : i32
    %c0_i32_1 = arith.constant 0 : i32
    return %c0_i32, %c0_i32_0 : i32, i32
  }
  func.func @transform_16(%arg0: i32) -> (i32, i32) {
    %c0_i32 = arith.constant 0 : i32
    %c0_i32_0 = arith.constant 0 : i32
    %c0_i32_1 = arith.constant 0 : i32
    return %c0_i32, %c0_i32_0 : i32, i32
  }
  func.func @transform_17(%arg0: i32) -> (i32, i32, i32) {
    %c0_i32 = arith.constant 0 : i32
    %c0_i32_0 = arith.constant 0 : i32
    %c0_i32_1 = arith.constant 0 : i32
    return %arg0, %c0_i32, %c0_i32_0 : i32, i32, i32
  }
}

module attributes {stable_mosaic.version = 11 : i64} {
  func.func @_clip_block_kernel(%arg0: i32, %arg1: memref<1x5x32xf32, #tpu.memory_space<vmem>>, %arg2: memref<1x32xf32, #tpu.memory_space<vmem>>, %arg3: memref<1x32xf32, #tpu.memory_space<vmem>>, %arg4: memref<32x32xf32, #tpu.memory_space<vmem>>, %arg5: memref<1x32xf32, #tpu.memory_space<vmem>>, %arg6: memref<32x32xf32, #tpu.memory_space<vmem>>, %arg7: memref<1x32xf32, #tpu.memory_space<vmem>>, %arg8: memref<32x32xf32, #tpu.memory_space<vmem>>, %arg9: memref<1x32xf32, #tpu.memory_space<vmem>>, %arg10: memref<32x32xf32, #tpu.memory_space<vmem>>, %arg11: memref<1x32xf32, #tpu.memory_space<vmem>>, %arg12: memref<1x32xf32, #tpu.memory_space<vmem>>, %arg13: memref<1x32xf32, #tpu.memory_space<vmem>>, %arg14: memref<32x128xf32, #tpu.memory_space<vmem>>, %arg15: memref<1x128xf32, #tpu.memory_space<vmem>>, %arg16: memref<128x32xf32, #tpu.memory_space<vmem>>, %arg17: memref<1x32xf32, #tpu.memory_space<vmem>>, %arg18: memref<1x5x32xf32, #tpu.memory_space<vmem>>) attributes {dimension_semantics = [#tpu.dimension_semantics<parallel>], iteration_bounds = array<i64: 2>, scalar_prefetch = 0 : i64, scratch_operands = 0 : i64, tpu.core_type = #tpu.core_type<tc>, window_params = [{transform_indices = @transform_0, window_bounds = array<i64: 1, 5, 32>}, {pipeline_mode = #tpu.pipeline_mode<synchronous>, transform_indices = @transform_1, window_bounds = array<i64: 1, 32>}, {pipeline_mode = #tpu.pipeline_mode<synchronous>, transform_indices = @transform_2, window_bounds = array<i64: 1, 32>}, {pipeline_mode = #tpu.pipeline_mode<synchronous>, transform_indices = @transform_3, window_bounds = array<i64: 32, 32>}, {pipeline_mode = #tpu.pipeline_mode<synchronous>, transform_indices = @transform_4, window_bounds = array<i64: 1, 32>}, {pipeline_mode = #tpu.pipeline_mode<synchronous>, transform_indices = @transform_5, window_bounds = array<i64: 32, 32>}, {pipeline_mode = #tpu.pipeline_mode<synchronous>, transform_indices = @transform_6, window_bounds = array<i64: 1, 32>}, {pipeline_mode = #tpu.pipeline_mode<synchronous>, transform_indices = @transform_7, window_bounds = array<i64: 32, 32>}, {pipeline_mode = #tpu.pipeline_mode<synchronous>, transform_indices = @transform_8, window_bounds = array<i64: 1, 32>}, {pipeline_mode = #tpu.pipeline_mode<synchronous>, transform_indices = @transform_9, window_bounds = array<i64: 32, 32>}, {pipeline_mode = #tpu.pipeline_mode<synchronous>, transform_indices = @transform_10, window_bounds = array<i64: 1, 32>}, {pipeline_mode = #tpu.pipeline_mode<synchronous>, transform_indices = @transform_11, window_bounds = array<i64: 1, 32>}, {pipeline_mode = #tpu.pipeline_mode<synchronous>, transform_indices = @transform_12, window_bounds = array<i64: 1, 32>}, {pipeline_mode = #tpu.pipeline_mode<synchronous>, transform_indices = @transform_13, window_bounds = array<i64: 32, 128>}, {pipeline_mode = #tpu.pipeline_mode<synchronous>, transform_indices = @transform_14, window_bounds = array<i64: 1, 128>}, {pipeline_mode = #tpu.pipeline_mode<synchronous>, transform_indices = @transform_15, window_bounds = array<i64: 128, 32>}, {pipeline_mode = #tpu.pipeline_mode<synchronous>, transform_indices = @transform_16, window_bounds = array<i64: 1, 32>}, {transform_indices = @transform_17, window_bounds = array<i64: 1, 5, 32>}]} {
    %c0 = arith.constant 0 : index
    %c0_0 = arith.constant 0 : index
    %c0_1 = arith.constant 0 : index
    %0 = vector.load %arg1[%c0, %c0_0, %c0_1] : memref<1x5x32xf32, #tpu.memory_space<vmem>>, vector<1x5x32xf32>
    %1 = vector.shape_cast %0 : vector<1x5x32xf32> to vector<5x32xf32>
    %c0_2 = arith.constant 0 : index
    %c0_3 = arith.constant 0 : index
    %2 = vector.load %arg2[%c0_2, %c0_3] : memref<1x32xf32, #tpu.memory_space<vmem>>, vector<1x32xf32>
    %c0_4 = arith.constant 0 : index
    %c0_5 = arith.constant 0 : index
    %3 = vector.load %arg3[%c0_4, %c0_5] : memref<1x32xf32, #tpu.memory_space<vmem>>, vector<1x32xf32>
    %cst = arith.constant dense<0.000000e+00> : vector<5xf32>
    %4 = vector.multi_reduction <add>, %1, %cst [1] : vector<5x32xf32> to vector<5xf32>
    %5 = vector.shape_cast %4 : vector<5xf32> to vector<5x1xf32>
    %cst_6 = arith.constant 3.200000e+01 : f32
    %6 = vector.broadcast %cst_6 : f32 to vector<5x1xf32>
    %7 = arith.divf %5, %6 : vector<5x1xf32>
    %8 = vector.broadcast %7 : vector<5x1xf32> to vector<5x32xf32>
    %9 = arith.subf %1, %8 : vector<5x32xf32>
    %10 = vector.broadcast %7 : vector<5x1xf32> to vector<5x32xf32>
    %11 = arith.subf %1, %10 : vector<5x32xf32>
    %12 = arith.mulf %9, %11 : vector<5x32xf32>
    %cst_7 = arith.constant dense<0.000000e+00> : vector<5xf32>
    %13 = vector.multi_reduction <add>, %12, %cst_7 [1] : vector<5x32xf32> to vector<5xf32>
    %14 = vector.shape_cast %13 : vector<5xf32> to vector<5x1xf32>
    %cst_8 = arith.constant 3.200000e+01 : f32
    %15 = vector.broadcast %cst_8 : f32 to vector<5x1xf32>
    %16 = arith.divf %14, %15 : vector<5x1xf32>
    %17 = vector.broadcast %7 : vector<5x1xf32> to vector<5x32xf32>
    %18 = arith.subf %1, %17 : vector<5x32xf32>
    %cst_9 = arith.constant 9.99999974E-6 : f32
    %19 = vector.broadcast %cst_9 : f32 to vector<5x1xf32>
    %20 = arith.addf %16, %19 : vector<5x1xf32>
    %21 = math.rsqrt %20 : vector<5x1xf32>
    %22 = vector.broadcast %21 : vector<5x1xf32> to vector<5x32xf32>
    %23 = arith.mulf %18, %22 : vector<5x32xf32>
    %24 = vector.broadcast %2 : vector<1x32xf32> to vector<5x32xf32>
    %25 = arith.mulf %23, %24 : vector<5x32xf32>
    %26 = vector.broadcast %3 : vector<1x32xf32> to vector<5x32xf32>
    %27 = arith.addf %25, %26 : vector<5x32xf32>
    %c0_10 = arith.constant 0 : index
    %c0_11 = arith.constant 0 : index
    %28 = vector.load %arg4[%c0_10, %c0_11] : memref<32x32xf32, #tpu.memory_space<vmem>>, vector<32x32xf32>
    %29 = arith.truncf %27 : vector<5x32xf32> to vector<5x32xbf16>
    %30 = arith.truncf %28 : vector<32x32xf32> to vector<32x32xbf16>
    %cst_12 = arith.constant dense<0.000000e+00> : vector<5x32xf32>
    %31 = tpu.matmul %29, %30, %cst_12 {dimension_numbers = #tpu.dot_dimension_numbers<[1], [0], [0], [1], [0, 0, 1, 1], [], []>} : vector<5x32xbf16>, vector<32x32xbf16>, vector<5x32xf32> -> vector<5x32xf32>
    %c0_13 = arith.constant 0 : index
    %c0_14 = arith.constant 0 : index
    %32 = vector.load %arg5[%c0_13, %c0_14] : memref<1x32xf32, #tpu.memory_space<vmem>>, vector<1x32xf32>
    %33 = vector.broadcast %32 : vector<1x32xf32> to vector<5x32xf32>
    %34 = arith.addf %31, %33 : vector<5x32xf32>
    %c0_15 = arith.constant 0 : index
    %c0_16 = arith.constant 0 : index
    %35 = vector.load %arg6[%c0_15, %c0_16] : memref<32x32xf32, #tpu.memory_space<vmem>>, vector<32x32xf32>
    %36 = arith.truncf %27 : vector<5x32xf32> to vector<5x32xbf16>
    %37 = arith.truncf %35 : vector<32x32xf32> to vector<32x32xbf16>
    %cst_17 = arith.constant dense<0.000000e+00> : vector<5x32xf32>
    %38 = tpu.matmul %36, %37, %cst_17 {dimension_numbers = #tpu.dot_dimension_numbers<[1], [0], [0], [1], [0, 0, 1, 1], [], []>} : vector<5x32xbf16>, vector<32x32xbf16>, vector<5x32xf32> -> vector<5x32xf32>
    %c0_18 = arith.constant 0 : index
    %c0_19 = arith.constant 0 : index
    %39 = vector.load %arg7[%c0_18, %c0_19] : memref<1x32xf32, #tpu.memory_space<vmem>>, vector<1x32xf32>
    %40 = vector.broadcast %39 : vector<1x32xf32> to vector<5x32xf32>
    %41 = arith.addf %38, %40 : vector<5x32xf32>
    %c0_20 = arith.constant 0 : index
    %c0_21 = arith.constant 0 : index
    %42 = vector.load %arg8[%c0_20, %c0_21] : memref<32x32xf32, #tpu.memory_space<vmem>>, vector<32x32xf32>
    %43 = arith.truncf %27 : vector<5x32xf32> to vector<5x32xbf16>
    %44 = arith.truncf %42 : vector<32x32xf32> to vector<32x32xbf16>
    %cst_22 = arith.constant dense<0.000000e+00> : vector<5x32xf32>
    %45 = tpu.matmul %43, %44, %cst_22 {dimension_numbers = #tpu.dot_dimension_numbers<[1], [0], [0], [1], [0, 0, 1, 1], [], []>} : vector<5x32xbf16>, vector<32x32xbf16>, vector<5x32xf32> -> vector<5x32xf32>
    %c0_23 = arith.constant 0 : index
    %c0_24 = arith.constant 0 : index
    %46 = vector.load %arg9[%c0_23, %c0_24] : memref<1x32xf32, #tpu.memory_space<vmem>>, vector<1x32xf32>
    %47 = vector.broadcast %46 : vector<1x32xf32> to vector<5x32xf32>
    %48 = arith.addf %45, %47 : vector<5x32xf32>
    %c0_25 = arith.constant 0 : index
    %c0_26 = arith.constant 0 : index
    %49 = vector.load %arg10[%c0_25, %c0_26] : memref<32x32xf32, #tpu.memory_space<vmem>>, vector<32x32xf32>
    %50 = vector.extract_strided_slice %34 {offsets = [0, 0], sizes = [5, 8], strides = [1, 1]} : vector<5x32xf32> to vector<5x8xf32>
    %51 = vector.extract_strided_slice %41 {offsets = [0, 0], sizes = [5, 8], strides = [1, 1]} : vector<5x32xf32> to vector<5x8xf32>
    %52 = arith.truncf %50 : vector<5x8xf32> to vector<5x8xbf16>
    %53 = arith.truncf %51 : vector<5x8xf32> to vector<5x8xbf16>
    %cst_27 = arith.constant dense<0.000000e+00> : vector<5x5xf32>
    %54 = tpu.matmul %52, %53, %cst_27 {dimension_numbers = #tpu.dot_dimension_numbers<[1], [1], [0], [0], [0, 0, 1, 0], [], []>} : vector<5x8xbf16>, vector<5x8xbf16>, vector<5x5xf32> -> vector<5x5xf32>
    %cst_28 = arith.constant 0.353553385 : f32
    %55 = vector.broadcast %cst_28 : f32 to vector<5x5xf32>
    %56 = arith.mulf %54, %55 : vector<5x5xf32>
    %cst_29 = arith.constant dense<0xFF800000> : vector<5xf32>
    %57 = vector.multi_reduction <maximumf>, %56, %cst_29 [1] : vector<5x5xf32> to vector<5xf32>
    %58 = vector.shape_cast %57 : vector<5xf32> to vector<5x1xf32>
    %59 = vector.broadcast %58 : vector<5x1xf32> to vector<5x5xf32>
    %60 = arith.subf %56, %59 : vector<5x5xf32>
    %61 = math.exp %60 : vector<5x5xf32>
    %cst_30 = arith.constant dense<0.000000e+00> : vector<5xf32>
    %62 = vector.multi_reduction <add>, %61, %cst_30 [1] : vector<5x5xf32> to vector<5xf32>
    %63 = vector.shape_cast %62 : vector<5xf32> to vector<5x1xf32>
    %64 = vector.broadcast %63 : vector<5x1xf32> to vector<5x5xf32>
    %65 = arith.divf %61, %64 : vector<5x5xf32>
    %66 = vector.extract_strided_slice %48 {offsets = [0, 0], sizes = [5, 8], strides = [1, 1]} : vector<5x32xf32> to vector<5x8xf32>
    %67 = arith.truncf %65 : vector<5x5xf32> to vector<5x5xbf16>
    %68 = arith.truncf %66 : vector<5x8xf32> to vector<5x8xbf16>
    %cst_31 = arith.constant dense<0.000000e+00> : vector<5x8xf32>
    %69 = tpu.matmul %67, %68, %cst_31 {dimension_numbers = #tpu.dot_dimension_numbers<[1], [0], [0], [1], [0, 0, 1, 1], [], []>} : vector<5x5xbf16>, vector<5x8xbf16>, vector<5x8xf32> -> vector<5x8xf32>
    %70 = vector.extract_strided_slice %49 {offsets = [0, 0], sizes = [8, 32], strides = [1, 1]} : vector<32x32xf32> to vector<8x32xf32>
    %71 = arith.truncf %69 : vector<5x8xf32> to vector<5x8xbf16>
    %72 = arith.truncf %70 : vector<8x32xf32> to vector<8x32xbf16>
    %cst_32 = arith.constant dense<0.000000e+00> : vector<5x32xf32>
    %73 = tpu.matmul %71, %72, %cst_32 {dimension_numbers = #tpu.dot_dimension_numbers<[1], [0], [0], [1], [0, 0, 1, 1], [], []>} : vector<5x8xbf16>, vector<8x32xbf16>, vector<5x32xf32> -> vector<5x32xf32>
    %74 = vector.extract_strided_slice %34 {offsets = [0, 8], sizes = [5, 8], strides = [1, 1]} : vector<5x32xf32> to vector<5x8xf32>
    %75 = vector.extract_strided_slice %41 {offsets = [0, 8], sizes = [5, 8], strides = [1, 1]} : vector<5x32xf32> to vector<5x8xf32>
    %76 = arith.truncf %74 : vector<5x8xf32> to vector<5x8xbf16>
    %77 = arith.truncf %75 : vector<5x8xf32> to vector<5x8xbf16>
    %cst_33 = arith.constant dense<0.000000e+00> : vector<5x5xf32>
    %78 = tpu.matmul %76, %77, %cst_33 {dimension_numbers = #tpu.dot_dimension_numbers<[1], [1], [0], [0], [0, 0, 1, 0], [], []>} : vector<5x8xbf16>, vector<5x8xbf16>, vector<5x5xf32> -> vector<5x5xf32>
    %cst_34 = arith.constant 0.353553385 : f32
    %79 = vector.broadcast %cst_34 : f32 to vector<5x5xf32>
    %80 = arith.mulf %78, %79 : vector<5x5xf32>
    %cst_35 = arith.constant dense<0xFF800000> : vector<5xf32>
    %81 = vector.multi_reduction <maximumf>, %80, %cst_35 [1] : vector<5x5xf32> to vector<5xf32>
    %82 = vector.shape_cast %81 : vector<5xf32> to vector<5x1xf32>
    %83 = vector.broadcast %82 : vector<5x1xf32> to vector<5x5xf32>
    %84 = arith.subf %80, %83 : vector<5x5xf32>
    %85 = math.exp %84 : vector<5x5xf32>
    %cst_36 = arith.constant dense<0.000000e+00> : vector<5xf32>
    %86 = vector.multi_reduction <add>, %85, %cst_36 [1] : vector<5x5xf32> to vector<5xf32>
    %87 = vector.shape_cast %86 : vector<5xf32> to vector<5x1xf32>
    %88 = vector.broadcast %87 : vector<5x1xf32> to vector<5x5xf32>
    %89 = arith.divf %85, %88 : vector<5x5xf32>
    %90 = vector.extract_strided_slice %48 {offsets = [0, 8], sizes = [5, 8], strides = [1, 1]} : vector<5x32xf32> to vector<5x8xf32>
    %91 = arith.truncf %89 : vector<5x5xf32> to vector<5x5xbf16>
    %92 = arith.truncf %90 : vector<5x8xf32> to vector<5x8xbf16>
    %cst_37 = arith.constant dense<0.000000e+00> : vector<5x8xf32>
    %93 = tpu.matmul %91, %92, %cst_37 {dimension_numbers = #tpu.dot_dimension_numbers<[1], [0], [0], [1], [0, 0, 1, 1], [], []>} : vector<5x5xbf16>, vector<5x8xbf16>, vector<5x8xf32> -> vector<5x8xf32>
    %94 = vector.extract_strided_slice %49 {offsets = [8, 0], sizes = [8, 32], strides = [1, 1]} : vector<32x32xf32> to vector<8x32xf32>
    %95 = arith.truncf %93 : vector<5x8xf32> to vector<5x8xbf16>
    %96 = arith.truncf %94 : vector<8x32xf32> to vector<8x32xbf16>
    %cst_38 = arith.constant dense<0.000000e+00> : vector<5x32xf32>
    %97 = tpu.matmul %95, %96, %cst_38 {dimension_numbers = #tpu.dot_dimension_numbers<[1], [0], [0], [1], [0, 0, 1, 1], [], []>} : vector<5x8xbf16>, vector<8x32xbf16>, vector<5x32xf32> -> vector<5x32xf32>
    %98 = arith.addf %73, %97 : vector<5x32xf32>
    %99 = vector.extract_strided_slice %34 {offsets = [0, 16], sizes = [5, 8], strides = [1, 1]} : vector<5x32xf32> to vector<5x8xf32>
    %100 = vector.extract_strided_slice %41 {offsets = [0, 16], sizes = [5, 8], strides = [1, 1]} : vector<5x32xf32> to vector<5x8xf32>
    %101 = arith.truncf %99 : vector<5x8xf32> to vector<5x8xbf16>
    %102 = arith.truncf %100 : vector<5x8xf32> to vector<5x8xbf16>
    %cst_39 = arith.constant dense<0.000000e+00> : vector<5x5xf32>
    %103 = tpu.matmul %101, %102, %cst_39 {dimension_numbers = #tpu.dot_dimension_numbers<[1], [1], [0], [0], [0, 0, 1, 0], [], []>} : vector<5x8xbf16>, vector<5x8xbf16>, vector<5x5xf32> -> vector<5x5xf32>
    %cst_40 = arith.constant 0.353553385 : f32
    %104 = vector.broadcast %cst_40 : f32 to vector<5x5xf32>
    %105 = arith.mulf %103, %104 : vector<5x5xf32>
    %cst_41 = arith.constant dense<0xFF800000> : vector<5xf32>
    %106 = vector.multi_reduction <maximumf>, %105, %cst_41 [1] : vector<5x5xf32> to vector<5xf32>
    %107 = vector.shape_cast %106 : vector<5xf32> to vector<5x1xf32>
    %108 = vector.broadcast %107 : vector<5x1xf32> to vector<5x5xf32>
    %109 = arith.subf %105, %108 : vector<5x5xf32>
    %110 = math.exp %109 : vector<5x5xf32>
    %cst_42 = arith.constant dense<0.000000e+00> : vector<5xf32>
    %111 = vector.multi_reduction <add>, %110, %cst_42 [1] : vector<5x5xf32> to vector<5xf32>
    %112 = vector.shape_cast %111 : vector<5xf32> to vector<5x1xf32>
    %113 = vector.broadcast %112 : vector<5x1xf32> to vector<5x5xf32>
    %114 = arith.divf %110, %113 : vector<5x5xf32>
    %115 = vector.extract_strided_slice %48 {offsets = [0, 16], sizes = [5, 8], strides = [1, 1]} : vector<5x32xf32> to vector<5x8xf32>
    %116 = arith.truncf %114 : vector<5x5xf32> to vector<5x5xbf16>
    %117 = arith.truncf %115 : vector<5x8xf32> to vector<5x8xbf16>
    %cst_43 = arith.constant dense<0.000000e+00> : vector<5x8xf32>
    %118 = tpu.matmul %116, %117, %cst_43 {dimension_numbers = #tpu.dot_dimension_numbers<[1], [0], [0], [1], [0, 0, 1, 1], [], []>} : vector<5x5xbf16>, vector<5x8xbf16>, vector<5x8xf32> -> vector<5x8xf32>
    %119 = vector.extract_strided_slice %49 {offsets = [16, 0], sizes = [8, 32], strides = [1, 1]} : vector<32x32xf32> to vector<8x32xf32>
    %120 = arith.truncf %118 : vector<5x8xf32> to vector<5x8xbf16>
    %121 = arith.truncf %119 : vector<8x32xf32> to vector<8x32xbf16>
    %cst_44 = arith.constant dense<0.000000e+00> : vector<5x32xf32>
    %122 = tpu.matmul %120, %121, %cst_44 {dimension_numbers = #tpu.dot_dimension_numbers<[1], [0], [0], [1], [0, 0, 1, 1], [], []>} : vector<5x8xbf16>, vector<8x32xbf16>, vector<5x32xf32> -> vector<5x32xf32>
    %123 = arith.addf %98, %122 : vector<5x32xf32>
    %124 = vector.extract_strided_slice %34 {offsets = [0, 24], sizes = [5, 8], strides = [1, 1]} : vector<5x32xf32> to vector<5x8xf32>
    %125 = vector.extract_strided_slice %41 {offsets = [0, 24], sizes = [5, 8], strides = [1, 1]} : vector<5x32xf32> to vector<5x8xf32>
    %126 = arith.truncf %124 : vector<5x8xf32> to vector<5x8xbf16>
    %127 = arith.truncf %125 : vector<5x8xf32> to vector<5x8xbf16>
    %cst_45 = arith.constant dense<0.000000e+00> : vector<5x5xf32>
    %128 = tpu.matmul %126, %127, %cst_45 {dimension_numbers = #tpu.dot_dimension_numbers<[1], [1], [0], [0], [0, 0, 1, 0], [], []>} : vector<5x8xbf16>, vector<5x8xbf16>, vector<5x5xf32> -> vector<5x5xf32>
    %cst_46 = arith.constant 0.353553385 : f32
    %129 = vector.broadcast %cst_46 : f32 to vector<5x5xf32>
    %130 = arith.mulf %128, %129 : vector<5x5xf32>
    %cst_47 = arith.constant dense<0xFF800000> : vector<5xf32>
    %131 = vector.multi_reduction <maximumf>, %130, %cst_47 [1] : vector<5x5xf32> to vector<5xf32>
    %132 = vector.shape_cast %131 : vector<5xf32> to vector<5x1xf32>
    %133 = vector.broadcast %132 : vector<5x1xf32> to vector<5x5xf32>
    %134 = arith.subf %130, %133 : vector<5x5xf32>
    %135 = math.exp %134 : vector<5x5xf32>
    %cst_48 = arith.constant dense<0.000000e+00> : vector<5xf32>
    %136 = vector.multi_reduction <add>, %135, %cst_48 [1] : vector<5x5xf32> to vector<5xf32>
    %137 = vector.shape_cast %136 : vector<5xf32> to vector<5x1xf32>
    %138 = vector.broadcast %137 : vector<5x1xf32> to vector<5x5xf32>
    %139 = arith.divf %135, %138 : vector<5x5xf32>
    %140 = vector.extract_strided_slice %48 {offsets = [0, 24], sizes = [5, 8], strides = [1, 1]} : vector<5x32xf32> to vector<5x8xf32>
    %141 = arith.truncf %139 : vector<5x5xf32> to vector<5x5xbf16>
    %142 = arith.truncf %140 : vector<5x8xf32> to vector<5x8xbf16>
    %cst_49 = arith.constant dense<0.000000e+00> : vector<5x8xf32>
    %143 = tpu.matmul %141, %142, %cst_49 {dimension_numbers = #tpu.dot_dimension_numbers<[1], [0], [0], [1], [0, 0, 1, 1], [], []>} : vector<5x5xbf16>, vector<5x8xbf16>, vector<5x8xf32> -> vector<5x8xf32>
    %144 = vector.extract_strided_slice %49 {offsets = [24, 0], sizes = [8, 32], strides = [1, 1]} : vector<32x32xf32> to vector<8x32xf32>
    %145 = arith.truncf %143 : vector<5x8xf32> to vector<5x8xbf16>
    %146 = arith.truncf %144 : vector<8x32xf32> to vector<8x32xbf16>
    %cst_50 = arith.constant dense<0.000000e+00> : vector<5x32xf32>
    %147 = tpu.matmul %145, %146, %cst_50 {dimension_numbers = #tpu.dot_dimension_numbers<[1], [0], [0], [1], [0, 0, 1, 1], [], []>} : vector<5x8xbf16>, vector<8x32xbf16>, vector<5x32xf32> -> vector<5x32xf32>
    %148 = arith.addf %123, %147 : vector<5x32xf32>
    %149 = arith.addf %1, %148 : vector<5x32xf32>
    %c0_51 = arith.constant 0 : index
    %c0_52 = arith.constant 0 : index
    %150 = vector.load %arg11[%c0_51, %c0_52] : memref<1x32xf32, #tpu.memory_space<vmem>>, vector<1x32xf32>
    %151 = vector.broadcast %150 : vector<1x32xf32> to vector<5x32xf32>
    %152 = arith.addf %149, %151 : vector<5x32xf32>
    %c0_53 = arith.constant 0 : index
    %c0_54 = arith.constant 0 : index
    %153 = vector.load %arg12[%c0_53, %c0_54] : memref<1x32xf32, #tpu.memory_space<vmem>>, vector<1x32xf32>
    %c0_55 = arith.constant 0 : index
    %c0_56 = arith.constant 0 : index
    %154 = vector.load %arg13[%c0_55, %c0_56] : memref<1x32xf32, #tpu.memory_space<vmem>>, vector<1x32xf32>
    %cst_57 = arith.constant dense<0.000000e+00> : vector<5xf32>
    %155 = vector.multi_reduction <add>, %152, %cst_57 [1] : vector<5x32xf32> to vector<5xf32>
    %156 = vector.shape_cast %155 : vector<5xf32> to vector<5x1xf32>
    %cst_58 = arith.constant 3.200000e+01 : f32
    %157 = vector.broadcast %cst_58 : f32 to vector<5x1xf32>
    %158 = arith.divf %156, %157 : vector<5x1xf32>
    %159 = vector.broadcast %158 : vector<5x1xf32> to vector<5x32xf32>
    %160 = arith.subf %152, %159 : vector<5x32xf32>
    %161 = vector.broadcast %158 : vector<5x1xf32> to vector<5x32xf32>
    %162 = arith.subf %152, %161 : vector<5x32xf32>
    %163 = arith.mulf %160, %162 : vector<5x32xf32>
    %cst_59 = arith.constant dense<0.000000e+00> : vector<5xf32>
    %164 = vector.multi_reduction <add>, %163, %cst_59 [1] : vector<5x32xf32> to vector<5xf32>
    %165 = vector.shape_cast %164 : vector<5xf32> to vector<5x1xf32>
    %cst_60 = arith.constant 3.200000e+01 : f32
    %166 = vector.broadcast %cst_60 : f32 to vector<5x1xf32>
    %167 = arith.divf %165, %166 : vector<5x1xf32>
    %168 = vector.broadcast %158 : vector<5x1xf32> to vector<5x32xf32>
    %169 = arith.subf %152, %168 : vector<5x32xf32>
    %cst_61 = arith.constant 9.99999974E-6 : f32
    %170 = vector.broadcast %cst_61 : f32 to vector<5x1xf32>
    %171 = arith.addf %167, %170 : vector<5x1xf32>
    %172 = math.rsqrt %171 : vector<5x1xf32>
    %173 = vector.broadcast %172 : vector<5x1xf32> to vector<5x32xf32>
    %174 = arith.mulf %169, %173 : vector<5x32xf32>
    %175 = vector.broadcast %153 : vector<1x32xf32> to vector<5x32xf32>
    %176 = arith.mulf %174, %175 : vector<5x32xf32>
    %177 = vector.broadcast %154 : vector<1x32xf32> to vector<5x32xf32>
    %178 = arith.addf %176, %177 : vector<5x32xf32>
    %c0_62 = arith.constant 0 : index
    %c0_63 = arith.constant 0 : index
    %179 = vector.load %arg14[%c0_62, %c0_63] : memref<32x128xf32, #tpu.memory_space<vmem>>, vector<32x128xf32>
    %180 = arith.truncf %178 : vector<5x32xf32> to vector<5x32xbf16>
    %181 = arith.truncf %179 : vector<32x128xf32> to vector<32x128xbf16>
    %cst_64 = arith.constant dense<0.000000e+00> : vector<5x128xf32>
    %182 = tpu.matmul %180, %181, %cst_64 {dimension_numbers = #tpu.dot_dimension_numbers<[1], [0], [0], [1], [0, 0, 1, 1], [], []>} : vector<5x32xbf16>, vector<32x128xbf16>, vector<5x128xf32> -> vector<5x128xf32>
    %c0_65 = arith.constant 0 : index
    %c0_66 = arith.constant 0 : index
    %183 = vector.load %arg15[%c0_65, %c0_66] : memref<1x128xf32, #tpu.memory_space<vmem>>, vector<1x128xf32>
    %184 = vector.broadcast %183 : vector<1x128xf32> to vector<5x128xf32>
    %185 = arith.addf %182, %184 : vector<5x128xf32>
    %cst_67 = arith.constant 1.702000e+00 : f32
    %186 = vector.broadcast %cst_67 : f32 to vector<5x128xf32>
    %187 = arith.mulf %186, %185 : vector<5x128xf32>
    %188 = arith.negf %187 : vector<5x128xf32>
    %189 = math.exp %188 : vector<5x128xf32>
    %cst_68 = arith.constant 1.000000e+00 : f32
    %190 = vector.broadcast %cst_68 : f32 to vector<5x128xf32>
    %191 = arith.addf %190, %189 : vector<5x128xf32>
    %192 = arith.divf %190, %191 : vector<5x128xf32>
    %193 = arith.mulf %185, %192 : vector<5x128xf32>
    %c0_69 = arith.constant 0 : index
    %c0_70 = arith.constant 0 : index
    %194 = vector.load %arg16[%c0_69, %c0_70] : memref<128x32xf32, #tpu.memory_space<vmem>>, vector<128x32xf32>
    %195 = arith.truncf %193 : vector<5x128xf32> to vector<5x128xbf16>
    %196 = arith.truncf %194 : vector<128x32xf32> to vector<128x32xbf16>
    %cst_71 = arith.constant dense<0.000000e+00> : vector<5x32xf32>
    %197 = tpu.matmul %195, %196, %cst_71 {dimension_numbers = #tpu.dot_dimension_numbers<[1], [0], [0], [1], [0, 0, 1, 1], [], []>} : vector<5x128xbf16>, vector<128x32xbf16>, vector<5x32xf32> -> vector<5x32xf32>
    %198 = arith.addf %152, %197 : vector<5x32xf32>
    %c0_72 = arith.constant 0 : index
    %c0_73 = arith.constant 0 : index
    %199 = vector.load %arg17[%c0_72, %c0_73] : memref<1x32xf32, #tpu.memory_space<vmem>>, vector<1x32xf32>
    %200 = vector.broadcast %199 : vector<1x32xf32> to vector<5x32xf32>
    %201 = arith.addf %198, %200 : vector<5x32xf32>
    %c0_74 = arith.constant 0 : index
    %c0_75 = arith.constant 0 : index
    %c0_76 = arith.constant 0 : index
    %202 = vector.load %arg18[%c0_74, %c0_75, %c0_76] : memref<1x5x32xf32, #tpu.memory_space<vmem>>, vector<1x5x32xf32>
    %203 = vector.shape_cast %202 : vector<1x5x32xf32> to vector<5x32xf32>
    %204 = vector.shape_cast %201 : vector<5x32xf32> to vector<1x5x32xf32>
    tpu.vector_store %arg18[%c0_74, %c0_75, %c0_76], %204 {strides = array<i32>} : memref<1x5x32xf32, #tpu.memory_space<vmem>>, vector<1x5x32xf32>,
    return
  }
  func.func @transform_0(%arg0: i32) -> (i32, i32, i32) {
    %c0_i32 = arith.constant 0 : i32
    %c0_i32_0 = arith.constant 0 : i32
    %c0_i32_1 = arith.constant 0 : i32
    return %arg0, %c0_i32, %c0_i32_0 : i32, i32, i32
  }
  func.func @transform_1(%arg0: i32) -> (i32, i32) {
    %c0_i32 = arith.constant 0 : i32
    %c0_i32_0 = arith.constant 0 : i32
    %c0_i32_1 = arith.constant 0 : i32
    return %c0_i32, %c0_i32_0 : i32, i32
  }
  func.func @transform_2(%arg0: i32) -> (i32, i32) {
    %c0_i32 = arith.constant 0 : i32
    %c0_i32_0 = arith.constant 0 : i32
    %c0_i32_1 = arith.constant 0 : i32
    return %c0_i32, %c0_i32_0 : i32, i32
  }
  func.func @transform_3(%arg0: i32) -> (i32, i32) {
    %c0_i32 = arith.constant 0 : i32
    %c0_i32_0 = arith.constant 0 : i32
    %c0_i32_1 = arith.constant 0 : i32
    return %c0_i32, %c0_i32_0 : i32, i32
  }
  func.func @transform_4(%arg0: i32) -> (i32, i32) {
    %c0_i32 = arith.constant 0 : i32
    %c0_i32_0 = arith.constant 0 : i32
    %c0_i32_1 = arith.constant 0 : i32
    return %c0_i32, %c0_i32_0 : i32, i32
  }
  func.func @transform_5(%arg0: i32) -> (i32, i32) {
    %c0_i32 = arith.constant 0 : i32
    %c0_i32_0 = arith.constant 0 : i32
    %c0_i32_1 = arith.constant 0 : i32
    return %c0_i32, %c0_i32_0 : i32, i32
  }
  func.func @transform_6(%arg0: i32) -> (i32, i32) {
    %c0_i32 = arith.constant 0 : i32
    %c0_i32_0 = arith.constant 0 : i32
    %c0_i32_1 = arith.constant 0 : i32
    return %c0_i32, %c0_i32_0 : i32, i32
  }
  func.func @transform_7(%arg0: i32) -> (i32, i32) {
    %c0_i32 = arith.constant 0 : i32
    %c0_i32_0 = arith.constant 0 : i32
    %c0_i32_1 = arith.constant 0 : i32
    return %c0_i32, %c0_i32_0 : i32, i32
  }
  func.func @transform_8(%arg0: i32) -> (i32, i32) {
    %c0_i32 = arith.constant 0 : i32
    %c0_i32_0 = arith.constant 0 : i32
    %c0_i32_1 = arith.constant 0 : i32
    return %c0_i32, %c0_i32_0 : i32, i32
  }
  func.func @transform_9(%arg0: i32) -> (i32, i32) {
    %c0_i32 = arith.constant 0 : i32
    %c0_i32_0 = arith.constant 0 : i32
    %c0_i32_1 = arith.constant 0 : i32
    return %c0_i32, %c0_i32_0 : i32, i32
  }
  func.func @transform_10(%arg0: i32) -> (i32, i32) {
    %c0_i32 = arith.constant 0 : i32
    %c0_i32_0 = arith.constant 0 : i32
    %c0_i32_1 = arith.constant 0 : i32
    return %c0_i32, %c0_i32_0 : i32, i32
  }
  func.func @transform_11(%arg0: i32) -> (i32, i32) {
    %c0_i32 = arith.constant 0 : i32
    %c0_i32_0 = arith.constant 0 : i32
    %c0_i32_1 = arith.constant 0 : i32
    return %c0_i32, %c0_i32_0 : i32, i32
  }
  func.func @transform_12(%arg0: i32) -> (i32, i32) {
    %c0_i32 = arith.constant 0 : i32
    %c0_i32_0 = arith.constant 0 : i32
    %c0_i32_1 = arith.constant 0 : i32
    return %c0_i32, %c0_i32_0 : i32, i32
  }
  func.func @transform_13(%arg0: i32) -> (i32, i32) {
    %c0_i32 = arith.constant 0 : i32
    %c0_i32_0 = arith.constant 0 : i32
    %c0_i32_1 = arith.constant 0 : i32
    return %c0_i32, %c0_i32_0 : i32, i32
  }
  func.func @transform_14(%arg0: i32) -> (i32, i32) {
    %c0_i32 = arith.constant 0 : i32
    %c0_i32_0 = arith.constant 0 : i32
    %c0_i32_1 = arith.constant 0 : i32
    return %c0_i32, %c0_i32_0 : i32, i32
  }
  func.func @transform_15(%arg0: i32) -> (i32, i32) {
    %c0_i32 = arith.constant 0 : i32
    %c0_i32_0 = arith.constant 0 : i32
    %c0_i32_1 = arith.constant 0 : i32
    return %c0_i32, %c0_i32_0 : i32, i32
  }
  func.func @transform_16(%arg0: i32) -> (i32, i32) {
    %c0_i32 = arith.constant 0 : i32
    %c0_i32_0 = arith.constant 0 : i32
    %c0_i32_1 = arith.constant 0 : i32
    return %c0_i32, %c0_i32_0 : i32, i32
  }
  func.func @transform_17(%arg0: i32) -> (i32, i32, i32) {
    %c0_i32 = arith.constant 0 : i32
    %c0_i32_0 = arith.constant 0 : i32
    %c0_i32_1 = arith.constant 0 : i32
    return %arg0, %c0_i32, %c0_i32_0 : i32, i32, i32
  }
}

module attributes {stable_mosaic.version = 11 : i64} {
  func.func @_clip_head_kernel(%arg0: i32, %arg1: memref<1x5x32xf32, #tpu.memory_space<vmem>>, %arg2: memref<1x32xf32, #tpu.memory_space<vmem>>, %arg3: memref<1x32xf32, #tpu.memory_space<vmem>>, %arg4: memref<32x32xf32, #tpu.memory_space<vmem>>, %arg5: memref<32x32xf32, #tpu.memory_space<vmem>>, %arg6: memref<1x32xf32, #tpu.memory_space<vmem>>, %arg7: memref<1x32xf32, #tpu.memory_space<vmem>>, %arg8: memref<1x32xf32, #tpu.memory_space<vmem>>, %arg9: memref<1x5x32xf32, #tpu.memory_space<vmem>>) attributes {dimension_semantics = [#tpu.dimension_semantics<parallel>], iteration_bounds = array<i64: 2>, scalar_prefetch = 0 : i64, scratch_operands = 0 : i64, tpu.core_type = #tpu.core_type<tc>, window_params = [{transform_indices = @transform_0, window_bounds = array<i64: 1, 5, 32>}, {pipeline_mode = #tpu.pipeline_mode<synchronous>, transform_indices = @transform_1, window_bounds = array<i64: 1, 32>}, {pipeline_mode = #tpu.pipeline_mode<synchronous>, transform_indices = @transform_2, window_bounds = array<i64: 1, 32>}, {pipeline_mode = #tpu.pipeline_mode<synchronous>, transform_indices = @transform_3, window_bounds = array<i64: 32, 32>}, {pipeline_mode = #tpu.pipeline_mode<synchronous>, transform_indices = @transform_4, window_bounds = array<i64: 32, 32>}, {pipeline_mode = #tpu.pipeline_mode<synchronous>, transform_indices = @transform_5, window_bounds = array<i64: 1, 32>}, {pipeline_mode = #tpu.pipeline_mode<synchronous>, transform_indices = @transform_6, window_bounds = array<i64: 1, 32>}, {pipeline_mode = #tpu.pipeline_mode<synchronous>, transform_indices = @transform_7, window_bounds = array<i64: 1, 32>}, {transform_indices = @transform_8, window_bounds = array<i64: 1, 5, 32>}]} {
    %c0 = arith.constant 0 : index
    %c0_0 = arith.constant 0 : index
    %c0_1 = arith.constant 0 : index
    %0 = vector.load %arg1[%c0, %c0_0, %c0_1] : memref<1x5x32xf32, #tpu.memory_space<vmem>>, vector<1x5x32xf32>
    %1 = vector.shape_cast %0 : vector<1x5x32xf32> to vector<5x32xf32>
    %c0_2 = arith.constant 0 : index
    %c0_3 = arith.constant 0 : index
    %2 = vector.load %arg2[%c0_2, %c0_3] : memref<1x32xf32, #tpu.memory_space<vmem>>, vector<1x32xf32>
    %c0_4 = arith.constant 0 : index
    %c0_5 = arith.constant 0 : index
    %3 = vector.load %arg3[%c0_4, %c0_5] : memref<1x32xf32, #tpu.memory_space<vmem>>, vector<1x32xf32>
    %cst = arith.constant dense<0.000000e+00> : vector<5xf32>
    %4 = vector.multi_reduction <add>, %1, %cst [1] : vector<5x32xf32> to vector<5xf32>
    %5 = vector.shape_cast %4 : vector<5xf32> to vector<5x1xf32>
    %cst_6 = arith.constant 3.200000e+01 : f32
    %6 = vector.broadcast %cst_6 : f32 to vector<5x1xf32>
    %7 = arith.divf %5, %6 : vector<5x1xf32>
    %8 = vector.broadcast %7 : vector<5x1xf32> to vector<5x32xf32>
    %9 = arith.subf %1, %8 : vector<5x32xf32>
    %10 = vector.broadcast %7 : vector<5x1xf32> to vector<5x32xf32>
    %11 = arith.subf %1, %10 : vector<5x32xf32>
    %12 = arith.mulf %9, %11 : vector<5x32xf32>
    %cst_7 = arith.constant dense<0.000000e+00> : vector<5xf32>
    %13 = vector.multi_reduction <add>, %12, %cst_7 [1] : vector<5x32xf32> to vector<5xf32>
    %14 = vector.shape_cast %13 : vector<5xf32> to vector<5x1xf32>
    %cst_8 = arith.constant 3.200000e+01 : f32
    %15 = vector.broadcast %cst_8 : f32 to vector<5x1xf32>
    %16 = arith.divf %14, %15 : vector<5x1xf32>
    %17 = vector.broadcast %7 : vector<5x1xf32> to vector<5x32xf32>
    %18 = arith.subf %1, %17 : vector<5x32xf32>
    %cst_9 = arith.constant 9.99999974E-6 : f32
    %19 = vector.broadcast %cst_9 : f32 to vector<5x1xf32>
    %20 = arith.addf %16, %19 : vector<5x1xf32>
    %21 = math.rsqrt %20 : vector<5x1xf32>
    %22 = vector.broadcast %21 : vector<5x1xf32> to vector<5x32xf32>
    %23 = arith.mulf %18, %22 : vector<5x32xf32>
    %24 = vector.broadcast %2 : vector<1x32xf32> to vector<5x32xf32>
    %25 = arith.mulf %23, %24 : vector<5x32xf32>
    %26 = vector.broadcast %3 : vector<1x32xf32> to vector<5x32xf32>
    %27 = arith.addf %25, %26 : vector<5x32xf32>
    %c0_10 = arith.constant 0 : index
    %c0_11 = arith.constant 0 : index
    %28 = vector.load %arg4[%c0_10, %c0_11] : memref<32x32xf32, #tpu.memory_space<vmem>>, vector<32x32xf32>
    %29 = arith.truncf %27 : vector<5x32xf32> to vector<5x32xbf16>
    %30 = arith.truncf %28 : vector<32x32xf32> to vector<32x32xbf16>
    %cst_12 = arith.constant dense<0.000000e+00> : vector<5x32xf32>
    %31 = tpu.matmul %29, %30, %cst_12 {dimension_numbers = #tpu.dot_dimension_numbers<[1], [0], [0], [1], [0, 0, 1, 1], [], []>} : vector<5x32xbf16>, vector<32x32xbf16>, vector<5x32xf32> -> vector<5x32xf32>
    %c0_13 = arith.constant 0 : index
    %c0_14 = arith.constant 0 : index
    %32 = vector.load %arg5[%c0_13, %c0_14] : memref<32x32xf32, #tpu.memory_space<vmem>>, vector<32x32xf32>
    %33 = arith.truncf %31 : vector<5x32xf32> to vector<5x32xbf16>
    %34 = arith.truncf %32 : vector<32x32xf32> to vector<32x32xbf16>
    %cst_15 = arith.constant dense<0.000000e+00> : vector<5x32xf32>
    %35 = tpu.matmul %33, %34, %cst_15 {dimension_numbers = #tpu.dot_dimension_numbers<[1], [0], [0], [1], [0, 0, 1, 1], [], []>} : vector<5x32xbf16>, vector<32x32xbf16>, vector<5x32xf32> -> vector<5x32xf32>
    %c0_16 = arith.constant 0 : index
    %c0_17 = arith.constant 0 : index
    %36 = vector.load %arg6[%c0_16, %c0_17] : memref<1x32xf32, #tpu.memory_space<vmem>>, vector<1x32xf32>
    %37 = vector.broadcast %36 : vector<1x32xf32> to vector<5x32xf32>
    %38 = arith.addf %35, %37 : vector<5x32xf32>
    %c0_18 = arith.constant 0 : index
    %c0_19 = arith.constant 0 : index
    %39 = vector.load %arg7[%c0_18, %c0_19] : memref<1x32xf32, #tpu.memory_space<vmem>>, vector<1x32xf32>
    %c0_20 = arith.constant 0 : index
    %c0_21 = arith.constant 0 : index
    %40 = vector.load %arg8[%c0_20, %c0_21] : memref<1x32xf32, #tpu.memory_space<vmem>>, vector<1x32xf32>
    %cst_22 = arith.constant dense<0.000000e+00> : vector<5xf32>
    %41 = vector.multi_reduction <add>, %38, %cst_22 [1] : vector<5x32xf32> to vector<5xf32>
    %42 = vector.shape_cast %41 : vector<5xf32> to vector<5x1xf32>
    %cst_23 = arith.constant 3.200000e+01 : f32
    %43 = vector.broadcast %cst_23 : f32 to vector<5x1xf32>
    %44 = arith.divf %42, %43 : vector<5x1xf32>
    %45 = vector.broadcast %44 : vector<5x1xf32> to vector<5x32xf32>
    %46 = arith.subf %38, %45 : vector<5x32xf32>
    %47 = vector.broadcast %44 : vector<5x1xf32> to vector<5x32xf32>
    %48 = arith.subf %38, %47 : vector<5x32xf32>
    %49 = arith.mulf %46, %48 : vector<5x32xf32>
    %cst_24 = arith.constant dense<0.000000e+00> : vector<5xf32>
    %50 = vector.multi_reduction <add>, %49, %cst_24 [1] : vector<5x32xf32> to vector<5xf32>
    %51 = vector.shape_cast %50 : vector<5xf32> to vector<5x1xf32>
    %cst_25 = arith.constant 3.200000e+01 : f32
    %52 = vector.broadcast %cst_25 : f32 to vector<5x1xf32>
    %53 = arith.divf %51, %52 : vector<5x1xf32>
    %54 = vector.broadcast %44 : vector<5x1xf32> to vector<5x32xf32>
    %55 = arith.subf %38, %54 : vector<5x32xf32>
    %cst_26 = arith.constant 9.99999974E-6 : f32
    %56 = vector.broadcast %cst_26 : f32 to vector<5x1xf32>
    %57 = arith.addf %53, %56 : vector<5x1xf32>
    %58 = math.rsqrt %57 : vector<5x1xf32>
    %59 = vector.broadcast %58 : vector<5x1xf32> to vector<5x32xf32>
    %60 = arith.mulf %55, %59 : vector<5x32xf32>
    %61 = vector.broadcast %39 : vector<1x32xf32> to vector<5x32xf32>
    %62 = arith.mulf %60, %61 : vector<5x32xf32>
    %63 = vector.broadcast %40 : vector<1x32xf32> to vector<5x32xf32>
    %64 = arith.addf %62, %63 : vector<5x32xf32>
    %c0_27 = arith.constant 0 : index
    %c0_28 = arith.constant 0 : index
    %c0_29 = arith.constant 0 : index
    %65 = vector.load %arg9[%c0_27, %c0_28, %c0_29] : memref<1x5x32xf32, #tpu.memory_space<vmem>>, vector<1x5x32xf32>
    %66 = vector.shape_cast %65 : vector<1x5x32xf32> to vector<5x32xf32>
    %67 = vector.shape_cast %64 : vector<5x32xf32> to vector<1x5x32xf32>
    tpu.vector_store %arg9[%c0_27, %c0_28, %c0_29], %67 {strides = array<i32>} : memref<1x5x32xf32, #tpu.memory_space<vmem>>, vector<1x5x32xf32>,
    return
  }
  func.func @transform_0(%arg0: i32) -> (i32, i32, i32) {
    %c0_i32 = arith.constant 0 : i32
    %c0_i32_0 = arith.constant 0 : i32
    %c0_i32_1 = arith.constant 0 : i32
    return %arg0, %c0_i32, %c0_i32_0 : i32, i32, i32
  }
  func.func @transform_1(%arg0: i32) -> (i32, i32) {
    %c0_i32 = arith.constant 0 : i32
    %c0_i32_0 = arith.constant 0 : i32
    %c0_i32_1 = arith.constant 0 : i32
    return %c0_i32, %c0_i32_0 : i32, i32
  }
  func.func @transform_2(%arg0: i32) -> (i32, i32) {
    %c0_i32 = arith.constant 0 : i32
    %c0_i32_0 = arith.constant 0 : i32
    %c0_i32_1 = arith.constant 0 : i32
    return %c0_i32, %c0_i32_0 : i32, i32
  }
  func.func @transform_3(%arg0: i32) -> (i32, i32) {
    %c0_i32 = arith.constant 0 : i32
    %c0_i32_0 = arith.constant 0 : i32
    %c0_i32_1 = arith.constant 0 : i32
    return %c0_i32, %c0_i32_0 : i32, i32
  }
  func.func @transform_4(%arg0: i32) -> (i32, i32) {
    %c0_i32 = arith.constant 0 : i32
    %c0_i32_0 = arith.constant 0 : i32
    %c0_i32_1 = arith.constant 0 : i32
    return %c0_i32, %c0_i32_0 : i32, i32
  }
  func.func @transform_5(%arg0: i32) -> (i32, i32) {
    %c0_i32 = arith.constant 0 : i32
    %c0_i32_0 = arith.constant 0 : i32
    %c0_i32_1 = arith.constant 0 : i32
    return %c0_i32, %c0_i32_0 : i32, i32
  }
  func.func @transform_6(%arg0: i32) -> (i32, i32) {
    %c0_i32 = arith.constant 0 : i32
    %c0_i32_0 = arith.constant 0 : i32
    %c0_i32_1 = arith.constant 0 : i32
    return %c0_i32, %c0_i32_0 : i32, i32
  }
  func.func @transform_7(%arg0: i32) -> (i32, i32) {
    %c0_i32 = arith.constant 0 : i32
    %c0_i32_0 = arith.constant 0 : i32
    %c0_i32_1 = arith.constant 0 : i32
    return %c0_i32, %c0_i32_0 : i32, i32
  }
  func.func @transform_8(%arg0: i32) -> (i32, i32, i32) {
    %c0_i32 = arith.constant 0 : i32
    %c0_i32_0 = arith.constant 0 : i32
    %c0_i32_1 = arith.constant 0 : i32
    return %arg0, %c0_i32, %c0_i32_0 : i32, i32, i32
  }
}

module attributes {stable_mosaic.version = 11 : i64} {
  func.func @_visual_head_kernel(%arg0: i32, %arg1: memref<1x9x32xf32, #tpu.memory_space<vmem>>, %arg2: memref<32x32xf32, #tpu.memory_space<vmem>>, %arg3: memref<1x32xf32, #tpu.memory_space<vmem>>, %arg4: memref<1x32xf32, #tpu.memory_space<vmem>>, %arg5: memref<1x32xf32, #tpu.memory_space<vmem>>, %arg6: memref<1x4x32xf32, #tpu.memory_space<vmem>>) attributes {dimension_semantics = [#tpu.dimension_semantics<parallel>], iteration_bounds = array<i64: 2>, scalar_prefetch = 0 : i64, scratch_operands = 0 : i64, tpu.core_type = #tpu.core_type<tc>, window_params = [{transform_indices = @transform_0, window_bounds = array<i64: 1, 9, 32>}, {pipeline_mode = #tpu.pipeline_mode<synchronous>, transform_indices = @transform_1, window_bounds = array<i64: 32, 32>}, {pipeline_mode = #tpu.pipeline_mode<synchronous>, transform_indices = @transform_2, window_bounds = array<i64: 1, 32>}, {pipeline_mode = #tpu.pipeline_mode<synchronous>, transform_indices = @transform_3, window_bounds = array<i64: 1, 32>}, {pipeline_mode = #tpu.pipeline_mode<synchronous>, transform_indices = @transform_4, window_bounds = array<i64: 1, 32>}, {transform_indices = @transform_5, window_bounds = array<i64: 1, 4, 32>}]} {
    %c0 = arith.constant 0 : index
    %c0_0 = arith.constant 0 : index
    %c0_1 = arith.constant 0 : index
    %0 = vector.load %arg1[%c0, %c0_0, %c0_1] : memref<1x9x32xf32, #tpu.memory_space<vmem>>, vector<1x9x32xf32>
    %1 = vector.shape_cast %0 : vector<1x9x32xf32> to vector<9x32xf32>
    %2 = vector.extract_strided_slice %1 {offsets = [0, 0], sizes = [4, 32], strides = [1, 1]} : vector<9x32xf32> to vector<4x32xf32>
    %c0_2 = arith.constant 0 : index
    %c0_3 = arith.constant 0 : index
    %3 = vector.load %arg2[%c0_2, %c0_3] : memref<32x32xf32, #tpu.memory_space<vmem>>, vector<32x32xf32>
    %4 = arith.truncf %2 : vector<4x32xf32> to vector<4x32xbf16>
    %5 = arith.truncf %3 : vector<32x32xf32> to vector<32x32xbf16>
    %cst = arith.constant dense<0.000000e+00> : vector<4x32xf32>
    %6 = tpu.matmul %4, %5, %cst {dimension_numbers = #tpu.dot_dimension_numbers<[1], [0], [0], [1], [0, 0, 1, 1], [], []>} : vector<4x32xbf16>, vector<32x32xbf16>, vector<4x32xf32> -> vector<4x32xf32>
    %c0_4 = arith.constant 0 : index
    %c0_5 = arith.constant 0 : index
    %7 = vector.load %arg3[%c0_4, %c0_5] : memref<1x32xf32, #tpu.memory_space<vmem>>, vector<1x32xf32>
    %8 = vector.broadcast %7 : vector<1x32xf32> to vector<4x32xf32>
    %9 = arith.addf %6, %8 : vector<4x32xf32>
    %c0_6 = arith.constant 0 : index
    %c0_7 = arith.constant 0 : index
    %10 = vector.load %arg4[%c0_6, %c0_7] : memref<1x32xf32, #tpu.memory_space<vmem>>, vector<1x32xf32>
    %c0_8 = arith.constant 0 : index
    %c0_9 = arith.constant 0 : index
    %11 = vector.load %arg5[%c0_8, %c0_9] : memref<1x32xf32, #tpu.memory_space<vmem>>, vector<1x32xf32>
    %cst_10 = arith.constant dense<0.000000e+00> : vector<4xf32>
    %12 = vector.multi_reduction <add>, %9, %cst_10 [1] : vector<4x32xf32> to vector<4xf32>
    %13 = vector.shape_cast %12 : vector<4xf32> to vector<4x1xf32>
    %cst_11 = arith.constant 3.200000e+01 : f32
    %14 = vector.broadcast %cst_11 : f32 to vector<4x1xf32>
    %15 = arith.divf %13, %14 : vector<4x1xf32>
    %16 = vector.broadcast %15 : vector<4x1xf32> to vector<4x32xf32>
    %17 = arith.subf %9, %16 : vector<4x32xf32>
    %18 = vector.broadcast %15 : vector<4x1xf32> to vector<4x32xf32>
    %19 = arith.subf %9, %18 : vector<4x32xf32>
    %20 = arith.mulf %17, %19 : vector<4x32xf32>
    %cst_12 = arith.constant dense<0.000000e+00> : vector<4xf32>
    %21 = vector.multi_reduction <add>, %20, %cst_12 [1] : vector<4x32xf32> to vector<4xf32>
    %22 = vector.shape_cast %21 : vector<4xf32> to vector<4x1xf32>
    %cst_13 = arith.constant 3.200000e+01 : f32
    %23 = vector.broadcast %cst_13 : f32 to vector<4x1xf32>
    %24 = arith.divf %22, %23 : vector<4x1xf32>
    %25 = vector.broadcast %15 : vector<4x1xf32> to vector<4x32xf32>
    %26 = arith.subf %9, %25 : vector<4x32xf32>
    %cst_14 = arith.constant 9.99999974E-6 : f32
    %27 = vector.broadcast %cst_14 : f32 to vector<4x1xf32>
    %28 = arith.addf %24, %27 : vector<4x1xf32>
    %29 = math.rsqrt %28 : vector<4x1xf32>
    %30 = vector.broadcast %29 : vector<4x1xf32> to vector<4x32xf32>
    %31 = arith.mulf %26, %30 : vector<4x32xf32>
    %32 = vector.broadcast %10 : vector<1x32xf32> to vector<4x32xf32>
    %33 = arith.mulf %31, %32 : vector<4x32xf32>
    %34 = vector.broadcast %11 : vector<1x32xf32> to vector<4x32xf32>
    %35 = arith.addf %33, %34 : vector<4x32xf32>
    %c0_15 = arith.constant 0 : index
    %c0_16 = arith.constant 0 : index
    %c0_17 = arith.constant 0 : index
    %36 = vector.load %arg6[%c0_15, %c0_16, %c0_17] : memref<1x4x32xf32, #tpu.memory_space<vmem>>, vector<1x4x32xf32>
    %37 = vector.shape_cast %36 : vector<1x4x32xf32> to vector<4x32xf32>
    %38 = vector.shape_cast %35 : vector<4x32xf32> to vector<1x4x32xf32>
    tpu.vector_store %arg6[%c0_15, %c0_16, %c0_17], %38 {strides = array<i32>} : memref<1x4x32xf32, #tpu.memory_space<vmem>>, vector<1x4x32xf32>,
    return
  }
  func.func @transform_0(%arg0: i32) -> (i32, i32, i32) {
    %c0_i32 = arith.constant 0 : i32
    %c0_i32_0 = arith.constant 0 : i32
    %c0_i32_1 = arith.constant 0 : i32
    return %arg0, %c0_i32, %c0_i32_0 : i32, i32, i32
  }
  func.func @transform_1(%arg0: i32) -> (i32, i32) {
    %c0_i32 = arith.constant 0 : i32
    %c0_i32_0 = arith.constant 0 : i32
    %c0_i32_1 = arith.constant 0 : i32
    return %c0_i32, %c0_i32_0 : i32, i32
  }
  func.func @transform_2(%arg0: i32) -> (i32, i32) {
    %c0_i32 = arith.constant 0 : i32
    %c0_i32_0 = arith.constant 0 : i32
    %c0_i32_1 = arith.constant 0 : i32
    return %c0_i32, %c0_i32_0 : i32, i32
  }
  func.func @transform_3(%arg0: i32) -> (i32, i32) {
    %c0_i32 = arith.constant 0 : i32
    %c0_i32_0 = arith.constant 0 : i32
    %c0_i32_1 = arith.constant 0 : i32
    return %c0_i32, %c0_i32_0 : i32, i32
  }
  func.func @transform_4(%arg0: i32) -> (i32, i32) {
    %c0_i32 = arith.constant 0 : i32
    %c0_i32_0 = arith.constant 0 : i32
    %c0_i32_1 = arith.constant 0 : i32
    return %c0_i32, %c0_i32_0 : i32, i32
  }
  func.func @transform_5(%arg0: i32) -> (i32, i32, i32) {
    %c0_i32 = arith.constant 0 : i32
    %c0_i32_0 = arith.constant 0 : i32
    %c0_i32_1 = arith.constant 0 : i32
    return %arg0, %c0_i32, %c0_i32_0 : i32, i32, i32
  }
}

module attributes {stable_mosaic.version = 11 : i64} {
  func.func @_vit_block_kernel(%arg0: i32, %arg1: memref<1x9x32xf32, #tpu.memory_space<vmem>>, %arg2: memref<1x32xf32, #tpu.memory_space<vmem>>, %arg3: memref<1x32xf32, #tpu.memory_space<vmem>>, %arg4: memref<32x32xf32, #tpu.memory_space<vmem>>, %arg5: memref<1x32xf32, #tpu.memory_space<vmem>>, %arg6: memref<32x32xf32, #tpu.memory_space<vmem>>, %arg7: memref<1x32xf32, #tpu.memory_space<vmem>>, %arg8: memref<32x32xf32, #tpu.memory_space<vmem>>, %arg9: memref<1x32xf32, #tpu.memory_space<vmem>>, %arg10: memref<32x32xf32, #tpu.memory_space<vmem>>, %arg11: memref<1x32xf32, #tpu.memory_space<vmem>>, %arg12: memref<1x32xf32, #tpu.memory_space<vmem>>, %arg13: memref<1x32xf32, #tpu.memory_space<vmem>>, %arg14: memref<32x128xf32, #tpu.memory_space<vmem>>, %arg15: memref<1x128xf32, #tpu.memory_space<vmem>>, %arg16: memref<128x32xf32, #tpu.memory_space<vmem>>, %arg17: memref<1x32xf32, #tpu.memory_space<vmem>>, %arg18: memref<1x9x32xf32, #tpu.memory_space<vmem>>) attributes {dimension_semantics = [#tpu.dimension_semantics<parallel>], iteration_bounds = array<i64: 2>, scalar_prefetch = 0 : i64, scratch_operands = 0 : i64, tpu.core_type = #tpu.core_type<tc>, window_params = [{transform_indices = @transform_0, window_bounds = array<i64: 1, 9, 32>}, {pipeline_mode = #tpu.pipeline_mode<synchronous>, transform_indices = @transform_1, window_bounds = array<i64: 1, 32>}, {pipeline_mode = #tpu.pipeline_mode<synchronous>, transform_indices = @transform_2, window_bounds = array<i64: 1, 32>}, {pipeline_mode = #tpu.pipeline_mode<synchronous>, transform_indices = @transform_3, window_bounds = array<i64: 32, 32>}, {pipeline_mode = #tpu.pipeline_mode<synchronous>, transform_indices = @transform_4, window_bounds = array<i64: 1, 32>}, {pipeline_mode = #tpu.pipeline_mode<synchronous>, transform_indices = @transform_5, window_bounds = array<i64: 32, 32>}, {pipeline_mode = #tpu.pipeline_mode<synchronous>, transform_indices = @transform_6, window_bounds = array<i64: 1, 32>}, {pipeline_mode = #tpu.pipeline_mode<synchronous>, transform_indices = @transform_7, window_bounds = array<i64: 32, 32>}, {pipeline_mode = #tpu.pipeline_mode<synchronous>, transform_indices = @transform_8, window_bounds = array<i64: 1, 32>}, {pipeline_mode = #tpu.pipeline_mode<synchronous>, transform_indices = @transform_9, window_bounds = array<i64: 32, 32>}, {pipeline_mode = #tpu.pipeline_mode<synchronous>, transform_indices = @transform_10, window_bounds = array<i64: 1, 32>}, {pipeline_mode = #tpu.pipeline_mode<synchronous>, transform_indices = @transform_11, window_bounds = array<i64: 1, 32>}, {pipeline_mode = #tpu.pipeline_mode<synchronous>, transform_indices = @transform_12, window_bounds = array<i64: 1, 32>}, {pipeline_mode = #tpu.pipeline_mode<synchronous>, transform_indices = @transform_13, window_bounds = array<i64: 32, 128>}, {pipeline_mode = #tpu.pipeline_mode<synchronous>, transform_indices = @transform_14, window_bounds = array<i64: 1, 128>}, {pipeline_mode = #tpu.pipeline_mode<synchronous>, transform_indices = @transform_15, window_bounds = array<i64: 128, 32>}, {pipeline_mode = #tpu.pipeline_mode<synchronous>, transform_indices = @transform_16, window_bounds = array<i64: 1, 32>}, {transform_indices = @transform_17, window_bounds = array<i64: 1, 9, 32>}]} {
    %c0 = arith.constant 0 : index
    %c0_0 = arith.constant 0 : index
    %c0_1 = arith.constant 0 : index
    %0 = vector.load %arg1[%c0, %c0_0, %c0_1] : memref<1x9x32xf32, #tpu.memory_space<vmem>>, vector<1x9x32xf32>
    %1 = vector.shape_cast %0 : vector<1x9x32xf32> to vector<9x32xf32>
    %c0_2 = arith.constant 0 : index
    %c0_3 = arith.constant 0 : index
    %2 = vector.load %arg2[%c0_2, %c0_3] : memref<1x32xf32, #tpu.memory_space<vmem>>, vector<1x32xf32>
    %c0_4 = arith.constant 0 : index
    %c0_5 = arith.constant 0 : index
    %3 = vector.load %arg3[%c0_4, %c0_5] : memref<1x32xf32, #tpu.memory_space<vmem>>, vector<1x32xf32>
    %cst = arith.constant dense<0.000000e+00> : vector<9xf32>
    %4 = vector.multi_reduction <add>, %1, %cst [1] : vector<9x32xf32> to vector<9xf32>
    %5 = vector.shape_cast %4 : vector<9xf32> to vector<9x1xf32>
    %cst_6 = arith.constant 3.200000e+01 : f32
    %6 = vector.broadcast %cst_6 : f32 to vector<9x1xf32>
    %7 = arith.divf %5, %6 : vector<9x1xf32>
    %8 = vector.broadcast %7 : vector<9x1xf32> to vector<9x32xf32>
    %9 = arith.subf %1, %8 : vector<9x32xf32>
    %10 = vector.broadcast %7 : vector<9x1xf32> to vector<9x32xf32>
    %11 = arith.subf %1, %10 : vector<9x32xf32>
    %12 = arith.mulf %9, %11 : vector<9x32xf32>
    %cst_7 = arith.constant dense<0.000000e+00> : vector<9xf32>
    %13 = vector.multi_reduction <add>, %12, %cst_7 [1] : vector<9x32xf32> to vector<9xf32>
    %14 = vector.shape_cast %13 : vector<9xf32> to vector<9x1xf32>
    %cst_8 = arith.constant 3.200000e+01 : f32
    %15 = vector.broadcast %cst_8 : f32 to vector<9x1xf32>
    %16 = arith.divf %14, %15 : vector<9x1xf32>
    %17 = vector.broadcast %7 : vector<9x1xf32> to vector<9x32xf32>
    %18 = arith.subf %1, %17 : vector<9x32xf32>
    %cst_9 = arith.constant 9.99999974E-6 : f32
    %19 = vector.broadcast %cst_9 : f32 to vector<9x1xf32>
    %20 = arith.addf %16, %19 : vector<9x1xf32>
    %21 = math.rsqrt %20 : vector<9x1xf32>
    %22 = vector.broadcast %21 : vector<9x1xf32> to vector<9x32xf32>
    %23 = arith.mulf %18, %22 : vector<9x32xf32>
    %24 = vector.broadcast %2 : vector<1x32xf32> to vector<9x32xf32>
    %25 = arith.mulf %23, %24 : vector<9x32xf32>
    %26 = vector.broadcast %3 : vector<1x32xf32> to vector<9x32xf32>
    %27 = arith.addf %25, %26 : vector<9x32xf32>
    %c0_10 = arith.constant 0 : index
    %c0_11 = arith.constant 0 : index
    %28 = vector.load %arg4[%c0_10, %c0_11] : memref<32x32xf32, #tpu.memory_space<vmem>>, vector<32x32xf32>
    %29 = arith.truncf %27 : vector<9x32xf32> to vector<9x32xbf16>
    %30 = arith.truncf %28 : vector<32x32xf32> to vector<32x32xbf16>
    %cst_12 = arith.constant dense<0.000000e+00> : vector<9x32xf32>
    %31 = tpu.matmul %29, %30, %cst_12 {dimension_numbers = #tpu.dot_dimension_numbers<[1], [0], [0], [1], [0, 0, 1, 1], [], []>} : vector<9x32xbf16>, vector<32x32xbf16>, vector<9x32xf32> -> vector<9x32xf32>
    %c0_13 = arith.constant 0 : index
    %c0_14 = arith.constant 0 : index
    %32 = vector.load %arg5[%c0_13, %c0_14] : memref<1x32xf32, #tpu.memory_space<vmem>>, vector<1x32xf32>
    %33 = vector.broadcast %32 : vector<1x32xf32> to vector<9x32xf32>
    %34 = arith.addf %31, %33 : vector<9x32xf32>
    %c0_15 = arith.constant 0 : index
    %c0_16 = arith.constant 0 : index
    %35 = vector.load %arg6[%c0_15, %c0_16] : memref<32x32xf32, #tpu.memory_space<vmem>>, vector<32x32xf32>
    %36 = arith.truncf %27 : vector<9x32xf32> to vector<9x32xbf16>
    %37 = arith.truncf %35 : vector<32x32xf32> to vector<32x32xbf16>
    %cst_17 = arith.constant dense<0.000000e+00> : vector<9x32xf32>
    %38 = tpu.matmul %36, %37, %cst_17 {dimension_numbers = #tpu.dot_dimension_numbers<[1], [0], [0], [1], [0, 0, 1, 1], [], []>} : vector<9x32xbf16>, vector<32x32xbf16>, vector<9x32xf32> -> vector<9x32xf32>
    %c0_18 = arith.constant 0 : index
    %c0_19 = arith.constant 0 : index
    %39 = vector.load %arg7[%c0_18, %c0_19] : memref<1x32xf32, #tpu.memory_space<vmem>>, vector<1x32xf32>
    %40 = vector.broadcast %39 : vector<1x32xf32> to vector<9x32xf32>
    %41 = arith.addf %38, %40 : vector<9x32xf32>
    %c0_20 = arith.constant 0 : index
    %c0_21 = arith.constant 0 : index
    %42 = vector.load %arg8[%c0_20, %c0_21] : memref<32x32xf32, #tpu.memory_space<vmem>>, vector<32x32xf32>
    %43 = arith.truncf %27 : vector<9x32xf32> to vector<9x32xbf16>
    %44 = arith.truncf %42 : vector<32x32xf32> to vector<32x32xbf16>
    %cst_22 = arith.constant dense<0.000000e+00> : vector<9x32xf32>
    %45 = tpu.matmul %43, %44, %cst_22 {dimension_numbers = #tpu.dot_dimension_numbers<[1], [0], [0], [1], [0, 0, 1, 1], [], []>} : vector<9x32xbf16>, vector<32x32xbf16>, vector<9x32xf32> -> vector<9x32xf32>
    %c0_23 = arith.constant 0 : index
    %c0_24 = arith.constant 0 : index
    %46 = vector.load %arg9[%c0_23, %c0_24] : memref<1x32xf32, #tpu.memory_space<vmem>>, vector<1x32xf32>
    %47 = vector.broadcast %46 : vector<1x32xf32> to vector<9x32xf32>
    %48 = arith.addf %45, %47 : vector<9x32xf32>
    %c0_25 = arith.constant 0 : index
    %c0_26 = arith.constant 0 : index
    %49 = vector.load %arg10[%c0_25, %c0_26] : memref<32x32xf32, #tpu.memory_space<vmem>>, vector<32x32xf32>
    %50 = vector.extract_strided_slice %34 {offsets = [0, 0], sizes = [9, 8], strides = [1, 1]} : vector<9x32xf32> to vector<9x8xf32>
    %51 = vector.extract_strided_slice %41 {offsets = [0, 0], sizes = [9, 8], strides = [1, 1]} : vector<9x32xf32> to vector<9x8xf32>
    %52 = arith.truncf %50 : vector<9x8xf32> to vector<9x8xbf16>
    %53 = arith.truncf %51 : vector<9x8xf32> to vector<9x8xbf16>
    %cst_27 = arith.constant dense<0.000000e+00> : vector<9x9xf32>
    %54 = tpu.matmul %52, %53, %cst_27 {dimension_numbers = #tpu.dot_dimension_numbers<[1], [1], [0], [0], [0, 0, 1, 0], [], []>} : vector<9x8xbf16>, vector<9x8xbf16>, vector<9x9xf32> -> vector<9x9xf32>
    %cst_28 = arith.constant 0.353553385 : f32
    %55 = vector.broadcast %cst_28 : f32 to vector<9x9xf32>
    %56 = arith.mulf %54, %55 : vector<9x9xf32>
    %cst_29 = arith.constant dense<0xFF800000> : vector<9xf32>
    %57 = vector.multi_reduction <maximumf>, %56, %cst_29 [1] : vector<9x9xf32> to vector<9xf32>
    %58 = vector.shape_cast %57 : vector<9xf32> to vector<9x1xf32>
    %59 = vector.broadcast %58 : vector<9x1xf32> to vector<9x9xf32>
    %60 = arith.subf %56, %59 : vector<9x9xf32>
    %61 = math.exp %60 : vector<9x9xf32>
    %cst_30 = arith.constant dense<0.000000e+00> : vector<9xf32>
    %62 = vector.multi_reduction <add>, %61, %cst_30 [1] : vector<9x9xf32> to vector<9xf32>
    %63 = vector.shape_cast %62 : vector<9xf32> to vector<9x1xf32>
    %64 = vector.broadcast %63 : vector<9x1xf32> to vector<9x9xf32>
    %65 = arith.divf %61, %64 : vector<9x9xf32>
    %66 = vector.extract_strided_slice %48 {offsets = [0, 0], sizes = [9, 8], strides = [1, 1]} : vector<9x32xf32> to vector<9x8xf32>
    %67 = arith.truncf %65 : vector<9x9xf32> to vector<9x9xbf16>
    %68 = arith.truncf %66 : vector<9x8xf32> to vector<9x8xbf16>
    %cst_31 = arith.constant dense<0.000000e+00> : vector<9x8xf32>
    %69 = tpu.matmul %67, %68, %cst_31 {dimension_numbers = #tpu.dot_dimension_numbers<[1], [0], [0], [1], [0, 0, 1, 1], [], []>} : vector<9x9xbf16>, vector<9x8xbf16>, vector<9x8xf32> -> vector<9x8xf32>
    %70 = vector.extract_strided_slice %49 {offsets = [0, 0], sizes = [8, 32], strides = [1, 1]} : vector<32x32xf32> to vector<8x32xf32>
    %71 = arith.truncf %69 : vector<9x8xf32> to vector<9x8xbf16>
    %72 = arith.truncf %70 : vector<8x32xf32> to vector<8x32xbf16>
    %cst_32 = arith.constant dense<0.000000e+00> : vector<9x32xf32>
    %73 = tpu.matmul %71, %72, %cst_32 {dimension_numbers = #tpu.dot_dimension_numbers<[1], [0], [0], [1], [0, 0, 1, 1], [], []>} : vector<9x8xbf16>, vector<8x32xbf16>, vector<9x32xf32> -> vector<9x32xf32>
    %74 = vector.extract_strided_slice %34 {offsets = [0, 8], sizes = [9, 8], strides = [1, 1]} : vector<9x32xf32> to vector<9x8xf32>
    %75 = vector.extract_strided_slice %41 {offsets = [0, 8], sizes = [9, 8], strides = [1, 1]} : vector<9x32xf32> to vector<9x8xf32>
    %76 = arith.truncf %74 : vector<9x8xf32> to vector<9x8xbf16>
    %77 = arith.truncf %75 : vector<9x8xf32> to vector<9x8xbf16>
    %cst_33 = arith.constant dense<0.000000e+00> : vector<9x9xf32>
    %78 = tpu.matmul %76, %77, %cst_33 {dimension_numbers = #tpu.dot_dimension_numbers<[1], [1], [0], [0], [0, 0, 1, 0], [], []>} : vector<9x8xbf16>, vector<9x8xbf16>, vector<9x9xf32> -> vector<9x9xf32>
    %cst_34 = arith.constant 0.353553385 : f32
    %79 = vector.broadcast %cst_34 : f32 to vector<9x9xf32>
    %80 = arith.mulf %78, %79 : vector<9x9xf32>
    %cst_35 = arith.constant dense<0xFF800000> : vector<9xf32>
    %81 = vector.multi_reduction <maximumf>, %80, %cst_35 [1] : vector<9x9xf32> to vector<9xf32>
    %82 = vector.shape_cast %81 : vector<9xf32> to vector<9x1xf32>
    %83 = vector.broadcast %82 : vector<9x1xf32> to vector<9x9xf32>
    %84 = arith.subf %80, %83 : vector<9x9xf32>
    %85 = math.exp %84 : vector<9x9xf32>
    %cst_36 = arith.constant dense<0.000000e+00> : vector<9xf32>
    %86 = vector.multi_reduction <add>, %85, %cst_36 [1] : vector<9x9xf32> to vector<9xf32>
    %87 = vector.shape_cast %86 : vector<9xf32> to vector<9x1xf32>
    %88 = vector.broadcast %87 : vector<9x1xf32> to vector<9x9xf32>
    %89 = arith.divf %85, %88 : vector<9x9xf32>
    %90 = vector.extract_strided_slice %48 {offsets = [0, 8], sizes = [9, 8], strides = [1, 1]} : vector<9x32xf32> to vector<9x8xf32>
    %91 = arith.truncf %89 : vector<9x9xf32> to vector<9x9xbf16>
    %92 = arith.truncf %90 : vector<9x8xf32> to vector<9x8xbf16>
    %cst_37 = arith.constant dense<0.000000e+00> : vector<9x8xf32>
    %93 = tpu.matmul %91, %92, %cst_37 {dimension_numbers = #tpu.dot_dimension_numbers<[1], [0], [0], [1], [0, 0, 1, 1], [], []>} : vector<9x9xbf16>, vector<9x8xbf16>, vector<9x8xf32> -> vector<9x8xf32>
    %94 = vector.extract_strided_slice %49 {offsets = [8, 0], sizes = [8, 32], strides = [1, 1]} : vector<32x32xf32> to vector<8x32xf32>
    %95 = arith.truncf %93 : vector<9x8xf32> to vector<9x8xbf16>
    %96 = arith.truncf %94 : vector<8x32xf32> to vector<8x32xbf16>
    %cst_38 = arith.constant dense<0.000000e+00> : vector<9x32xf32>
    %97 = tpu.matmul %95, %96, %cst_38 {dimension_numbers = #tpu.dot_dimension_numbers<[1], [0], [0], [1], [0, 0, 1, 1], [], []>} : vector<9x8xbf16>, vector<8x32xbf16>, vector<9x32xf32> -> vector<9x32xf32>
    %98 = arith.addf %73, %97 : vector<9x32xf32>
    %99 = vector.extract_strided_slice %34 {offsets = [0, 16], sizes = [9, 8], strides = [1, 1]} : vector<9x32xf32> to vector<9x8xf32>
    %100 = vector.extract_strided_slice %41 {offsets = [0, 16], sizes = [9, 8], strides = [1, 1]} : vector<9x32xf32> to vector<9x8xf32>
    %101 = arith.truncf %99 : vector<9x8xf32> to vector<9x8xbf16>
    %102 = arith.truncf %100 : vector<9x8xf32> to vector<9x8xbf16>
    %cst_39 = arith.constant dense<0.000000e+00> : vector<9x9xf32>
    %103 = tpu.matmul %101, %102, %cst_39 {dimension_numbers = #tpu.dot_dimension_numbers<[1], [1], [0], [0], [0, 0, 1, 0], [], []>} : vector<9x8xbf16>, vector<9x8xbf16>, vector<9x9xf32> -> vector<9x9xf32>
    %cst_40 = arith.constant 0.353553385 : f32
    %104 = vector.broadcast %cst_40 : f32 to vector<9x9xf32>
    %105 = arith.mulf %103, %104 : vector<9x9xf32>
    %cst_41 = arith.constant dense<0xFF800000> : vector<9xf32>
    %106 = vector.multi_reduction <maximumf>, %105, %cst_41 [1] : vector<9x9xf32> to vector<9xf32>
    %107 = vector.shape_cast %106 : vector<9xf32> to vector<9x1xf32>
    %108 = vector.broadcast %107 : vector<9x1xf32> to vector<9x9xf32>
    %109 = arith.subf %105, %108 : vector<9x9xf32>
    %110 = math.exp %109 : vector<9x9xf32>
    %cst_42 = arith.constant dense<0.000000e+00> : vector<9xf32>
    %111 = vector.multi_reduction <add>, %110, %cst_42 [1] : vector<9x9xf32> to vector<9xf32>
    %112 = vector.shape_cast %111 : vector<9xf32> to vector<9x1xf32>
    %113 = vector.broadcast %112 : vector<9x1xf32> to vector<9x9xf32>
    %114 = arith.divf %110, %113 : vector<9x9xf32>
    %115 = vector.extract_strided_slice %48 {offsets = [0, 16], sizes = [9, 8], strides = [1, 1]} : vector<9x32xf32> to vector<9x8xf32>
    %116 = arith.truncf %114 : vector<9x9xf32> to vector<9x9xbf16>
    %117 = arith.truncf %115 : vector<9x8xf32> to vector<9x8xbf16>
    %cst_43 = arith.constant dense<0.000000e+00> : vector<9x8xf32>
    %118 = tpu.matmul %116, %117, %cst_43 {dimension_numbers = #tpu.dot_dimension_numbers<[1], [0], [0], [1], [0, 0, 1, 1], [], []>} : vector<9x9xbf16>, vector<9x8xbf16>, vector<9x8xf32> -> vector<9x8xf32>
    %119 = vector.extract_strided_slice %49 {offsets = [16, 0], sizes = [8, 32], strides = [1, 1]} : vector<32x32xf32> to vector<8x32xf32>
    %120 = arith.truncf %118 : vector<9x8xf32> to vector<9x8xbf16>
    %121 = arith.truncf %119 : vector<8x32xf32> to vector<8x32xbf16>
    %cst_44 = arith.constant dense<0.000000e+00> : vector<9x32xf32>
    %122 = tpu.matmul %120, %121, %cst_44 {dimension_numbers = #tpu.dot_dimension_numbers<[1], [0], [0], [1], [0, 0, 1, 1], [], []>} : vector<9x8xbf16>, vector<8x32xbf16>, vector<9x32xf32> -> vector<9x32xf32>
    %123 = arith.addf %98, %122 : vector<9x32xf32>
    %124 = vector.extract_strided_slice %34 {offsets = [0, 24], sizes = [9, 8], strides = [1, 1]} : vector<9x32xf32> to vector<9x8xf32>
    %125 = vector.extract_strided_slice %41 {offsets = [0, 24], sizes = [9, 8], strides = [1, 1]} : vector<9x32xf32> to vector<9x8xf32>
    %126 = arith.truncf %124 : vector<9x8xf32> to vector<9x8xbf16>
    %127 = arith.truncf %125 : vector<9x8xf32> to vector<9x8xbf16>
    %cst_45 = arith.constant dense<0.000000e+00> : vector<9x9xf32>
    %128 = tpu.matmul %126, %127, %cst_45 {dimension_numbers = #tpu.dot_dimension_numbers<[1], [1], [0], [0], [0, 0, 1, 0], [], []>} : vector<9x8xbf16>, vector<9x8xbf16>, vector<9x9xf32> -> vector<9x9xf32>
    %cst_46 = arith.constant 0.353553385 : f32
    %129 = vector.broadcast %cst_46 : f32 to vector<9x9xf32>
    %130 = arith.mulf %128, %129 : vector<9x9xf32>
    %cst_47 = arith.constant dense<0xFF800000> : vector<9xf32>
    %131 = vector.multi_reduction <maximumf>, %130, %cst_47 [1] : vector<9x9xf32> to vector<9xf32>
    %132 = vector.shape_cast %131 : vector<9xf32> to vector<9x1xf32>
    %133 = vector.broadcast %132 : vector<9x1xf32> to vector<9x9xf32>
    %134 = arith.subf %130, %133 : vector<9x9xf32>
    %135 = math.exp %134 : vector<9x9xf32>
    %cst_48 = arith.constant dense<0.000000e+00> : vector<9xf32>
    %136 = vector.multi_reduction <add>, %135, %cst_48 [1] : vector<9x9xf32> to vector<9xf32>
    %137 = vector.shape_cast %136 : vector<9xf32> to vector<9x1xf32>
    %138 = vector.broadcast %137 : vector<9x1xf32> to vector<9x9xf32>
    %139 = arith.divf %135, %138 : vector<9x9xf32>
    %140 = vector.extract_strided_slice %48 {offsets = [0, 24], sizes = [9, 8], strides = [1, 1]} : vector<9x32xf32> to vector<9x8xf32>
    %141 = arith.truncf %139 : vector<9x9xf32> to vector<9x9xbf16>
    %142 = arith.truncf %140 : vector<9x8xf32> to vector<9x8xbf16>
    %cst_49 = arith.constant dense<0.000000e+00> : vector<9x8xf32>
    %143 = tpu.matmul %141, %142, %cst_49 {dimension_numbers = #tpu.dot_dimension_numbers<[1], [0], [0], [1], [0, 0, 1, 1], [], []>} : vector<9x9xbf16>, vector<9x8xbf16>, vector<9x8xf32> -> vector<9x8xf32>
    %144 = vector.extract_strided_slice %49 {offsets = [24, 0], sizes = [8, 32], strides = [1, 1]} : vector<32x32xf32> to vector<8x32xf32>
    %145 = arith.truncf %143 : vector<9x8xf32> to vector<9x8xbf16>
    %146 = arith.truncf %144 : vector<8x32xf32> to vector<8x32xbf16>
    %cst_50 = arith.constant dense<0.000000e+00> : vector<9x32xf32>
    %147 = tpu.matmul %145, %146, %cst_50 {dimension_numbers = #tpu.dot_dimension_numbers<[1], [0], [0], [1], [0, 0, 1, 1], [], []>} : vector<9x8xbf16>, vector<8x32xbf16>, vector<9x32xf32> -> vector<9x32xf32>
    %148 = arith.addf %123, %147 : vector<9x32xf32>
    %149 = arith.addf %1, %148 : vector<9x32xf32>
    %c0_51 = arith.constant 0 : index
    %c0_52 = arith.constant 0 : index
    %150 = vector.load %arg11[%c0_51, %c0_52] : memref<1x32xf32, #tpu.memory_space<vmem>>, vector<1x32xf32>
    %151 = vector.broadcast %150 : vector<1x32xf32> to vector<9x32xf32>
    %152 = arith.addf %149, %151 : vector<9x32xf32>
    %c0_53 = arith.constant 0 : index
    %c0_54 = arith.constant 0 : index
    %153 = vector.load %arg12[%c0_53, %c0_54] : memref<1x32xf32, #tpu.memory_space<vmem>>, vector<1x32xf32>
    %c0_55 = arith.constant 0 : index
    %c0_56 = arith.constant 0 : index
    %154 = vector.load %arg13[%c0_55, %c0_56] : memref<1x32xf32, #tpu.memory_space<vmem>>, vector<1x32xf32>
    %cst_57 = arith.constant dense<0.000000e+00> : vector<9xf32>
    %155 = vector.multi_reduction <add>, %152, %cst_57 [1] : vector<9x32xf32> to vector<9xf32>
    %156 = vector.shape_cast %155 : vector<9xf32> to vector<9x1xf32>
    %cst_58 = arith.constant 3.200000e+01 : f32
    %157 = vector.broadcast %cst_58 : f32 to vector<9x1xf32>
    %158 = arith.divf %156, %157 : vector<9x1xf32>
    %159 = vector.broadcast %158 : vector<9x1xf32> to vector<9x32xf32>
    %160 = arith.subf %152, %159 : vector<9x32xf32>
    %161 = vector.broadcast %158 : vector<9x1xf32> to vector<9x32xf32>
    %162 = arith.subf %152, %161 : vector<9x32xf32>
    %163 = arith.mulf %160, %162 : vector<9x32xf32>
    %cst_59 = arith.constant dense<0.000000e+00> : vector<9xf32>
    %164 = vector.multi_reduction <add>, %163, %cst_59 [1] : vector<9x32xf32> to vector<9xf32>
    %165 = vector.shape_cast %164 : vector<9xf32> to vector<9x1xf32>
    %cst_60 = arith.constant 3.200000e+01 : f32
    %166 = vector.broadcast %cst_60 : f32 to vector<9x1xf32>
    %167 = arith.divf %165, %166 : vector<9x1xf32>
    %168 = vector.broadcast %158 : vector<9x1xf32> to vector<9x32xf32>
    %169 = arith.subf %152, %168 : vector<9x32xf32>
    %cst_61 = arith.constant 9.99999974E-6 : f32
    %170 = vector.broadcast %cst_61 : f32 to vector<9x1xf32>
    %171 = arith.addf %167, %170 : vector<9x1xf32>
    %172 = math.rsqrt %171 : vector<9x1xf32>
    %173 = vector.broadcast %172 : vector<9x1xf32> to vector<9x32xf32>
    %174 = arith.mulf %169, %173 : vector<9x32xf32>
    %175 = vector.broadcast %153 : vector<1x32xf32> to vector<9x32xf32>
    %176 = arith.mulf %174, %175 : vector<9x32xf32>
    %177 = vector.broadcast %154 : vector<1x32xf32> to vector<9x32xf32>
    %178 = arith.addf %176, %177 : vector<9x32xf32>
    %c0_62 = arith.constant 0 : index
    %c0_63 = arith.constant 0 : index
    %179 = vector.load %arg14[%c0_62, %c0_63] : memref<32x128xf32, #tpu.memory_space<vmem>>, vector<32x128xf32>
    %180 = arith.truncf %178 : vector<9x32xf32> to vector<9x32xbf16>
    %181 = arith.truncf %179 : vector<32x128xf32> to vector<32x128xbf16>
    %cst_64 = arith.constant dense<0.000000e+00> : vector<9x128xf32>
    %182 = tpu.matmul %180, %181, %cst_64 {dimension_numbers = #tpu.dot_dimension_numbers<[1], [0], [0], [1], [0, 0, 1, 1], [], []>} : vector<9x32xbf16>, vector<32x128xbf16>, vector<9x128xf32> -> vector<9x128xf32>
    %c0_65 = arith.constant 0 : index
    %c0_66 = arith.constant 0 : index
    %183 = vector.load %arg15[%c0_65, %c0_66] : memref<1x128xf32, #tpu.memory_space<vmem>>, vector<1x128xf32>
    %184 = vector.broadcast %183 : vector<1x128xf32> to vector<9x128xf32>
    %185 = arith.addf %182, %184 : vector<9x128xf32>
    %186 = arith.mulf %185, %185 : vector<9x128xf32>
    %187 = arith.mulf %185, %186 : vector<9x128xf32>
    %cst_67 = arith.constant 4.471500e-02 : f32
    %188 = vector.broadcast %cst_67 : f32 to vector<9x128xf32>
    %189 = arith.mulf %188, %187 : vector<9x128xf32>
    %190 = arith.addf %185, %189 : vector<9x128xf32>
    %cst_68 = arith.constant 0.797884583 : f32
    %191 = vector.broadcast %cst_68 : f32 to vector<9x128xf32>
    %192 = arith.mulf %191, %190 : vector<9x128xf32>
    %193 = math.tanh %192 : vector<9x128xf32>
    %cst_69 = arith.constant 1.000000e+00 : f32
    %194 = vector.broadcast %cst_69 : f32 to vector<9x128xf32>
    %195 = arith.addf %194, %193 : vector<9x128xf32>
    %cst_70 = arith.constant 5.000000e-01 : f32
    %196 = vector.broadcast %cst_70 : f32 to vector<9x128xf32>
    %197 = arith.mulf %196, %195 : vector<9x128xf32>
    %198 = arith.mulf %185, %197 : vector<9x128xf32>
    %c0_71 = arith.constant 0 : index
    %c0_72 = arith.constant 0 : index
    %199 = vector.load %arg16[%c0_71, %c0_72] : memref<128x32xf32, #tpu.memory_space<vmem>>, vector<128x32xf32>
    %200 = arith.truncf %198 : vector<9x128xf32> to vector<9x128xbf16>
    %201 = arith.truncf %199 : vector<128x32xf32> to vector<128x32xbf16>
    %cst_73 = arith.constant dense<0.000000e+00> : vector<9x32xf32>
    %202 = tpu.matmul %200, %201, %cst_73 {dimension_numbers = #tpu.dot_dimension_numbers<[1], [0], [0], [1], [0, 0, 1, 1], [], []>} : vector<9x128xbf16>, vector<128x32xbf16>, vector<9x32xf32> -> vector<9x32xf32>
    %203 = arith.addf %152, %202 : vector<9x32xf32>
    %c0_74 = arith.constant 0 : index
    %c0_75 = arith.constant 0 : index
    %204 = vector.load %arg17[%c0_74, %c0_75] : memref<1x32xf32, #tpu.memory_space<vmem>>, vector<1x32xf32>
    %205 = vector.broadcast %204 : vector<1x32xf32> to vector<9x32xf32>
    %206 = arith.addf %203, %205 : vector<9x32xf32>
    %c0_76 = arith.constant 0 : index
    %c0_77 = arith.constant 0 : index
    %c0_78 = arith.constant 0 : index
    %207 = vector.load %arg18[%c0_76, %c0_77, %c0_78] : memref<1x9x32xf32, #tpu.memory_space<vmem>>, vector<1x9x32xf32>
    %208 = vector.shape_cast %207 : vector<1x9x32xf32> to vector<9x32xf32>
    %209 = vector.shape_cast %206 : vector<9x32xf32> to vector<1x9x32xf32>
    tpu.vector_store %arg18[%c0_76, %c0_77, %c0_78], %209 {strides = array<i32>} : memref<1x9x32xf32, #tpu.memory_space<vmem>>, vector<1x9x32xf32>,
    return
  }
  func.func @transform_0(%arg0: i32) -> (i32, i32, i32) {
    %c0_i32 = arith.constant 0 : i32
    %c0_i32_0 = arith.constant 0 : i32
    %c0_i32_1 = arith.constant 0 : i32
    return %arg0, %c0_i32, %c0_i32_0 : i32, i32, i32
  }
  func.func @transform_1(%arg0: i32) -> (i32, i32) {
    %c0_i32 = arith.constant 0 : i32
    %c0_i32_0 = arith.constant 0 : i32
    %c0_i32_1 = arith.constant 0 : i32
    return %c0_i32, %c0_i32_0 : i32, i32
  }
  func.func @transform_2(%arg0: i32) -> (i32, i32) {
    %c0_i32 = arith.constant 0 : i32
    %c0_i32_0 = arith.constant 0 : i32
    %c0_i32_1 = arith.constant 0 : i32
    return %c0_i32, %c0_i32_0 : i32, i32
  }
  func.func @transform_3(%arg0: i32) -> (i32, i32) {
    %c0_i32 = arith.constant 0 : i32
    %c0_i32_0 = arith.constant 0 : i32
    %c0_i32_1 = arith.constant 0 : i32
    return %c0_i32, %c0_i32_0 : i32, i32
  }
  func.func @transform_4(%arg0: i32) -> (i32, i32) {
    %c0_i32 = arith.constant 0 : i32
    %c0_i32_0 = arith.constant 0 : i32
    %c0_i32_1 = arith.constant 0 : i32
    return %c0_i32, %c0_i32_0 : i32, i32
  }
  func.func @transform_5(%arg0: i32) -> (i32, i32) {
    %c0_i32 = arith.constant 0 : i32
    %c0_i32_0 = arith.constant 0 : i32
    %c0_i32_1 = arith.constant 0 : i32
    return %c0_i32, %c0_i32_0 : i32, i32
  }
  func.func @transform_6(%arg0: i32) -> (i32, i32) {
    %c0_i32 = arith.constant 0 : i32
    %c0_i32_0 = arith.constant 0 : i32
    %c0_i32_1 = arith.constant 0 : i32
    return %c0_i32, %c0_i32_0 : i32, i32
  }
  func.func @transform_7(%arg0: i32) -> (i32, i32) {
    %c0_i32 = arith.constant 0 : i32
    %c0_i32_0 = arith.constant 0 : i32
    %c0_i32_1 = arith.constant 0 : i32
    return %c0_i32, %c0_i32_0 : i32, i32
  }
  func.func @transform_8(%arg0: i32) -> (i32, i32) {
    %c0_i32 = arith.constant 0 : i32
    %c0_i32_0 = arith.constant 0 : i32
    %c0_i32_1 = arith.constant 0 : i32
    return %c0_i32, %c0_i32_0 : i32, i32
  }
  func.func @transform_9(%arg0: i32) -> (i32, i32) {
    %c0_i32 = arith.constant 0 : i32
    %c0_i32_0 = arith.constant 0 : i32
    %c0_i32_1 = arith.constant 0 : i32
    return %c0_i32, %c0_i32_0 : i32, i32
  }
  func.func @transform_10(%arg0: i32) -> (i32, i32) {
    %c0_i32 = arith.constant 0 : i32
    %c0_i32_0 = arith.constant 0 : i32
    %c0_i32_1 = arith.constant 0 : i32
    return %c0_i32, %c0_i32_0 : i32, i32
  }
  func.func @transform_11(%arg0: i32) -> (i32, i32) {
    %c0_i32 = arith.constant 0 : i32
    %c0_i32_0 = arith.constant 0 : i32
    %c0_i32_1 = arith.constant 0 : i32
    return %c0_i32, %c0_i32_0 : i32, i32
  }
  func.func @transform_12(%arg0: i32) -> (i32, i32) {
    %c0_i32 = arith.constant 0 : i32
    %c0_i32_0 = arith.constant 0 : i32
    %c0_i32_1 = arith.constant 0 : i32
    return %c0_i32, %c0_i32_0 : i32, i32
  }
  func.func @transform_13(%arg0: i32) -> (i32, i32) {
    %c0_i32 = arith.constant 0 : i32
    %c0_i32_0 = arith.constant 0 : i32
    %c0_i32_1 = arith.constant 0 : i32
    return %c0_i32, %c0_i32_0 : i32, i32
  }
  func.func @transform_14(%arg0: i32) -> (i32, i32) {
    %c0_i32 = arith.constant 0 : i32
    %c0_i32_0 = arith.constant 0 : i32
    %c0_i32_1 = arith.constant 0 : i32
    return %c0_i32, %c0_i32_0 : i32, i32
  }
  func.func @transform_15(%arg0: i32) -> (i32, i32) {
    %c0_i32 = arith.constant 0 : i32
    %c0_i32_0 = arith.constant 0 : i32
    %c0_i32_1 = arith.constant 0 : i32
    return %c0_i32, %c0_i32_0 : i32, i32
  }
  func.func @transform_16(%arg0: i32) -> (i32, i32) {
    %c0_i32 = arith.constant 0 : i32
    %c0_i32_0 = arith.constant 0 : i32
    %c0_i32_1 = arith.constant 0 : i32
    return %c0_i32, %c0_i32_0 : i32, i32
  }
  func.func @transform_17(%arg0: i32) -> (i32, i32, i32) {
    %c0_i32 = arith.constant 0 : i32
    %c0_i32_0 = arith.constant 0 : i32
    %c0_i32_1 = arith.constant 0 : i32
    return %arg0, %c0_i32, %c0_i32_0 : i32, i32, i32
  }
}

module attributes {stable_mosaic.version = 11 : i64} {
  func.func @kernel(%arg0: i32, %arg1: memref<1x8x32xf32, #tpu.memory_space<vmem>>, %arg2: memref<1x4x32xf32, #tpu.memory_space<vmem>>, %arg3: memref<8x4xf32, #tpu.memory_space<vmem>>, %arg4: memref<8x4xf32, #tpu.memory_space<vmem>>, %arg5: memref<1x32xf32, #tpu.memory_space<vmem>>, %arg6: memref<32x32xf32, #tpu.memory_space<vmem>>, %arg7: memref<1x32xf32, #tpu.memory_space<vmem>>, %arg8: memref<32x32xf32, #tpu.memory_space<vmem>>, %arg9: memref<32x32xf32, #tpu.memory_space<vmem>>, %arg10: memref<32x32xf32, #tpu.memory_space<vmem>>, %arg11: memref<1x32xf32, #tpu.memory_space<vmem>>, %arg12: memref<1x4xf32, #tpu.memory_space<vmem>>, %arg13: memref<1x32xf32, #tpu.memory_space<vmem>>, %arg14: memref<32x96xf32, #tpu.memory_space<vmem>>, %arg15: memref<1x96xf32, #tpu.memory_space<vmem>>, %arg16: memref<32x96xf32, #tpu.memory_space<vmem>>, %arg17: memref<1x96xf32, #tpu.memory_space<vmem>>, %arg18: memref<96x32xf32, #tpu.memory_space<vmem>>, %arg19: memref<1x32xf32, #tpu.memory_space<vmem>>, %arg20: memref<1x8x32xf32, #tpu.memory_space<vmem>>) attributes {dimension_semantics = [#tpu.dimension_semantics<parallel>], iteration_bounds = array<i64: 2>, scalar_prefetch = 0 : i64, scratch_operands = 0 : i64, tpu.core_type = #tpu.core_type<tc>, window_params = [{transform_indices = @transform_0, window_bounds = array<i64: 1, 8, 32>}, {transform_indices = @transform_1, window_bounds = array<i64: 1, 4, 32>}, {pipeline_mode = #tpu.pipeline_mode<synchronous>, transform_indices = @transform_2, window_bounds = array<i64: 8, 4>}, {pipeline_mode = #tpu.pipeline_mode<synchronous>, transform_indices = @transform_3, window_bounds = array<i64: 8, 4>}, {pipeline_mode = #tpu.pipeline_mode<synchronous>, transform_indices = @transform_4, window_bounds = array<i64: 1, 32>}, {pipeline_mode = #tpu.pipeline_mode<synchronous>, transform_indices = @transform_5, window_bounds = array<i64: 32, 32>}, {pipeline_mode = #tpu.pipeline_mode<synchronous>, transform_indices = @transform_6, window_bounds = array<i64: 1, 32>}, {pipeline_mode = #tpu.pipeline_mode<synchronous>, transform_indices = @transform_7, window_bounds = array<i64: 32, 32>}, {pipeline_mode = #tpu.pipeline_mode<synchronous>, transform_indices = @transform_8, window_bounds = array<i64: 32, 32>}, {pipeline_mode = #tpu.pipeline_mode<synchronous>, transform_indices = @transform_9, window_bounds = array<i64: 32, 32>}, {pipeline_mode = #tpu.pipeline_mode<synchronous>, transform_indices = @transform_10, window_bounds = array<i64: 1, 32>}, {pipeline_mode = #tpu.pipeline_mode<synchronous>, transform_indices = @transform_11, window_bounds = array<i64: 1, 4>}, {pipeline_mode = #tpu.pipeline_mode<synchronous>, transform_indices = @transform_12, window_bounds = array<i64: 1, 32>}, {pipeline_mode = #tpu.pipeline_mode<synchronous>, transform_indices = @transform_13, window_bounds = array<i64: 32, 96>}, {pipeline_mode = #tpu.pipeline_mode<synchronous>, transform_indices = @transform_14, window_bounds = array<i64: 1, 96>}, {pipeline_mode = #tpu.pipeline_mode<synchronous>, transform_indices = @transform_15, window_bounds = array<i64: 32, 96>}, {pipeline_mode = #tpu.pipeline_mode<synchronous>, transform_indices = @transform_16, window_bounds = array<i64: 1, 96>}, {pipeline_mode = #tpu.pipeline_mode<synchronous>, transform_indices = @transform_17, window_bounds = array<i64: 96, 32>}, {pipeline_mode = #tpu.pipeline_mode<synchronous>, transform_indices = @transform_18, window_bounds = array<i64: 1, 32>}, {transform_indices = @transform_19, window_bounds = array<i64: 1, 8, 32>}]} {
    %c0 = arith.constant 0 : index
    %c0_0 = arith.constant 0 : index
    %c0_1 = arith.constant 0 : index
    %0 = vector.load %arg1[%c0, %c0_0, %c0_1] : memref<1x8x32xf32, #tpu.memory_space<vmem>>, vector<1x8x32xf32>
    %1 = vector.shape_cast %0 : vector<1x8x32xf32> to vector<8x32xf32>
    %c0_2 = arith.constant 0 : index
    %c0_3 = arith.constant 0 : index
    %2 = vector.load %arg3[%c0_2, %c0_3] : memref<8x4xf32, #tpu.memory_space<vmem>>, vector<8x4xf32>
    %c0_4 = arith.constant 0 : index
    %c0_5 = arith.constant 0 : index
    %3 = vector.load %arg4[%c0_4, %c0_5] : memref<8x4xf32, #tpu.memory_space<vmem>>, vector<8x4xf32>
    %c0_6 = arith.constant 0 : index
    %c0_7 = arith.constant 0 : index
    %4 = vector.load %arg5[%c0_6, %c0_7] : memref<1x32xf32, #tpu.memory_space<vmem>>, vector<1x32xf32>
    %5 = arith.mulf %1, %1 : vector<8x32xf32>
    %cst = arith.constant dense<0.000000e+00> : vector<8xf32>
    %6 = vector.multi_reduction <add>, %5, %cst [1] : vector<8x32xf32> to vector<8xf32>
    %7 = vector.shape_cast %6 : vector<8xf32> to vector<8x1xf32>
    %cst_8 = arith.constant 3.200000e+01 : f32
    %8 = vector.broadcast %cst_8 : f32 to vector<8x1xf32>
    %9 = arith.divf %7, %8 : vector<8x1xf32>
    %cst_9 = arith.constant 9.99999974E-6 : f32
    %10 = vector.broadcast %cst_9 : f32 to vector<8x1xf32>
    %11 = arith.addf %9, %10 : vector<8x1xf32>
    %12 = math.rsqrt %11 : vector<8x1xf32>
    %13 = vector.broadcast %12 : vector<8x1xf32> to vector<8x32xf32>
    %14 = arith.mulf %1, %13 : vector<8x32xf32>
    %15 = vector.broadcast %4 : vector<1x32xf32> to vector<8x32xf32>
    %16 = arith.mulf %14, %15 : vector<8x32xf32>
    %c0_10 = arith.constant 0 : index
    %c0_11 = arith.constant 0 : index
    %17 = vector.load %arg6[%c0_10, %c0_11] : memref<32x32xf32, #tpu.memory_space<vmem>>, vector<32x32xf32>
    %18 = arith.truncf %16 : vector<8x32xf32> to vector<8x32xbf16>
    %19 = arith.truncf %17 : vector<32x32xf32> to vector<32x32xbf16>
    %cst_12 = arith.constant dense<0.000000e+00> : vector<8x32xf32>
    %20 = tpu.matmul %18, %19, %cst_12 {dimension_numbers = #tpu.dot_dimension_numbers<[1], [0], [0], [1], [0, 0, 1, 1], [], []>} : vector<8x32xbf16>, vector<32x32xbf16>, vector<8x32xf32> -> vector<8x32xf32>
    %c0_13 = arith.constant 0 : index
    %c0_14 = arith.constant 0 : index
    %21 = vector.load %arg7[%c0_13, %c0_14] : memref<1x32xf32, #tpu.memory_space<vmem>>, vector<1x32xf32>
    %22 = vector.broadcast %21 : vector<1x32xf32> to vector<8x32xf32>
    %23 = arith.addf %20, %22 : vector<8x32xf32>
    %c0_15 = arith.constant 0 : index
    %c0_16 = arith.constant 0 : index
    %24 = vector.load %arg8[%c0_15, %c0_16] : memref<32x32xf32, #tpu.memory_space<vmem>>, vector<32x32xf32>
    %25 = arith.truncf %16 : vector<8x32xf32> to vector<8x32xbf16>
    %26 = arith.truncf %24 : vector<32x32xf32> to vector<32x32xbf16>
    %cst_17 = arith.constant dense<0.000000e+00> : vector<8x32xf32>
    %27 = tpu.matmul %25, %26, %cst_17 {dimension_numbers = #tpu.dot_dimension_numbers<[1], [0], [0], [1], [0, 0, 1, 1], [], []>} : vector<8x32xbf16>, vector<32x32xbf16>, vector<8x32xf32> -> vector<8x32xf32>
    %c0_18 = arith.constant 0 : index
    %c0_19 = arith.constant 0 : index
    %28 = vector.load %arg9[%c0_18, %c0_19] : memref<32x32xf32, #tpu.memory_space<vmem>>, vector<32x32xf32>
    %29 = arith.truncf %16 : vector<8x32xf32> to vector<8x32xbf16>
    %30 = arith.truncf %28 : vector<32x32xf32> to vector<32x32xbf16>
    %cst_20 = arith.constant dense<0.000000e+00> : vector<8x32xf32>
    %31 = tpu.matmul %29, %30, %cst_20 {dimension_numbers = #tpu.dot_dimension_numbers<[1], [0], [0], [1], [0, 0, 1, 1], [], []>} : vector<8x32xbf16>, vector<32x32xbf16>, vector<8x32xf32> -> vector<8x32xf32>
    %c0_21 = arith.constant 0 : index
    %c0_22 = arith.constant 0 : index
    %c0_23 = arith.constant 0 : index
    %32 = vector.load %arg2[%c0_21, %c0_22, %c0_23] : memref<1x4x32xf32, #tpu.memory_space<vmem>>, vector<1x4x32xf32>
    %33 = vector.shape_cast %32 : vector<1x4x32xf32> to vector<4x32xf32>
    %c0_24 = arith.constant 0 : index
    %c0_25 = arith.constant 0 : index
    %34 = vector.load %arg8[%c0_24, %c0_25] : memref<32x32xf32, #tpu.memory_space<vmem>>, vector<32x32xf32>
    %35 = arith.truncf %33 : vector<4x32xf32> to vector<4x32xbf16>
    %36 = arith.truncf %34 : vector<32x32xf32> to vector<32x32xbf16>
    %cst_26 = arith.constant dense<0.000000e+00> : vector<4x32xf32>
    %37 = tpu.matmul %35, %36, %cst_26 {dimension_numbers = #tpu.dot_dimension_numbers<[1], [0], [0], [1], [0, 0, 1, 1], [], []>} : vector<4x32xbf16>, vector<32x32xbf16>, vector<4x32xf32> -> vector<4x32xf32>
    %c0_27 = arith.constant 0 : index
    %c0_28 = arith.constant 0 : index
    %38 = vector.load %arg9[%c0_27, %c0_28] : memref<32x32xf32, #tpu.memory_space<vmem>>, vector<32x32xf32>
    %39 = arith.truncf %33 : vector<4x32xf32> to vector<4x32xbf16>
    %40 = arith.truncf %38 : vector<32x32xf32> to vector<32x32xbf16>
    %cst_29 = arith.constant dense<0.000000e+00> : vector<4x32xf32>
    %41 = tpu.matmul %39, %40, %cst_29 {dimension_numbers = #tpu.dot_dimension_numbers<[1], [0], [0], [1], [0, 0, 1, 1], [], []>} : vector<4x32xbf16>, vector<32x32xbf16>, vector<4x32xf32> -> vector<4x32xf32>
    %c0_30 = arith.constant 0 : index
    %c0_31 = arith.constant 0 : index
    %42 = vector.load %arg12[%c0_30, %c0_31] : memref<1x4xf32, #tpu.memory_space<vmem>>, vector<1x4xf32>
    %43 = tpu.iota {dimensions = array<i32: 0>} : vector<8x8xi32>
    %44 = tpu.iota {dimensions = array<i32: 1>} : vector<8x8xi32>
    %45 = arith.cmpi sgt, %44, %43 : vector<8x8xi32>
    %cst_32 = arith.constant -1.000000e+30 : f32
    %cst_33 = arith.constant 0.000000e+00 : f32
    %46 = vector.broadcast %cst_32 : f32 to vector<8x8xf32>
    %47 = vector.broadcast %cst_33 : f32 to vector<8x8xf32>
    %48 = arith.select %45, %46, %47 : vector<8x8xi1>, vector<8x8xf32>
    %c0_34 = arith.constant 0 : index
    %c0_35 = arith.constant 0 : index
    %49 = vector.load %arg10[%c0_34, %c0_35] : memref<32x32xf32, #tpu.memory_space<vmem>>, vector<32x32xf32>
    %50 = vector.extract_strided_slice %23 {offsets = [0, 0], sizes = [8, 4], strides = [1, 1]} : vector<8x32xf32> to vector<8x4xf32>
    %51 = vector.extract_strided_slice %23 {offsets = [0, 4], sizes = [8, 4], strides = [1, 1]} : vector<8x32xf32> to vector<8x4xf32>
    %52 = vector.extract_strided_slice %27 {offsets = [0, 0], sizes = [8, 4], strides = [1, 1]} : vector<8x32xf32> to vector<8x4xf32>
    %53 = vector.extract_strided_slice %27 {offsets = [0, 4], sizes = [8, 4], strides = [1, 1]} : vector<8x32xf32> to vector<8x4xf32>
    %54 = arith.mulf %50, %2 : vector<8x4xf32>
    %55 = arith.mulf %51, %3 : vector<8x4xf32>
    %56 = arith.subf %54, %55 : vector<8x4xf32>
    %57 = arith.mulf %50, %3 : vector<8x4xf32>
    %58 = arith.mulf %51, %2 : vector<8x4xf32>
    %59 = arith.addf %57, %58 : vector<8x4xf32>
    %60 = arith.mulf %52, %2 : vector<8x4xf32>
    %61 = arith.mulf %53, %3 : vector<8x4xf32>
    %62 = arith.subf %60, %61 : vector<8x4xf32>
    %63 = arith.mulf %52, %3 : vector<8x4xf32>
    %64 = arith.mulf %53, %2 : vector<8x4xf32>
    %65 = arith.addf %63, %64 : vector<8x4xf32>
    %66 = arith.truncf %56 : vector<8x4xf32> to vector<8x4xbf16>
    %67 = arith.truncf %62 : vector<8x4xf32> to vector<8x4xbf16>
    %cst_36 = arith.constant dense<0.000000e+00> : vector<8x8xf32>
    %68 = tpu.matmul %66, %67, %cst_36 {dimension_numbers = #tpu.dot_dimension_numbers<[1], [1], [0], [0], [0, 0, 1, 0], [], []>} : vector<8x4xbf16>, vector<8x4xbf16>, vector<8x8xf32> -> vector<8x8xf32>
    %69 = arith.truncf %59 : vector<8x4xf32> to vector<8x4xbf16>
    %70 = arith.truncf %65 : vector<8x4xf32> to vector<8x4xbf16>
    %cst_37 = arith.constant dense<0.000000e+00> : vector<8x8xf32>
    %71 = tpu.matmul %69, %70, %cst_37 {dimension_numbers = #tpu.dot_dimension_numbers<[1], [1], [0], [0], [0, 0, 1, 0], [], []>} : vector<8x4xbf16>, vector<8x4xbf16>, vector<8x8xf32> -> vector<8x8xf32>
    %72 = arith.addf %68, %71 : vector<8x8xf32>
    %cst_38 = arith.constant 0.353553385 : f32
    %73 = vector.broadcast %cst_38 : f32 to vector<8x8xf32>
    %74 = arith.mulf %72, %73 : vector<8x8xf32>
    %75 = arith.addf %74, %48 : vector<8x8xf32>
    %cst_39 = arith.constant dense<0xFF800000> : vector<8xf32>
    %76 = vector.multi_reduction <maximumf>, %75, %cst_39 [1] : vector<8x8xf32> to vector<8xf32>
    %77 = vector.shape_cast %76 : vector<8xf32> to vector<8x1xf32>
    %78 = vector.broadcast %77 : vector<8x1xf32> to vector<8x8xf32>
    %79 = arith.subf %75, %78 : vector<8x8xf32>
    %80 = math.exp %79 : vector<8x8xf32>
    %cst_40 = arith.constant dense<0.000000e+00> : vector<8xf32>
    %81 = vector.multi_reduction <add>, %80, %cst_40 [1] : vector<8x8xf32> to vector<8xf32>
    %82 = vector.shape_cast %81 : vector<8xf32> to vector<8x1xf32>
    %83 = vector.broadcast %82 : vector<8x1xf32> to vector<8x8xf32>
    %84 = arith.divf %80, %83 : vector<8x8xf32>
    %85 = vector.extract_strided_slice %31 {offsets = [0, 0], sizes = [8, 8], strides = [1, 1]} : vector<8x32xf32> to vector<8x8xf32>
    %86 = arith.truncf %84 : vector<8x8xf32> to vector<8x8xbf16>
    %87 = arith.truncf %85 : vector<8x8xf32> to vector<8x8xbf16>
    %cst_41 = arith.constant dense<0.000000e+00> : vector<8x8xf32>
    %88 = tpu.matmul %86, %87, %cst_41 {dimension_numbers = #tpu.dot_dimension_numbers<[1], [0], [0], [1], [0, 0, 1, 1], [], []>} : vector<8x8xbf16>, vector<8x8xbf16>, vector<8x8xf32> -> vector<8x8xf32>
    %89 = vector.extract_strided_slice %37 {offsets = [0, 0], sizes = [4, 4], strides = [1, 1]} : vector<4x32xf32> to vector<4x4xf32>
    %90 = vector.extract_strided_slice %37 {offsets = [0, 4], sizes = [4, 4], strides = [1, 1]} : vector<4x32xf32> to vector<4x4xf32>
    %91 = arith.truncf %56 : vector<8x4xf32> to vector<8x4xbf16>
    %92 = arith.truncf %89 : vector<4x4xf32> to vector<4x4xbf16>
    %cst_42 = arith.constant dense<0.000000e+00> : vector<8x4xf32>
    %93 = tpu.matmul %91, %92, %cst_42 {dimension_numbers = #tpu.dot_dimension_numbers<[1], [1], [0], [0], [0, 0, 1, 0], [], []>} : vector<8x4xbf16>, vector<4x4xbf16>, vector<8x4xf32> -> vector<8x4xf32>
    %94 = arith.truncf %59 : vector<8x4xf32> to vector<8x4xbf16>
    %95 = arith.truncf %90 : vector<4x4xf32> to vector<4x4xbf16>
    %cst_43 = arith.constant dense<0.000000e+00> : vector<8x4xf32>
    %96 = tpu.matmul %94, %95, %cst_43 {dimension_numbers = #tpu.dot_dimension_numbers<[1], [1], [0], [0], [0, 0, 1, 0], [], []>} : vector<8x4xbf16>, vector<4x4xbf16>, vector<8x4xf32> -> vector<8x4xf32>
    %97 = arith.addf %93, %96 : vector<8x4xf32>
    %cst_44 = arith.constant 0.353553385 : f32
    %98 = vector.broadcast %cst_44 : f32 to vector<8x4xf32>
    %99 = arith.mulf %97, %98 : vector<8x4xf32>
    %cst_45 = arith.constant dense<0xFF800000> : vector<8xf32>
    %100 = vector.multi_reduction <maximumf>, %99, %cst_45 [1] : vector<8x4xf32> to vector<8xf32>
    %101 = vector.shape_cast %100 : vector<8xf32> to vector<8x1xf32>
    %102 = vector.broadcast %101 : vector<8x1xf32> to vector<8x4xf32>
    %103 = arith.subf %99, %102 : vector<8x4xf32>
    %104 = math.exp %103 : vector<8x4xf32>
    %cst_46 = arith.constant dense<0.000000e+00> : vector<8xf32>
    %105 = vector.multi_reduction <add>, %104, %cst_46 [1] : vector<8x4xf32> to vector<8xf32>
    %106 = vector.shape_cast %105 : vector<8xf32> to vector<8x1xf32>
    %107 = vector.broadcast %106 : vector<8x1xf32> to vector<8x4xf32>
    %108 = arith.divf %104, %107 : vector<8x4xf32>
    %109 = vector.extract_strided_slice %41 {offsets = [0, 0], sizes = [4, 8], strides = [1, 1]} : vector<4x32xf32> to vector<4x8xf32>
    %110 = arith.truncf %108 : vector<8x4xf32> to vector<8x4xbf16>
    %111 = arith.truncf %109 : vector<4x8xf32> to vector<4x8xbf16>
    %cst_47 = arith.constant dense<0.000000e+00> : vector<8x8xf32>
    %112 = tpu.matmul %110, %111, %cst_47 {dimension_numbers = #tpu.dot_dimension_numbers<[1], [0], [0], [1], [0, 0, 1, 1], [], []>} : vector<8x4xbf16>, vector<4x8xbf16>, vector<8x8xf32> -> vector<8x8xf32>
    %113 = vector.extract_strided_slice %42 {offsets = [0, 0], sizes = [1, 1], strides = [1, 1]} : vector<1x4xf32> to vector<1x1xf32>
    %114 = vector.broadcast %113 : vector<1x1xf32> to vector<8x8xf32>
    %115 = arith.mulf %114, %112 : vector<8x8xf32>
    %116 = arith.addf %88, %115 : vector<8x8xf32>
    %117 = vector.extract_strided_slice %49 {offsets = [0, 0], sizes = [8, 32], strides = [1, 1]} : vector<32x32xf32> to vector<8x32xf32>
    %118 = arith.truncf %116 : vector<8x8xf32> to vector<8x8xbf16>
    %119 = arith.truncf %117 : vector<8x32xf32> to vector<8x32xbf16>
    %cst_48 = arith.constant dense<0.000000e+00> : vector<8x32xf32>
    %120 = tpu.matmul %118, %119, %cst_48 {dimension_numbers = #tpu.dot_dimension_numbers<[1], [0], [0], [1], [0, 0, 1, 1], [], []>} : vector<8x8xbf16>, vector<8x32xbf16>, vector<8x32xf32> -> vector<8x32xf32>
    %121 = vector.extract_strided_slice %23 {offsets = [0, 8], sizes = [8, 4], strides = [1, 1]} : vector<8x32xf32> to vector<8x4xf32>
    %122 = vector.extract_strided_slice %23 {offsets = [0, 12], sizes = [8, 4], strides = [1, 1]} : vector<8x32xf32> to vector<8x4xf32>
    %123 = vector.extract_strided_slice %27 {offsets = [0, 8], sizes = [8, 4], strides = [1, 1]} : vector<8x32xf32> to vector<8x4xf32>
    %124 = vector.extract_strided_slice %27 {offsets = [0, 12], sizes = [8, 4], strides = [1, 1]} : vector<8x32xf32> to vector<8x4xf32>
    %125 = arith.mulf %121, %2 : vector<8x4xf32>
    %126 = arith.mulf %122, %3 : vector<8x4xf32>
    %127 = arith.subf %125, %126 : vector<8x4xf32>
    %128 = arith.mulf %121, %3 : vector<8x4xf32>
    %129 = arith.mulf %122, %2 : vector<8x4xf32>
    %130 = arith.addf %128, %129 : vector<8x4xf32>
    %131 = arith.mulf %123, %2 : vector<8x4xf32>
    %132 = arith.mulf %124, %3 : vector<8x4xf32>
    %133 = arith.subf %131, %132 : vector<8x4xf32>
    %134 = arith.mulf %123, %3 : vector<8x4xf32>
    %135 = arith.mulf %124, %2 : vector<8x4xf32>
    %136 = arith.addf %134, %135 : vector<8x4xf32>
    %137 = arith.truncf %127 : vector<8x4xf32> to vector<8x4xbf16>
    %138 = arith.truncf %133 : vector<8x4xf32> to vector<8x4xbf16>
    %cst_49 = arith.constant dense<0.000000e+00> : vector<8x8xf32>
    %139 = tpu.matmul %137, %138, %cst_49 {dimension_numbers = #tpu.dot_dimension_numbers<[1], [1], [0], [0], [0, 0, 1, 0], [], []>} : vector<8x4xbf16>, vector<8x4xbf16>, vector<8x8xf32> -> vector<8x8xf32>
    %140 = arith.truncf %130 : vector<8x4xf32> to vector<8x4xbf16>
    %141 = arith.truncf %136 : vector<8x4xf32> to vector<8x4xbf16>
    %cst_50 = arith.constant dense<0.000000e+00> : vector<8x8xf32>
    %142 = tpu.matmul %140, %141, %cst_50 {dimension_numbers = #tpu.dot_dimension_numbers<[1], [1], [0], [0], [0, 0, 1, 0], [], []>} : vector<8x4xbf16>, vector<8x4xbf16>, vector<8x8xf32> -> vector<8x8xf32>
    %143 = arith.addf %139, %142 : vector<8x8xf32>
    %cst_51 = arith.constant 0.353553385 : f32
    %144 = vector.broadcast %cst_51 : f32 to vector<8x8xf32>
    %145 = arith.mulf %143, %144 : vector<8x8xf32>
    %146 = arith.addf %145, %48 : vector<8x8xf32>
    %cst_52 = arith.constant dense<0xFF800000> : vector<8xf32>
    %147 = vector.multi_reduction <maximumf>, %146, %cst_52 [1] : vector<8x8xf32> to vector<8xf32>
    %148 = vector.shape_cast %147 : vector<8xf32> to vector<8x1xf32>
    %149 = vector.broadcast %148 : vector<8x1xf32> to vector<8x8xf32>
    %150 = arith.subf %146, %149 : vector<8x8xf32>
    %151 = math.exp %150 : vector<8x8xf32>
    %cst_53 = arith.constant dense<0.000000e+00> : vector<8xf32>
    %152 = vector.multi_reduction <add>, %151, %cst_53 [1] : vector<8x8xf32> to vector<8xf32>
    %153 = vector.shape_cast %152 : vector<8xf32> to vector<8x1xf32>
    %154 = vector.broadcast %153 : vector<8x1xf32> to vector<8x8xf32>
    %155 = arith.divf %151, %154 : vector<8x8xf32>
    %156 = vector.extract_strided_slice %31 {offsets = [0, 8], sizes = [8, 8], strides = [1, 1]} : vector<8x32xf32> to vector<8x8xf32>
    %157 = arith.truncf %155 : vector<8x8xf32> to vector<8x8xbf16>
    %158 = arith.truncf %156 : vector<8x8xf32> to vector<8x8xbf16>
    %cst_54 = arith.constant dense<0.000000e+00> : vector<8x8xf32>
    %159 = tpu.matmul %157, %158, %cst_54 {dimension_numbers = #tpu.dot_dimension_numbers<[1], [0], [0], [1], [0, 0, 1, 1], [], []>} : vector<8x8xbf16>, vector<8x8xbf16>, vector<8x8xf32> -> vector<8x8xf32>
    %160 = vector.extract_strided_slice %37 {offsets = [0, 8], sizes = [4, 4], strides = [1, 1]} : vector<4x32xf32> to vector<4x4xf32>
    %161 = vector.extract_strided_slice %37 {offsets = [0, 12], sizes = [4, 4], strides = [1, 1]} : vector<4x32xf32> to vector<4x4xf32>
    %162 = arith.truncf %127 : vector<8x4xf32> to vector<8x4xbf16>
    %163 = arith.truncf %160 : vector<4x4xf32> to vector<4x4xbf16>
    %cst_55 = arith.constant dense<0.000000e+00> : vector<8x4xf32>
    %164 = tpu.matmul %162, %163, %cst_55 {dimension_numbers = #tpu.dot_dimension_numbers<[1], [1], [0], [0], [0, 0, 1, 0], [], []>} : vector<8x4xbf16>, vector<4x4xbf16>, vector<8x4xf32> -> vector<8x4xf32>
    %165 = arith.truncf %130 : vector<8x4xf32> to vector<8x4xbf16>
    %166 = arith.truncf %161 : vector<4x4xf32> to vector<4x4xbf16>
    %cst_56 = arith.constant dense<0.000000e+00> : vector<8x4xf32>
    %167 = tpu.matmul %165, %166, %cst_56 {dimension_numbers = #tpu.dot_dimension_numbers<[1], [1], [0], [0], [0, 0, 1, 0], [], []>} : vector<8x4xbf16>, vector<4x4xbf16>, vector<8x4xf32> -> vector<8x4xf32>
    %168 = arith.addf %164, %167 : vector<8x4xf32>
    %cst_57 = arith.constant 0.353553385 : f32
    %169 = vector.broadcast %cst_57 : f32 to vector<8x4xf32>
    %170 = arith.mulf %168, %169 : vector<8x4xf32>
    %cst_58 = arith.constant dense<0xFF800000> : vector<8xf32>
    %171 = vector.multi_reduction <maximumf>, %170, %cst_58 [1] : vector<8x4xf32> to vector<8xf32>
    %172 = vector.shape_cast %171 : vector<8xf32> to vector<8x1xf32>
    %173 = vector.broadcast %172 : vector<8x1xf32> to vector<8x4xf32>
    %174 = arith.subf %170, %173 : vector<8x4xf32>
    %175 = math.exp %174 : vector<8x4xf32>
    %cst_59 = arith.constant dense<0.000000e+00> : vector<8xf32>
    %176 = vector.multi_reduction <add>, %175, %cst_59 [1] : vector<8x4xf32> to vector<8xf32>
    %177 = vector.shape_cast %176 : vector<8xf32> to vector<8x1xf32>
    %178 = vector.broadcast %177 : vector<8x1xf32> to vector<8x4xf32>
    %179 = arith.divf %175, %178 : vector<8x4xf32>
    %180 = vector.extract_strided_slice %41 {offsets = [0, 8], sizes = [4, 8], strides = [1, 1]} : vector<4x32xf32> to vector<4x8xf32>
    %181 = arith.truncf %179 : vector<8x4xf32> to vector<8x4xbf16>
    %182 = arith.truncf %180 : vector<4x8xf32> to vector<4x8xbf16>
    %cst_60 = arith.constant dense<0.000000e+00> : vector<8x8xf32>
    %183 = tpu.matmul %181, %182, %cst_60 {dimension_numbers = #tpu.dot_dimension_numbers<[1], [0], [0], [1], [0, 0, 1, 1], [], []>} : vector<8x4xbf16>, vector<4x8xbf16>, vector<8x8xf32> -> vector<8x8xf32>
    %184 = vector.extract_strided_slice %42 {offsets = [0, 1], sizes = [1, 1], strides = [1, 1]} : vector<1x4xf32> to vector<1x1xf32>
    %185 = vector.broadcast %184 : vector<1x1xf32> to vector<8x8xf32>
    %186 = arith.mulf %185, %183 : vector<8x8xf32>
    %187 = arith.addf %159, %186 : vector<8x8xf32>
    %188 = vector.extract_strided_slice %49 {offsets = [8, 0], sizes = [8, 32], strides = [1, 1]} : vector<32x32xf32> to vector<8x32xf32>
    %189 = arith.truncf %187 : vector<8x8xf32> to vector<8x8xbf16>
    %190 = arith.truncf %188 : vector<8x32xf32> to vector<8x32xbf16>
    %cst_61 = arith.constant dense<0.000000e+00> : vector<8x32xf32>
    %191 = tpu.matmul %189, %190, %cst_61 {dimension_numbers = #tpu.dot_dimension_numbers<[1], [0], [0], [1], [0, 0, 1, 1], [], []>} : vector<8x8xbf16>, vector<8x32xbf16>, vector<8x32xf32> -> vector<8x32xf32>
    %192 = arith.addf %120, %191 : vector<8x32xf32>
    %193 = vector.extract_strided_slice %23 {offsets = [0, 16], sizes = [8, 4], strides = [1, 1]} : vector<8x32xf32> to vector<8x4xf32>
    %194 = vector.extract_strided_slice %23 {offsets = [0, 20], sizes = [8, 4], strides = [1, 1]} : vector<8x32xf32> to vector<8x4xf32>
    %195 = vector.extract_strided_slice %27 {offsets = [0, 16], sizes = [8, 4], strides = [1, 1]} : vector<8x32xf32> to vector<8x4xf32>
    %196 = vector.extract_strided_slice %27 {offsets = [0, 20], sizes = [8, 4], strides = [1, 1]} : vector<8x32xf32> to vector<8x4xf32>
    %197 = arith.mulf %193, %2 : vector<8x4xf32>
    %198 = arith.mulf %194, %3 : vector<8x4xf32>
    %199 = arith.subf %197, %198 : vector<8x4xf32>
    %200 = arith.mulf %193, %3 : vector<8x4xf32>
    %201 = arith.mulf %194, %2 : vector<8x4xf32>
    %202 = arith.addf %200, %201 : vector<8x4xf32>
    %203 = arith.mulf %195, %2 : vector<8x4xf32>
    %204 = arith.mulf %196, %3 : vector<8x4xf32>
    %205 = arith.subf %203, %204 : vector<8x4xf32>
    %206 = arith.mulf %195, %3 : vector<8x4xf32>
    %207 = arith.mulf %196, %2 : vector<8x4xf32>
    %208 = arith.addf %206, %207 : vector<8x4xf32>
    %209 = arith.truncf %199 : vector<8x4xf32> to vector<8x4xbf16>
    %210 = arith.truncf %205 : vector<8x4xf32> to vector<8x4xbf16>
    %cst_62 = arith.constant dense<0.000000e+00> : vector<8x8xf32>
    %211 = tpu.matmul %209, %210, %cst_62 {dimension_numbers = #tpu.dot_dimension_numbers<[1], [1], [0], [0], [0, 0, 1, 0], [], []>} : vector<8x4xbf16>, vector<8x4xbf16>, vector<8x8xf32> -> vector<8x8xf32>
    %212 = arith.truncf %202 : vector<8x4xf32> to vector<8x4xbf16>
    %213 = arith.truncf %208 : vector<8x4xf32> to vector<8x4xbf16>
    %cst_63 = arith.constant dense<0.000000e+00> : vector<8x8xf32>
    %214 = tpu.matmul %212, %213, %cst_63 {dimension_numbers = #tpu.dot_dimension_numbers<[1], [1], [0], [0], [0, 0, 1, 0], [], []>} : vector<8x4xbf16>, vector<8x4xbf16>, vector<8x8xf32> -> vector<8x8xf32>
    %215 = arith.addf %211, %214 : vector<8x8xf32>
    %cst_64 = arith.constant 0.353553385 : f32
    %216 = vector.broadcast %cst_64 : f32 to vector<8x8xf32>
    %217 = arith.mulf %215, %216 : vector<8x8xf32>
    %218 = arith.addf %217, %48 : vector<8x8xf32>
    %cst_65 = arith.constant dense<0xFF800000> : vector<8xf32>
    %219 = vector.multi_reduction <maximumf>, %218, %cst_65 [1] : vector<8x8xf32> to vector<8xf32>
    %220 = vector.shape_cast %219 : vector<8xf32> to vector<8x1xf32>
    %221 = vector.broadcast %220 : vector<8x1xf32> to vector<8x8xf32>
    %222 = arith.subf %218, %221 : vector<8x8xf32>
    %223 = math.exp %222 : vector<8x8xf32>
    %cst_66 = arith.constant dense<0.000000e+00> : vector<8xf32>
    %224 = vector.multi_reduction <add>, %223, %cst_66 [1] : vector<8x8xf32> to vector<8xf32>
    %225 = vector.shape_cast %224 : vector<8xf32> to vector<8x1xf32>
    %226 = vector.broadcast %225 : vector<8x1xf32> to vector<8x8xf32>
    %227 = arith.divf %223, %226 : vector<8x8xf32>
    %228 = vector.extract_strided_slice %31 {offsets = [0, 16], sizes = [8, 8], strides = [1, 1]} : vector<8x32xf32> to vector<8x8xf32>
    %229 = arith.truncf %227 : vector<8x8xf32> to vector<8x8xbf16>
    %230 = arith.truncf %228 : vector<8x8xf32> to vector<8x8xbf16>
    %cst_67 = arith.constant dense<0.000000e+00> : vector<8x8xf32>
    %231 = tpu.matmul %229, %230, %cst_67 {dimension_numbers = #tpu.dot_dimension_numbers<[1], [0], [0], [1], [0, 0, 1, 1], [], []>} : vector<8x8xbf16>, vector<8x8xbf16>, vector<8x8xf32> -> vector<8x8xf32>
    %232 = vector.extract_strided_slice %37 {offsets = [0, 16], sizes = [4, 4], strides = [1, 1]} : vector<4x32xf32> to vector<4x4xf32>
    %233 = vector.extract_strided_slice %37 {offsets = [0, 20], sizes = [4, 4], strides = [1, 1]} : vector<4x32xf32> to vector<4x4xf32>
    %234 = arith.truncf %199 : vector<8x4xf32> to vector<8x4xbf16>
    %235 = arith.truncf %232 : vector<4x4xf32> to vector<4x4xbf16>
    %cst_68 = arith.constant dense<0.000000e+00> : vector<8x4xf32>
    %236 = tpu.matmul %234, %235, %cst_68 {dimension_numbers = #tpu.dot_dimension_numbers<[1], [1], [0], [0], [0, 0, 1, 0], [], []>} : vector<8x4xbf16>, vector<4x4xbf16>, vector<8x4xf32> -> vector<8x4xf32>
    %237 = arith.truncf %202 : vector<8x4xf32> to vector<8x4xbf16>
    %238 = arith.truncf %233 : vector<4x4xf32> to vector<4x4xbf16>
    %cst_69 = arith.constant dense<0.000000e+00> : vector<8x4xf32>
    %239 = tpu.matmul %237, %238, %cst_69 {dimension_numbers = #tpu.dot_dimension_numbers<[1], [1], [0], [0], [0, 0, 1, 0], [], []>} : vector<8x4xbf16>, vector<4x4xbf16>, vector<8x4xf32> -> vector<8x4xf32>
    %240 = arith.addf %236, %239 : vector<8x4xf32>
    %cst_70 = arith.constant 0.353553385 : f32
    %241 = vector.broadcast %cst_70 : f32 to vector<8x4xf32>
    %242 = arith.mulf %240, %241 : vector<8x4xf32>
    %cst_71 = arith.constant dense<0xFF800000> : vector<8xf32>
    %243 = vector.multi_reduction <maximumf>, %242, %cst_71 [1] : vector<8x4xf32> to vector<8xf32>
    %244 = vector.shape_cast %243 : vector<8xf32> to vector<8x1xf32>
    %245 = vector.broadcast %244 : vector<8x1xf32> to vector<8x4xf32>
    %246 = arith.subf %242, %245 : vector<8x4xf32>
    %247 = math.exp %246 : vector<8x4xf32>
    %cst_72 = arith.constant dense<0.000000e+00> : vector<8xf32>
    %248 = vector.multi_reduction <add>, %247, %cst_72 [1] : vector<8x4xf32> to vector<8xf32>
    %249 = vector.shape_cast %248 : vector<8xf32> to vector<8x1xf32>
    %250 = vector.broadcast %249 : vector<8x1xf32> to vector<8x4xf32>
    %251 = arith.divf %247, %250 : vector<8x4xf32>
    %252 = vector.extract_strided_slice %41 {offsets = [0, 16], sizes = [4, 8], strides = [1, 1]} : vector<4x32xf32> to vector<4x8xf32>
    %253 = arith.truncf %251 : vector<8x4xf32> to vector<8x4xbf16>
    %254 = arith.truncf %252 : vector<4x8xf32> to vector<4x8xbf16>
    %cst_73 = arith.constant dense<0.000000e+00> : vector<8x8xf32>
    %255 = tpu.matmul %253, %254, %cst_73 {dimension_numbers = #tpu.dot_dimension_numbers<[1], [0], [0], [1], [0, 0, 1, 1], [], []>} : vector<8x4xbf16>, vector<4x8xbf16>, vector<8x8xf32> -> vector<8x8xf32>
    %256 = vector.extract_strided_slice %42 {offsets = [0, 2], sizes = [1, 1], strides = [1, 1]} : vector<1x4xf32> to vector<1x1xf32>
    %257 = vector.broadcast %256 : vector<1x1xf32> to vector<8x8xf32>
    %258 = arith.mulf %257, %255 : vector<8x8xf32>
    %259 = arith.addf %231, %258 : vector<8x8xf32>
    %260 = vector.extract_strided_slice %49 {offsets = [16, 0], sizes = [8, 32], strides = [1, 1]} : vector<32x32xf32> to vector<8x32xf32>
    %261 = arith.truncf %259 : vector<8x8xf32> to vector<8x8xbf16>
    %262 = arith.truncf %260 : vector<8x32xf32> to vector<8x32xbf16>
    %cst_74 = arith.constant dense<0.000000e+00> : vector<8x32xf32>
    %263 = tpu.matmul %261, %262, %cst_74 {dimension_numbers = #tpu.dot_dimension_numbers<[1], [0], [0], [1], [0, 0, 1, 1], [], []>} : vector<8x8xbf16>, vector<8x32xbf16>, vector<8x32xf32> -> vector<8x32xf32>
    %264 = arith.addf %192, %263 : vector<8x32xf32>
    %265 = vector.extract_strided_slice %23 {offsets = [0, 24], sizes = [8, 4], strides = [1, 1]} : vector<8x32xf32> to vector<8x4xf32>
    %266 = vector.extract_strided_slice %23 {offsets = [0, 28], sizes = [8, 4], strides = [1, 1]} : vector<8x32xf32> to vector<8x4xf32>
    %267 = vector.extract_strided_slice %27 {offsets = [0, 24], sizes = [8, 4], strides = [1, 1]} : vector<8x32xf32> to vector<8x4xf32>
    %268 = vector.extract_strided_slice %27 {offsets = [0, 28], sizes = [8, 4], strides = [1, 1]} : vector<8x32xf32> to vector<8x4xf32>
    %269 = arith.mulf %265, %2 : vector<8x4xf32>
    %270 = arith.mulf %266, %3 : vector<8x4xf32>
    %271 = arith.subf %269, %270 : vector<8x4xf32>
    %272 = arith.mulf %265, %3 : vector<8x4xf32>
    %273 = arith.mulf %266, %2 : vector<8x4xf32>
    %274 = arith.addf %272, %273 : vector<8x4xf32>
    %275 = arith.mulf %267, %2 : vector<8x4xf32>
    %276 = arith.mulf %268, %3 : vector<8x4xf32>
    %277 = arith.subf %275, %276 : vector<8x4xf32>
    %278 = arith.mulf %267, %3 : vector<8x4xf32>
    %279 = arith.mulf %268, %2 : vector<8x4xf32>
    %280 = arith.addf %278, %279 : vector<8x4xf32>
    %281 = arith.truncf %271 : vector<8x4xf32> to vector<8x4xbf16>
    %282 = arith.truncf %277 : vector<8x4xf32> to vector<8x4xbf16>
    %cst_75 = arith.constant dense<0.000000e+00> : vector<8x8xf32>
    %283 = tpu.matmul %281, %282, %cst_75 {dimension_numbers = #tpu.dot_dimension_numbers<[1], [1], [0], [0], [0, 0, 1, 0], [], []>} : vector<8x4xbf16>, vector<8x4xbf16>, vector<8x8xf32> -> vector<8x8xf32>
    %284 = arith.truncf %274 : vector<8x4xf32> to vector<8x4xbf16>
    %285 = arith.truncf %280 : vector<8x4xf32> to vector<8x4xbf16>
    %cst_76 = arith.constant dense<0.000000e+00> : vector<8x8xf32>
    %286 = tpu.matmul %284, %285, %cst_76 {dimension_numbers = #tpu.dot_dimension_numbers<[1], [1], [0], [0], [0, 0, 1, 0], [], []>} : vector<8x4xbf16>, vector<8x4xbf16>, vector<8x8xf32> -> vector<8x8xf32>
    %287 = arith.addf %283, %286 : vector<8x8xf32>
    %cst_77 = arith.constant 0.353553385 : f32
    %288 = vector.broadcast %cst_77 : f32 to vector<8x8xf32>
    %289 = arith.mulf %287, %288 : vector<8x8xf32>
    %290 = arith.addf %289, %48 : vector<8x8xf32>
    %cst_78 = arith.constant dense<0xFF800000> : vector<8xf32>
    %291 = vector.multi_reduction <maximumf>, %290, %cst_78 [1] : vector<8x8xf32> to vector<8xf32>
    %292 = vector.shape_cast %291 : vector<8xf32> to vector<8x1xf32>
    %293 = vector.broadcast %292 : vector<8x1xf32> to vector<8x8xf32>
    %294 = arith.subf %290, %293 : vector<8x8xf32>
    %295 = math.exp %294 : vector<8x8xf32>
    %cst_79 = arith.constant dense<0.000000e+00> : vector<8xf32>
    %296 = vector.multi_reduction <add>, %295, %cst_79 [1] : vector<8x8xf32> to vector<8xf32>
    %297 = vector.shape_cast %296 : vector<8xf32> to vector<8x1xf32>
    %298 = vector.broadcast %297 : vector<8x1xf32> to vector<8x8xf32>
    %299 = arith.divf %295, %298 : vector<8x8xf32>
    %300 = vector.extract_strided_slice %31 {offsets = [0, 24], sizes = [8, 8], strides = [1, 1]} : vector<8x32xf32> to vector<8x8xf32>
    %301 = arith.truncf %299 : vector<8x8xf32> to vector<8x8xbf16>
    %302 = arith.truncf %300 : vector<8x8xf32> to vector<8x8xbf16>
    %cst_80 = arith.constant dense<0.000000e+00> : vector<8x8xf32>
    %303 = tpu.matmul %301, %302, %cst_80 {dimension_numbers = #tpu.dot_dimension_numbers<[1], [0], [0], [1], [0, 0, 1, 1], [], []>} : vector<8x8xbf16>, vector<8x8xbf16>, vector<8x8xf32> -> vector<8x8xf32>
    %304 = vector.extract_strided_slice %37 {offsets = [0, 24], sizes = [4, 4], strides = [1, 1]} : vector<4x32xf32> to vector<4x4xf32>
    %305 = vector.extract_strided_slice %37 {offsets = [0, 28], sizes = [4, 4], strides = [1, 1]} : vector<4x32xf32> to vector<4x4xf32>
    %306 = arith.truncf %271 : vector<8x4xf32> to vector<8x4xbf16>
    %307 = arith.truncf %304 : vector<4x4xf32> to vector<4x4xbf16>
    %cst_81 = arith.constant dense<0.000000e+00> : vector<8x4xf32>
    %308 = tpu.matmul %306, %307, %cst_81 {dimension_numbers = #tpu.dot_dimension_numbers<[1], [1], [0], [0], [0, 0, 1, 0], [], []>} : vector<8x4xbf16>, vector<4x4xbf16>, vector<8x4xf32> -> vector<8x4xf32>
    %309 = arith.truncf %274 : vector<8x4xf32> to vector<8x4xbf16>
    %310 = arith.truncf %305 : vector<4x4xf32> to vector<4x4xbf16>
    %cst_82 = arith.constant dense<0.000000e+00> : vector<8x4xf32>
    %311 = tpu.matmul %309, %310, %cst_82 {dimension_numbers = #tpu.dot_dimension_numbers<[1], [1], [0], [0], [0, 0, 1, 0], [], []>} : vector<8x4xbf16>, vector<4x4xbf16>, vector<8x4xf32> -> vector<8x4xf32>
    %312 = arith.addf %308, %311 : vector<8x4xf32>
    %cst_83 = arith.constant 0.353553385 : f32
    %313 = vector.broadcast %cst_83 : f32 to vector<8x4xf32>
    %314 = arith.mulf %312, %313 : vector<8x4xf32>
    %cst_84 = arith.constant dense<0xFF800000> : vector<8xf32>
    %315 = vector.multi_reduction <maximumf>, %314, %cst_84 [1] : vector<8x4xf32> to vector<8xf32>
    %316 = vector.shape_cast %315 : vector<8xf32> to vector<8x1xf32>
    %317 = vector.broadcast %316 : vector<8x1xf32> to vector<8x4xf32>
    %318 = arith.subf %314, %317 : vector<8x4xf32>
    %319 = math.exp %318 : vector<8x4xf32>
    %cst_85 = arith.constant dense<0.000000e+00> : vector<8xf32>
    %320 = vector.multi_reduction <add>, %319, %cst_85 [1] : vector<8x4xf32> to vector<8xf32>
    %321 = vector.shape_cast %320 : vector<8xf32> to vector<8x1xf32>
    %322 = vector.broadcast %321 : vector<8x1xf32> to vector<8x4xf32>
    %323 = arith.divf %319, %322 : vector<8x4xf32>
    %324 = vector.extract_strided_slice %41 {offsets = [0, 24], sizes = [4, 8], strides = [1, 1]} : vector<4x32xf32> to vector<4x8xf32>
    %325 = arith.truncf %323 : vector<8x4xf32> to vector<8x4xbf16>
    %326 = arith.truncf %324 : vector<4x8xf32> to vector<4x8xbf16>
    %cst_86 = arith.constant dense<0.000000e+00> : vector<8x8xf32>
    %327 = tpu.matmul %325, %326, %cst_86 {dimension_numbers = #tpu.dot_dimension_numbers<[1], [0], [0], [1], [0, 0, 1, 1], [], []>} : vector<8x4xbf16>, vector<4x8xbf16>, vector<8x8xf32> -> vector<8x8xf32>
    %328 = vector.extract_strided_slice %42 {offsets = [0, 3], sizes = [1, 1], strides = [1, 1]} : vector<1x4xf32> to vector<1x1xf32>
    %329 = vector.broadcast %328 : vector<1x1xf32> to vector<8x8xf32>
    %330 = arith.mulf %329, %327 : vector<8x8xf32>
    %331 = arith.addf %303, %330 : vector<8x8xf32>
    %332 = vector.extract_strided_slice %49 {offsets = [24, 0], sizes = [8, 32], strides = [1, 1]} : vector<32x32xf32> to vector<8x32xf32>
    %333 = arith.truncf %331 : vector<8x8xf32> to vector<8x8xbf16>
    %334 = arith.truncf %332 : vector<8x32xf32> to vector<8x32xbf16>
    %cst_87 = arith.constant dense<0.000000e+00> : vector<8x32xf32>
    %335 = tpu.matmul %333, %334, %cst_87 {dimension_numbers = #tpu.dot_dimension_numbers<[1], [0], [0], [1], [0, 0, 1, 1], [], []>} : vector<8x8xbf16>, vector<8x32xbf16>, vector<8x32xf32> -> vector<8x32xf32>
    %336 = arith.addf %264, %335 : vector<8x32xf32>
    %337 = arith.addf %1, %336 : vector<8x32xf32>
    %c0_88 = arith.constant 0 : index
    %c0_89 = arith.constant 0 : index
    %338 = vector.load %arg11[%c0_88, %c0_89] : memref<1x32xf32, #tpu.memory_space<vmem>>, vector<1x32xf32>
    %339 = vector.broadcast %338 : vector<1x32xf32> to vector<8x32xf32>
    %340 = arith.addf %337, %339 : vector<8x32xf32>
    %c0_90 = arith.constant 0 : index
    %c0_91 = arith.constant 0 : index
    %341 = vector.load %arg13[%c0_90, %c0_91] : memref<1x32xf32, #tpu.memory_space<vmem>>, vector<1x32xf32>
    %342 = arith.mulf %340, %340 : vector<8x32xf32>
    %cst_92 = arith.constant dense<0.000000e+00> : vector<8xf32>
    %343 = vector.multi_reduction <add>, %342, %cst_92 [1] : vector<8x32xf32> to vector<8xf32>
    %344 = vector.shape_cast %343 : vector<8xf32> to vector<8x1xf32>
    %cst_93 = arith.constant 3.200000e+01 : f32
    %345 = vector.broadcast %cst_93 : f32 to vector<8x1xf32>
    %346 = arith.divf %344, %345 : vector<8x1xf32>
    %cst_94 = arith.constant 9.99999974E-6 : f32
    %347 = vector.broadcast %cst_94 : f32 to vector<8x1xf32>
    %348 = arith.addf %346, %347 : vector<8x1xf32>
    %349 = math.rsqrt %348 : vector<8x1xf32>
    %350 = vector.broadcast %349 : vector<8x1xf32> to vector<8x32xf32>
    %351 = arith.mulf %340, %350 : vector<8x32xf32>
    %352 = vector.broadcast %341 : vector<1x32xf32> to vector<8x32xf32>
    %353 = arith.mulf %351, %352 : vector<8x32xf32>
    %c0_95 = arith.constant 0 : index
    %c0_96 = arith.constant 0 : index
    %354 = vector.load %arg14[%c0_95, %c0_96] : memref<32x96xf32, #tpu.memory_space<vmem>>, vector<32x96xf32>
    %355 = arith.truncf %353 : vector<8x32xf32> to vector<8x32xbf16>
    %356 = arith.truncf %354 : vector<32x96xf32> to vector<32x96xbf16>
    %cst_97 = arith.constant dense<0.000000e+00> : vector<8x96xf32>
    %357 = tpu.matmul %355, %356, %cst_97 {dimension_numbers = #tpu.dot_dimension_numbers<[1], [0], [0], [1], [0, 0, 1, 1], [], []>} : vector<8x32xbf16>, vector<32x96xbf16>, vector<8x96xf32> -> vector<8x96xf32>
    %c0_98 = arith.constant 0 : index
    %c0_99 = arith.constant 0 : index
    %358 = vector.load %arg15[%c0_98, %c0_99] : memref<1x96xf32, #tpu.memory_space<vmem>>, vector<1x96xf32>
    %359 = vector.broadcast %358 : vector<1x96xf32> to vector<8x96xf32>
    %360 = arith.addf %357, %359 : vector<8x96xf32>
    %361 = arith.negf %360 : vector<8x96xf32>
    %362 = math.exp %361 : vector<8x96xf32>
    %cst_100 = arith.constant 1.000000e+00 : f32
    %363 = vector.broadcast %cst_100 : f32 to vector<8x96xf32>
    %364 = arith.addf %363, %362 : vector<8x96xf32>
    %365 = arith.divf %363, %364 : vector<8x96xf32>
    %366 = arith.mulf %360, %365 : vector<8x96xf32>
    %c0_101 = arith.constant 0 : index
    %c0_102 = arith.constant 0 : index
    %367 = vector.load %arg16[%c0_101, %c0_102] : memref<32x96xf32, #tpu.memory_space<vmem>>, vector<32x96xf32>
    %368 = arith.truncf %353 : vector<8x32xf32> to vector<8x32xbf16>
    %369 = arith.truncf %367 : vector<32x96xf32> to vector<32x96xbf16>
    %cst_103 = arith.constant dense<0.000000e+00> : vector<8x96xf32>
    %370 = tpu.matmul %368, %369, %cst_103 {dimension_numbers = #tpu.dot_dimension_numbers<[1], [0], [0], [1], [0, 0, 1, 1], [], []>} : vector<8x32xbf16>, vector<32x96xbf16>, vector<8x96xf32> -> vector<8x96xf32>
    %c0_104 = arith.constant 0 : index
    %c0_105 = arith.constant 0 : index
    %371 = vector.load %arg17[%c0_104, %c0_105] : memref<1x96xf32, #tpu.memory_space<vmem>>, vector<1x96xf32>
    %372 = vector.broadcast %371 : vector<1x96xf32> to vector<8x96xf32>
    %373 = arith.addf %370, %372 : vector<8x96xf32>
    %374 = arith.mulf %366, %373 : vector<8x96xf32>
    %c0_106 = arith.constant 0 : index
    %c0_107 = arith.constant 0 : index
    %375 = vector.load %arg18[%c0_106, %c0_107] : memref<96x32xf32, #tpu.memory_space<vmem>>, vector<96x32xf32>
    %376 = arith.truncf %374 : vector<8x96xf32> to vector<8x96xbf16>
    %377 = arith.truncf %375 : vector<96x32xf32> to vector<96x32xbf16>
    %cst_108 = arith.constant dense<0.000000e+00> : vector<8x32xf32>
    %378 = tpu.matmul %376, %377, %cst_108 {dimension_numbers = #tpu.dot_dimension_numbers<[1], [0], [0], [1], [0, 0, 1, 1], [], []>} : vector<8x96xbf16>, vector<96x32xbf16>, vector<8x32xf32> -> vector<8x32xf32>
    %379 = arith.addf %340, %378 : vector<8x32xf32>
    %c0_109 = arith.constant 0 : index
    %c0_110 = arith.constant 0 : index
    %380 = vector.load %arg19[%c0_109, %c0_110] : memref<1x32xf32, #tpu.memory_space<vmem>>, vector<1x32xf32>
    %381 = vector.broadcast %380 : vector<1x32xf32> to vector<8x32xf32>
    %382 = arith.addf %379, %381 : vector<8x32xf32>
    %c0_111 = arith.constant 0 : index
    %c0_112 = arith.constant 0 : index
    %c0_113 = arith.constant 0 : index
    %383 = vector.load %arg20[%c0_111, %c0_112, %c0_113] : memref<1x8x32xf32, #tpu.memory_space<vmem>>, vector<1x8x32xf32>
    %384 = vector.shape_cast %383 : vector<1x8x32xf32> to vector<8x32xf32>
    %385 = vector.shape_cast %382 : vector<8x32xf32> to vector<1x8x32xf32>
    tpu.vector_store %arg20[%c0_111, %c0_112, %c0_113], %385 {strides = array<i32>} : memref<1x8x32xf32, #tpu.memory_space<vmem>>, vector<1x8x32xf32>,
    return
  }
  func.func @transform_0(%arg0: i32) -> (i32, i32, i32) {
    %c0_i32 = arith.constant 0 : i32
    %c0_i32_0 = arith.constant 0 : i32
    %c0_i32_1 = arith.constant 0 : i32
    return %arg0, %c0_i32, %c0_i32_0 : i32, i32, i32
  }
  func.func @transform_1(%arg0: i32) -> (i32, i32, i32) {
    %c0_i32 = arith.constant 0 : i32
    %c0_i32_0 = arith.constant 0 : i32
    %c0_i32_1 = arith.constant 0 : i32
    return %arg0, %c0_i32, %c0_i32_0 : i32, i32, i32
  }
  func.func @transform_2(%arg0: i32) -> (i32, i32) {
    %c0_i32 = arith.constant 0 : i32
    %c0_i32_0 = arith.constant 0 : i32
    %c0_i32_1 = arith.constant 0 : i32
    return %c0_i32, %c0_i32_0 : i32, i32
  }
  func.func @transform_3(%arg0: i32) -> (i32, i32) {
    %c0_i32 = arith.constant 0 : i32
    %c0_i32_0 = arith.constant 0 : i32
    %c0_i32_1 = arith.constant 0 : i32
    return %c0_i32, %c0_i32_0 : i32, i32
  }
  func.func @transform_4(%arg0: i32) -> (i32, i32) {
    %c0_i32 = arith.constant 0 : i32
    %c0_i32_0 = arith.constant 0 : i32
    %c0_i32_1 = arith.constant 0 : i32
    return %c0_i32, %c0_i32_0 : i32, i32
  }
  func.func @transform_5(%arg0: i32) -> (i32, i32) {
    %c0_i32 = arith.constant 0 : i32
    %c0_i32_0 = arith.constant 0 : i32
    %c0_i32_1 = arith.constant 0 : i32
    return %c0_i32, %c0_i32_0 : i32, i32
  }
  func.func @transform_6(%arg0: i32) -> (i32, i32) {
    %c0_i32 = arith.constant 0 : i32
    %c0_i32_0 = arith.constant 0 : i32
    %c0_i32_1 = arith.constant 0 : i32
    return %c0_i32, %c0_i32_0 : i32, i32
  }
  func.func @transform_7(%arg0: i32) -> (i32, i32) {
    %c0_i32 = arith.constant 0 : i32
    %c0_i32_0 = arith.constant 0 : i32
    %c0_i32_1 = arith.constant 0 : i32
    return %c0_i32, %c0_i32_0 : i32, i32
  }
  func.func @transform_8(%arg0: i32) -> (i32, i32) {
    %c0_i32 = arith.constant 0 : i32
    %c0_i32_0 = arith.constant 0 : i32
    %c0_i32_1 = arith.constant 0 : i32
    return %c0_i32, %c0_i32_0 : i32, i32
  }
  func.func @transform_9(%arg0: i32) -> (i32, i32) {
    %c0_i32 = arith.constant 0 : i32
    %c0_i32_0 = arith.constant 0 : i32
    %c0_i32_1 = arith.constant 0 : i32
    return %c0_i32, %c0_i32_0 : i32, i32
  }
  func.func @transform_10(%arg0: i32) -> (i32, i32) {
    %c0_i32 = arith.constant 0 : i32
    %c0_i32_0 = arith.constant 0 : i32
    %c0_i32_1 = arith.constant 0 : i32
    return %c0_i32, %c0_i32_0 : i32, i32
  }
  func.func @transform_11(%arg0: i32) -> (i32, i32) {
    %c0_i32 = arith.constant 0 : i32
    %c0_i32_0 = arith.constant 0 : i32
    %c0_i32_1 = arith.constant 0 : i32
    return %c0_i32, %c0_i32_0 : i32, i32
  }
  func.func @transform_12(%arg0: i32) -> (i32, i32) {
    %c0_i32 = arith.constant 0 : i32
    %c0_i32_0 = arith.constant 0 : i32
    %c0_i32_1 = arith.constant 0 : i32
    return %c0_i32, %c0_i32_0 : i32, i32
  }
  func.func @transform_13(%arg0: i32) -> (i32, i32) {
    %c0_i32 = arith.constant 0 : i32
    %c0_i32_0 = arith.constant 0 : i32
    %c0_i32_1 = arith.constant 0 : i32
    return %c0_i32, %c0_i32_0 : i32, i32
  }
  func.func @transform_14(%arg0: i32) -> (i32, i32) {
    %c0_i32 = arith.constant 0 : i32
    %c0_i32_0 = arith.constant 0 : i32
    %c0_i32_1 = arith.constant 0 : i32
    return %c0_i32, %c0_i32_0 : i32, i32
  }
  func.func @transform_15(%arg0: i32) -> (i32, i32) {
    %c0_i32 = arith.constant 0 : i32
    %c0_i32_0 = arith.constant 0 : i32
    %c0_i32_1 = arith.constant 0 : i32
    return %c0_i32, %c0_i32_0 : i32, i32
  }
  func.func @transform_16(%arg0: i32) -> (i32, i32) {
    %c0_i32 = arith.constant 0 : i32
    %c0_i32_0 = arith.constant 0 : i32
    %c0_i32_1 = arith.constant 0 : i32
    return %c0_i32, %c0_i32_0 : i32, i32
  }
  func.func @transform_17(%arg0: i32) -> (i32, i32) {
    %c0_i32 = arith.constant 0 : i32
    %c0_i32_0 = arith.constant 0 : i32
    %c0_i32_1 = arith.constant 0 : i32
    return %c0_i32, %c0_i32_0 : i32, i32
  }
  func.func @transform_18(%arg0: i32) -> (i32, i32) {
    %c0_i32 = arith.constant 0 : i32
    %c0_i32_0 = arith.constant 0 : i32
    %c0_i32_1 = arith.constant 0 : i32
    return %c0_i32, %c0_i32_0 : i32, i32
  }
  func.func @transform_19(%arg0: i32) -> (i32, i32, i32) {
    %c0_i32 = arith.constant 0 : i32
    %c0_i32_0 = arith.constant 0 : i32
    %c0_i32_1 = arith.constant 0 : i32
    return %arg0, %c0_i32, %c0_i32_0 : i32, i32, i32
  }
}

module attributes {stable_mosaic.version = 11 : i64} {
  func.func @_loss_kernel(%arg0: i32, %arg1: memref<2x8x32xf32, #tpu.memory_space<vmem>>, %arg2: memref<2x7x1xi32, #tpu.memory_space<vmem>>, %arg3: memref<1x32xf32, #tpu.memory_space<vmem>>, %arg4: memref<32x64xf32, #tpu.memory_space<vmem>>, %arg5: memref<1x1xf32, #tpu.memory_space<vmem>>, %arg6: memref<1x1xf32, #tpu.memory_space<vmem>>) attributes {dimension_semantics = [#tpu.dimension_semantics<arbitrary>], iteration_bounds = array<i64: 1>, scalar_prefetch = 0 : i64, scratch_operands = 0 : i64, tpu.core_type = #tpu.core_type<tc>, window_params = [{pipeline_mode = #tpu.pipeline_mode<synchronous>, transform_indices = @transform_0, window_bounds = array<i64: 2, 8, 32>}, {pipeline_mode = #tpu.pipeline_mode<synchronous>, transform_indices = @transform_1, window_bounds = array<i64: 2, 7, 1>}, {pipeline_mode = #tpu.pipeline_mode<synchronous>, transform_indices = @transform_2, window_bounds = array<i64: 1, 32>}, {pipeline_mode = #tpu.pipeline_mode<synchronous>, transform_indices = @transform_3, window_bounds = array<i64: 32, 64>}, {pipeline_mode = #tpu.pipeline_mode<synchronous>, transform_indices = @transform_4, window_bounds = array<i64: 1, 1>}, {pipeline_mode = #tpu.pipeline_mode<synchronous>, transform_indices = @transform_5, window_bounds = array<i64: 1, 1>}]} {
    %cst = arith.constant 0.000000e+00 : f32
    %0 = vector.broadcast %cst : f32 to vector<1x1xf32>
    %cst_0 = arith.constant 0.000000e+00 : f32
    %1 = vector.broadcast %cst_0 : f32 to vector<1x1xf32>
    %c0 = arith.constant 0 : index
    %c0_1 = arith.constant 0 : index
    %c0_2 = arith.constant 0 : index
    %2 = vector.load %arg1[%c0, %c0_1, %c0_2] : memref<2x8x32xf32, #tpu.memory_space<vmem>>, vector<1x8x32xf32>
    %3 = vector.shape_cast %2 : vector<1x8x32xf32> to vector<8x32xf32>
    %c0_3 = arith.constant 0 : index
    %c0_4 = arith.constant 0 : index
    %4 = vector.load %arg3[%c0_3, %c0_4] : memref<1x32xf32, #tpu.memory_space<vmem>>, vector<1x32xf32>
    %5 = arith.mulf %3, %3 : vector<8x32xf32>
    %cst_5 = arith.constant dense<0.000000e+00> : vector<8xf32>
    %6 = vector.multi_reduction <add>, %5, %cst_5 [1] : vector<8x32xf32> to vector<8xf32>
    %7 = vector.shape_cast %6 : vector<8xf32> to vector<8x1xf32>
    %cst_6 = arith.constant 3.200000e+01 : f32
    %8 = vector.broadcast %cst_6 : f32 to vector<8x1xf32>
    %9 = arith.divf %7, %8 : vector<8x1xf32>
    %cst_7 = arith.constant 9.99999974E-6 : f32
    %10 = vector.broadcast %cst_7 : f32 to vector<8x1xf32>
    %11 = arith.addf %9, %10 : vector<8x1xf32>
    %12 = math.rsqrt %11 : vector<8x1xf32>
    %13 = vector.broadcast %12 : vector<8x1xf32> to vector<8x32xf32>
    %14 = arith.mulf %3, %13 : vector<8x32xf32>
    %15 = vector.broadcast %4 : vector<1x32xf32> to vector<8x32xf32>
    %16 = arith.mulf %14, %15 : vector<8x32xf32>
    %17 = vector.extract_strided_slice %16 {offsets = [0, 0], sizes = [7, 32], strides = [1, 1]} : vector<8x32xf32> to vector<7x32xf32>
    %c0_8 = arith.constant 0 : index
    %c0_9 = arith.constant 0 : index
    %18 = vector.load %arg4[%c0_8, %c0_9] : memref<32x64xf32, #tpu.memory_space<vmem>>, vector<32x64xf32>
    %19 = arith.truncf %17 : vector<7x32xf32> to vector<7x32xbf16>
    %20 = arith.truncf %18 : vector<32x64xf32> to vector<32x64xbf16>
    %cst_10 = arith.constant dense<0.000000e+00> : vector<7x64xf32>
    %21 = tpu.matmul %19, %20, %cst_10 {dimension_numbers = #tpu.dot_dimension_numbers<[1], [0], [0], [1], [0, 0, 1, 1], [], []>} : vector<7x32xbf16>, vector<32x64xbf16>, vector<7x64xf32> -> vector<7x64xf32>
    %c0_11 = arith.constant 0 : index
    %c0_12 = arith.constant 0 : index
    %c0_13 = arith.constant 0 : index
    %22 = vector.load %arg2[%c0_11, %c0_12, %c0_13] : memref<2x7x1xi32, #tpu.memory_space<vmem>>, vector<1x7x1xi32>
    %23 = vector.shape_cast %22 : vector<1x7x1xi32> to vector<7x1xi32>
    %cst_14 = arith.constant dense<0xFF800000> : vector<7xf32>
    %24 = vector.multi_reduction <maximumf>, %21, %cst_14 [1] : vector<7x64xf32> to vector<7xf32>
    %25 = vector.shape_cast %24 : vector<7xf32> to vector<7x1xf32>
    %26 = vector.broadcast %25 : vector<7x1xf32> to vector<7x64xf32>
    %27 = arith.subf %21, %26 : vector<7x64xf32>
    %28 = math.exp %27 : vector<7x64xf32>
    %cst_15 = arith.constant dense<0.000000e+00> : vector<7xf32>
    %29 = vector.multi_reduction <add>, %28, %cst_15 [1] : vector<7x64xf32> to vector<7xf32>
    %30 = vector.shape_cast %29 : vector<7xf32> to vector<7x1xf32>
    %31 = math.log %30 : vector<7x1xf32>
    %32 = arith.addf %31, %25 : vector<7x1xf32>
    %33 = tpu.iota {dimensions = array<i32: 1>} : vector<7x64xi32>
    %34 = vector.broadcast %23 : vector<7x1xi32> to vector<7x64xi32>
    %35 = arith.cmpi eq, %33, %34 : vector<7x64xi32>
    %cst_16 = arith.constant 0.000000e+00 : f32
    %36 = vector.broadcast %cst_16 : f32 to vector<7x64xf32>
    %37 = arith.select %35, %21, %36 : vector<7x64xi1>, vector<7x64xf32>
    %cst_17 = arith.constant dense<0.000000e+00> : vector<7xf32>
    %38 = vector.multi_reduction <add>, %37, %cst_17 [1] : vector<7x64xf32> to vector<7xf32>
    %39 = vector.shape_cast %38 : vector<7xf32> to vector<7x1xf32>
    %c0_i32 = arith.constant 0 : i32
    %40 = vector.broadcast %c0_i32 : i32 to vector<7x1xi32>
    %41 = arith.cmpi ne, %23, %40 : vector<7x1xi32>
    %42 = arith.extui %41 : vector<7x1xi1> to vector<7x1xi32>
    %43 = arith.sitofp %42 : vector<7x1xi32> to vector<7x1xf32>
    %44 = arith.subf %32, %39 : vector<7x1xf32>
    %45 = arith.mulf %44, %43 : vector<7x1xf32>
    %cst_18 = arith.constant dense<0.000000e+00> : vector<1xf32>
    %46 = vector.multi_reduction <add>, %45, %cst_18 [0] : vector<7x1xf32> to vector<1xf32>
    %47 = vector.shape_cast %46 : vector<1xf32> to vector<1x1xf32>
    %48 = arith.addf %0, %47 : vector<1x1xf32>
    %cst_19 = arith.constant dense<0.000000e+00> : vector<1xf32>
    %49 = vector.multi_reduction <add>, %43, %cst_19 [0] : vector<7x1xf32> to vector<1xf32>
    %50 = vector.shape_cast %49 : vector<1xf32> to vector<1x1xf32>
    %51 = arith.addf %1, %50 : vector<1x1xf32>
    %c1 = arith.constant 1 : index
    %c0_20 = arith.constant 0 : index
    %c0_21 = arith.constant 0 : index
    %52 = vector.load %arg1[%c1, %c0_20, %c0_21] : memref<2x8x32xf32, #tpu.memory_space<vmem>>, vector<1x8x32xf32>
    %53 = vector.shape_cast %52 : vector<1x8x32xf32> to vector<8x32xf32>
    %c0_22 = arith.constant 0 : index
    %c0_23 = arith.constant 0 : index
    %54 = vector.load %arg3[%c0_22, %c0_23] : memref<1x32xf32, #tpu.memory_space<vmem>>, vector<1x32xf32>
    %55 = arith.mulf %53, %53 : vector<8x32xf32>
    %cst_24 = arith.constant dense<0.000000e+00> : vector<8xf32>
    %56 = vector.multi_reduction <add>, %55, %cst_24 [1] : vector<8x32xf32> to vector<8xf32>
    %57 = vector.shape_cast %56 : vector<8xf32> to vector<8x1xf32>
    %cst_25 = arith.constant 3.200000e+01 : f32
    %58 = vector.broadcast %cst_25 : f32 to vector<8x1xf32>
    %59 = arith.divf %57, %58 : vector<8x1xf32>
    %cst_26 = arith.constant 9.99999974E-6 : f32
    %60 = vector.broadcast %cst_26 : f32 to vector<8x1xf32>
    %61 = arith.addf %59, %60 : vector<8x1xf32>
    %62 = math.rsqrt %61 : vector<8x1xf32>
    %63 = vector.broadcast %62 : vector<8x1xf32> to vector<8x32xf32>
    %64 = arith.mulf %53, %63 : vector<8x32xf32>
    %65 = vector.broadcast %54 : vector<1x32xf32> to vector<8x32xf32>
    %66 = arith.mulf %64, %65 : vector<8x32xf32>
    %67 = vector.extract_strided_slice %66 {offsets = [0, 0], sizes = [7, 32], strides = [1, 1]} : vector<8x32xf32> to vector<7x32xf32>
    %c0_27 = arith.constant 0 : index
    %c0_28 = arith.constant 0 : index
    %68 = vector.load %arg4[%c0_27, %c0_28] : memref<32x64xf32, #tpu.memory_space<vmem>>, vector<32x64xf32>
    %69 = arith.truncf %67 : vector<7x32xf32> to vector<7x32xbf16>
    %70 = arith.truncf %68 : vector<32x64xf32> to vector<32x64xbf16>
    %cst_29 = arith.constant dense<0.000000e+00> : vector<7x64xf32>
    %71 = tpu.matmul %69, %70, %cst_29 {dimension_numbers = #tpu.dot_dimension_numbers<[1], [0], [0], [1], [0, 0, 1, 1], [], []>} : vector<7x32xbf16>, vector<32x64xbf16>, vector<7x64xf32> -> vector<7x64xf32>
    %c1_30 = arith.constant 1 : index
    %c0_31 = arith.constant 0 : index
    %c0_32 = arith.constant 0 : index
    %72 = vector.load %arg2[%c1_30, %c0_31, %c0_32] : memref<2x7x1xi32, #tpu.memory_space<vmem>>, vector<1x7x1xi32>
    %73 = vector.shape_cast %72 : vector<1x7x1xi32> to vector<7x1xi32>
    %cst_33 = arith.constant dense<0xFF800000> : vector<7xf32>
    %74 = vector.multi_reduction <maximumf>, %71, %cst_33 [1] : vector<7x64xf32> to vector<7xf32>
    %75 = vector.shape_cast %74 : vector<7xf32> to vector<7x1xf32>
    %76 = vector.broadcast %75 : vector<7x1xf32> to vector<7x64xf32>
    %77 = arith.subf %71, %76 : vector<7x64xf32>
    %78 = math.exp %77 : vector<7x64xf32>
    %cst_34 = arith.constant dense<0.000000e+00> : vector<7xf32>
    %79 = vector.multi_reduction <add>, %78, %cst_34 [1] : vector<7x64xf32> to vector<7xf32>
    %80 = vector.shape_cast %79 : vector<7xf32> to vector<7x1xf32>
    %81 = math.log %80 : vector<7x1xf32>
    %82 = arith.addf %81, %75 : vector<7x1xf32>
    %83 = tpu.iota {dimensions = array<i32: 1>} : vector<7x64xi32>
    %84 = vector.broadcast %73 : vector<7x1xi32> to vector<7x64xi32>
    %85 = arith.cmpi eq, %83, %84 : vector<7x64xi32>
    %cst_35 = arith.constant 0.000000e+00 : f32
    %86 = vector.broadcast %cst_35 : f32 to vector<7x64xf32>
    %87 = arith.select %85, %71, %86 : vector<7x64xi1>, vector<7x64xf32>
    %cst_36 = arith.constant dense<0.000000e+00> : vector<7xf32>
    %88 = vector.multi_reduction <add>, %87, %cst_36 [1] : vector<7x64xf32> to vector<7xf32>
    %89 = vector.shape_cast %88 : vector<7xf32> to vector<7x1xf32>
    %c0_i32_37 = arith.constant 0 : i32
    %90 = vector.broadcast %c0_i32_37 : i32 to vector<7x1xi32>
    %91 = arith.cmpi ne, %73, %90 : vector<7x1xi32>
    %92 = arith.extui %91 : vector<7x1xi1> to vector<7x1xi32>
    %93 = arith.sitofp %92 : vector<7x1xi32> to vector<7x1xf32>
    %94 = arith.subf %82, %89 : vector<7x1xf32>
    %95 = arith.mulf %94, %93 : vector<7x1xf32>
    %cst_38 = arith.constant dense<0.000000e+00> : vector<1xf32>
    %96 = vector.multi_reduction <add>, %95, %cst_38 [0] : vector<7x1xf32> to vector<1xf32>
    %97 = vector.shape_cast %96 : vector<1xf32> to vector<1x1xf32>
    %98 = arith.addf %48, %97 : vector<1x1xf32>
    %cst_39 = arith.constant dense<0.000000e+00> : vector<1xf32>
    %99 = vector.multi_reduction <add>, %93, %cst_39 [0] : vector<7x1xf32> to vector<1xf32>
    %100 = vector.shape_cast %99 : vector<1xf32> to vector<1x1xf32>
    %101 = arith.addf %51, %100 : vector<1x1xf32>
    %c0_40 = arith.constant 0 : index
    %c0_41 = arith.constant 0 : index
    %102 = vector.load %arg5[%c0_40, %c0_41] : memref<1x1xf32, #tpu.memory_space<vmem>>, vector<1x1xf32>
    tpu.vector_store %arg5[%c0_40, %c0_41], %98 {strides = array<i32>} : memref<1x1xf32, #tpu.memory_space<vmem>>, vector<1x1xf32>,
    %c0_42 = arith.constant 0 : index
    %c0_43 = arith.constant 0 : index
    %103 = vector.load %arg6[%c0_42, %c0_43] : memref<1x1xf32, #tpu.memory_space<vmem>>, vector<1x1xf32>
    tpu.vector_store %arg6[%c0_42, %c0_43], %101 {strides = array<i32>} : memref<1x1xf32, #tpu.memory_space<vmem>>, vector<1x1xf32>,
    return
  }
  func.func @transform_0(%arg0: i32) -> (i32, i32, i32) {
    %c0_i32 = arith.constant 0 : i32
    %c0_i32_0 = arith.constant 0 : i32
    %c0_i32_1 = arith.constant 0 : i32
    %c0_i32_2 = arith.constant 0 : i32
    return %c0_i32, %c0_i32_0, %c0_i32_1 : i32, i32, i32
  }
  func.func @transform_1(%arg0: i32) -> (i32, i32, i32) {
    %c0_i32 = arith.constant 0 : i32
    %c0_i32_0 = arith.constant 0 : i32
    %c0_i32_1 = arith.constant 0 : i32
    %c0_i32_2 = arith.constant 0 : i32
    return %c0_i32, %c0_i32_0, %c0_i32_1 : i32, i32, i32
  }
  func.func @transform_2(%arg0: i32) -> (i32, i32) {
    %c0_i32 = arith.constant 0 : i32
    %c0_i32_0 = arith.constant 0 : i32
    %c0_i32_1 = arith.constant 0 : i32
    return %c0_i32, %c0_i32_0 : i32, i32
  }
  func.func @transform_3(%arg0: i32) -> (i32, i32) {
    %c0_i32 = arith.constant 0 : i32
    %c0_i32_0 = arith.constant 0 : i32
    %c0_i32_1 = arith.constant 0 : i32
    return %c0_i32, %c0_i32_0 : i32, i32
  }
  func.func @transform_4(%arg0: i32) -> (i32, i32) {
    %c0_i32 = arith.constant 0 : i32
    %c0_i32_0 = arith.constant 0 : i32
    %c0_i32_1 = arith.constant 0 : i32
    return %c0_i32, %c0_i32_0 : i32, i32
  }
  func.func @transform_5(%arg0: i32) -> (i32, i32) {
    %c0_i32 = arith.constant 0 : i32
    %c0_i32_0 = arith.constant 0 : i32
    %c0_i32_1 = arith.constant 0 : i32
    return %c0_i32, %c0_i32_0 : i32, i32
  }
}

</mosaic_0001>

<bundles_post_ra>
// kernel: llama_adapter_forward.10
= control target key start
LH: loop header
LB: loop body
LE: loop exit
PB: predicated region body
PF: predicated region fallthrough
CT: control target
= control target key end

     0   :  { %s515_s21 = smov 0   ;;  %s645_s0 = inlined_call_operand.vmem [shape: f32[2,4,192], index: 0, kind: input, shape index: {}]   ;;  %s646_s1 = inlined_call_operand.vmem [shape: f32[192,32], index: 1, kind: input, shape index: {}]   ;;  %s647_s2 = inlined_call_operand.vmem [shape: f32[1,32], index: 2, kind: input, shape index: {}]   ;;  %s648_s3 = inlined_call_operand.vmem [shape: f32[5,32], index: 3, kind: input, shape index: {}]   ;;  %s649_s4 = inlined_call_operand.vmem [shape: f32[1,32], index: 4, kind: input, shape index: {}]   ;;  %s650_s5 = inlined_call_operand.vmem [shape: f32[1,32], index: 5, kind: input, shape index: {}]   ;;  %s651_s6 = inlined_call_operand.vmem [shape: f32[2,5,32], index: 6, kind: output, shape index: {}]  }
   0x1 LB: > { %s445_s22 = sadd.s32 4294967295, %s477_s21   ;;  %p449_p0 = scmp.ge.s32.totalorder %s477_s21, 1  ;;  %s477_s21 = sphi %s515_s21, %s16_s21  }
   0x2   : > { %p212_p1 = scmp.lt.s32.totalorder %s477_s21, 3 }
   0x4   : > { %p213_p2 = pnand %p449_p0, %p212_p1 }
   0x5   : > { %v252_v0 = vld [vmem:[%s646_s1] sm:$0xff] (!%p213_p2)  ;;  %v253_v1 = vld [vmem:[%s646_s1 + $0x8] sm:$0xff] (!%p213_p2)  ;;  %v254_v2 = vld [vmem:[%s646_s1 + $0x10] sm:$0xff] (!%p213_p2)  ;;  %p241_p3 = scmp.lt.s32.totalorder (!%p213_p2), %s445_s22, 1  ;;  %v479_v3 = vmov (!%p213_p2), 0   ;;  %vm345_vm0 = vcmask (!%p213_p2), 253952  }
   0x6   : > { %216 = sbr.rel (%p213_p2) target bundleno = 583 (0x247), region = 44  ;;  %305 = vmatprep.subr.bf16.mxu0 (!%p213_p2), %v479_v3  ;;  %v281_v4 = vpack.c.bf16 (!%p213_p2), %v253_v1, %v252_v0  ;;  %v255_v5 = vld [vmem:[%s646_s1 + $0x18] sm:$0xff] (!%p213_p2)  ;;  %v256_v7 = vld [vmem:[%s646_s1 + $0x20] sm:$0xff] (!%p213_p2)  ;;  %v257_v8 = vld [vmem:[%s646_s1 + $0x28] sm:$0xff] (!%p213_p2)  ;;  %vm301_vm1 = vcmask (!%p213_p2), 523264   ;;  %vm363_vm2 = vcmask (!%p213_p2), 257024  }
   0x7   : > { %v282_v6 = vpack.c.bf16 (!%p213_p2), %v255_v5, %v254_v2  ;;  %v283_v9 = vpack.c.bf16 (!%p213_p2), %v257_v8, %v256_v7  ;;  %v258_v10 = vld [vmem:[%s646_s1 + $0x30] sm:$0xff] (!%p213_p2)  ;;  %v259_v11 = vld [vmem:[%s646_s1 + $0x38] sm:$0xff] (!%p213_p2)  ;;  %v561_v13 = vld [vmem:[%s648_s3] sm:$0x1f] (!%p213_p2) }
   0x8   : > { %306 = vmatpush1.bf16.msra.mxu0 (!%p213_p2), %v281_v4  ;;  %v296_v14 = vld [vmem:[%s647_s2] sm:$0x1] (!%p213_p2)  ;;  %v284_v17 = vpack.c.bf16 (!%p213_p2), %v259_v11, %v258_v10  ;;  %v261_v21 = vld [vmem:[%s646_s1 + $0x48] sm:$0xff] (!%p213_p2)  ;;  %v262_v23 = vld [vmem:[%s646_s1 + $0x50] sm:$0xff] (!%p213_p2)  ;;  %v299_v50 = vrot.slane (!%p213_p2), %v561_v13, 1 }
   0x9   : > { %307 = vmatprep.subr.bf16.mxu0 (!%p213_p2), %v479_v3  ;;  %v297_v16 = vadd.f32 (!%p213_p2), %v296_v14, %v561_v13  ;;  %v260_v20 = vld [vmem:[%s646_s1 + $0x40] sm:$0xff] (!%p213_p2)  ;;  %v263_v24 = vld [vmem:[%s646_s1 + $0x58] sm:$0xff] (!%p213_p2)  ;;  %v265_v27 = vld [vmem:[%s646_s1 + $0x68] sm:$0xff] (!%p213_p2) }
   0xa   : > { %v285_v22 = vpack.c.bf16 (!%p213_p2), %v261_v21, %v260_v20  ;;  %v286_v25 = vpack.c.bf16 (!%p213_p2), %v263_v24, %v262_v23  ;;  %v264_v26 = vld [vmem:[%s646_s1 + $0x60] sm:$0xff] (!%p213_p2)  ;;  %v266_v29 = vld [vmem:[%s646_s1 + $0x70] sm:$0xff] (!%p213_p2)  ;;  %v267_v30 = vld [vmem:[%s646_s1 + $0x78] sm:$0xff] (!%p213_p2) }
   0xb   : > { %v346_v19 = vsel (!%p213_p2), %vm345_vm0, %v297_v16, 0.0  ;;  %v287_v28 = vpack.c.bf16 (!%p213_p2), %v265_v27, %v264_v26  ;;  %v288_v31 = vpack.c.bf16 (!%p213_p2), %v267_v30, %v266_v29  ;;  %v268_v32 = vld [vmem:[%s646_s1 + $0x80] sm:$0xff] (!%p213_p2)  ;;  %v269_v33 = vld [vmem:[%s646_s1 + $0x88] sm:$0xff] (!%p213_p2)  ;;  %v270_v35 = vld [vmem:[%s646_s1 + $0x90] sm:$0xff] (!%p213_p2) }
   0xc   : > { %308 = vmatpush1.bf16.msra.mxu0 (!%p213_p2), %v282_v6  ;;  %347 = vadd.xlane.f32.xlu0 (!%p213_p2), %v346_v19  ;;  %v289_v34 = vpack.c.bf16 (!%p213_p2), %v269_v33, %v268_v32  ;;  %v271_v36 = vld [vmem:[%s646_s1 + $0x98] sm:$0xff] (!%p213_p2)  ;;  %v272_v38 = vld [vmem:[%s646_s1 + $0xa0] sm:$0xff] (!%p213_p2)  ;;  %v273_v39 = vld [vmem:[%s646_s1 + $0xa8] sm:$0xff] (!%p213_p2) }
   0xd   : > { %s653_s22 = smov (!%p241_p3, %s445_s22), 1  ;;  %309 = vmatprep.subr.bf16.mxu0 %v479_v3  ;;  %v290_v37 = vpack.c.bf16 %v271_v36, %v270_v35  ;;  %v291_v40 = vpack.c.bf16 %v273_v39, %v272_v38  ;;  %v274_v41 = vld [vmem:[%s646_s1 + $0xb0] sm:$0xff]  ;;  %v275_v42 = vld [vmem:[%s646_s1 + $0xb8] sm:$0xff]  ;;  %v294_v61 = vld [vmem:[%s649_s4] sm:$0x1] }
   0xe   : > { %s456_s11 = sshll.u32 %s653_s22, 3  ;;  %v292_v43 = vpack.c.bf16 %v275_v42, %v274_v41  ;;  %v295_v63 = vld [vmem:[%s650_s5] sm:$0x1] }
   0xf   : > { %s245_s14 = scalar_lea.vmem %s645_s0, %s456_s11  ;;  %s249_s19 = scalar_lea.vmem %s651_s6, %s456_s11 }
  0x10   : > { %v251_v12 = vld [vmem:[%s245_s14] sm:$0xff]  ;;  %310 = vmatpush1.bf16.msra.mxu0 %v283_v9  ;;  %v378_v9 = vlaneseq }
  0x11   : > { %v277_v15 = vcombine.high %v251_v12, %v251_v12  ;;  %311 = vmatprep.subr.bf16.mxu0 %v479_v3  ;;  %v279_v44 = vpack.c.bf16 %v251_v12, %v251_v12 }
  0x12   : > { %v379_v11 = vshrl.u32 %v378_v9, 7 }
  0x13   : > { %v280_v18 = vpack.c.bf16 %v277_v15, %v277_v15 }
  0x14   : > { %312 = vmatpush1.bf16.msra.mxu0 %v284_v17  ;;  %v380_v12 = vsub.s32 0, %v379_v11 }
  0x15   : > { %453 = vmatprep.mubr.msk.bf16.mxu0 %vm301_vm1, %v280_v18  ;;  %313 = vmatprep.subr.bf16.mxu0 %v479_v3 }
  0x16   : > { %v381_v13 = vrot.slane %v294_v61, %v380_v12  ;;  %v388_v15 = vrot.slane %v295_v63, %v380_v12 }
  0x18   : > { %314 = vmatpush1.bf16.msra.mxu0 %v285_v22 }
  0x19   : > { %315 = vmatprep.subr.bf16.mxu0 %v479_v3 }
  0x1c   : > { %316 = vmatpush1.bf16.msra.mxu0 %v286_v25 }
  0x1d   : > { %317 = vmatprep.subr.bf16.mxu0 %v479_v3 }
  0x20   : > { %318 = vmatpush1.bf16.msra.mxu0 %v287_v28 }
  0x21   : > { %319 = vmatprep.subr.bf16.mxu0 %v479_v3 }
  0x24   : > { %320 = vmatpush1.bf16.msra.mxu0 %v288_v31 }
  0x25   : > { %321 = vmatprep.subr.bf16.mxu0 %v479_v3 }
  0x28   : > { %322 = vmatpush1.bf16.msra.mxu0 %v289_v34 }
  0x29   : > { %323 = vmatprep.subr.bf16.mxu0 %v479_v3 }
  0x2c   : > { %324 = vmatpush1.bf16.msra.mxu0 %v290_v37 }
  0x2d   : > { %325 = vmatprep.subr.bf16.mxu0 %v479_v3 }
  0x30   : > { %326 = vmatpush1.bf16.msra.mxu0 %v291_v40 }
  0x31   : > { %327 = vmatprep.subr.bf16.mxu0 %v479_v3 }
  0x34   : > { %328 = vmatpush1.bf16.msra.mxu0 %v292_v43 }
  0x37   : > { %338 = vmatmul.mubr.bf16.vlgmr.msra.gmra.mrb[0].mxu0 %v279_v44 }
  0x99   : > { %v348_v45 = vpop.xlane.xlu0 %347 }
  0x9a   : > { %v350_v46 = vmul.f32 0.03125, %v348_v45 }
  0x9c   : > { %v351_v47 = vsub.f32 %v297_v16, %v350_v46 }
  0x9e   : > { %v352_v48 = vmul.f32 %v351_v47, %v351_v47 }
  0xa0   : > { %v353_v49 = vsel %vm345_vm0, %v352_v48, 0.0 }
  0xa1   : > { %354 = vadd.xlane.f32.xlu1 %v353_v49 }
 0x10a   : > { %v339_v51 = vpop.f32.mrb[0].mxu0 }
 0x10b   : > { %v340_v52 = vadd.f32 %v339_v51, %v299_v50  ;;  %v341_v53 = vpop.f32.mrb[1].mxu0 }
 0x10c   : > { %v342_v54 = vpop.f32.mrb[2].mxu0 }
 0x10d   : > { %v343_v55 = vpop.f32.mrb[3].mxu0  ;;  %v364_v56 = vsel %vm363_vm2, %v340_v52, 0.0 }
 0x10e   : > { %365 = vadd.xlane.f32.xlu0 %v364_v56 }
 0x12e   : > { %v355_v57 = vpop.xlane.xlu1 %354 }
 0x12f   : > { %v356_v58 = vmul.f32 0.03125, %v355_v57 }
 0x131   : > { %v357_v59 = vadd.f32 1e-05, %v356_v58 }
 0x133   : > { %467 = vrsqrt.f32 %v357_v59 }
 0x13d   : > { %v468_v60 = vpop.eup %467 }
 0x13e   : > { %v359_v62 = vmul.f32 %v468_v60, %v351_v47 }
 0x140   : > { %v360_v0 = vmul.f32 %v359_v62, %v294_v61 }
 0x142   : > { %v361_v1 = vadd.f32 %v360_v0, %v295_v63 }
 0x144   : > { %362 = vst.msk [vmem:[%s249_s19] sm:$0x1] %vm345_vm0, %v361_v1 }
 0x19b   : > { %v366_v2 = vpop.xlane.xlu0 %365 }
 0x19c   : > { %v367_v3 = vmul.f32 0.03125, %v366_v2 }
 0x19e   : > { %v368_v4 = vsub.f32 %v340_v52, %v367_v3 }
 0x1a0   : > { %v369_v5 = vmul.f32 %v368_v4, %v368_v4 }
 0x1a2   : > { %v370_v6 = vsel %vm363_vm2, %v369_v5, 0.0 }
 0x1a3   : > { %371 = vadd.xlane.f32.xlu1 %v370_v6 }
 0x230   : > { %v372_v7 = vpop.xlane.xlu1 %371 }
 0x231   : > { %v373_v8 = vmul.f32 0.03125, %v372_v7 }
 0x233   : > { %v374_v10 = vadd.f32 1e-05, %v373_v8 }
 0x235   : > { %469 = vrsqrt.f32 %v374_v10 }
 0x23f   : > { %v470_v14 = vpop.eup %469 }
 0x240   : > { %v376_v16 = vmul.f32 %v470_v14, %v368_v4 }
 0x242   : > { %v383_v17 = vmul.f32 %v381_v13, %v376_v16 }
 0x244   : > { %v390_v18 = vadd.f32 %v388_v15, %v383_v17 }
 0x246   : > { %391 = vst.msk [vmem:[%s249_s19 + $0x1] sm:$0xf] %vm363_vm2, %v390_v18 }
 0x247 PF: > { %s16_s21 = sadd.s32 1, %s477_s21  }
 0x248   : > { %p13_p4 = scmp.ge.s32.totalorder %s16_s21, 4  }
 0x24a   :  { %15 = sbr.rel (!%p13_p4) target bundleno = 1 (0x1), region = 74 }

// kernel: llama_adapter_forward.12
= control target key start
LH: loop header
LB: loop body
LE: loop exit
PB: predicated region body
PF: predicated region fallthrough
CT: control target
= control target key end

     0   :  { %s632_s27 = smov 0   ;;  %s700_s0 = inlined_call_operand.vmem [shape: f32[2,5,32], index: 0, kind: input, shape index: {}]   ;;  %s701_s1 = inlined_call_operand.vmem [shape: f32[1,32], index: 1, kind: input, shape index: {}]   ;;  %s702_s2 = inlined_call_operand.vmem [shape: f32[1,32], index: 2, kind: input, shape index: {}]   ;;  %s703_s3 = inlined_call_operand.vmem [shape: f32[32,32], index: 3, kind: input, shape index: {}]   ;;  %s704_s4 = inlined_call_operand.vmem [shape: f32[32,32], index: 4, kind: input, shape index: {}]   ;;  %s705_s5 = inlined_call_operand.vmem [shape: f32[1,32], index: 5, kind: input, shape index: {}]   ;;  %s706_s6 = inlined_call_operand.vmem [shape: f32[1,32], index: 6, kind: input, shape index: {}]   ;;  %s707_s7 = inlined_call_operand.vmem [shape: f32[1,32], index: 7, kind: input, shape index: {}]   ;;  %s708_s8 = inlined_call_operand.vmem [shape: f32[2,5,32], index: 8, kind: output, shape index: {}]  }
   0x1 LB: > { %s525_s28 = sadd.s32 4294967295, %s583_s27   ;;  %p529_p0 = scmp.ge.s32.totalorder %s583_s27, 1  ;;  %s583_s27 = sphi %s632_s27, %s18_s27  }
   0x2   : > { %p261_p1 = scmp.lt.s32.totalorder %s583_s27, 3 }
   0x4   : > { %p262_p2 = pnand %p529_p0, %p261_p1 }
   0x5   : > { %p293_p3 = scmp.lt.s32.totalorder (!%p262_p2), %s525_s28, 1  ;;  %vm305_vm0 = vcmask (!%p262_p2), 258048   ;;  %v334_v7 = vld [vmem:[%s703_s3] sm:$0xff] (!%p262_p2)  ;;  %v335_v8 = vld [vmem:[%s703_s3 + $0x8] sm:$0xff] (!%p262_p2)  ;;  %v585_v10 = vmov (!%p262_p2), 0.0   ;;  %v336_v11 = vld [vmem:[%s703_s3 + $0x10] sm:$0xff] (!%p262_p2) }
   0x6   : > { %265 = sbr.rel (%p262_p2) target bundleno = 1074 (0x432), region = 52  ;;  %v339_v9 = vpack.c.bf16 (!%p262_p2), %v335_v8, %v334_v7  ;;  %547 = vmatprep.subr.bf16.mxu0 (!%p262_p2), %v585_v10  ;;  %v337_v12 = vld [vmem:[%s703_s3 + $0x18] sm:$0xff] (!%p262_p2)  ;;  %555 = vmatprep.subr.bf16.mxu1 (!%p262_p2), %v585_v10  ;;  %vm586_vm1 = vmmov (!%p262_p2), 0   ;;  %v385_v14 = vld [vmem:[%s704_s4] sm:$0xff] (!%p262_p2)  ;;  %v386_v15 = vld [vmem:[%s704_s4 + $0x8] sm:$0xff] (!%p262_p2)  ;;  %vm341_vm2 = vcmask (!%p262_p2), 261120  }
   0x7   : > { %v340_v13 = vpack.c.bf16 (!%p262_p2), %v337_v12, %v336_v11  ;;  %551 = vmatprep.mubr.msk.bf16.mxu0 (!%p262_p2), %vm586_vm1, %v585_v10  ;;  %559 = vmatprep.mubr.msk.bf16.mxu1 (!%p262_p2), %vm586_vm1, %v585_v10  ;;  %v390_v16 = vpack.c.bf16 (!%p262_p2), %v386_v15, %v385_v14  ;;  %v532_v21 = vld [vmem:[%s701_s1] ss:$0 sm:$0xff] (!%p262_p2)  ;;  %v387_v27 = vld [vmem:[%s704_s4 + $0x10] sm:$0xff] (!%p262_p2)  ;;  %v388_v28 = vld [vmem:[%s704_s4 + $0x18] sm:$0xff] (!%p262_p2) }
   0x8   : > { %548 = vmatpush3.bf16.msra.mxu0 (!%p262_p2), %v339_v9  ;;  %v533_v23 = vld [vmem:[%s702_s2] ss:$0 sm:$0xff] (!%p262_p2)  ;;  %v391_v29 = vpack.c.bf16 (!%p262_p2), %v388_v28, %v387_v27 }
   0x9   : > { %549 = vmatprep.subr.bf16.mxu0 (!%p262_p2), %v585_v10  ;;  %556 = vmatpush3.bf16.msra.mxu1 (!%p262_p2), %v390_v16  ;;  %v535_v35 = vld [vmem:[%s705_s5] ss:$0 sm:$0xff] (!%p262_p2) }
   0xa   : > { %557 = vmatprep.subr.bf16.mxu1 (!%p262_p2), %v585_v10  ;;  %v537_v51 = vld [vmem:[%s706_s6] ss:$0 sm:$0xff] (!%p262_p2) }
   0xb   : > { %v538_v53 = vld [vmem:[%s707_s7] ss:$0 sm:$0xff] (!%p262_p2) }
   0xc   : > { %550 = vmatpush3.bf16.msra.mxu0 (!%p262_p2), %v340_v13 }
   0xd   : > { %s710_s28 = smov (!%p293_p3, %s525_s28), 1  ;;  %558 = vmatpush3.bf16.msra.mxu1 %v391_v29 }
   0xe   : > { %s530_s29 = sshll.u32 %s710_s28, 3 }
   0xf   : > { %s296_s10 = scalar_lea.vmem %s700_s0, %s530_s29  ;;  %s300_s20 = scalar_lea.vmem %s708_s8, %s530_s29 }
  0x10   : > { %v302_v0 = vld [vmem:[%s296_s10] sm:$0x1f] }
  0x11   : > { %v306_v1 = vsel %vm305_vm0, %v302_v0, 0.0 }
  0x12   : > { %307 = vadd.xlane.f32.xlu0 %v306_v1 }
  0x9f   : > { %v308_v2 = vpop.xlane.xlu0 %307 }
  0xa0   : > { %v310_v3 = vmul.f32 0.03125, %v308_v2 }
  0xa2   : > { %v311_v4 = vsub.f32 %v302_v0, %v310_v3 }
  0xa4   : > { %v312_v5 = vmul.f32 %v311_v4, %v311_v4 }
  0xa6   : > { %v313_v6 = vsel %vm305_vm0, %v312_v5, 0.0 }
  0xa7   : > { %314 = vadd.xlane.f32.xlu0 %v313_v6 }
 0x134   : > { %v315_v17 = vpop.xlane.xlu0 %314 }
 0x135   : > { %v316_v18 = vmul.f32 0.03125, %v315_v17 }
 0x137   : > { %v317_v19 = vadd.f32 1e-05, %v316_v18 }
 0x139   : > { %573 = vrsqrt.f32 %v317_v19 }
 0x143   : > { %v574_v20 = vpop.eup %573 }
 0x144   : > { %v319_v22 = vmul.f32 %v574_v20, %v311_v4 }
 0x146   : > { %v326_v24 = vmul.f32 %v532_v21, %v319_v22 }
 0x148   : > { %v333_v25 = vadd.f32 %v533_v23, %v326_v24 }
 0x14a   : > { %v338_v26 = vpack.c.bf16 %v333_v25, %v333_v25 }
 0x14c   : > { %552 = vmatmul.mubr.msk.bf16.vlgmr.msra.gmra.mrb[0].mxu0 %vm341_vm2, %v338_v26 }
 0x21f   : > { %v379_v30 = vpop.f32.mrb[0].mxu0 }
 0x220   : > { %v389_v31 = vpack.c.bf16 %v379_v30, %v379_v30  ;;  %v553_v32 = vpop.f32.mrb[1].mxu0 }
 0x221   : > { %v382_v33 = vpop.f32.mrb[2].mxu0 }
 0x222   : > { %v554_v34 = vpop.f32.mrb[3].mxu0  ;;  %560 = vmatmul.mubr.msk.bf16.vlgmr.msra.gmra.mrb[0].mxu1 %vm341_vm2, %v389_v31 }
 0x2f5   : > { %v436_v36 = vpop.f32.mrb[0].mxu1 }
 0x2f6   : > { %v437_v37 = vadd.f32 %v535_v35, %v436_v36  ;;  %v561_v38 = vpop.f32.mrb[1].mxu1 }
 0x2f7   : > { %v439_v39 = vpop.f32.mrb[2].mxu1 }
 0x2f8   : > { %v562_v40 = vpop.f32.mrb[3].mxu1  ;;  %v444_v41 = vsel %vm305_vm0, %v437_v37, 0.0 }
 0x2f9   : > { %445 = vadd.xlane.f32.xlu1 %v444_v41 }
 0x386   : > { %v446_v42 = vpop.xlane.xlu1 %445 }
 0x387   : > { %v447_v43 = vmul.f32 0.03125, %v446_v42 }
 0x389   : > { %v448_v44 = vsub.f32 %v437_v37, %v447_v43 }
 0x38b   : > { %v449_v45 = vmul.f32 %v448_v44, %v448_v44 }
 0x38d   : > { %v450_v46 = vsel %vm305_vm0, %v449_v45, 0.0 }
 0x38e   : > { %451 = vadd.xlane.f32.xlu1 %v450_v46 }
 0x41b   : > { %v452_v47 = vpop.xlane.xlu1 %451 }
 0x41c   : > { %v453_v48 = vmul.f32 0.03125, %v452_v47 }
 0x41e   : > { %v454_v49 = vadd.f32 1e-05, %v453_v48 }
 0x420   : > { %575 = vrsqrt.f32 %v454_v49 }
 0x42a   : > { %v576_v50 = vpop.eup %575 }
 0x42b   : > { %v456_v52 = vmul.f32 %v576_v50, %v448_v44 }
 0x42d   : > { %v463_v54 = vmul.f32 %v537_v51, %v456_v52 }
 0x42f   : > { %v470_v55 = vadd.f32 %v538_v53, %v463_v54 }
 0x431   : > { %471 = vst.msk [vmem:[%s300_s20] sm:$0x1f] %vm305_vm0, %v470_v55 }
 0x432 PF: > { %s18_s27 = sadd.s32 1, %s583_s27  }
 0x433   : > { %p15_p4 = scmp.ge.s32.totalorder %s18_s27, 4  }
 0x435   :  { %17 = sbr.rel (!%p15_p4) target bundleno = 1 (0x1), region = 82 }

// kernel: llama_adapter_forward.16
= control target key start
LH: loop header
LB: loop body
LE: loop exit
PB: predicated region body
PF: predicated region fallthrough
CT: control target
= control target key end

     0   :  { %s2432_s24 = smov 0   ;;  %s2841_s0 = inlined_call_operand.vmem [shape: f32[2,8,32], index: 0, kind: input, shape index: {}]   ;;  %s2842_s1 = inlined_call_operand.vmem [shape: f32[8,4], index: 1, kind: input, shape index: {}]   ;;  %s2843_s2 = inlined_call_operand.vmem [shape: f32[8,4], index: 2, kind: input, shape index: {}]   ;;  %s2844_s3 = inlined_call_operand.vmem [shape: f32[1,32], index: 3, kind: input, shape index: {}]   ;;  %s2845_s4 = inlined_call_operand.vmem [shape: f32[32,32], index: 4, kind: input, shape index: {}]   ;;  %s2846_s5 = inlined_call_operand.vmem [shape: f32[1,32], index: 5, kind: input, shape index: {}]   ;;  %s2847_s6 = inlined_call_operand.vmem [shape: f32[32,32], index: 6, kind: input, shape index: {}]   ;;  %s2848_s7 = inlined_call_operand.vmem [shape: f32[32,32], index: 7, kind: input, shape index: {}]   ;;  %s2849_s8 = inlined_call_operand.vmem [shape: f32[32,32], index: 8, kind: input, shape index: {}]   ;;  %s2850_s9 = inlined_call_operand.vmem [shape: f32[1,32], index: 9, kind: input, shape index: {}]   ;;  %s2851_s10 = inlined_call_operand.vmem [shape: f32[1,32], index: 10, kind: input, shape index: {}]   ;;  %s2852_s11 = inlined_call_operand.vmem [shape: f32[32,96], index: 11, kind: input, shape index: {}]   ;;  %s2853_s12 = inlined_call_operand.vmem [shape: f32[1,96], index: 12, kind: input, shape index: {}]   ;;  %s2854_s13 = inlined_call_operand.vmem [shape: f32[32,96], index: 13, kind: input, shape index: {}]   ;;  %s2855_s14 = inlined_call_operand.vmem [shape: f32[1,96], index: 14, kind: input, shape index: {}]   ;;  %s2856_s15 = inlined_call_operand.vmem [shape: f32[96,32], index: 15, kind: input, shape index: {}]   ;;  %s2857_s16 = inlined_call_operand.vmem [shape: f32[1,32], index: 16, kind: input, shape index: {}]   ;;  %s2858_s17 = inlined_call_operand.vmem [shape: f32[2,8,32], index: 17, kind: output, shape index: {}]  }
   0x1   :  { %2859 = sst [smem:[#allocation2_spill]] %s2841_s0 }
   0x2   :  { %2860 = sst [smem:[#allocation3_spill]] %s2842_s1 }
   0x3 LB: > { %s2015_s25 = sadd.s32 4294967295, %s2327_s24   ;;  %p2019_p0 = scmp.ge.s32.totalorder %s2327_s24, 1  ;;  %s2327_s24 = sphi %s2432_s24, %s27_s24  }
   0x4   : > { %p486_p1 = scmp.lt.s32.totalorder %s2327_s24, 3 }
   0x6   : > { %p487_p2 = pnand %p2019_p0, %p486_p1 }
   0x7   : > { %p536_p3 = scmp.lt.s32.totalorder (!%p487_p2), %s2015_s25, 1  ;;  %s2861_s29 = sld [smem:[#allocation2_spill]] (!%p487_p2)  ;;  %vm550_vm0 = vcmask (!%p487_p2), 261120   ;;  %v566_v3 = vld [vmem:[%s2845_s4] sm:$0xff] (!%p487_p2)  ;;  %v567_v4 = vld [vmem:[%s2845_s4 + $0x8] sm:$0xff] (!%p487_p2)  ;;  %v568_v5 = vld [vmem:[%s2845_s4 + $0x10] sm:$0xff] (!%p487_p2) }
   0x8   : > { %490 = sbr.rel (%p487_p2) target bundleno = 3720 (0xe88), region = 88  ;;  %v2329_v6 = vmov (!%p487_p2), 0.0   ;;  %v571_v7 = vpack.c.bf16 (!%p487_p2), %v567_v4, %v566_v3  ;;  %v569_v8 = vld [vmem:[%s2845_s4 + $0x18] sm:$0xff] (!%p487_p2)  ;;  %vm2330_vm1 = vmmov (!%p487_p2), 0   ;;  %v2481_v11 = vld [vmem:[%s2843_s2] sm:$0xff] (!%p487_p2)  ;;  %s2331_s18 = smov (!%p487_p2), 4  }
   0x9   : > { %2108 = vmatprep.subr.bf16.mxu0 (!%p487_p2), %v2329_v6  ;;  %2112 = vmatprep.mubr.msk.bf16.mxu0 (!%p487_p2), %vm2330_vm1, %v2329_v6  ;;  %v572_v9 = vpack.c.bf16 (!%p487_p2), %v569_v8, %v568_v5  ;;  %s2332_s19 = smov (!%p487_p2), 12   ;;  %s2333_s1 = smov (!%p487_p2), 8   ;;  %v2022_v16 = vld [vmem:[%s2844_s3] ss:$0 sm:$0xff] (!%p487_p2)  ;;  %v624_v19 = vld [vmem:[%s2847_s6 + $0x8] sm:$0xff] (!%p487_p2)  ;;  %v625_v23 = vld [vmem:[%s2847_s6 + $0x10] sm:$0xff] (!%p487_p2) }
   0xa   : > { %2132 = vmatprep.subr.bf16.mxu1 (!%p487_p2), %v2329_v6  ;;  %2134 = vmatprep.mubr.msk.bf16.mxu1 (!%p487_p2), %vm2330_vm1, %v2329_v6  ;;  %v623_v18 = vld [vmem:[%s2847_s6] sm:$0xff] (!%p487_p2)  ;;  %v626_v24 = vld [vmem:[%s2847_s6 + $0x18] sm:$0xff] (!%p487_p2)  ;;  %v670_v27 = vld [vmem:[%s2848_s7 + $0x8] sm:$0xff] (!%p487_p2)  ;;  %s2334_s20 = smov (!%p487_p2), 124   ;;  %vm877_vm2 = vcmask (!%p487_p2), 1043456   ;;  %vm765_vm3 = vcmask (!%p487_p2), 31744  }
   0xb   : > { %2109 = vmatpush3.bf16.msra.mxu0 (!%p487_p2), %v571_v7  ;;  %727 = vrot.lane.b32.xlu1 (!%p487_p2), %v2481_v11, %s2331_s18  ;;  %v627_v21 = vpack.c.bf16 (!%p487_p2), %v624_v19, %v623_v18  ;;  %v628_v25 = vpack.c.bf16 (!%p487_p2), %v626_v24, %v625_v23  ;;  %v669_v26 = vld [vmem:[%s2848_s7] sm:$0xff] (!%p487_p2)  ;;  %v671_v29 = vld [vmem:[%s2848_s7 + $0x10] sm:$0xff] (!%p487_p2)  ;;  %v672_v30 = vld [vmem:[%s2848_s7 + $0x18] sm:$0xff] (!%p487_p2)  ;;  %v715_v18 = vlaneseq (!%p487_p2)  ;;  %vm860_vm5 = vcmask (!%p487_p2), 64512   ;;  %s2336_s22 = smov (!%p487_p2), 20   ;;  %s2337_s23 = smov (!%p487_p2), 16  }
   0xc   : > { %2110 = vmatprep.subr.bf16.mxu0 (!%p487_p2), %v2329_v6  ;;  %v673_v28 = vpack.c.bf16 (!%p487_p2), %v670_v27, %v669_v26  ;;  %v674_v31 = vpack.c.bf16 (!%p487_p2), %v672_v30, %v671_v29  ;;  %v2023_v36 = vld [vmem:[%s2846_s5] ss:$0 sm:$0xff] (!%p487_p2)  ;;  %s2340_s30 = smov (!%p487_p2), 24   ;;  %vm1908_vm6 = vcmask (!%p487_p2), 785408  }
   0xd   : > { %v716_v19 = vshrl.u32 (!%p487_p2), %v715_v18, 7 }
   0xf   : > { %s2864_s25 = smov (!%p536_p3, %s2015_s25), 1  ;;  %2111 = vmatpush3.bf16.msra.mxu0 %v572_v9 }
  0x10   : > { %s2020_s26 = sshll.u32 %s2864_s25, 3  ;;  %2116 = vmatprep.subr.bf16.mxu0 %v2329_v6 }
  0x11   : > { %s539_s0 = scalar_lea.vmem %s2861_s29, %s2020_s26  ;;  %s2862_s29 = sld [smem:[#allocation3_spill]] }
  0x12   : > { %v2448_v0 = vld [vmem:[%s539_s0] sm:$0xff]  ;;  %s2339_s0 = smov 28  }
  0x13   : > { %v549_v1 = vmul.f32 %v2448_v0, %v2448_v0 }
  0x15   : > { %v551_v2 = vsel %vm550_vm0, %v549_v1, 0.0 }
  0x16   : > { %552 = vadd.xlane.f32.xlu0 %v551_v2 }
  0x17   : > { %v2476_v10 = vld [vmem:[%s2862_s29] sm:$0xff]  ;;  %s2338_s29 = smov 112  }
  0x2c   : > { %738 = vrot.lane.b32.xlu0 %v2476_v10, %s2331_s18  ;;  %s2341_s18 = smov 104  }
  0x30   : > { %927 = vrot.lane.b32.xlu0 %v2481_v11, %s2332_s19 }
  0x34   : > { %936 = vrot.lane.b32.xlu0 %v2481_v11, %s2333_s1 }
  0x7d   : > { %v728_v45 = vpop.permute.xlu1 %727 }
  0xa3   : > { %v553_v12 = vpop.xlane.xlu0 %552 }
  0xa4   : > { %v555_v13 = vmul.f32 0.03125, %v553_v12 }
  0xa6   : > { %v556_v14 = vadd.f32 1e-05, %v555_v13 }
  0xa7   : > { %v739_v37 = vpop.permute.xlu0 %738 }
  0xa8   : > { %2297 = vrsqrt.f32 %v556_v14 }
  0xb2   : > { %v2298_v15 = vpop.eup %2297 }
  0xb3   : > { %v558_v17 = vmul.f32 %v2298_v15, %v2448_v0  ;;  %v928_v15 = vpop.permute.xlu0 %927 }
  0xb5   : > { %v565_v20 = vmul.f32 %v2022_v16, %v558_v17 }
  0xb7   : > { %v570_v22 = vpack.c.bf16 %v565_v20, %v565_v20  ;;  %v718_v20 = vand.u32 127, %v715_v18 }
  0xb9   : > { %2113 = vmatmul.mubr.msk.bf16.vlgmr.msra.gmra.mrb[0].mxu0 %vm550_vm0, %v570_v22  ;;  %vm719_vm4 = vcmp.gt.s32.totalorder %v718_v20, %v716_v19 }
  0xba   : > { %2117 = vmatpush3.bf16.msra.mxu0 %v627_v21  ;;  %2120 = vmatprep.mubr.msk.bf16.mxu0 %vm2330_vm1, %v2329_v6  ;;  %v937_v21 = vpop.permute.xlu0 %936  ;;  %v2581_v23 = vsel %vm719_vm4, -1e+30, %v2329_v6 }
  0xbb   : > { %2118 = vmatprep.subr.bf16.mxu0 %v2329_v6 }
  0xbe   : > { %2119 = vmatpush3.bf16.msra.mxu0 %v628_v25 }
  0xbf   : > { %2124 = vmatprep.subr.bf16.mxu0 %v2329_v6 }
  0xc1   : > { %2121 = vmatmul.mubr.msk.bf16.vlgmr.msra.gmra.mrb[4].mxu0 %vm550_vm0, %v570_v22 }
  0xc2   : > { %2125 = vmatpush3.bf16.msra.mxu0 %v673_v28  ;;  %2128 = vmatprep.mubr.msk.bf16.mxu0 %vm2330_vm1, %v2329_v6 }
  0xc3   : > { %2126 = vmatprep.subr.bf16.mxu0 %v2329_v6 }
  0xc6   : > { %2127 = vmatpush3.bf16.msra.mxu0 %v674_v31 }
  0xc7   : > { %2144 = vmatprep.subr.bf16.mxu0 %v2329_v6 }
  0xc9   : > { %2129 = vmatmul.mubr.msk.bf16.vlgmr.msra.gmra.mrb[8].mxu0 %vm550_vm0, %v570_v22 }
  0xca   : > { %2146 = vmatprep.mubr.msk.bf16.mxu0 %vm2330_vm1, %v2329_v6 }
 0x18c   : > { %v617_v32 = vpop.f32.mrb[0].mxu0 }
 0x18d   : > { %v2114_v33 = vpop.f32.mrb[1].mxu0  ;;  %v2535_v39 = vadd.f32 %v2023_v36, %v617_v32 }
 0x18e   : > { %v620_v34 = vpop.f32.mrb[2].mxu0 }
 0x18f   : > { %v2115_v35 = vpop.f32.mrb[3].mxu0  ;;  %v741_v44 = vmul.f32 %v739_v37, %v2535_v39  ;;  %v730_v53 = vmul.f32 %v728_v45, %v2535_v39  ;;  %v736_v59 = vmul.f32 %v2535_v39, %v2481_v11  ;;  %v725_v8 = vmul.f32 %v2535_v39, %v2476_v10 }
 0x190   : > { %v930_v17 = vmul.f32 %v928_v15, %v2535_v39  ;;  %v939_v35 = vmul.f32 %v937_v21, %v2535_v39 }
 0x194   : > { %v2533_v38 = vpop.f32.mrb[4].mxu0 }
 0x195   : > { %v2122_v40 = vpop.f32.mrb[5].mxu0  ;;  %v755_v41 = vmul.f32 %v739_v37, %v2533_v38  ;;  %v748_v49 = vmul.f32 %v728_v45, %v2533_v38  ;;  %v754_v54 = vmul.f32 %v2533_v38, %v2481_v11  ;;  %v747_v62 = vmul.f32 %v2533_v38, %v2476_v10 }
 0x196   : > { %v666_v42 = vpop.f32.mrb[6].mxu0  ;;  %v950_v16 = vmul.f32 %v928_v15, %v2533_v38  ;;  %v956_v32 = vmul.f32 %v937_v21, %v2533_v38 }
 0x197   : > { %v2123_v43 = vpop.f32.mrb[7].mxu0  ;;  %757 = vrot.lane.b32.xlu1 %v755_v41, %s2334_s20 }
 0x19b   : > { %743 = vrot.lane.b32.xlu1 %v741_v44, %s2334_s20 }
 0x19c   : > { %v709_v46 = vpop.f32.mrb[8].mxu0 }
 0x19d   : > { %v2541_v47 = vpack.c.bf16 %v709_v46, %v709_v46  ;;  %v2130_v48 = vpop.f32.mrb[9].mxu0 }
 0x19e   : > { %v712_v50 = vpop.f32.mrb[10].mxu0 }
 0x19f   : > { %v2131_v51 = vpop.f32.mrb[11].mxu0  ;;  %750 = vrot.lane.b32.xlu1 %v748_v49, %s2334_s20  ;;  %v879_v52 = vsel %vm877_vm2, %v2541_v47, 0 }
 0x1a0   : > { %2145 = vmatpush3.bf16.msra.mxu0 %v879_v52 }
 0x1a1   : > { %2150 = vmatprep.subr.bf16.mxu0 %v2329_v6 }
 0x1a3   : > { %732 = vrot.lane.b32.xlu1 %v730_v53, %s2334_s20 }
 0x1a7   : > { %940 = vrot.lane.b32.xlu1 %v2476_v10, %s2332_s19  ;;  %s2335_s19 = smov 120  }
 0x209   : > { %v758_v55 = vpop.permute.xlu1 %757 }
 0x20a   : > { %v760_v56 = vadd.f32 %v758_v55, %v754_v54 }
 0x20c   : > { %v764_v57 = vpack.c.bf16 %v760_v56, %v760_v56 }
 0x20d   : > { %v744_v58 = vpop.permute.xlu1 %743 }
 0x20e   : > { %v770_v60 = vsel %vm765_vm3, %v764_v57, 0  ;;  %v746_v61 = vadd.f32 %v744_v58, %v736_v59 }
 0x20f   : > { %2133 = vmatpush3.bf16.xpose.msra.mxu1 %v770_v60 }
 0x210   : > { %2138 = vmatprep.subr.bf16.mxu1 %v2329_v6  ;;  %v763_v2 = vpack.c.bf16 %v746_v61, %v746_v61 }
 0x211   : > { %v751_v63 = vpop.permute.xlu1 %750 }
 0x212   : > { %v753_v1 = vsub.f32 %v747_v62, %v751_v63 }
 0x214   : > { %v762_v3 = vpack.c.bf16 %v753_v1, %v753_v1 }
 0x215   : > { %v733_v4 = vpop.permute.xlu1 %732 }
 0x216   : > { %v816_v5 = vsel %vm765_vm3, %v762_v3, 0  ;;  %2135 = vmatmul.mubr.msk.bf16.vlgmr.msra.gmra.mrb[0].mxu1 %vm765_vm3, %v763_v2  ;;  %v735_v12 = vsub.f32 %v725_v8, %v733_v4  ;;  %v721_v2 = vld [vmem:[%s2849_s8] sm:$0xff] }
 0x217   : > { %2139 = vmatpush3.bf16.xpose.msra.mxu1 %v816_v5  ;;  %2140 = vmatprep.mubr.msk.bf16.mxu1 %vm2330_vm1, %v2329_v6  ;;  %v922_v3 = vpack.c.bf16 %v721_v2, %v721_v2 }
 0x218   : > { %2162 = vmatprep.subr.bf16.mxu1 %v2329_v6  ;;  %v761_v14 = vpack.c.bf16 %v735_v12, %v735_v12 }
 0x219   : > { %v941_v7 = vpop.permute.xlu1 %940  ;;  %v1186_v4 = vsel %vm877_vm2, %v922_v3, 0 }
 0x21a   : > { %v957_v9 = vmul.f32 %v941_v7, %v2533_v38  ;;  %v943_v13 = vmul.f32 %v941_v7, %v2535_v39 }
 0x21c   : > { %959 = vrot.lane.b32.xlu0 %v957_v9, %s2334_s20 }
 0x220   : > { %945 = vrot.lane.b32.xlu0 %v943_v13, %s2334_s20 }
 0x222   : > { %2141 = vmatmul.mubr.msk.bf16.vlgmr.msra.gmra.mrb[0].mxu1 %vm765_vm3, %v761_v14 }
 0x223   : > { %2164 = vmatprep.mubr.msk.bf16.mxu1 %vm2330_vm1, %v2329_v6 }
 0x224   : > { %923 = vrot.lane.b32.xlu0 %v2476_v10, %s2333_s1 }
 0x228   : > { %952 = vrot.lane.b32.xlu0 %v950_v16, %s2334_s20 }
 0x22c   : > { %932 = vrot.lane.b32.xlu0 %v930_v17, %s2334_s20 }
 0x28e   : > { %v960_v29 = vpop.permute.xlu0 %959 }
 0x28f   : > { %v962_v34 = vadd.f32 %v960_v29, %v956_v32 }
 0x291   : > { %v966_v36 = vpack.c.bf16 %v962_v34, %v962_v34 }
 0x292   : > { %v946_v31 = vpop.permute.xlu0 %945 }
 0x293   : > { %v948_v37 = vadd.f32 %v946_v31, %v939_v35 }
 0x295   : > { %v965_v42 = vpack.c.bf16 %v948_v37, %v948_v37 }
 0x296   : > { %v924_v33 = vpop.permute.xlu0 %923 }
 0x297   : > { %v949_v41 = vmul.f32 %v924_v33, %v2533_v38  ;;  %v926_v52 = vmul.f32 %v924_v33, %v2535_v39 }
 0x29a   : > { %v953_v40 = vpop.permute.xlu0 %952 }
 0x29b   : > { %v955_v43 = vsub.f32 %v949_v41, %v953_v40 }
 0x29d   : > { %v964_v44 = vpack.c.bf16 %v955_v43, %v955_v43 }
 0x29e   : > { %v933_v51 = vpop.permute.xlu0 %932 }
 0x29f   : > { %v935_v53 = vsub.f32 %v926_v52, %v933_v51 }
 0x2a1   : > { %v963_v54 = vpack.c.bf16 %v935_v53, %v935_v53 }
 0x2f5   : > { %v852_v22 = vpop.f32.mrb[0].mxu1 }
 0x2f6   : > { %v858_v24 = vmul.f32 0.35355338, %v852_v22  ;;  %v2142_v25 = vpop.f32.mrb[1].mxu1 }
 0x2f7   : > { %v855_v26 = vpop.f32.mrb[2].mxu1 }
 0x2f8   : > { %v2143_v27 = vpop.f32.mrb[3].mxu1  ;;  %v859_v28 = vadd.f32 %v858_v24, %v2581_v23 }
 0x2fa   : > { %v861_v30 = vsel %vm860_vm5, %v859_v28, -inf }
 0x2fb   : > { %862 = vmax.xlane.f32.xlu1 %v861_v30 }
 0x30c   : > { %971 = vrot.lane.b32.xlu1 %v966_v36, %s2335_s19 }
 0x310   : > { %968 = vrot.lane.b32.xlu1 %v965_v42, %s2335_s19 }
 0x314   : > { %1023 = vrot.lane.b32.xlu1 %v964_v44, %s2335_s19  ;;  %v722_v44 = vld [vmem:[%s2849_s8 + $0x8] sm:$0xff] }
 0x388   : > { %v863_v45 = vpop.xlane.xlu1 %862 }
 0x389   : > { %v864_v46 = vsub.f32 %v859_v28, %v863_v45  ;;  %v1135_v45 = vpack.c.bf16 %v722_v44, %v722_v44 }
 0x38b   : > { %v865_v48 = vmul.f32 1.442695, %v864_v46  ;;  %v1140_v46 = vsel %vm877_vm2, %v1135_v45, 0 }
 0x38c   : > { %v972_v56 = vpop.permute.xlu1 %971 }
 0x38d   : > { %2299 = vpow2.f32 %v865_v48  ;;  %v977_v61 = vsel %vm765_vm3, %v972_v56, 0 }
 0x390   : > { %v969_v60 = vpop.permute.xlu1 %968 }
 0x394   : > { %v1024_v62 = vpop.permute.xlu1 %1023 }
 0x395   : > { %v1029_v63 = vsel %vm765_vm3, %v1024_v62, 0 }
 0x397   : > { %v2300_v49 = vpop.eup %2299 }
 0x398   : > { %v867_v50 = vsel %vm860_vm5, %v2300_v49, 0.0 }
 0x399   : > { %868 = vadd.xlane.f32.xlu0 %v867_v50 }
 0x3af   : > { %1020 = vrot.lane.b32.xlu0 %v963_v54, %s2335_s19 }
 0x426   : > { %v869_v55 = vpop.xlane.xlu0 %868 }
 0x427   : > { %2301 = vrcp.f32 %v869_v55 }
 0x42a   : > { %v1021_v1 = vpop.permute.xlu0 %1020 }
 0x431   : > { %v2302_v57 = vpop.eup %2301 }
 0x432   : > { %v871_v58 = vmul.f32 %v2302_v57, %v2300_v49 }
 0x434   : > { %v872_v59 = vpack.c.bf16 %v871_v58, %v871_v58 }
 0x436   : > { %2147 = vmatmul.mubr.msk.bf16.vlgmr.msra.gmra.mrb[12].mxu0 %vm860_vm5, %v872_v59 }
 0x437   : > { %2151 = vmatpush3.bf16.xpose.msra.mxu0 %v977_v61  ;;  %2152 = vmatprep.mubr.msk.bf16.mxu0 %vm2330_vm1, %v2329_v6 }
 0x438   : > { %2156 = vmatprep.subr.bf16.mxu0 %v2329_v6 }
 0x43e   : > { %2153 = vmatmul.mubr.msk.bf16.vlgmr.msra.gmra.mrb[16].mxu0 %vm765_vm3, %v969_v60 }
 0x43f   : > { %2157 = vmatpush3.bf16.xpose.msra.mxu0 %v1029_v63  ;;  %2158 = vmatprep.mubr.msk.bf16.mxu0 %vm2330_vm1, %v2329_v6 }
 0x440   : > { %2174 = vmatprep.subr.bf16.mxu0 %v2329_v6 }
 0x44a   : > { %2159 = vmatmul.mubr.msk.bf16.vlgmr.msra.gmra.mrb[16].mxu0 %vm765_vm3, %v1021_v1 }
 0x44b   : > { %2176 = vmatprep.mubr.msk.bf16.mxu0 %vm2330_vm1, %v2329_v6  ;;  %2175 = vmatpush3.bf16.msra.mxu0 %v1186_v4 }
 0x44c   : > { %2192 = vmatprep.subr.bf16.mxu0 %v2329_v6 }
 0x509   : > { %v915_v5 = vpop.f32.mrb[12].mxu0 }
 0x50a   : > { %v921_v7 = vpack.c.bf16 %v915_v5, %v915_v5  ;;  %v2148_v8 = vpop.f32.mrb[13].mxu0 }
 0x50b   : > { %v918_v9 = vpop.f32.mrb[14].mxu0 }
 0x50c   : > { %v2149_v12 = vpop.f32.mrb[15].mxu0  ;;  %2177 = vmatmul.mubr.msk.bf16.vlgmr.msra.gmra.mrb[20].mxu0 %vm860_vm5, %v921_v7 }
 0x50d   : > { %2194 = vmatprep.mubr.msk.bf16.mxu0 %vm2330_vm1, %v2329_v6 }
 0x51d   : > { %v1065_v13 = vpop.f32.mrb[16].mxu0 }
 0x51e   : > { %v1071_v14 = vmul.f32 0.35355338, %v1065_v13  ;;  %v2160_v15 = vpop.f32.mrb[17].mxu0 }
 0x51f   : > { %v1068_v16 = vpop.f32.mrb[18].mxu0 }
 0x520   : > { %v2161_v17 = vpop.f32.mrb[19].mxu0  ;;  %v1072_v18 = vadd.f32 %v1071_v14, %v2581_v23 }
 0x522   : > { %v1073_v19 = vsel %vm860_vm5, %v1072_v18, -inf }
 0x523   : > { %1074 = vmax.xlane.f32.xlu1 %v1073_v19 }
 0x534   : > { %1086 = vrot.lane.b32.xlu1 %v2541_v47, %s2335_s19 }
 0x538   : > { %1232 = vrot.lane.b32.xlu1 %v2481_v11, %s2336_s22 }
 0x53c   : > { %1241 = vrot.lane.b32.xlu1 %v2481_v11, %s2337_s23 }
 0x5b0   : > { %v1075_v20 = vpop.xlane.xlu1 %1074 }
 0x5b1   : > { %v1076_v21 = vsub.f32 %v1072_v18, %v1075_v20 }
 0x5b3   : > { %v1077_v22 = vmul.f32 1.442695, %v1076_v21 }
 0x5b4   : > { %v1087_v24 = vpop.permute.xlu1 %1086 }
 0x5b5   : > { %2303 = vpow2.f32 %v1077_v22  ;;  %v1092_v25 = vsel %vm877_vm2, %v1087_v24, 0 }
 0x5b6   : > { %2163 = vmatpush3.bf16.msra.mxu1 %v1092_v25 }
 0x5b7   : > { %2168 = vmatprep.subr.bf16.mxu1 %v2329_v6 }
 0x5b8   : > { %v1233_v26 = vpop.permute.xlu1 %1232 }
 0x5b9   : > { %v1255_v27 = vmul.f32 %v1233_v26, %v2533_v38  ;;  %v1235_v30 = vmul.f32 %v1233_v26, %v2535_v39 }
 0x5bc   : > { %v1242_v48 = vpop.permute.xlu1 %1241 }
 0x5bd   : > { %v1261_v49 = vmul.f32 %v1242_v48, %v2533_v38  ;;  %v1244_v52 = vmul.f32 %v1242_v48, %v2535_v39 }
 0x5bf   : > { %v2304_v28 = vpop.eup %2303 }
 0x5c0   : > { %v1079_v29 = vsel %vm860_vm5, %v2304_v28, 0.0 }
 0x5c1   : > { %1080 = vadd.xlane.f32.xlu0 %v1079_v29 }
 0x5d7   : > { %1245 = vrot.lane.b32.xlu0 %v2476_v10, %s2336_s22 }
 0x5db   : > { %1237 = vrot.lane.b32.xlu0 %v1235_v30, %s2334_s20 }
 0x5df   : > { %v2629_v31 = vpop.f32.mrb[20].mxu0 }
 0x5e0   : > { %v2178_v32 = vpop.f32.mrb[21].mxu0 }
 0x5e1   : > { %v1225_v33 = vpop.f32.mrb[22].mxu0 }
 0x5e2   : > { %v2179_v34 = vpop.f32.mrb[23].mxu0 }
 0x64e   : > { %v1081_v35 = vpop.xlane.xlu0 %1080 }
 0x64f   : > { %2305 = vrcp.f32 %v1081_v35 }
 0x652   : > { %v1246_v36 = vpop.permute.xlu0 %1245 }
 0x653   : > { %v1262_v37 = vmul.f32 %v1246_v36, %v2533_v38  ;;  %v1248_v40 = vmul.f32 %v1246_v36, %v2535_v39 }
 0x655   : > { %1264 = vrot.lane.b32.xlu1 %v1262_v37, %s2334_s20 }
 0x656   : > { %v1238_v59 = vpop.permute.xlu0 %1237 }
 0x659   : > { %v2306_v41 = vpop.eup %2305  ;;  %1250 = vrot.lane.b32.xlu1 %v1248_v40, %s2334_s20 }
 0x65a   : > { %v1083_v42 = vmul.f32 %v2306_v41, %v2304_v28 }
 0x65c   : > { %v1084_v43 = vpack.c.bf16 %v1083_v42, %v1083_v42 }
 0x65d   : > { %1228 = vrot.lane.b32.xlu1 %v2476_v10, %s2337_s23 }
 0x65e   : > { %2165 = vmatmul.mubr.msk.bf16.vlgmr.msra.gmra.mrb[4].mxu1 %vm860_vm5, %v1084_v43 }
 0x65f   : > { %2170 = vmatprep.mubr.msk.bf16.mxu1 %vm2330_vm1, %v2329_v6  ;;  %2169 = vmatpush3.bf16.msra.mxu1 %v1140_v46 }
 0x660   : > { %2180 = vmatprep.subr.bf16.mxu1 %v2329_v6 }
 0x661   : > { %1257 = vrot.lane.b32.xlu1 %v1255_v27, %s2334_s20 }
 0x6c7   : > { %v1265_v50 = vpop.permute.xlu1 %1264 }
 0x6c8   : > { %v1267_v51 = vadd.f32 %v1265_v50, %v1261_v49 }
 0x6ca   : > { %v1271_v53 = vpack.c.bf16 %v1267_v51, %v1267_v51 }
 0x6cb   : > { %v1251_v54 = vpop.permute.xlu1 %1250 }
 0x6cc   : > { %v1253_v55 = vadd.f32 %v1251_v54, %v1244_v52  ;;  %1276 = vrot.lane.b32.xlu1 %v1271_v53, %s2338_s29 }
 0x6ce   : > { %v1270_v56 = vpack.c.bf16 %v1253_v55, %v1253_v55 }
 0x6cf   : > { %v1229_v57 = vpop.permute.xlu1 %1228 }
 0x6d0   : > { %v1231_v58 = vmul.f32 %v1229_v57, %v2535_v39  ;;  %1273 = vrot.lane.b32.xlu0 %v1270_v56, %s2338_s29  ;;  %v1254_v61 = vmul.f32 %v1229_v57, %v2533_v38 }
 0x6d2   : > { %v1240_v60 = vsub.f32 %v1231_v58, %v1238_v59 }
 0x6d3   : > { %v1258_v62 = vpop.permute.xlu1 %1257 }
 0x6d4   : > { %v1260_v63 = vsub.f32 %v1254_v61, %v1258_v62  ;;  %v1268_v1 = vpack.c.bf16 %v1240_v60, %v1240_v60 }
 0x6d6   : > { %v1269_v2 = vpack.c.bf16 %v1260_v63, %v1260_v63  ;;  %1325 = vrot.lane.b32.xlu0 %v1268_v1, %s2338_s29 }
 0x6d8   : > { %1328 = vrot.lane.b32.xlu1 %v1269_v2, %s2338_s29 }
 0x6da   : > { %1491 = vrot.lane.b32.xlu0 %v2481_v11, %s2339_s0 }
 0x6dc   : > { %1504 = vrot.lane.b32.xlu1 %v2476_v10, %s2339_s0 }
 0x6e0   : > { %1500 = vrot.lane.b32.xlu1 %v2481_v11, %s2340_s30 }
 0x731   : > { %v1128_v3 = vpop.f32.mrb[4].mxu1 }
 0x732   : > { %v1134_v4 = vpack.c.bf16 %v1128_v3, %v1128_v3  ;;  %v2166_v5 = vpop.f32.mrb[5].mxu1 }
 0x733   : > { %v1131_v7 = vpop.f32.mrb[6].mxu1 }
 0x734   : > { %v2167_v8 = vpop.f32.mrb[7].mxu1  ;;  %2171 = vmatmul.mubr.msk.bf16.vlgmr.msra.gmra.mrb[8].mxu1 %vm860_vm5, %v1134_v4 }
 0x735   : > { %2182 = vmatprep.mubr.msk.bf16.mxu1 %vm2330_vm1, %v2329_v6 }
 0x73e   : > { %v1277_v9 = vpop.permute.xlu1 %1276 }
 0x73f   : > { %v1282_v12 = vsel %vm765_vm3, %v1277_v9, 0 }
 0x740   : > { %2181 = vmatpush3.bf16.xpose.msra.mxu1 %v1282_v12 }
 0x741   : > { %2186 = vmatprep.subr.bf16.mxu1 %v2329_v6 }
 0x742   : > { %v1274_v13 = vpop.permute.xlu0 %1273 }
 0x747   : > { %2183 = vmatmul.mubr.msk.bf16.vlgmr.msra.gmra.mrb[12].mxu1 %vm765_vm3, %v1274_v13 }
 0x748   : > { %2188 = vmatprep.mubr.msk.bf16.mxu1 %vm2330_vm1, %v2329_v6  ;;  %v1326_v11 = vpop.permute.xlu0 %1325 }
 0x74a   : > { %v1329_v14 = vpop.permute.xlu1 %1328 }
 0x74b   : > { %v1334_v15 = vsel %vm765_vm3, %v1329_v14, 0 }
 0x74c   : > { %2187 = vmatpush3.bf16.xpose.msra.mxu1 %v1334_v15  ;;  %v1492_v19 = vpop.permute.xlu0 %1491 }
 0x74d   : > { %2204 = vmatprep.subr.bf16.mxu1 %v2329_v6  ;;  %v1514_v20 = vmul.f32 %v1492_v19, %v2533_v38  ;;  %v1494_v21 = vmul.f32 %v1492_v19, %v2535_v39 }
 0x74e   : > { %v1505_v16 = vpop.permute.xlu1 %1504 }
 0x74f   : > { %v1507_v17 = vmul.f32 %v1505_v16, %v2535_v39  ;;  %v1521_v18 = vmul.f32 %v1505_v16, %v2533_v38 }
 0x751   : > { %1523 = vrot.lane.b32.xlu0 %v1521_v18, %s2334_s20  ;;  %1509 = vrot.lane.b32.xlu1 %v1507_v17, %s2334_s20  ;;  %v723_v17 = vld [vmem:[%s2849_s8 + $0x10] sm:$0xff] }
 0x752   : > { %v1501_v22 = vpop.permute.xlu1 %1500  ;;  %v1439_v19 = vpack.c.bf16 %v723_v17, %v723_v17  ;;  %v1891_v17 = vld [vmem:[%s2856_s15 + $0x10] sm:$0xff] }
 0x753   : > { %2189 = vmatmul.mubr.msk.bf16.vlgmr.msra.gmra.mrb[12].mxu1 %vm765_vm3, %v1326_v11  ;;  %v1503_v24 = vmul.f32 %v1501_v22, %v2535_v39  ;;  %v1520_v25 = vmul.f32 %v1501_v22, %v2533_v38 }
 0x754   : > { %2206 = vmatprep.mubr.msk.bf16.mxu1 %vm2330_vm1, %v2329_v6 }
 0x755   : > { %1487 = vrot.lane.b32.xlu0 %v2476_v10, %s2340_s30  ;;  %1516 = vrot.lane.b32.xlu1 %v1514_v20, %s2334_s20  ;;  %v1444_v20 = vsel %vm877_vm2, %v1439_v19, 0 }
 0x759   : > { %1496 = vrot.lane.b32.xlu0 %v1494_v21, %s2334_s20 }
 0x7c3   : > { %v1524_v26 = vpop.permute.xlu0 %1523  ;;  %v1510_v27 = vpop.permute.xlu1 %1509 }
 0x7c4   : > { %v1526_v28 = vadd.f32 %v1524_v26, %v1520_v25  ;;  %v1512_v29 = vadd.f32 %v1510_v27, %v1503_v24 }
 0x7c6   : > { %v1530_v30 = vpack.c.bf16 %v1526_v28, %v1526_v28  ;;  %v1529_v32 = vpack.c.bf16 %v1512_v29, %v1512_v29 }
 0x7c7   : > { %v1488_v33 = vpop.permute.xlu0 %1487  ;;  %v1517_v34 = vpop.permute.xlu1 %1516 }
 0x7c8   : > { %v1513_v10 = vmul.f32 %v1488_v33, %v2533_v38  ;;  %1535 = vrot.lane.b32.xlu1 %v1530_v30, %s2341_s18  ;;  %1532 = vrot.lane.b32.xlu0 %v1529_v32, %s2341_s18  ;;  %v1490_v35 = vmul.f32 %v1488_v33, %v2535_v39 }
 0x7ca   : > { %v1519_v36 = vsub.f32 %v1513_v10, %v1517_v34  ;;  %v724_v34 = vld [vmem:[%s2849_s8 + $0x18] sm:$0xff] }
 0x7cb   : > { %v1497_v37 = vpop.permute.xlu0 %1496 }
 0x7cc   : > { %v1528_v40 = vpack.c.bf16 %v1519_v36, %v1519_v36  ;;  %v1499_v41 = vsub.f32 %v1490_v35, %v1497_v37  ;;  %v1698_v35 = vpack.c.bf16 %v724_v34, %v724_v34 }
 0x7ce   : > { %v1527_v42 = vpack.c.bf16 %v1499_v41, %v1499_v41  ;;  %1587 = vrot.lane.b32.xlu1 %v1528_v40, %s2341_s18  ;;  %v1703_v36 = vsel %vm877_vm2, %v1698_v35, 0 }
 0x7d0   : > { %1584 = vrot.lane.b32.xlu0 %v1527_v42, %s2341_s18 }
 0x807   : > { %v1176_v43 = vpop.f32.mrb[8].mxu1 }
 0x808   : > { %v2688_v38 = vadd.f32 %v2629_v31, %v1176_v43  ;;  %v2172_v44 = vpop.f32.mrb[9].mxu1 }
 0x809   : > { %v1179_v45 = vpop.f32.mrb[10].mxu1 }
 0x80a   : > { %v2173_v46 = vpop.f32.mrb[11].mxu1 }
 0x826   : > { %v1370_v48 = vpop.f32.mrb[12].mxu1 }
 0x827   : > { %v1376_v49 = vmul.f32 0.35355338, %v1370_v48  ;;  %v2190_v50 = vpop.f32.mrb[13].mxu1 }
 0x828   : > { %v1373_v39 = vpop.f32.mrb[14].mxu1 }
 0x829   : > { %v2191_v51 = vpop.f32.mrb[15].mxu1  ;;  %v1377_v52 = vadd.f32 %v1376_v49, %v2581_v23 }
 0x82b   : > { %v1378_v53 = vsel %vm860_vm5, %v1377_v52, -inf }
 0x82c   : > { %1379 = vmax.xlane.f32.xlu1 %v1378_v53 }
 0x83a   : > { %v1536_v54 = vpop.permute.xlu1 %1535  ;;  %v1533_v56 = vpop.permute.xlu0 %1532 }
 0x83b   : > { %v1541_v55 = vsel %vm765_vm3, %v1536_v54, 0 }
 0x83c   : > { %2205 = vmatpush3.bf16.xpose.msra.mxu1 %v1541_v55 }
 0x83d   : > { %2210 = vmatprep.subr.bf16.mxu1 %v2329_v6 }
 0x840   : > { %v1588_v31 = vpop.permute.xlu1 %1587 }
 0x841   : > { %v1593_v57 = vsel %vm765_vm3, %v1588_v31, 0 }
 0x842   : > { %v1585_v58 = vpop.permute.xlu0 %1584 }
 0x843   : > { %2207 = vmatmul.mubr.msk.bf16.vlgmr.msra.gmra.mrb[16].mxu1 %vm765_vm3, %v1533_v56 }
 0x844   : > { %2211 = vmatpush3.bf16.xpose.msra.mxu1 %v1593_v57  ;;  %2212 = vmatprep.mubr.msk.bf16.mxu1 %vm2330_vm1, %v2329_v6  ;;  %v1771_v57 = vld [vmem:[%s2852_s11] sm:$0xff] }
 0x845   : > { %2228 = vmatprep.subr.bf16.mxu1 %v2329_v6 }
 0x84f   : > { %2213 = vmatmul.mubr.msk.bf16.vlgmr.msra.gmra.mrb[16].mxu1 %vm765_vm3, %v1585_v58  ;;  %v1772_v58 = vld [vmem:[%s2852_s11 + $0x8] sm:$0xff] }
 0x850   : > { %2232 = vmatprep.mubr.msk.bf16.mxu1 %vm2330_vm1, %v2329_v6 }
 0x8b9   : > { %v1380_v59 = vpop.xlane.xlu1 %1379 }
 0x8ba   : > { %v1381_v60 = vsub.f32 %v1377_v52, %v1380_v59  ;;  %v1776_v59 = vpack.c.bf16 %v1772_v58, %v1771_v57 }
 0x8bc   : > { %v1382_v61 = vmul.f32 1.442695, %v1381_v60  ;;  %v1836_v60 = vld [vmem:[%s2854_s13 + $0x8] sm:$0xff]  ;;  %2229 = vmatpush3.bf16.msra.mxu1 %v1776_v59 }
 0x8bd   : > { %2230 = vmatprep.subr.bf16.mxu1 %v2329_v6 }
 0x8be   : > { %2307 = vpow2.f32 %v1382_v61 }
 0x8c8   : > { %v2308_v62 = vpop.eup %2307 }
 0x8c9   : > { %v1384_v63 = vsel %vm860_vm5, %v2308_v62, 0.0 }
 0x8ca   : > { %1385 = vadd.xlane.f32.xlu0 %v1384_v63  ;;  %v1774_v63 = vld [vmem:[%s2852_s11 + $0x18] sm:$0xff] }
 0x8e0   : > { %1390 = vrot.lane.b32.xlu0 %v2541_v47, %s2338_s29  ;;  %s543_s29 = scalar_lea.vmem %s2858_s17, %s2020_s26 }
 0x922   : > { %v1629_v1 = vpop.f32.mrb[16].mxu1 }
 0x923   : > { %v1635_v2 = vmul.f32 0.35355338, %v1629_v1  ;;  %v2214_v3 = vpop.f32.mrb[17].mxu1  ;;  %v1837_v1 = vld [vmem:[%s2854_s13 + $0x10] sm:$0xff] }
 0x924   : > { %v1632_v4 = vpop.f32.mrb[18].mxu1  ;;  %v1838_v3 = vld [vmem:[%s2854_s13 + $0x18] sm:$0xff] }
 0x925   : > { %v2215_v5 = vpop.f32.mrb[19].mxu1  ;;  %v1636_v7 = vadd.f32 %v1635_v2, %v2581_v23  ;;  %v1840_v4 = vpack.c.bf16 %v1838_v3, %v1837_v1 }
 0x927   : > { %v1637_v8 = vsel %vm860_vm5, %v1636_v7, -inf }
 0x928   : > { %1638 = vmax.xlane.f32.xlu1 %v1637_v8 }
 0x957   : > { %v1386_v9 = vpop.xlane.xlu0 %1385 }
 0x958   : > { %2309 = vrcp.f32 %v1386_v9 }
 0x95b   : > { %v1391_v12 = vpop.permute.xlu0 %1390 }
 0x95c   : > { %v1396_v13 = vsel %vm877_vm2, %v1391_v12, 0  ;;  %v2044_v12 = vld [vmem:[%s2851_s10] ss:$0 sm:$0xff] }
 0x95d   : > { %2193 = vmatpush3.bf16.msra.mxu0 %v1396_v13 }
 0x95e   : > { %2198 = vmatprep.subr.bf16.mxu0 %v2329_v6 }
 0x962   : > { %v2310_v11 = vpop.eup %2309 }
 0x963   : > { %v1388_v14 = vmul.f32 %v2310_v11, %v2308_v62  ;;  %v1773_v62 = vld [vmem:[%s2852_s11 + $0x10] sm:$0xff] }
 0x964   : > { %v1777_v2 = vpack.c.bf16 %v1774_v63, %v1773_v62 }
 0x965   : > { %v1389_v15 = vpack.c.bf16 %v1388_v14, %v1388_v14 }
 0x966   : > { %2231 = vmatpush3.bf16.msra.mxu1 %v1777_v2 }
 0x967   : > { %2195 = vmatmul.mubr.msk.bf16.vlgmr.msra.gmra.mrb[24].mxu0 %vm860_vm5, %v1389_v15  ;;  %2244 = vmatprep.subr.bf16.mxu1 %v2329_v6  ;;  %v1889_v15 = vld [vmem:[%s2856_s15] sm:$0xff] }
 0x968   : > { %2200 = vmatprep.mubr.msk.bf16.mxu0 %vm2330_vm1, %v2329_v6  ;;  %2199 = vmatpush3.bf16.msra.mxu0 %v1444_v20  ;;  %v1893_v20 = vld [vmem:[%s2856_s15 + $0x20] sm:$0xff] }
 0x969   : > { %2216 = vmatprep.subr.bf16.mxu0 %v2329_v6 }
 0x9b5   : > { %v1639_v23 = vpop.xlane.xlu1 %1638 }
 0x9b6   : > { %v1640_v16 = vsub.f32 %v1636_v7, %v1639_v23  ;;  %v1890_v23 = vld [vmem:[%s2856_s15 + $0x8] sm:$0xff] }
 0x9b8   : > { %v1641_v18 = vmul.f32 1.442695, %v1640_v16  ;;  %v1902_v16 = vpack.c.bf16 %v1890_v23, %v1889_v15 }
 0x9ba   : > { %2311 = vpow2.f32 %v1641_v18  ;;  %v1892_v18 = vld [vmem:[%s2856_s15 + $0x18] sm:$0xff] }
 0x9bb   : > { %v1903_v19 = vpack.c.bf16 %v1892_v18, %v1891_v17 }
 0x9c4   : > { %v2312_v21 = vpop.eup %2311 }
 0x9c5   : > { %v1643_v22 = vsel %vm860_vm5, %v2312_v21, 0.0 }
 0x9c6   : > { %1644 = vadd.xlane.f32.xlu1 %v1643_v22 }
 0x9d7   : > { %1649 = vrot.lane.b32.xlu1 %v2541_v47, %s2341_s18 }
 0xa3a   : > { %v1432_v24 = vpop.f32.mrb[24].mxu0 }
 0xa3b   : > { %v1438_v25 = vpack.c.bf16 %v1432_v24, %v1432_v24  ;;  %v2196_v26 = vpop.f32.mrb[25].mxu0  ;;  %v1895_v24 = vld [vmem:[%s2856_s15 + $0x30] sm:$0xff] }
 0xa3c   : > { %v1435_v27 = vpop.f32.mrb[26].mxu0 }
 0xa3d   : > { %v2197_v28 = vpop.f32.mrb[27].mxu0  ;;  %2201 = vmatmul.mubr.msk.bf16.vlgmr.msra.gmra.mrb[28].mxu0 %vm860_vm5, %v1438_v25  ;;  %v1896_v25 = vld [vmem:[%s2856_s15 + $0x38] sm:$0xff]  ;;  %v1897_v27 = vld [vmem:[%s2856_s15 + $0x40] sm:$0xff] }
 0xa3e   : > { %2218 = vmatprep.mubr.msk.bf16.mxu0 %vm2330_vm1, %v2329_v6  ;;  %v1905_v26 = vpack.c.bf16 %v1896_v25, %v1895_v24  ;;  %v1898_v28 = vld [vmem:[%s2856_s15 + $0x48] sm:$0xff] }
 0xa53   : > { %v1645_v29 = vpop.xlane.xlu1 %1644 }
 0xa54   : > { %2313 = vrcp.f32 %v1645_v29  ;;  %v1906_v29 = vpack.c.bf16 %v1898_v28, %v1897_v27 }
 0xa57   : > { %v1650_v30 = vpop.permute.xlu1 %1649 }
 0xa58   : > { %v1655_v32 = vsel %vm877_vm2, %v1650_v30, 0  ;;  %v1899_v30 = vld [vmem:[%s2856_s15 + $0x50] sm:$0xff] }
 0xa59   : > { %2217 = vmatpush3.bf16.msra.mxu0 %v1655_v32  ;;  %v1900_v32 = vld [vmem:[%s2856_s15 + $0x58] sm:$0xff] }
 0xa5a   : > { %2222 = vmatprep.subr.bf16.mxu0 %v2329_v6 }
 0xa5e   : > { %v2314_v33 = vpop.eup %2313 }
 0xa5f   : > { %v1647_v47 = vmul.f32 %v2314_v33, %v2312_v21  ;;  %v1894_v21 = vld [vmem:[%s2856_s15 + $0x28] sm:$0xff]  ;;  %v1907_v33 = vpack.c.bf16 %v1900_v32, %v1899_v30 }
 0xa60   : > { %v1904_v22 = vpack.c.bf16 %v1894_v21, %v1893_v20 }
 0xa61   : > { %v1648_v10 = vpack.c.bf16 %v1647_v47, %v1647_v47  ;;  %v2045_v47 = vld [vmem:[%s2853_s12] ss:$0 sm:$0xff] }
 0xa63   : > { %2219 = vmatmul.mubr.msk.bf16.vlgmr.msra.gmra.mrb[32].mxu0 %vm860_vm5, %v1648_v10 }
 0xa64   : > { %2224 = vmatprep.mubr.msk.bf16.mxu0 %vm2330_vm1, %v2329_v6  ;;  %2223 = vmatpush3.bf16.msra.mxu0 %v1703_v36 }
 0xa65   : > { %2236 = vmatprep.subr.bf16.mxu0 %v2329_v6 }
 0xb10   : > { %v1480_v37 = vpop.f32.mrb[28].mxu0 }
 0xb11   : > { %v1486_v40 = vadd.f32 %v1480_v37, %v2688_v38  ;;  %v2202_v41 = vpop.f32.mrb[29].mxu0  ;;  %v2043_v38 = vld [vmem:[%s2850_s9] ss:$0 sm:$0xff] }
 0xb12   : > { %v1483_v42 = vpop.f32.mrb[30].mxu0 }
 0xb13   : > { %v2203_v43 = vpop.f32.mrb[31].mxu0 }
 0xb36   : > { %v1691_v44 = vpop.f32.mrb[32].mxu0 }
 0xb37   : > { %v1697_v45 = vpack.c.bf16 %v1691_v44, %v1691_v44  ;;  %v2220_v46 = vpop.f32.mrb[33].mxu0 }
 0xb38   : > { %v1694_v48 = vpop.f32.mrb[34].mxu0  ;;  %v2048_v46 = vld [vmem:[%s2855_s14] ss:$0 sm:$0xff] }
 0xb39   : > { %v2221_v49 = vpop.f32.mrb[35].mxu0  ;;  %2225 = vmatmul.mubr.msk.bf16.vlgmr.msra.gmra.mrb[36].mxu0 %vm860_vm5, %v1697_v45 }
 0xb3a   : > { %2240 = vmatprep.mubr.msk.bf16.mxu0 %vm2330_vm1, %v2329_v6 }
 0xc0c   : > { %v1739_v50 = vpop.f32.mrb[36].mxu0 }
 0xc0d   : > { %v1745_v39 = vadd.f32 %v1739_v50, %v1486_v40  ;;  %v2226_v51 = vpop.f32.mrb[37].mxu0 }
 0xc0e   : > { %v1742_v52 = vpop.f32.mrb[38].mxu0 }
 0xc0f   : > { %v1746_v53 = vadd.f32 %v1745_v39, %v2448_v0  ;;  %v2227_v54 = vpop.f32.mrb[39].mxu0  ;;  %v1835_v0 = vld [vmem:[%s2854_s13] sm:$0xff] }
 0xc10   : > { %v1839_v61 = vpack.c.bf16 %v1836_v60, %v1835_v0  ;;  %v2051_v52 = vld [vmem:[%s2857_s16] ss:$0 sm:$0xff] }
 0xc11   : > { %v2741_v55 = vadd.f32 %v2043_v38, %v1746_v53 }
 0xc12   : > { %2237 = vmatpush3.bf16.msra.mxu0 %v1839_v61 }
 0xc13   : > { %v1756_v31 = vmul.f32 %v2741_v55, %v2741_v55  ;;  %2238 = vmatprep.subr.bf16.mxu0 %v2329_v6 }
 0xc15   : > { %v1757_v56 = vsel %vm550_vm0, %v1756_v31, 0.0 }
 0xc16   : > { %1758 = vadd.xlane.f32.xlu0 %v1757_v56  ;;  %2239 = vmatpush3.bf16.msra.mxu0 %v1840_v4 }
 0xca3   : > { %v1759_v5 = vpop.xlane.xlu0 %1758 }
 0xca4   : > { %v1760_v7 = vmul.f32 0.03125, %v1759_v5 }
 0xca6   : > { %v1761_v8 = vadd.f32 1e-05, %v1760_v7 }
 0xca8   : > { %2315 = vrsqrt.f32 %v1761_v8 }
 0xcb2   : > { %v2316_v9 = vpop.eup %2315 }
 0xcb3   : > { %v1763_v13 = vmul.f32 %v2316_v9, %v2741_v55 }
 0xcb5   : > { %v1770_v11 = vmul.f32 %v2044_v12, %v1763_v13 }
 0xcb7   : > { %v1775_v14 = vpack.c.bf16 %v1770_v11, %v1770_v11 }
 0xcb9   : > { %2233 = vmatmul.mubr.msk.bf16.vlgmr.msra.gmra.mrb[20].mxu1 %vm550_vm0, %v1775_v14  ;;  %2241 = vmatmul.mubr.msk.bf16.vlgmr.msra.gmra.mrb[40].mxu0 %vm550_vm0, %v1775_v14 }
 0xcba   : > { %2256 = vmatprep.mubr.msk.bf16.mxu1 %vm2330_vm1, %v2329_v6  ;;  %2245 = vmatpush3.bf16.msra.mxu1 %v1902_v16 }
 0xcbb   : > { %2246 = vmatprep.subr.bf16.mxu1 %v2329_v6 }
 0xcbe   : > { %2247 = vmatpush3.bf16.msra.mxu1 %v1903_v19 }
 0xcbf   : > { %2248 = vmatprep.subr.bf16.mxu1 %v2329_v6 }
 0xcc2   : > { %2249 = vmatpush3.bf16.msra.mxu1 %v1904_v22 }
 0xcc3   : > { %2250 = vmatprep.subr.bf16.mxu1 %v2329_v6 }
 0xcc6   : > { %2251 = vmatpush3.bf16.msra.mxu1 %v1905_v26 }
 0xcc7   : > { %2252 = vmatprep.subr.bf16.mxu1 %v2329_v6 }
 0xcca   : > { %2253 = vmatpush3.bf16.msra.mxu1 %v1906_v29 }
 0xccb   : > { %2254 = vmatprep.subr.bf16.mxu1 %v2329_v6 }
 0xcce   : > { %2255 = vmatpush3.bf16.msra.mxu1 %v1907_v33 }
 0xd8c   : > { %v1822_v10 = vpop.f32.mrb[20].mxu1  ;;  %v1882_v34 = vpop.f32.mrb[40].mxu0 }
 0xd8d   : > { %v1823_v35 = vadd.f32 %v2045_v47, %v1822_v10  ;;  %v2234_v36 = vpop.f32.mrb[21].mxu1  ;;  %v2242_v37 = vpop.f32.mrb[41].mxu0  ;;  %v1883_v50 = vadd.f32 %v2048_v46, %v1882_v34 }
 0xd8e   : > { %v1825_v6 = vpop.f32.mrb[22].mxu1  ;;  %v1885_v40 = vpop.f32.mrb[42].mxu0 }
 0xd8f   : > { %v2047_v41 = vmul.f32 -1.442695, %v1823_v35  ;;  %v2235_v42 = vpop.f32.mrb[23].mxu1  ;;  %v2243_v43 = vpop.f32.mrb[43].mxu0 }
 0xd91   : > { %2317 = vpow2.f32 %v2047_v41 }
 0xd9b   : > { %v2318_v44 = vpop.eup %2317 }
 0xd9c   : > { %v1831_v45 = vadd.f32 1.0, %v2318_v44 }
 0xd9e   : > { %2319 = vrcp.f32 %v1831_v45 }
 0xda8   : > { %v2320_v48 = vpop.eup %2319 }
 0xda9   : > { %v1834_v49 = vmul.f32 %v2320_v48, %v1823_v35 }
 0xdab   : > { %v1888_v39 = vmul.f32 %v1883_v50, %v1834_v49 }
 0xdad   : > { %v1901_v51 = vpack.c.bf16 %v1888_v39, %v1888_v39 }
 0xdaf   : > { %2257 = vmatmul.mubr.msk.bf16.vlgmr.msra.gmra.mrb[24].mxu1 %vm1908_vm6, %v1901_v51 }
 0xe82   : > { %v1946_v38 = vpop.f32.mrb[24].mxu1 }
 0xe83   : > { %v1952_v53 = vadd.f32 %v1946_v38, %v2741_v55  ;;  %v2258_v54 = vpop.f32.mrb[25].mxu1 }
 0xe84   : > { %v1949_v31 = vpop.f32.mrb[26].mxu1 }
 0xe85   : > { %v1960_v56 = vadd.f32 %v2051_v52, %v1952_v53  ;;  %v2259_v57 = vpop.f32.mrb[27].mxu1 }
 0xe87   : > { %1961 = vst.msk [vmem:[%s543_s29] sm:$0xff] %vm550_vm0, %v1960_v56 }
 0xe88 PF: > { %s27_s24 = sadd.s32 1, %s2327_s24  }
 0xe89   : > { %p24_p4 = scmp.ge.s32.totalorder %s27_s24, 4  }
 0xe8b   :  { %26 = sbr.rel (!%p24_p4) target bundleno = 3 (0x3), region = 118 }

// kernel: llama_adapter_forward.11
= control target key start
LH: loop header
LB: loop body
LE: loop exit
PB: predicated region body
PF: predicated region fallthrough
CT: control target
= control target key end

     0   :  { %s1969_s24 = smov 0   ;;  %s2276_s0 = inlined_call_operand.vmem [shape: f32[2,5,32], index: 0, kind: input, shape index: {}]   ;;  %s2277_s1 = inlined_call_operand.vmem [shape: f32[1,32], index: 1, kind: input, shape index: {}]   ;;  %s2278_s2 = inlined_call_operand.vmem [shape: f32[1,32], index: 2, kind: input, shape index: {}]   ;;  %s2279_s3 = inlined_call_operand.vmem [shape: f32[32,32], index: 3, kind: input, shape index: {}]   ;;  %s2280_s4 = inlined_call_operand.vmem [shape: f32[1,32], index: 4, kind: input, shape index: {}]   ;;  %s2281_s5 = inlined_call_operand.vmem [shape: f32[32,32], index: 5, kind: input, shape index: {}]   ;;  %s2282_s6 = inlined_call_operand.vmem [shape: f32[1,32], index: 6, kind: input, shape index: {}]   ;;  %s2283_s7 = inlined_call_operand.vmem [shape: f32[32,32], index: 7, kind: input, shape index: {}]   ;;  %s2284_s8 = inlined_call_operand.vmem [shape: f32[1,32], index: 8, kind: input, shape index: {}]   ;;  %s2285_s9 = inlined_call_operand.vmem [shape: f32[32,32], index: 9, kind: input, shape index: {}]   ;;  %s2286_s10 = inlined_call_operand.vmem [shape: f32[1,32], index: 10, kind: input, shape index: {}]   ;;  %s2287_s11 = inlined_call_operand.vmem [shape: f32[1,32], index: 11, kind: input, shape index: {}]   ;;  %s2288_s12 = inlined_call_operand.vmem [shape: f32[1,32], index: 12, kind: input, shape index: {}]   ;;  %s2289_s13 = inlined_call_operand.vmem [shape: f32[32,128], index: 13, kind: input, shape index: {}]   ;;  %s2290_s14 = inlined_call_operand.vmem [shape: f32[1,128], index: 14, kind: input, shape index: {}]   ;;  %s2291_s15 = inlined_call_operand.vmem [shape: f32[128,32], index: 15, kind: input, shape index: {}]   ;;  %s2292_s16 = inlined_call_operand.vmem [shape: f32[1,32], index: 16, kind: input, shape index: {}]   ;;  %s2293_s17 = inlined_call_operand.vmem [shape: f32[2,5,32], index: 17, kind: output, shape index: {}]  }
   0x1   :  { %2294 = sst [smem:[#allocation2_spill]] %s2276_s0 }
   0x2   :  { %2295 = sst [smem:[#allocation3_spill]] %s2277_s1 }
   0x3 LB: > { %s1622_s25 = sadd.s32 4294967295, %s1871_s24   ;;  %p1626_p0 = scmp.ge.s32.totalorder %s1871_s24, 1  ;;  %s1871_s24 = sphi %s1969_s24, %s27_s24  }
   0x4   : > { %p486_p1 = scmp.lt.s32.totalorder %s1871_s24, 3 }
   0x6   : > { %p487_p2 = pnand %p1626_p0, %p486_p1 }
   0x7   : > { %p536_p3 = scmp.lt.s32.totalorder (!%p487_p2), %s1622_s25, 1  ;;  %vm548_vm0 = vcmask (!%p487_p2), 258048   ;;  %s2296_s29 = sld [smem:[#allocation2_spill]] (!%p487_p2)  ;;  %v577_v7 = vld [vmem:[%s2279_s3] sm:$0xff] (!%p487_p2)  ;;  %v578_v8 = vld [vmem:[%s2279_s3 + $0x8] sm:$0xff] (!%p487_p2)  ;;  %v579_v9 = vld [vmem:[%s2279_s3 + $0x10] sm:$0xff] (!%p487_p2) }
   0x8   : > { %490 = sbr.rel (%p487_p2) target bundleno = 3711 (0xe7f), region = 88  ;;  %v1873_v10 = vmov (!%p487_p2), 0.0   ;;  %v582_v11 = vpack.c.bf16 (!%p487_p2), %v578_v8, %v577_v7  ;;  %v580_v12 = vld [vmem:[%s2279_s3 + $0x18] sm:$0xff] (!%p487_p2)  ;;  %vm1874_vm1 = vmmov (!%p487_p2), 0   ;;  %v1630_v20 = vld [vmem:[%s2278_s2] ss:$0 sm:$0xff] (!%p487_p2) }
   0x9   : > { %1703 = vmatprep.subr.bf16.mxu1 (!%p487_p2), %v1873_v10  ;;  %1707 = vmatprep.mubr.msk.bf16.mxu1 (!%p487_p2), %vm1874_vm1, %v1873_v10  ;;  %v583_v13 = vpack.c.bf16 (!%p487_p2), %v580_v12, %v579_v9  ;;  %v635_v22 = vld [vmem:[%s2281_s5] sm:$0xff] (!%p487_p2)  ;;  %v636_v23 = vld [vmem:[%s2281_s5 + $0x8] sm:$0xff] (!%p487_p2)  ;;  %vm591_vm2 = vcmask (!%p487_p2), 261120   ;;  %v637_v27 = vld [vmem:[%s2281_s5 + $0x10] sm:$0xff] (!%p487_p2)  ;;  %vm747_vm3 = vcmask (!%p487_p2), 64512   ;;  %vm813_vm4 = vcmask (!%p487_p2), 1041408  }
   0xa   : > { %1733 = vmatprep.subr.bf16.mxu0 (!%p487_p2), %v1873_v10  ;;  %1735 = vmatprep.mubr.msk.bf16.mxu0 (!%p487_p2), %vm1874_vm1, %v1873_v10  ;;  %v639_v25 = vpack.c.bf16 (!%p487_p2), %v636_v23, %v635_v22  ;;  %v638_v28 = vld [vmem:[%s2281_s5 + $0x18] sm:$0xff] (!%p487_p2)  ;;  %v688_v30 = vld [vmem:[%s2283_s7] sm:$0xff] (!%p487_p2)  ;;  %v689_v31 = vld [vmem:[%s2283_s7 + $0x8] sm:$0xff] (!%p487_p2)  ;;  %s1875_s28 = smov (!%p487_p2), 120   ;;  %vm814_vm5 = vcmask (!%p487_p2), 1042432   ;;  %v1876_v52 = vmov (!%p487_p2), 65535  }
   0xb   : > { %1704 = vmatpush3.bf16.msra.mxu1 (!%p487_p2), %v582_v11  ;;  %v640_v29 = vpack.c.bf16 (!%p487_p2), %v638_v28, %v637_v27  ;;  %v692_v32 = vpack.c.bf16 (!%p487_p2), %v689_v31, %v688_v30  ;;  %v690_v33 = vld [vmem:[%s2283_s7 + $0x10] sm:$0xff] (!%p487_p2)  ;;  %v691_v34 = vld [vmem:[%s2283_s7 + $0x18] sm:$0xff] (!%p487_p2)  ;;  %v1633_v40 = vld [vmem:[%s2282_s6] ss:$0 sm:$0xff] (!%p487_p2)  ;;  %v815_v53 = vsel (!%p487_p2), %vm813_vm4, 4294967295, %v1876_v52  ;;  %vm795_vm6 = vcmask (!%p487_p2), 36864  }
   0xc   : > { %1705 = vmatprep.subr.bf16.mxu1 (!%p487_p2), %v1873_v10  ;;  %v693_v35 = vpack.c.bf16 (!%p487_p2), %v691_v34, %v690_v33  ;;  %v1631_v41 = vld [vmem:[%s2280_s4] ss:$0 sm:$0xff] (!%p487_p2)  ;;  %v2074_v58 = vsel (!%p487_p2), %vm814_vm5, %v815_v53, 0  ;;  %s1877_s30 = smov (!%p487_p2), 112   ;;  %vm809_vm7 = vcmask (!%p487_p2), 39936   ;;  %vm981_vm8 = vcmask (!%p487_p2), 1043456  }
   0xd   : > { %v1635_v50 = vld [vmem:[%s2284_s8] ss:$0 sm:$0xff] (!%p487_p2)  ;;  %s1878_s21 = smov (!%p487_p2), 104  }
   0xf   : > { %s2299_s25 = smov (!%p536_p3, %s1622_s25), 1  ;;  %1706 = vmatpush3.bf16.msra.mxu1 %v583_v13 }
  0x10   : > { %s1627_s26 = sshll.u32 %s2299_s25, 3  ;;  %1711 = vmatprep.subr.bf16.mxu1 %v1873_v10 }
  0x11   : > { %s539_s0 = scalar_lea.vmem %s2296_s29, %s1627_s26  ;;  %s2297_s29 = sld [smem:[#allocation3_spill]] }
  0x12   : > { %v1985_v0 = vld [vmem:[%s539_s0] sm:$0x1f]  ;;  %s543_s19 = scalar_lea.vmem %s2293_s17, %s1627_s26 }
  0x13   : > { %v549_v1 = vsel %vm548_vm0, %v1985_v0, 0.0 }
  0x14   : > { %550 = vadd.xlane.f32.xlu0 %v549_v1 }
  0x17   : > { %v1629_v18 = vld [vmem:[%s2297_s29] ss:$0 sm:$0xff] }
  0xa1   : > { %v551_v2 = vpop.xlane.xlu0 %550 }
  0xa2   : > { %v553_v3 = vmul.f32 0.03125, %v551_v2 }
  0xa4   : > { %v554_v4 = vsub.f32 %v1985_v0, %v553_v3 }
  0xa6   : > { %v555_v5 = vmul.f32 %v554_v4, %v554_v4 }
  0xa8   : > { %v556_v6 = vsel %vm548_vm0, %v555_v5, 0.0 }
  0xa9   : > { %557 = vadd.xlane.f32.xlu0 %v556_v6 }
 0x136   : > { %v558_v14 = vpop.xlane.xlu0 %557 }
 0x137   : > { %v559_v15 = vmul.f32 0.03125, %v558_v14 }
 0x139   : > { %v560_v16 = vadd.f32 1e-05, %v559_v15 }
 0x13b   : > { %1841 = vrsqrt.f32 %v560_v16 }
 0x145   : > { %v1842_v17 = vpop.eup %1841 }
 0x146   : > { %v562_v19 = vmul.f32 %v1842_v17, %v554_v4 }
 0x148   : > { %v569_v21 = vmul.f32 %v1629_v18, %v562_v19 }
 0x14a   : > { %v576_v24 = vadd.f32 %v1630_v20, %v569_v21 }
 0x14c   : > { %v581_v26 = vpack.c.bf16 %v576_v24, %v576_v24 }
 0x14e   : > { %1708 = vmatmul.mubr.msk.bf16.vlgmr.msra.gmra.mrb[0].mxu1 %vm591_vm2, %v581_v26 }
 0x14f   : > { %1712 = vmatpush3.bf16.msra.mxu1 %v639_v25  ;;  %1715 = vmatprep.mubr.msk.bf16.mxu1 %vm1874_vm1, %v1873_v10 }
 0x150   : > { %1713 = vmatprep.subr.bf16.mxu1 %v1873_v10 }
 0x153   : > { %1714 = vmatpush3.bf16.msra.mxu1 %v640_v29  ;;  %v742_v29 = vld [vmem:[%s2285_s9 + $0x8] sm:$0xff] }
 0x154   : > { %1719 = vmatprep.subr.bf16.mxu1 %v1873_v10  ;;  %v977_v30 = vpack.c.bf16 %v742_v29, %v742_v29 }
 0x156   : > { %1716 = vmatmul.mubr.msk.bf16.vlgmr.msra.gmra.mrb[4].mxu1 %vm591_vm2, %v581_v26  ;;  %v983_v31 = vsel %vm981_vm8, %v977_v30, 0 }
 0x157   : > { %1720 = vmatpush3.bf16.msra.mxu1 %v692_v32  ;;  %1723 = vmatprep.mubr.msk.bf16.mxu1 %vm1874_vm1, %v1873_v10 }
 0x158   : > { %1721 = vmatprep.subr.bf16.mxu1 %v1873_v10 }
 0x15b   : > { %1722 = vmatpush3.bf16.msra.mxu1 %v693_v35  ;;  %v741_v35 = vld [vmem:[%s2285_s9] sm:$0xff] }
 0x15c   : > { %1727 = vmatprep.subr.bf16.mxu1 %v1873_v10 }
 0x15e   : > { %1724 = vmatmul.mubr.msk.bf16.vlgmr.msra.gmra.mrb[8].mxu1 %vm591_vm2, %v581_v26 }
 0x15f   : > { %1729 = vmatprep.mubr.msk.bf16.mxu1 %vm1874_vm1, %v1873_v10 }
 0x221   : > { %v629_v36 = vpop.f32.mrb[0].mxu1 }
 0x222   : > { %v1709_v37 = vpop.f32.mrb[1].mxu1  ;;  %v630_v46 = vadd.f32 %v1631_v41, %v629_v36  ;;  %v861_v36 = vpack.c.bf16 %v741_v35, %v741_v35 }
 0x223   : > { %v632_v38 = vpop.f32.mrb[2].mxu1 }
 0x224   : > { %v1710_v39 = vpop.f32.mrb[3].mxu1  ;;  %v2069_v51 = vpack.c.bf16 %v630_v46, %v630_v46 }
 0x229   : > { %v682_v42 = vpop.f32.mrb[4].mxu1 }
 0x22a   : > { %v683_v43 = vadd.f32 %v1633_v40, %v682_v42  ;;  %v1717_v44 = vpop.f32.mrb[5].mxu1  ;;  %v1029_v40 = vsel %vm981_vm8, %v861_v36, 0 }
 0x22b   : > { %v685_v45 = vpop.f32.mrb[6].mxu1 }
 0x22c   : > { %v2060_v47 = vpack.c.bf16 %v683_v43, %v683_v43  ;;  %v1718_v48 = vpop.f32.mrb[7].mxu1 }
 0x22e   : > { %866 = vrot.lane.b32.xlu1 %v2060_v47, %s1875_s28  ;;  %v752_v49 = vsel %vm747_vm3, %v2060_v47, 0 }
 0x22f   : > { %1728 = vmatpush3.bf16.xpose.msra.mxu1 %v752_v49 }
 0x230   : > { %1739 = vmatprep.subr.bf16.mxu1 %v1873_v10 }
 0x231   : > { %v735_v54 = vpop.f32.mrb[8].mxu1 }
 0x232   : > { %v736_v55 = vadd.f32 %v1635_v50, %v735_v54  ;;  %863 = vrot.lane.b32.xlu1 %v2069_v51, %s1875_s28  ;;  %v1725_v56 = vpop.f32.mrb[9].mxu1 }
 0x233   : > { %v738_v57 = vpop.f32.mrb[10].mxu1 }
 0x234   : > { %v2076_v59 = vpack.c.bf16 %v736_v55, %v736_v55  ;;  %v1726_v60 = vpop.f32.mrb[11].mxu1 }
 0x236   : > { %1730 = vmatmul.mubr.msk.bf16.vlgmr.msra.gmra.mrb[12].mxu1 %vm747_vm3, %v2069_v51  ;;  %v818_v61 = vand.u32 %v2074_v58, %v2076_v59 }
 0x237   : > { %1741 = vmatprep.mubr.msk.bf16.mxu1 %vm1874_vm1, %v1873_v10 }
 0x238   : > { %1734 = vmatpush3.bf16.msra.mxu0 %v818_v61 }
 0x239   : > { %1745 = vmatprep.subr.bf16.mxu0 %v1873_v10 }
 0x2a0   : > { %v867_v62 = vpop.permute.xlu1 %866 }
 0x2a1   : > { %v872_v63 = vsel %vm747_vm3, %v867_v62, 0 }
 0x2a2   : > { %1740 = vmatpush3.bf16.xpose.msra.mxu1 %v872_v63 }
 0x2a3   : > { %1751 = vmatprep.subr.bf16.mxu1 %v1873_v10 }
 0x2a4   : > { %v864_v1 = vpop.permute.xlu1 %863 }
 0x2a9   : > { %1742 = vmatmul.mubr.msk.bf16.vlgmr.msra.gmra.mrb[16].mxu1 %vm747_vm3, %v864_v1 }
 0x2aa   : > { %1753 = vmatprep.mubr.msk.bf16.mxu1 %vm1874_vm1, %v1873_v10  ;;  %1752 = vmatpush3.bf16.msra.mxu1 %v983_v31 }
 0x2ab   : > { %1763 = vmatprep.subr.bf16.mxu1 %v1873_v10 }
 0x309   : > { %v788_v2 = vpop.f32.mrb[12].mxu1 }
 0x30a   : > { %v794_v3 = vmul.f32 0.35355338, %v788_v2  ;;  %v1731_v4 = vpop.f32.mrb[13].mxu1 }
 0x30b   : > { %v791_v5 = vpop.f32.mrb[14].mxu1 }
 0x30c   : > { %v1732_v6 = vpop.f32.mrb[15].mxu1  ;;  %v796_v7 = vsel %vm795_vm6, %v794_v3, -inf }
 0x30d   : > { %797 = vmax.xlane.f32.xlu0 %v796_v7 }
 0x37c   : > { %v908_v8 = vpop.f32.mrb[16].mxu1 }
 0x37d   : > { %v914_v9 = vmul.f32 0.35355338, %v908_v8  ;;  %v1743_v11 = vpop.f32.mrb[17].mxu1 }
 0x37e   : > { %v911_v12 = vpop.f32.mrb[18].mxu1 }
 0x37f   : > { %v1744_v13 = vpop.f32.mrb[19].mxu1  ;;  %v915_v14 = vsel %vm795_vm6, %v914_v9, -inf }
 0x380   : > { %916 = vmax.xlane.f32.xlu1 %v915_v14 }
 0x391   : > { %1071 = vrot.lane.b32.xlu1 %v2069_v51, %s1877_s30 }
 0x39a   : > { %v798_v15 = vpop.xlane.xlu0 %797 }
 0x39b   : > { %v799_v16 = vsub.f32 %v794_v3, %v798_v15 }
 0x39d   : > { %v800_v17 = vmul.f32 1.442695, %v799_v16 }
 0x39f   : > { %1843 = vpow2.f32 %v800_v17 }
 0x3a9   : > { %v1844_v18 = vpop.eup %1843 }
 0x3aa   : > { %v802_v19 = vsel %vm795_vm6, %v1844_v18, 0.0 }
 0x3ab   : > { %803 = vadd.xlane.f32.xlu0 %v802_v19 }
 0x40d   : > { %v917_v20 = vpop.xlane.xlu1 %916 }
 0x40e   : > { %v918_v21 = vsub.f32 %v914_v9, %v917_v20 }
 0x410   : > { %v919_v22 = vmul.f32 1.442695, %v918_v21 }
 0x411   : > { %v1072_v55 = vpop.permute.xlu1 %1071 }
 0x412   : > { %1845 = vpow2.f32 %v919_v22 }
 0x41c   : > { %v1846_v23 = vpop.eup %1845 }
 0x41d   : > { %v921_v24 = vsel %vm795_vm6, %v1846_v23, 0.0 }
 0x41e   : > { %922 = vadd.xlane.f32.xlu0 %v921_v24 }
 0x434   : > { %928 = vrot.lane.b32.xlu0 %v2076_v59, %s1875_s28 }
 0x438   : > { %v804_v25 = vpop.xlane.xlu0 %803  ;;  %1073 = vrot.lane.b32.xlu0 %v2060_v47, %s1877_s30 }
 0x439   : > { %1847 = vrcp.f32 %v804_v25 }
 0x443   : > { %v1848_v26 = vpop.eup %1847 }
 0x444   : > { %v806_v27 = vmul.f32 %v1848_v26, %v1844_v18 }
 0x446   : > { %v807_v28 = vpack.c.bf16 %v806_v27, %v806_v27 }
 0x448   : > { %1736 = vmatmul.mubr.msk.bf16.vlgmr.msra.gmra.mrb[0].mxu0 %vm809_vm7, %v807_v28 }
 0x449   : > { %1747 = vmatprep.mubr.msk.bf16.mxu0 %vm1874_vm1, %v1873_v10 }
 0x4ab   : > { %v923_v32 = vpop.xlane.xlu0 %922 }
 0x4ac   : > { %1849 = vrcp.f32 %v923_v32 }
 0x4af   : > { %v929_v33 = vpop.permute.xlu0 %928 }
 0x4b0   : > { %v934_v34 = vand.u32 %v929_v33, %v2074_v58 }
 0x4b2   : > { %1746 = vmatpush3.bf16.msra.mxu0 %v934_v34 }
 0x4b3   : > { %1757 = vmatprep.subr.bf16.mxu0 %v1873_v10  ;;  %v1074_v46 = vpop.permute.xlu0 %1073 }
 0x4b4   : > { %v1079_v53 = vsel %vm747_vm3, %v1074_v46, 0 }
 0x4b6   : > { %v1850_v37 = vpop.eup %1849 }
 0x4b7   : > { %v925_v38 = vmul.f32 %v1850_v37, %v1846_v23 }
 0x4b9   : > { %v926_v39 = vpack.c.bf16 %v925_v38, %v925_v38 }
 0x4bb   : > { %1748 = vmatmul.mubr.msk.bf16.vlgmr.msra.gmra.mrb[4].mxu0 %vm809_vm7, %v926_v39 }
 0x4bc   : > { %1758 = vmatpush3.bf16.msra.mxu0 %v1029_v40  ;;  %1759 = vmatprep.mubr.msk.bf16.mxu0 %vm1874_vm1, %v1873_v10 }
 0x4bd   : > { %1769 = vmatprep.subr.bf16.mxu0 %v1873_v10 }
 0x51b   : > { %v854_v41 = vpop.f32.mrb[0].mxu0 }
 0x51c   : > { %v860_v42 = vpack.c.bf16 %v854_v41, %v854_v41  ;;  %v1737_v43 = vpop.f32.mrb[1].mxu0 }
 0x51d   : > { %v857_v44 = vpop.f32.mrb[2].mxu0 }
 0x51e   : > { %v1738_v45 = vpop.f32.mrb[3].mxu0  ;;  %1760 = vmatmul.mubr.msk.bf16.vlgmr.msra.gmra.mrb[8].mxu0 %vm747_vm3, %v860_v42  ;;  %v744_v44 = vld [vmem:[%s2285_s9 + $0x18] sm:$0xff] }
 0x51f   : > { %1771 = vmatprep.mubr.msk.bf16.mxu0 %vm1874_vm1, %v1873_v10  ;;  %v1343_v45 = vpack.c.bf16 %v744_v44, %v744_v44  ;;  %v1505_v44 = vld [vmem:[%s2291_s15 + $0x58] sm:$0xff] }
 0x58e   : > { %v970_v48 = vpop.f32.mrb[4].mxu0 }
 0x58f   : > { %v976_v49 = vpack.c.bf16 %v970_v48, %v970_v48  ;;  %v1749_v50 = vpop.f32.mrb[5].mxu0 }
 0x590   : > { %v973_v52 = vpop.f32.mrb[6].mxu0 }
 0x591   : > { %v1750_v54 = vpop.f32.mrb[7].mxu0  ;;  %1754 = vmatmul.mubr.msk.bf16.vlgmr.msra.gmra.mrb[20].mxu1 %vm747_vm3, %v976_v49 }
 0x592   : > { %1764 = vmatpush3.bf16.xpose.msra.mxu1 %v1079_v53  ;;  %1765 = vmatprep.mubr.msk.bf16.mxu1 %vm1874_vm1, %v1873_v10 }
 0x593   : > { %1775 = vmatprep.subr.bf16.mxu1 %v1873_v10 }
 0x599   : > { %1766 = vmatmul.mubr.msk.bf16.vlgmr.msra.gmra.mrb[24].mxu1 %vm747_vm3, %v1072_v55 }
 0x59a   : > { %1777 = vmatprep.mubr.msk.bf16.mxu1 %vm1874_vm1, %v1873_v10 }
 0x5f1   : > { %v1065_v56 = vpop.f32.mrb[8].mxu0 }
 0x5f2   : > { %v1761_v57 = vpop.f32.mrb[9].mxu0 }
 0x5f3   : > { %v1068_v60 = vpop.f32.mrb[10].mxu0 }
 0x5f4   : > { %v1762_v61 = vpop.f32.mrb[11].mxu0 }
 0x664   : > { %v1019_v62 = vpop.f32.mrb[20].mxu1 }
 0x665   : > { %v2129_v63 = vadd.f32 %v1065_v56, %v1019_v62  ;;  %v1755_v1 = vpop.f32.mrb[21].mxu1 }
 0x666   : > { %v1022_v2 = vpop.f32.mrb[22].mxu1 }
 0x667   : > { %v1756_v3 = vpop.f32.mrb[23].mxu1 }
 0x668   : > { %v1649_v3 = vld [vmem:[%s2286_s10] ss:$0 sm:$0xff] }
 0x66c   : > { %v1115_v4 = vpop.f32.mrb[24].mxu1 }
 0x66d   : > { %v1121_v5 = vmul.f32 0.35355338, %v1115_v4  ;;  %v1767_v6 = vpop.f32.mrb[25].mxu1 }
 0x66e   : > { %v1118_v7 = vpop.f32.mrb[26].mxu1 }
 0x66f   : > { %v1768_v8 = vpop.f32.mrb[27].mxu1  ;;  %v1122_v9 = vsel %vm795_vm6, %v1121_v5, -inf }
 0x670   : > { %1123 = vmax.xlane.f32.xlu0 %v1122_v9 }
 0x686   : > { %1134 = vrot.lane.b32.xlu0 %v2076_v59, %s1877_s30 }
 0x68a   : > { %1231 = vrot.lane.b32.xlu0 %v2069_v51, %s1878_s21 }
 0x6fd   : > { %v1124_v11 = vpop.xlane.xlu0 %1123 }
 0x6fe   : > { %v1125_v12 = vsub.f32 %v1121_v5, %v1124_v11 }
 0x700   : > { %v1126_v13 = vmul.f32 1.442695, %v1125_v12 }
 0x701   : > { %v1135_v14 = vpop.permute.xlu0 %1134 }
 0x702   : > { %1851 = vpow2.f32 %v1126_v13  ;;  %v1140_v15 = vand.u32 %v1135_v14, %v2074_v58 }
 0x704   : > { %1770 = vmatpush3.bf16.msra.mxu0 %v1140_v15  ;;  %v1429_v15 = vld [vmem:[%s2289_s13] sm:$0xff] }
 0x705   : > { %1781 = vmatprep.subr.bf16.mxu0 %v1873_v10  ;;  %v1232_v23 = vpop.permute.xlu0 %1231 }
 0x70c   : > { %v1852_v16 = vpop.eup %1851 }
 0x70d   : > { %v1128_v17 = vsel %vm795_vm6, %v1852_v16, 0.0 }
 0x70e   : > { %1129 = vadd.xlane.f32.xlu1 %v1128_v17  ;;  %v1431_v17 = vld [vmem:[%s2289_s13 + $0x10] sm:$0xff] }
 0x71f   : > { %1233 = vrot.lane.b32.xlu1 %v2060_v47, %s1878_s21  ;;  %v743_v47 = vld [vmem:[%s2285_s9 + $0x10] sm:$0xff] }
 0x720   : > { %v1183_v24 = vpack.c.bf16 %v743_v47, %v743_v47 }
 0x722   : > { %v1188_v25 = vsel %vm981_vm8, %v1183_v24, 0  ;;  %v1651_v24 = vld [vmem:[%s2288_s12] ss:$0 sm:$0xff] }
 0x723   : > { %1776 = vmatpush3.bf16.msra.mxu1 %v1188_v25 }
 0x724   : > { %1787 = vmatprep.subr.bf16.mxu1 %v1873_v10 }
 0x79b   : > { %v1130_v18 = vpop.xlane.xlu1 %1129 }
 0x79c   : > { %1853 = vrcp.f32 %v1130_v18  ;;  %v1432_v18 = vld [vmem:[%s2289_s13 + $0x18] sm:$0xff] }
 0x79f   : > { %v1234_v20 = vpop.permute.xlu1 %1233 }
 0x7a0   : > { %v1239_v22 = vsel %vm747_vm3, %v1234_v20, 0 }
 0x7a6   : > { %v1854_v51 = vpop.eup %1853 }
 0x7a7   : > { %v1132_v19 = vmul.f32 %v1854_v51, %v1852_v16  ;;  %v1435_v51 = vpack.c.bf16 %v1432_v18, %v1431_v17 }
 0x7a9   : > { %v1133_v21 = vpack.c.bf16 %v1132_v19, %v1132_v19 }
 0x7ab   : > { %1772 = vmatmul.mubr.msk.bf16.vlgmr.msra.gmra.mrb[12].mxu0 %vm809_vm7, %v1133_v21 }
 0x7ac   : > { %1782 = vmatpush3.bf16.xpose.msra.mxu0 %v1239_v22  ;;  %1783 = vmatprep.mubr.msk.bf16.mxu0 %vm1874_vm1, %v1873_v10 }
 0x7ad   : > { %1793 = vmatprep.subr.bf16.mxu0 %v1873_v10 }
 0x7b3   : > { %1784 = vmatmul.mubr.msk.bf16.vlgmr.msra.gmra.mrb[16].mxu0 %vm747_vm3, %v1232_v23  ;;  %v1650_v23 = vld [vmem:[%s2287_s11] ss:$0 sm:$0xff] }
 0x7b4   : > { %1795 = vmatprep.mubr.msk.bf16.mxu0 %vm1874_vm1, %v1873_v10 }
 0x87e   : > { %v1176_v26 = vpop.f32.mrb[12].mxu0 }
 0x87f   : > { %v1182_v27 = vpack.c.bf16 %v1176_v26, %v1176_v26  ;;  %v1773_v28 = vpop.f32.mrb[13].mxu0 }
 0x880   : > { %v1179_v29 = vpop.f32.mrb[14].mxu0  ;;  %v1494_v28 = vld [vmem:[%s2291_s15] sm:$0xff] }
 0x881   : > { %v1774_v30 = vpop.f32.mrb[15].mxu0  ;;  %1778 = vmatmul.mubr.msk.bf16.vlgmr.msra.gmra.mrb[28].mxu1 %vm747_vm3, %v1182_v27  ;;  %v1495_v29 = vld [vmem:[%s2291_s15 + $0x8] sm:$0xff] }
 0x882   : > { %1789 = vmatprep.mubr.msk.bf16.mxu1 %vm1874_vm1, %v1873_v10  ;;  %v1511_v30 = vpack.c.bf16 %v1495_v29, %v1494_v28 }
 0x886   : > { %v1275_v31 = vpop.f32.mrb[16].mxu0 }
 0x887   : > { %v1281_v32 = vmul.f32 0.35355338, %v1275_v31  ;;  %v1785_v33 = vpop.f32.mrb[17].mxu0  ;;  %v1496_v31 = vld [vmem:[%s2291_s15 + $0x10] sm:$0xff] }
 0x888   : > { %v1278_v34 = vpop.f32.mrb[18].mxu0 }
 0x889   : > { %v1786_v35 = vpop.f32.mrb[19].mxu0  ;;  %v1282_v36 = vsel %vm795_vm6, %v1281_v32, -inf  ;;  %v1498_v34 = vld [vmem:[%s2291_s15 + $0x20] sm:$0xff] }
 0x88a   : > { %1283 = vmax.xlane.f32.xlu0 %v1282_v36  ;;  %v1499_v35 = vld [vmem:[%s2291_s15 + $0x28] sm:$0xff] }
 0x88b   : > { %v1513_v36 = vpack.c.bf16 %v1499_v35, %v1498_v34 }
 0x8a0   : > { %1294 = vrot.lane.b32.xlu0 %v2076_v59, %s1878_s21  ;;  %v1348_v59 = vsel %vm981_vm8, %v1343_v45, 0 }
 0x8a1   : > { %1794 = vmatpush3.bf16.msra.mxu0 %v1348_v59  ;;  %v1506_v59 = vld [vmem:[%s2291_s15 + $0x60] sm:$0xff] }
 0x8a2   : > { %1807 = vmatprep.subr.bf16.mxu0 %v1873_v10 }
 0x917   : > { %v1284_v37 = vpop.xlane.xlu0 %1283 }
 0x918   : > { %v1285_v38 = vsub.f32 %v1281_v32, %v1284_v37  ;;  %v1497_v32 = vld [vmem:[%s2291_s15 + $0x18] sm:$0xff]  ;;  %v1500_v37 = vld [vmem:[%s2291_s15 + $0x30] sm:$0xff] }
 0x919   : > { %v1512_v33 = vpack.c.bf16 %v1497_v32, %v1496_v31 }
 0x91a   : > { %v1286_v39 = vmul.f32 1.442695, %v1285_v38  ;;  %v1501_v38 = vld [vmem:[%s2291_s15 + $0x38] sm:$0xff] }
 0x91b   : > { %v1295_v40 = vpop.permute.xlu0 %1294 }
 0x91c   : > { %1855 = vpow2.f32 %v1286_v39  ;;  %v1300_v41 = vand.u32 %v1295_v40, %v2074_v58  ;;  %v1514_v39 = vpack.c.bf16 %v1501_v38, %v1500_v37  ;;  %v1502_v40 = vld [vmem:[%s2291_s15 + $0x40] sm:$0xff] }
 0x91e   : > { %1788 = vmatpush3.bf16.msra.mxu1 %v1300_v41  ;;  %v1503_v41 = vld [vmem:[%s2291_s15 + $0x48] sm:$0xff] }
 0x91f   : > { %1799 = vmatprep.subr.bf16.mxu1 %v1873_v10 }
 0x926   : > { %v1856_v42 = vpop.eup %1855 }
 0x927   : > { %v1288_v43 = vsel %vm795_vm6, %v1856_v42, 0.0 }
 0x928   : > { %1289 = vadd.xlane.f32.xlu1 %v1288_v43  ;;  %v1504_v43 = vld [vmem:[%s2291_s15 + $0x50] sm:$0xff] }
 0x929   : > { %v1516_v45 = vpack.c.bf16 %v1505_v44, %v1504_v43 }
 0x954   : > { %v1224_v46 = vpop.f32.mrb[28].mxu1 }
 0x955   : > { %v1230_v58 = vadd.f32 %v1224_v46, %v2129_v63  ;;  %v1779_v48 = vpop.f32.mrb[29].mxu1  ;;  %v1507_v46 = vld [vmem:[%s2291_s15 + $0x68] sm:$0xff] }
 0x956   : > { %v1227_v49 = vpop.f32.mrb[30].mxu1  ;;  %v1508_v48 = vld [vmem:[%s2291_s15 + $0x70] sm:$0xff] }
 0x957   : > { %v1780_v50 = vpop.f32.mrb[31].mxu1  ;;  %v1509_v49 = vld [vmem:[%s2291_s15 + $0x78] sm:$0xff] }
 0x958   : > { %v1518_v50 = vpack.c.bf16 %v1509_v49, %v1508_v48 }
 0x9b5   : > { %v1290_v52 = vpop.xlane.xlu1 %1289 }
 0x9b6   : > { %1857 = vrcp.f32 %v1290_v52  ;;  %v1652_v52 = vld [vmem:[%s2290_s14] ss:$0 sm:$0xff] }
 0x9c0   : > { %v1858_v53 = vpop.eup %1857 }
 0x9c1   : > { %v1292_v54 = vmul.f32 %v1858_v53, %v1856_v42  ;;  %v1515_v42 = vpack.c.bf16 %v1503_v41, %v1502_v40 }
 0x9c3   : > { %v1293_v55 = vpack.c.bf16 %v1292_v54, %v1292_v54 }
 0x9c5   : > { %1790 = vmatmul.mubr.msk.bf16.vlgmr.msra.gmra.mrb[32].mxu1 %vm809_vm7, %v1293_v55 }
 0x9c6   : > { %1803 = vmatprep.mubr.msk.bf16.mxu1 %vm1874_vm1, %v1873_v10 }
 0xa98   : > { %v1336_v56 = vpop.f32.mrb[32].mxu1 }
 0xa99   : > { %v1342_v57 = vpack.c.bf16 %v1336_v56, %v1336_v56  ;;  %v1791_v60 = vpop.f32.mrb[33].mxu1 }
 0xa9a   : > { %v1339_v61 = vpop.f32.mrb[34].mxu1 }
 0xa9b   : > { %v1792_v62 = vpop.f32.mrb[35].mxu1  ;;  %1796 = vmatmul.mubr.msk.bf16.vlgmr.msra.gmra.mrb[20].mxu0 %vm747_vm3, %v1342_v57 }
 0xa9c   : > { %1823 = vmatprep.mubr.msk.bf16.mxu0 %vm1874_vm1, %v1873_v10  ;;  %1808 = vmatpush3.bf16.msra.mxu0 %v1511_v30 }
 0xa9d   : > { %1809 = vmatprep.subr.bf16.mxu0 %v1873_v10 }
 0xaa0   : > { %1810 = vmatpush3.bf16.msra.mxu0 %v1512_v33 }
 0xaa1   : > { %1811 = vmatprep.subr.bf16.mxu0 %v1873_v10 }
 0xaa4   : > { %1812 = vmatpush3.bf16.msra.mxu0 %v1513_v36 }
 0xaa5   : > { %1813 = vmatprep.subr.bf16.mxu0 %v1873_v10 }
 0xaa8   : > { %1814 = vmatpush3.bf16.msra.mxu0 %v1514_v39 }
 0xaa9   : > { %1815 = vmatprep.subr.bf16.mxu0 %v1873_v10 }
 0xaac   : > { %1816 = vmatpush3.bf16.msra.mxu0 %v1515_v42 }
 0xaad   : > { %1817 = vmatprep.subr.bf16.mxu0 %v1873_v10 }
 0xab0   : > { %1818 = vmatpush3.bf16.msra.mxu0 %v1516_v45 }
 0xab1   : > { %1819 = vmatprep.subr.bf16.mxu0 %v1873_v10 }
 0xb6e   : > { %v1384_v63 = vpop.f32.mrb[20].mxu0 }
 0xb6f   : > { %v1390_v1 = vadd.f32 %v1384_v63, %v1230_v58  ;;  %v1797_v2 = vpop.f32.mrb[21].mxu0  ;;  %v1517_v58 = vpack.c.bf16 %v1507_v46, %v1506_v59 }
 0xb70   : > { %v1387_v4 = vpop.f32.mrb[22].mxu0 }
 0xb71   : > { %v1391_v5 = vadd.f32 %v1390_v1, %v1985_v0  ;;  %v1798_v6 = vpop.f32.mrb[23].mxu0  ;;  %v1430_v0 = vld [vmem:[%s2289_s13 + $0x8] sm:$0xff]  ;;  %1820 = vmatpush3.bf16.msra.mxu0 %v1517_v58  ;;  %v1655_v4 = vld [vmem:[%s2292_s16] ss:$0 sm:$0xff] }
 0xb72   : > { %v1434_v16 = vpack.c.bf16 %v1430_v0, %v1429_v15  ;;  %1821 = vmatprep.subr.bf16.mxu0 %v1873_v10 }
 0xb73   : > { %v2179_v7 = vadd.f32 %v1649_v3, %v1391_v5 }
 0xb74   : > { %1800 = vmatpush3.bf16.msra.mxu1 %v1434_v16 }
 0xb75   : > { %v1402_v8 = vsel %vm548_vm0, %v2179_v7, 0.0  ;;  %1801 = vmatprep.subr.bf16.mxu1 %v1873_v10  ;;  %1822 = vmatpush3.bf16.msra.mxu0 %v1518_v50 }
 0xb76   : > { %1403 = vadd.xlane.f32.xlu1 %v1402_v8 }
 0xb78   : > { %1802 = vmatpush3.bf16.msra.mxu1 %v1435_v51 }
 0xc03   : > { %v1404_v9 = vpop.xlane.xlu1 %1403 }
 0xc04   : > { %v1405_v11 = vmul.f32 0.03125, %v1404_v9 }
 0xc06   : > { %v1406_v12 = vsub.f32 %v2179_v7, %v1405_v11 }
 0xc08   : > { %v1407_v13 = vmul.f32 %v1406_v12, %v1406_v12 }
 0xc0a   : > { %v1408_v14 = vsel %vm548_vm0, %v1407_v13, 0.0 }
 0xc0b   : > { %1409 = vadd.xlane.f32.xlu1 %v1408_v14 }
 0xc98   : > { %v1410_v19 = vpop.xlane.xlu1 %1409 }
 0xc99   : > { %v1411_v20 = vmul.f32 0.03125, %v1410_v19 }
 0xc9b   : > { %v1412_v21 = vadd.f32 1e-05, %v1411_v20 }
 0xc9d   : > { %1859 = vrsqrt.f32 %v1412_v21 }
 0xca7   : > { %v1860_v22 = vpop.eup %1859 }
 0xca8   : > { %v1414_v47 = vmul.f32 %v1860_v22, %v1406_v12 }
 0xcaa   : > { %v1421_v25 = vmul.f32 %v1650_v23, %v1414_v47 }
 0xcac   : > { %v1428_v26 = vadd.f32 %v1651_v24, %v1421_v25 }
 0xcae   : > { %v1433_v27 = vpack.c.bf16 %v1428_v26, %v1428_v26 }
 0xcb0   : > { %1804 = vmatmul.mubr.msk.bf16.vlgmr.msra.gmra.mrb[36].mxu1 %vm591_vm2, %v1433_v27 }
 0xd83   : > { %v1480_v53 = vpop.f32.mrb[36].mxu1 }
 0xd84   : > { %v1481_v54 = vadd.f32 %v1652_v52, %v1480_v53  ;;  %v1805_v55 = vpop.f32.mrb[37].mxu1 }
 0xd85   : > { %v1483_v56 = vpop.f32.mrb[38].mxu1 }
 0xd86   : > { %v1654_v10 = vmul.f32 -1.702, %v1481_v54  ;;  %v1806_v57 = vpop.f32.mrb[39].mxu1 }
 0xd88   : > { %v1488_v60 = vmul.f32 1.442695, %v1654_v10 }
 0xd8a   : > { %1861 = vpow2.f32 %v1488_v60 }
 0xd94   : > { %v1862_v61 = vpop.eup %1861 }
 0xd95   : > { %v1490_v62 = vadd.f32 1.0, %v1862_v61 }
 0xd97   : > { %1863 = vrcp.f32 %v1490_v62 }
 0xda1   : > { %v1864_v63 = vpop.eup %1863 }
 0xda2   : > { %v1493_v1 = vmul.f32 %v1864_v63, %v1481_v54 }
 0xda4   : > { %v1510_v2 = vpack.c.bf16 %v1493_v1, %v1493_v1 }
 0xda6   : > { %1824 = vmatmul.mubr.bf16.vlgmr.msra.gmra.mrb[24].mxu0 %v1510_v2 }
 0xe79   : > { %v1553_v3 = vpop.f32.mrb[24].mxu0 }
 0xe7a   : > { %v1559_v5 = vadd.f32 %v1553_v3, %v2179_v7  ;;  %v1825_v6 = vpop.f32.mrb[25].mxu0 }
 0xe7b   : > { %v1556_v8 = vpop.f32.mrb[26].mxu0 }
 0xe7c   : > { %v1567_v9 = vadd.f32 %v1655_v4, %v1559_v5  ;;  %v1826_v11 = vpop.f32.mrb[27].mxu0 }
 0xe7e   : > { %1568 = vst.msk [vmem:[%s543_s19] sm:$0x1f] %vm548_vm0, %v1567_v9 }
 0xe7f PF: > { %s27_s24 = sadd.s32 1, %s1871_s24  }
 0xe80   : > { %p24_p4 = scmp.ge.s32.totalorder %s27_s24, 4  }
 0xe82   :  { %26 = sbr.rel (!%p24_p4) target bundleno = 3 (0x3), region = 118 }

// kernel: llama_adapter_forward.15
= control target key start
LH: loop header
LB: loop body
LE: loop exit
PB: predicated region body
PF: predicated region fallthrough
CT: control target
= control target key end

     0   :  { %s446_s18 = smov 0   ;;  %s491_s0 = inlined_call_operand.vmem [shape: f32[2,9,32], index: 0, kind: input, shape index: {}]   ;;  %s492_s1 = inlined_call_operand.vmem [shape: f32[32,32], index: 1, kind: input, shape index: {}]   ;;  %s493_s2 = inlined_call_operand.vmem [shape: f32[1,32], index: 2, kind: input, shape index: {}]   ;;  %s494_s3 = inlined_call_operand.vmem [shape: f32[1,32], index: 3, kind: input, shape index: {}]   ;;  %s495_s4 = inlined_call_operand.vmem [shape: f32[1,32], index: 4, kind: input, shape index: {}]   ;;  %s496_s5 = inlined_call_operand.vmem [shape: f32[2,4,32], index: 5, kind: output, shape index: {}]  }
   0x1 LB: > { %s368_s19 = sadd.s32 4294967295, %s412_s18   ;;  %p372_p0 = scmp.ge.s32.totalorder %s412_s18, 1  ;;  %s412_s18 = sphi %s446_s18, %s15_s18  }
   0x2   : > { %p187_p1 = scmp.lt.s32.totalorder %s412_s18, 3 }
   0x4   : > { %p188_p2 = pnand %p372_p0, %p187_p1 }
   0x5   : > { %v225_v0 = vld [vmem:[%s492_s1] sm:$0xff] (!%p188_p2)  ;;  %v226_v1 = vld [vmem:[%s492_s1 + $0x8] sm:$0xff] (!%p188_p2)  ;;  %v227_v2 = vld [vmem:[%s492_s1 + $0x10] sm:$0xff] (!%p188_p2)  ;;  %p214_p3 = scmp.lt.s32.totalorder (!%p188_p2), %s368_s19, 1  ;;  %v414_v3 = vmov (!%p188_p2), 0.0   ;;  %vm415_vm0 = vmmov (!%p188_p2), 0  }
   0x6   : > { %191 = sbr.rel (%p188_p2) target bundleno = 547 (0x223), region = 40  ;;  %386 = vmatprep.subr.bf16.mxu0 (!%p188_p2), %v414_v3  ;;  %v230_v4 = vpack.c.bf16 (!%p188_p2), %v226_v1, %v225_v0  ;;  %v228_v5 = vld [vmem:[%s492_s1 + $0x18] sm:$0xff] (!%p188_p2)  ;;  %390 = vmatprep.mubr.msk.bf16.mxu0 (!%p188_p2), %vm415_vm0, %v414_v3  ;;  %vm239_vm1 = vcmask (!%p188_p2), 261120   ;;  %v376_v9 = vld [vmem:[%s493_s2] ss:$0 sm:$0xff] (!%p188_p2)  ;;  %vm285_vm2 = vcmask (!%p188_p2), 257024  }
   0x7   : > { %v231_v6 = vpack.c.bf16 (!%p188_p2), %v228_v5, %v227_v2  ;;  %v378_v25 = vld [vmem:[%s494_s3] ss:$0 sm:$0xff] (!%p188_p2) }
   0x8   : > { %387 = vmatpush3.bf16.msra.mxu0 (!%p188_p2), %v230_v4  ;;  %v379_v27 = vld [vmem:[%s495_s4] ss:$0 sm:$0xff] (!%p188_p2) }
   0x9   : > { %388 = vmatprep.subr.bf16.mxu0 (!%p188_p2), %v414_v3 }
   0xc   : > { %389 = vmatpush3.bf16.msra.mxu0 (!%p188_p2), %v231_v6 }
   0xd   : > { %s498_s19 = smov (!%p214_p3, %s368_s19), 1 }
   0xe   : > { %s382_s28 = sshll.u32 %s498_s19, 4  ;;  %s375_s11 = sshll.u32 %s498_s19, 2 }
   0xf   : > { %s218_s6 = scalar_lea.vmem %s491_s0, %s382_s28  ;;  %s222_s16 = scalar_lea.vmem %s496_s5, %s375_s11 }
  0x10   : > { %v224_v7 = vld [vmem:[%s218_s6] sm:$0xff] }
  0x11   : > { %v229_v8 = vpack.c.bf16 %v224_v7, %v224_v7 }
  0x13   : > { %391 = vmatmul.mubr.msk.bf16.vlgmr.msra.gmra.mrb[0].mxu0 %vm239_vm1, %v229_v8 }
  0xe6   : > { %v277_v10 = vpop.f32.mrb[0].mxu0 }
  0xe7   : > { %v278_v11 = vadd.f32 %v376_v9, %v277_v10  ;;  %v392_v12 = vpop.f32.mrb[1].mxu0 }
  0xe8   : > { %v280_v13 = vpop.f32.mrb[2].mxu0 }
  0xe9   : > { %v393_v14 = vpop.f32.mrb[3].mxu0  ;;  %v286_v15 = vsel %vm285_vm2, %v278_v11, 0.0 }
  0xea   : > { %287 = vadd.xlane.f32.xlu0 %v286_v15 }
 0x177   : > { %v288_v16 = vpop.xlane.xlu0 %287 }
 0x178   : > { %v290_v17 = vmul.f32 0.03125, %v288_v16 }
 0x17a   : > { %v291_v18 = vsub.f32 %v278_v11, %v290_v17 }
 0x17c   : > { %v292_v19 = vmul.f32 %v291_v18, %v291_v18 }
 0x17e   : > { %v293_v20 = vsel %vm285_vm2, %v292_v19, 0.0 }
 0x17f   : > { %294 = vadd.xlane.f32.xlu0 %v293_v20 }
 0x20c   : > { %v295_v21 = vpop.xlane.xlu0 %294 }
 0x20d   : > { %v296_v22 = vmul.f32 0.03125, %v295_v21 }
 0x20f   : > { %v297_v23 = vadd.f32 1e-05, %v296_v22 }
 0x211   : > { %404 = vrsqrt.f32 %v297_v23 }
 0x21b   : > { %v405_v24 = vpop.eup %404 }
 0x21c   : > { %v299_v26 = vmul.f32 %v405_v24, %v291_v18 }
 0x21e   : > { %v306_v28 = vmul.f32 %v378_v25, %v299_v26 }
 0x220   : > { %v313_v29 = vadd.f32 %v379_v27, %v306_v28 }
 0x222   : > { %314 = vst.msk [vmem:[%s222_s16] sm:$0xf] %vm285_vm2, %v313_v29 }
 0x223 PF: > { %s15_s18 = sadd.s32 1, %s412_s18  }
 0x224   : > { %p12_p4 = scmp.ge.s32.totalorder %s15_s18, 4  }
 0x226   :  { %14 = sbr.rel (!%p12_p4) target bundleno = 1 (0x1), region = 70 }

// kernel: llama_adapter_forward.19
= control target key start
LH: loop header
LB: loop body
LE: loop exit
PB: predicated region body
PF: predicated region fallthrough
CT: control target
= control target key end

     0   :  { %11 = vsyncpa [#allocation3], 0  ;;  %vm25_vm0 = vcmask 261120   ;;  %s484_s0 = inlined_call_operand.vmem [shape: f32[2,8,32], index: 0, kind: input, shape index: {}]   ;;  %s485_s1 = inlined_call_operand.vmem [shape: s32[2,7,1], index: 1, kind: input, shape index: {}]   ;;  %s486_s2 = inlined_call_operand.vmem [shape: f32[1,32], index: 2, kind: input, shape index: {}]   ;;  %s487_s3 = inlined_call_operand.vmem [shape: f32[32,64], index: 3, kind: input, shape index: {}]   ;;  %s488_s4 = inlined_call_operand.hbm [shape: f32[1,1], index: 4, kind: output, shape index: {0}]   ;;  %s489_s5 = inlined_call_operand.hbm [shape: f32[1,1], index: 5, kind: output, shape index: {1}]  }
   0x1   :  { %v22_v0 = vld [vmem:[%s484_s0] sm:$0xff]  ;;  %v269_v1 = vld [vmem:[%s484_s0 + $0x8] sm:$0xff] }
   0x2   :  { %12 = vsyncpa [#allocation5], 0  ;;  %v24_v2 = vmul.f32 %v22_v0, %v22_v0  ;;  %v139_v3 = vmul.f32 %v269_v1, %v269_v1  ;;  %v41_v6 = vld [vmem:[%s487_s3] sm:$0xff]  ;;  %v42_v7 = vld [vmem:[%s487_s3 + $0x8] sm:$0xff]  ;;  %v362_v9 = vmov 0.0   ;;  %vm363_vm1 = vmmov 0  }
   0x3   :  { %v43_v8 = vld [vmem:[%s487_s3 + $0x10] sm:$0xff]  ;;  %279 = vmatprep.subr.bf16.mxu0 %v362_v9  ;;  %v46_v10 = vpack.c.bf16 %v42_v7, %v41_v6  ;;  %287 = vmatprep.subr.bf16.mxu1 %v362_v9  ;;  %v44_v11 = vld [vmem:[%s487_s3 + $0x18] sm:$0xff]  ;;  %v426_v13 = vld [vmem:[%s485_s1] sm:$0x7f]  ;;  %v364_v14 = vmov 0   ;;  %vm92_vm2 = vcmask 522240   ;;  %v105_v46 = vlaneseq }
   0x4   :  { %v26_v4 = vsel %vm25_vm0, %v24_v2, 0.0  ;;  %v140_v5 = vsel %vm25_vm0, %v139_v3, 0.0  ;;  %283 = vmatprep.mubr.msk.bf16.mxu0 %vm363_vm1, %v362_v9  ;;  %291 = vmatprep.mubr.msk.bf16.mxu1 %vm363_vm1, %v362_v9  ;;  %v47_v12 = vpack.c.bf16 %v44_v11, %v43_v8  ;;  %v266_v22 = vld [vmem:[%s486_s2] ss:$0 sm:$0xff]  ;;  %v271_v40 = vld [vmem:[%s485_s1 + $0x8] sm:$0x7f] }
   0x5   :  { %27 = vadd.xlane.f32.xlu0 %v26_v4  ;;  %280 = vmatpush3.bf16.msra.mxu0 %v46_v10  ;;  %v106_v48 = vand.u32 127, %v105_v46  ;;  %vm115_vm5 = vcmp.ne.s32.totalorder %v426_v13, 0  ;;  %vm120_vm6 = vcmask 6144   ;;  %vm214_vm7 = vcmp.ne.s32.totalorder %v271_v40, 0  ;;  %s365_s1 = smov [#allocation4]  }
   0x6   :  { %288 = vmatpush3.bf16.msra.mxu1 %v46_v10  ;;  %281 = vmatprep.subr.bf16.mxu0 %v362_v9  ;;  %v268_v59 = vsel %vm115_vm5, 1.0, %v362_v9  ;;  %v272_v63 = vsel %vm214_vm7, 1.0, %v362_v9  ;;  %vm235_vm8 = vcmask 0   ;;  %s254_s8 = sshll.u32 %s365_s1, 4  ;;  %s255_s8 = int_to_ptr.vmem [resolvable:$true] %s254_s8 }
   0x7   :  { %289 = vmatprep.subr.bf16.mxu1 %v362_v9  ;;  %300 = vset.pattern.permute.xlu0 %v364_v14  ;;  %v129_v60 = vsel %vm120_vm6, %v268_v59, 0.0  ;;  %s314_s9 = scalar_lea.vmem %s255_s8, 16  ;;  %s318_s10 = scalar_lea.vmem %s255_s8, 32 }
   0x8   :  { %301 = vset.pattern.permute.xlu1 %v364_v14  ;;  %v130_v61 = vrot.slane %v129_v60, 4  ;;  %p315_p0 = scmp.ne.s32.totalorder %s255_s8, %s314_s9  ;;  %p319_p1 = scmp.lt.s32.totalorder %s255_s8, %s255_s8 }
   0x9   :  { %141 = vadd.xlane.f32.xlu0 %v140_v5  ;;  %282 = vmatpush3.bf16.msra.mxu0 %v47_v12  ;;  %p320_p2 = scmp.lt.s32.totalorder %s318_s10, %s314_s9 }
   0xa   :  { %290 = vmatpush3.bf16.msra.mxu1 %v47_v12  ;;  %v131_v62 = vadd.f32 %v130_v61, %v129_v60 }
   0xb   :  { %p321_p3 = por %p320_p2, %p319_p1 }
   0xd   :  { %p322_p4 = pnand %p321_p3, %p315_p0 }
  0x1f   :  { %108 = vperm.xlu0 %300, %v426_v13  }
  0x92   :  { %v28_v15 = vpop.xlane.xlu0 %27 }
  0x93   :  { %v30_v16 = vmul.f32 0.03125, %v28_v15 }
  0x95   :  { %v31_v17 = vadd.f32 1e-05, %v30_v16 }
  0x96   :  { %v142_v18 = vpop.xlane.xlu0 %141 }
  0x97   :  { %302 = vrsqrt.f32 %v31_v17  ;;  %v143_v19 = vmul.f32 0.03125, %v142_v18 }
  0x99   :  { %v144_v20 = vadd.f32 1e-05, %v143_v19 }
  0x9b   :  { %304 = vrsqrt.f32 %v144_v20 }
  0x9e   :  { %v109_v49 = vpop.permute.xlu0 %108 }
  0x9f   :  { %vm110_vm3 = vcmp.eq.s32.totalorder %v106_v48, %v109_v49 }
  0xa1   :  { %v303_v21 = vpop.eup %302 }
  0xa2   :  { %v33_v23 = vmul.f32 %v303_v21, %v22_v0  ;;  %v227_v0 = vsel %vm120_vm6, %v272_v63, 0.0 }
  0xa3   :  { %v228_v2 = vrot.slane %v227_v0, 4 }
  0xa4   :  { %v40_v24 = vmul.f32 %v266_v22, %v33_v23 }
  0xa5   :  { %v305_v25 = vpop.eup %304  ;;  %v229_v3 = vadd.f32 %v228_v2, %v227_v0 }
  0xa6   :  { %v45_v26 = vpack.c.bf16 %v40_v24, %v40_v24  ;;  %v146_v27 = vmul.f32 %v305_v25, %v269_v1  ;;  %v132_v1 = vrot.slane %v131_v62, 2 }
  0xa7   :  { %v230_v5 = vrot.slane %v229_v3, 2 }
  0xa8   :  { %284 = vmatmul.mubr.msk.bf16.vlgmr.msra.gmra.mrb[0].mxu0 %vm25_vm0, %v45_v26  ;;  %v147_v28 = vmul.f32 %v266_v22, %v146_v27  ;;  %v133_v4 = vadd.f32 %v132_v1, %v131_v62 }
  0xa9   :  { %v231_v6 = vadd.f32 %v230_v5, %v229_v3 }
  0xaa   :  { %v148_v29 = vpack.c.bf16 %v147_v28, %v147_v28  ;;  %v134_v7 = vrot.slane %v133_v4, 1 }
  0xab   :  { %v232_v8 = vrot.slane %v231_v6, 1 }
  0xac   :  { %292 = vmatmul.mubr.msk.bf16.vlgmr.msra.gmra.mrb[0].mxu1 %vm25_vm0, %v148_v29  ;;  %v135_v10 = vadd.f32 %v134_v7, %v133_v4 }
  0xad   :  { %v233_v11 = vadd.f32 %v232_v8, %v231_v6 }
  0xaf   :  { %v234_v12 = vadd.f32 %v233_v11, %v135_v10 }
  0xb1   :  { %237 = vst.msk [vmem:[#allocation4] sm:$0x1] %vm235_vm8, %v234_v12 }
 0x17b   :  { %v85_v30 = vpop.f32.mrb[0].mxu0 }
 0x17c   :  { %v285_v31 = vpop.f32.mrb[1].mxu0  ;;  %v93_v32 = vsel %vm92_vm2, %v85_v30, -inf  ;;  %v111_v53 = vsel %vm110_vm3, %v85_v30, 0.0 }
 0x17d   :  { %94 = vmax.xlane.f32.xlu1 %v93_v32  ;;  %v88_v33 = vpop.f32.mrb[2].mxu0  ;;  %v112_v56 = vsel %vm92_vm2, %v111_v53, 0.0 }
 0x17e   :  { %v286_v34 = vpop.f32.mrb[3].mxu0 }
 0x17f   :  { %v186_v35 = vpop.f32.mrb[0].mxu1 }
 0x180   :  { %v293_v36 = vpop.f32.mrb[1].mxu1  ;;  %v194_v37 = vsel %vm92_vm2, %v186_v35, -inf }
 0x181   :  { %195 = vmax.xlane.f32.xlu1 %v194_v37  ;;  %v189_v38 = vpop.f32.mrb[2].mxu1 }
 0x182   :  { %v294_v39 = vpop.f32.mrb[3].mxu1 }
 0x192   :  { %207 = vperm.xlu1 %301, %v271_v40  }
 0x20a   :  { %v439_v41 = vpop.xlane.xlu1 %94 }
 0x20b   :  { %v96_v42 = vsub.f32 %v85_v30, %v439_v41 }
 0x20d   :  { %v97_v43 = vmul.f32 1.442695, %v96_v42 }
 0x20e   :  { %v442_v44 = vpop.xlane.xlu1 %195 }
 0x20f   :  { %306 = vpow2.f32 %v97_v43  ;;  %v197_v45 = vsub.f32 %v186_v35, %v442_v44 }
 0x211   :  { %v198_v47 = vmul.f32 1.442695, %v197_v45 }
 0x212   :  { %v208_v51 = vpop.permute.xlu1 %207 }
 0x213   :  { %308 = vpow2.f32 %v198_v47  ;;  %vm209_vm4 = vcmp.eq.s32.totalorder %v106_v48, %v208_v51 }
 0x214   :  { %v210_v57 = vsel %vm209_vm4, %v186_v35, 0.0 }
 0x215   :  { %v211_v58 = vsel %vm92_vm2, %v210_v57, 0.0 }
 0x219   :  { %v307_v50 = vpop.eup %306 }
 0x21a   :  { %v99_v52 = vsel %vm92_vm2, %v307_v50, 0.0 }
 0x21b   :  { %100 = vadd.xlane.f32.xlu1 %v99_v52 }
 0x21d   :  { %v309_v54 = vpop.eup %308 }
 0x21e   :  { %v200_v55 = vsel %vm92_vm2, %v309_v54, 0.0 }
 0x21f   :  { %201 = vadd.xlane.f32.xlu0 %v200_v55  ;;  %113 = vadd.xlane.f32.xlu1 %v112_v56 }
 0x223   :  { %212 = vadd.xlane.f32.xlu1 %v211_v58 }
 0x224   :  { %325 = shalt.err (!%p322_p4)
}
 0x225   :  { %s326_s13 = scalar_lea.hbm %s489_s5, 16 }
 0x226   :  { %p327_p5 = scmp.ne.s32.totalorder %s489_s5, %s326_s13  ;;  %p330_p6 = scmp.lt.u32.totalorder %s326_s13, %s489_s5 }
 0x228   :  { %p332_p7 = pnand %p330_p6, %p327_p5 }
 0x22a   :  { %335 = shalt.err (!%p332_p7)
}
 0x22b   :  { %257 = dma.vmem_to_hbm [thread:$0]  %s255_s8, 16, %s489_s5, [#allocation5]  }
 0x22c   :  { %s366_s5 = smov [#allocation2]  }
 0x22d   :  { %s244_s20 = sshll.u32 %s366_s5, 4  ;;  %s245_s20 = int_to_ptr.vmem [resolvable:$true] %s244_s20 }
 0x22e   :  { %s336_s21 = scalar_lea.vmem %s245_s20, 16  ;;  %s340_s22 = scalar_lea.vmem %s245_s20, 32 }
 0x22f   :  { %p337_p8 = scmp.ne.s32.totalorder %s245_s20, %s336_s21  ;;  %p341_p9 = scmp.lt.s32.totalorder %s245_s20, %s245_s20 }
 0x230   :  { %p342_p10 = scmp.lt.s32.totalorder %s340_s22, %s336_s21 }
 0x232   :  { %p343_p11 = por %p342_p10, %p341_p9 }
 0x234   :  { %p344_p12 = pnand %p343_p11, %p337_p8 }
 0x2a8   :  { %v101_v9 = vpop.xlane.xlu1 %100 }
 0x2a9   :  { %310 = vlog2.f32 %v101_v9 }
 0x2ac   :  { %v202_v13 = vpop.xlane.xlu0 %201  ;;  %v114_v16 = vpop.xlane.xlu1 %113 }
 0x2ad   :  { %312 = vlog2.f32 %v202_v13 }
 0x2b0   :  { %v213_v23 = vpop.xlane.xlu1 %212 }
 0x2b3   :  { %v311_v14 = vpop.eup %310 }
 0x2b4   :  { %v103_v15 = vmul.f32 0.6931472, %v311_v14 }
 0x2b6   :  { %v104_v17 = vadd.f32 %v103_v15, %v439_v41 }
 0x2b7   :  { %v313_v18 = vpop.eup %312 }
 0x2b8   :  { %v118_v19 = vsub.f32 %v104_v17, %v114_v16  ;;  %v204_v20 = vmul.f32 0.6931472, %v313_v18 }
 0x2ba   :  { %v119_v21 = vmul.f32 %v268_v59, %v118_v19  ;;  %v205_v22 = vadd.f32 %v204_v20, %v442_v44 }
 0x2bc   :  { %v121_v24 = vsel %vm120_vm6, %v119_v21, 0.0  ;;  %v217_v25 = vsub.f32 %v205_v22, %v213_v23 }
 0x2bd   :  { %v122_v26 = vrot.slane %v121_v24, 4 }
 0x2be   :  { %v218_v27 = vmul.f32 %v272_v63, %v217_v25 }
 0x2bf   :  { %v123_v28 = vadd.f32 %v122_v26, %v121_v24 }
 0x2c0   :  { %v219_v29 = vsel %vm120_vm6, %v218_v27, 0.0 }
 0x2c1   :  { %v124_v30 = vrot.slane %v123_v28, 2  ;;  %v220_v31 = vrot.slane %v219_v29, 4 }
 0x2c3   :  { %v221_v32 = vadd.f32 %v220_v31, %v219_v29  ;;  %v125_v33 = vadd.f32 %v124_v30, %v123_v28 }
 0x2c5   :  { %v222_v34 = vrot.slane %v221_v32, 2  ;;  %v126_v35 = vrot.slane %v125_v33, 1 }
 0x2c7   :  { %v223_v36 = vadd.f32 %v222_v34, %v221_v32  ;;  %v127_v38 = vadd.f32 %v126_v35, %v125_v33 }
 0x2c9   :  { %v224_v37 = vrot.slane %v223_v36, 1 }
 0x2cb   :  { %v225_v39 = vadd.f32 %v224_v37, %v223_v36 }
 0x2cd   :  { %v226_v40 = vadd.f32 %v225_v39, %v127_v38 }
 0x2cf   :  { %236 = vst.msk [vmem:[#allocation2] sm:$0x1] %vm235_vm8, %v226_v40 }
 0x2d0   :  { %347 = shalt.err (!%p344_p12)
}
 0x2d1   :  { %s348_s25 = scalar_lea.hbm %s488_s4, 16 }
 0x2d2   :  { %p349_p13 = scmp.ne.s32.totalorder %s488_s4, %s348_s25  ;;  %p352_p0 = scmp.lt.u32.totalorder %s348_s25, %s488_s4 }
 0x2d4   :  { %p354_p1 = pnand %p352_p0, %p349_p13 }
 0x2d6   :  { %357 = shalt.err (!%p354_p1)
}
 0x2d7   :  { %247 = dma.vmem_to_hbm [thread:$0]  %s245_s20, 16, %s488_s4, [#allocation3]  }
 0x2d8   :  { %358 = dma.done.wait [#allocation3], 16  }
 0x2d9   :  { %359 = vsyncadd [#allocation3], 4294967280 }
 0x2da   :  { %360 = dma.done.wait [#allocation5], 16  }
 0x2db   :  { %361 = vsyncadd [#allocation5], 4294967280 }
 0x2dc   :  { %264 = vsyncpa [#allocation3], 1 }
 0x2dd   :  { %265 = vsyncpa [#allocation5], 1 }

// kernel: llama_adapter_forward.13
= control target key start
LH: loop header
LB: loop body
LE: loop exit
PB: predicated region body
PF: predicated region fallthrough
CT: control target
= control target key end

     0   :  { %s2111_s24 = smov 0   ;;  %s2445_s0 = inlined_call_operand.vmem [shape: f32[2,9,32], index: 0, kind: input, shape index: {}]   ;;  %s2446_s1 = inlined_call_operand.vmem [shape: f32[1,32], index: 1, kind: input, shape index: {}]   ;;  %s2447_s2 = inlined_call_operand.vmem [shape: f32[1,32], index: 2, kind: input, shape index: {}]   ;;  %s2448_s3 = inlined_call_operand.vmem [shape: f32[32,32], index: 3, kind: input, shape index: {}]   ;;  %s2449_s4 = inlined_call_operand.vmem [shape: f32[1,32], index: 4, kind: input, shape index: {}]   ;;  %s2450_s5 = inlined_call_operand.vmem [shape: f32[32,32], index: 5, kind: input, shape index: {}]   ;;  %s2451_s6 = inlined_call_operand.vmem [shape: f32[1,32], index: 6, kind: input, shape index: {}]   ;;  %s2452_s7 = inlined_call_operand.vmem [shape: f32[32,32], index: 7, kind: input, shape index: {}]   ;;  %s2453_s8 = inlined_call_operand.vmem [shape: f32[1,32], index: 8, kind: input, shape index: {}]   ;;  %s2454_s9 = inlined_call_operand.vmem [shape: f32[32,32], index: 9, kind: input, shape index: {}]   ;;  %s2455_s10 = inlined_call_operand.vmem [shape: f32[1,32], index: 10, kind: input, shape index: {}]   ;;  %s2456_s11 = inlined_call_operand.vmem [shape: f32[1,32], index: 11, kind: input, shape index: {}]   ;;  %s2457_s12 = inlined_call_operand.vmem [shape: f32[1,32], index: 12, kind: input, shape index: {}]   ;;  %s2458_s13 = inlined_call_operand.vmem [shape: f32[32,128], index: 13, kind: input, shape index: {}]   ;;  %s2459_s14 = inlined_call_operand.vmem [shape: f32[1,128], index: 14, kind: input, shape index: {}]   ;;  %s2460_s15 = inlined_call_operand.vmem [shape: f32[128,32], index: 15, kind: input, shape index: {}]   ;;  %s2461_s16 = inlined_call_operand.vmem [shape: f32[1,32], index: 16, kind: input, shape index: {}]   ;;  %s2462_s17 = inlined_call_operand.vmem [shape: f32[2,9,32], index: 17, kind: output, shape index: {}]  }
   0x1   :  { %2463 = sst [smem:[#allocation2_spill]] %s2445_s0 }
   0x2   :  { %2464 = sst [smem:[#allocation3_spill]] %s2446_s1 }
   0x3 LB: > { %s1741_s25 = sadd.s32 4294967295, %s2013_s24   ;;  %p1745_p0 = scmp.ge.s32.totalorder %s2013_s24, 1  ;;  %s2013_s24 = sphi %s2111_s24, %s27_s24  }
   0x4   : > { %p487_p1 = scmp.lt.s32.totalorder %s2013_s24, 3 }
   0x6   : > { %p488_p2 = pnand %p1745_p0, %p487_p1 }
   0x7   : > { %p539_p3 = scmp.lt.s32.totalorder (!%p488_p2), %s1741_s25, 1  ;;  %vm554_vm0 = vcmask (!%p488_p2), 261120   ;;  %s2465_s29 = sld [smem:[#allocation2_spill]] (!%p488_p2)  ;;  %vm558_vm1 = vcmask (!%p488_p2), 253952   ;;  %v599_v14 = vld [vmem:[%s2448_s3] sm:$0xff] (!%p488_p2)  ;;  %v600_v15 = vld [vmem:[%s2448_s3 + $0x8] sm:$0xff] (!%p488_p2) }
   0x8   : > { %491 = sbr.rel (%p488_p2) target bundleno = 3734 (0xe96), region = 88  ;;  %v604_v16 = vpack.c.bf16 (!%p488_p2), %v600_v15, %v599_v14  ;;  %v2015_v17 = vmov (!%p488_p2), 0.0   ;;  %v601_v18 = vld [vmem:[%s2448_s3 + $0x10] sm:$0xff] (!%p488_p2)  ;;  %v602_v19 = vld [vmem:[%s2448_s3 + $0x18] sm:$0xff] (!%p488_p2)  ;;  %vm2016_vm2 = vmmov (!%p488_p2), 0   ;;  %v657_v35 = vld [vmem:[%s2450_s5] sm:$0xff] (!%p488_p2) }
   0x9   : > { %1825 = vmatprep.subr.bf16.mxu1 (!%p488_p2), %v2015_v17  ;;  %1855 = vmatprep.subr.bf16.mxu0 (!%p488_p2), %v2015_v17  ;;  %v605_v20 = vpack.c.bf16 (!%p488_p2), %v602_v19, %v601_v18  ;;  %v1751_v33 = vld [vmem:[%s2447_s2] ss:$0 sm:$0xff] (!%p488_p2)  ;;  %v658_v36 = vld [vmem:[%s2450_s5 + $0x8] sm:$0xff] (!%p488_p2)  ;;  %v659_v41 = vld [vmem:[%s2450_s5 + $0x10] sm:$0xff] (!%p488_p2)  ;;  %s2017_s23 = smov (!%p488_p2), 120   ;;  %vm771_vm3 = vcmask (!%p488_p2), 64512  }
   0xa   : > { %1826 = vmatpush3.bf16.msra.mxu1 (!%p488_p2), %v604_v16  ;;  %1829 = vmatprep.mubr.msk.bf16.mxu1 (!%p488_p2), %vm2016_vm2, %v2015_v17  ;;  %v661_v39 = vpack.c.bf16 (!%p488_p2), %v658_v36, %v657_v35  ;;  %v660_v42 = vld [vmem:[%s2450_s5 + $0x18] sm:$0xff] (!%p488_p2)  ;;  %v711_v44 = vld [vmem:[%s2452_s7] sm:$0xff] (!%p488_p2)  ;;  %v712_v45 = vld [vmem:[%s2452_s7 + $0x8] sm:$0xff] (!%p488_p2)  ;;  %vm850_vm4 = vcmask (!%p488_p2), 1043456   ;;  %vm851_vm5 = vcmask (!%p488_p2), 1044480   ;;  %vm821_vm6 = vcmask (!%p488_p2), 72704  }
   0xb   : > { %1827 = vmatprep.subr.bf16.mxu1 (!%p488_p2), %v2015_v17  ;;  %1857 = vmatprep.mubr.msk.bf16.mxu0 (!%p488_p2), %vm2016_vm2, %v2015_v17  ;;  %v662_v43 = vpack.c.bf16 (!%p488_p2), %v660_v42, %v659_v41  ;;  %v715_v46 = vpack.c.bf16 (!%p488_p2), %v712_v45, %v711_v44  ;;  %v713_v47 = vld [vmem:[%s2452_s7 + $0x10] sm:$0xff] (!%p488_p2)  ;;  %v714_v48 = vld [vmem:[%s2452_s7 + $0x18] sm:$0xff] (!%p488_p2)  ;;  %v1752_v50 = vld [vmem:[%s2449_s4] ss:$0 sm:$0xff] (!%p488_p2)  ;;  %vm825_vm7 = vcmask (!%p488_p2), 65536   ;;  %s2019_s30 = smov (!%p488_p2), 112  }
   0xc   : > { %v716_v49 = vpack.c.bf16 (!%p488_p2), %v714_v48, %v713_v47  ;;  %v1754_v58 = vld [vmem:[%s2451_s6] ss:$0 sm:$0xff] (!%p488_p2)  ;;  %s2020_s21 = smov (!%p488_p2), 104  }
   0xe   : > { %1828 = vmatpush3.bf16.msra.mxu1 (!%p488_p2), %v605_v20 }
   0xf   : > { %s2468_s25 = smov (!%p539_p3, %s1741_s25), 1  ;;  %1833 = vmatprep.subr.bf16.mxu1 %v2015_v17 }
  0x10   : > { %s1778_s26 = sshll.u32 %s2468_s25, 4 }
  0x11   : > { %s543_s0 = scalar_lea.vmem %s2465_s29, %s1778_s26  ;;  %s2466_s29 = sld [smem:[#allocation3_spill]] }
  0x12   : > { %v2127_v0 = vld [vmem:[%s543_s0] sm:$0xff]  ;;  %v2129_v1 = vld [vmem:[%s543_s0 + $0x8] sm:$0x1]  ;;  %s548_s19 = scalar_lea.vmem %s2462_s17, %s1778_s26 }
  0x13   : > { %v555_v2 = vsel %vm554_vm0, %v2127_v0, 0.0  ;;  %v559_v3 = vsel %vm558_vm1, %v2129_v1, 0.0 }
  0x14   : > { %556 = vadd.xlane.f32.xlu0 %v555_v2 }
  0x17   : > { %v1750_v29 = vld [vmem:[%s2466_s29] ss:$0 sm:$0xff] }
  0x18   : > { %560 = vadd.xlane.f32.xlu0 %v559_v3 }
  0xa1   : > { %v557_v4 = vpop.xlane.xlu0 %556 }
  0xa2   : > { %v563_v5 = vmul.f32 0.03125, %v557_v4 }
  0xa4   : > { %v565_v6 = vsub.f32 %v2127_v0, %v563_v5  ;;  %v1756_v5 = vld [vmem:[%s2453_s8] ss:$0 sm:$0xff] }
  0xa5   : > { %v561_v7 = vpop.xlane.xlu0 %560 }
  0xa6   : > { %v564_v8 = vmul.f32 0.03125, %v561_v7  ;;  %v567_v9 = vmul.f32 %v565_v6, %v565_v6 }
  0xa8   : > { %v566_v10 = vsub.f32 %v2129_v1, %v564_v8  ;;  %v569_v11 = vsel %vm554_vm0, %v567_v9, 0.0  ;;  %v2018_v8 = vmov 65535  }
  0xa9   : > { %570 = vadd.xlane.f32.xlu1 %v569_v11  ;;  %v852_v9 = vsel %vm850_vm4, 4294967295, %v2018_v8 }
  0xaa   : > { %v568_v12 = vmul.f32 %v566_v10, %v566_v10  ;;  %v2223_v14 = vsel %vm851_vm5, %v852_v9, 0 }
  0xac   : > { %v572_v13 = vsel %vm558_vm1, %v568_v12, 0.0 }
  0xad   : > { %573 = vadd.xlane.f32.xlu1 %v572_v13 }
 0x136   : > { %v571_v21 = vpop.xlane.xlu1 %570 }
 0x137   : > { %v575_v22 = vmul.f32 0.03125, %v571_v21 }
 0x139   : > { %v577_v23 = vadd.f32 1e-05, %v575_v22 }
 0x13a   : > { %v574_v24 = vpop.xlane.xlu1 %573 }
 0x13b   : > { %1963 = vrsqrt.f32 %v577_v23  ;;  %v576_v25 = vmul.f32 0.03125, %v574_v24 }
 0x13d   : > { %v578_v26 = vadd.f32 1e-05, %v576_v25 }
 0x13f   : > { %1965 = vrsqrt.f32 %v578_v26 }
 0x145   : > { %v1964_v27 = vpop.eup %1963 }
 0x146   : > { %v581_v28 = vmul.f32 %v1964_v27, %v565_v6 }
 0x148   : > { %v589_v32 = vmul.f32 %v1750_v29, %v581_v28 }
 0x149   : > { %v1966_v30 = vpop.eup %1965 }
 0x14a   : > { %v582_v31 = vmul.f32 %v1966_v30, %v566_v10  ;;  %v597_v37 = vadd.f32 %v1751_v33, %v589_v32 }
 0x14c   : > { %v590_v34 = vmul.f32 %v1750_v29, %v582_v31 }
 0x14e   : > { %v598_v38 = vadd.f32 %v1751_v33, %v590_v34 }
 0x150   : > { %v603_v40 = vpack.c.bf16 %v598_v38, %v597_v37 }
 0x152   : > { %1830 = vmatmul.mubr.msk.bf16.vlgmr.msra.gmra.mrb[0].mxu1 %vm554_vm0, %v603_v40 }
 0x153   : > { %1834 = vmatpush3.bf16.msra.mxu1 %v661_v39  ;;  %1837 = vmatprep.mubr.msk.bf16.mxu1 %vm2016_vm2, %v2015_v17 }
 0x154   : > { %1835 = vmatprep.subr.bf16.mxu1 %v2015_v17 }
 0x157   : > { %1836 = vmatpush3.bf16.msra.mxu1 %v662_v43 }
 0x158   : > { %1841 = vmatprep.subr.bf16.mxu1 %v2015_v17 }
 0x15a   : > { %1838 = vmatmul.mubr.msk.bf16.vlgmr.msra.gmra.mrb[4].mxu1 %vm554_vm0, %v603_v40 }
 0x15b   : > { %1842 = vmatpush3.bf16.msra.mxu1 %v715_v46  ;;  %1845 = vmatprep.mubr.msk.bf16.mxu1 %vm2016_vm2, %v2015_v17 }
 0x15c   : > { %1843 = vmatprep.subr.bf16.mxu1 %v2015_v17 }
 0x15f   : > { %1844 = vmatpush3.bf16.msra.mxu1 %v716_v49 }
 0x160   : > { %1849 = vmatprep.subr.bf16.mxu1 %v2015_v17 }
 0x162   : > { %1846 = vmatmul.mubr.msk.bf16.vlgmr.msra.gmra.mrb[8].mxu1 %vm554_vm0, %v603_v40 }
 0x163   : > { %1851 = vmatprep.mubr.msk.bf16.mxu1 %vm2016_vm2, %v2015_v17 }
 0x225   : > { %v650_v51 = vpop.f32.mrb[0].mxu1 }
 0x226   : > { %v1831_v52 = vpop.f32.mrb[1].mxu1  ;;  %v651_v54 = vadd.f32 %v1752_v50, %v650_v51 }
 0x227   : > { %v653_v53 = vpop.f32.mrb[2].mxu1 }
 0x228   : > { %v654_v55 = vadd.f32 %v1752_v50, %v653_v53  ;;  %v1832_v56 = vpop.f32.mrb[3].mxu1 }
 0x22a   : > { %v2205_v57 = vpack.c.bf16 %v654_v55, %v651_v54 }
 0x22c   : > { %901 = vrot.lane.b32.xlu1 %v2205_v57, %s2017_s23 }
 0x22d   : > { %v704_v59 = vpop.f32.mrb[4].mxu1 }
 0x22e   : > { %v1839_v60 = vpop.f32.mrb[5].mxu1  ;;  %v705_v62 = vadd.f32 %v1754_v58, %v704_v59 }
 0x22f   : > { %v707_v61 = vpop.f32.mrb[6].mxu1 }
 0x230   : > { %v708_v63 = vadd.f32 %v1754_v58, %v707_v61  ;;  %v1840_v2 = vpop.f32.mrb[7].mxu1 }
 0x232   : > { %v2212_v3 = vpack.c.bf16 %v708_v63, %v705_v62 }
 0x234   : > { %904 = vrot.lane.b32.xlu0 %v2212_v3, %s2017_s23  ;;  %v776_v4 = vsel %vm771_vm3, %v2212_v3, 0 }
 0x235   : > { %v758_v6 = vpop.f32.mrb[8].mxu1  ;;  %1850 = vmatpush3.bf16.xpose.msra.mxu1 %v776_v4  ;;  %v766_v4 = vld [vmem:[%s2454_s9 + $0x8] sm:$0xff] }
 0x236   : > { %v1847_v7 = vpop.f32.mrb[9].mxu1  ;;  %1861 = vmatprep.subr.bf16.mxu1 %v2015_v17  ;;  %v759_v11 = vadd.f32 %v1756_v5, %v758_v6 }
 0x237   : > { %v761_v10 = vpop.f32.mrb[10].mxu1 }
 0x238   : > { %v762_v12 = vadd.f32 %v1756_v5, %v761_v10  ;;  %v1848_v13 = vpop.f32.mrb[11].mxu1  ;;  %v1029_v5 = vpack.c.bf16 %v766_v4, %v766_v4 }
 0x23a   : > { %v2225_v15 = vpack.c.bf16 %v762_v12, %v759_v11  ;;  %v1034_v6 = vsel %vm850_vm4, %v1029_v5, 0  ;;  %v765_v11 = vld [vmem:[%s2454_s9] sm:$0xff] }
 0x23b   : > { %v899_v13 = vpack.c.bf16 %v765_v11, %v765_v11 }
 0x23c   : > { %1852 = vmatmul.mubr.msk.bf16.vlgmr.msra.gmra.mrb[12].mxu1 %vm771_vm3, %v2205_v57  ;;  %v855_v16 = vand.u32 %v2223_v14, %v2225_v15 }
 0x23d   : > { %1863 = vmatprep.mubr.msk.bf16.mxu1 %vm2016_vm2, %v2015_v17 }
 0x23e   : > { %1856 = vmatpush3.bf16.msra.mxu0 %v855_v16 }
 0x23f   : > { %1867 = vmatprep.subr.bf16.mxu0 %v2015_v17 }
 0x29e   : > { %v902_v20 = vpop.permute.xlu1 %901 }
 0x2a6   : > { %v905_v18 = vpop.permute.xlu0 %904 }
 0x2a7   : > { %v910_v19 = vsel %vm771_vm3, %v905_v18, 0 }
 0x2a8   : > { %1862 = vmatpush3.bf16.xpose.msra.mxu1 %v910_v19 }
 0x2a9   : > { %1873 = vmatprep.subr.bf16.mxu1 %v2015_v17 }
 0x2af   : > { %1864 = vmatmul.mubr.msk.bf16.vlgmr.msra.gmra.mrb[16].mxu1 %vm771_vm3, %v902_v20 }
 0x2b0   : > { %1875 = vmatprep.mubr.msk.bf16.mxu1 %vm2016_vm2, %v2015_v17  ;;  %1874 = vmatpush3.bf16.msra.mxu1 %v1034_v6 }
 0x2b1   : > { %1885 = vmatprep.subr.bf16.mxu1 %v2015_v17 }
 0x30f   : > { %v812_v21 = vpop.f32.mrb[12].mxu1 }
 0x310   : > { %v819_v22 = vmul.f32 0.35355338, %v812_v21  ;;  %v1853_v23 = vpop.f32.mrb[13].mxu1  ;;  %v1081_v21 = vsel %vm850_vm4, %v899_v13, 0  ;;  %v767_v13 = vld [vmem:[%s2454_s9 + $0x10] sm:$0xff] }
 0x311   : > { %v815_v24 = vpop.f32.mrb[14].mxu1 }
 0x312   : > { %v820_v25 = vmul.f32 0.35355338, %v815_v24  ;;  %v1854_v26 = vpop.f32.mrb[15].mxu1  ;;  %v822_v27 = vsel %vm821_vm6, %v819_v22, -inf }
 0x313   : > { %823 = vmax.xlane.f32.xlu1 %v822_v27 }
 0x314   : > { %v826_v28 = vsel %vm825_vm7, %v820_v25, -inf }
 0x315   : > { %827 = vmax.xlane.f32.xlu0 %v826_v28 }
 0x382   : > { %v946_v29 = vpop.f32.mrb[16].mxu1 }
 0x383   : > { %v953_v30 = vmul.f32 0.35355338, %v946_v29  ;;  %v1865_v31 = vpop.f32.mrb[17].mxu1 }
 0x384   : > { %v949_v32 = vpop.f32.mrb[18].mxu1 }
 0x385   : > { %v954_v33 = vmul.f32 0.35355338, %v949_v32  ;;  %v1866_v34 = vpop.f32.mrb[19].mxu1  ;;  %v955_v35 = vsel %vm821_vm6, %v953_v30, -inf }
 0x386   : > { %956 = vmax.xlane.f32.xlu0 %v955_v35 }
 0x387   : > { %v958_v36 = vsel %vm825_vm7, %v954_v33, -inf }
 0x388   : > { %959 = vmax.xlane.f32.xlu1 %v958_v36 }
 0x3a0   : > { %v824_v37 = vpop.xlane.xlu1 %823 }
 0x3a1   : > { %v829_v38 = vsub.f32 %v819_v22, %v824_v37 }
 0x3a2   : > { %v828_v39 = vpop.xlane.xlu0 %827 }
 0x3a3   : > { %v831_v40 = vmul.f32 1.442695, %v829_v38  ;;  %v830_v41 = vsub.f32 %v820_v25, %v828_v39 }
 0x3a5   : > { %1967 = vpow2.f32 %v831_v40  ;;  %v833_v42 = vmul.f32 1.442695, %v830_v41 }
 0x3a7   : > { %1969 = vpow2.f32 %v833_v42 }
 0x3af   : > { %v1968_v43 = vpop.eup %1967 }
 0x3b0   : > { %v835_v44 = vsel %vm821_vm6, %v1968_v43, 0.0 }
 0x3b1   : > { %v1970_v45 = vpop.eup %1969  ;;  %836 = vadd.xlane.f32.xlu0 %v835_v44 }
 0x3b2   : > { %v838_v46 = vsel %vm825_vm7, %v1970_v45, 0.0 }
 0x3b3   : > { %839 = vadd.xlane.f32.xlu1 %v838_v46 }
 0x413   : > { %v957_v47 = vpop.xlane.xlu0 %956 }
 0x414   : > { %v961_v48 = vsub.f32 %v953_v30, %v957_v47 }
 0x415   : > { %v960_v49 = vpop.xlane.xlu1 %959 }
 0x416   : > { %v963_v50 = vmul.f32 1.442695, %v961_v48  ;;  %v962_v51 = vsub.f32 %v954_v33, %v960_v49 }
 0x418   : > { %1971 = vpow2.f32 %v963_v50  ;;  %v965_v52 = vmul.f32 1.442695, %v962_v51 }
 0x41a   : > { %1973 = vpow2.f32 %v965_v52 }
 0x422   : > { %v1972_v53 = vpop.eup %1971 }
 0x423   : > { %v967_v54 = vsel %vm821_vm6, %v1972_v53, 0.0 }
 0x424   : > { %v1974_v55 = vpop.eup %1973  ;;  %968 = vadd.xlane.f32.xlu0 %v967_v54 }
 0x425   : > { %v970_v56 = vsel %vm825_vm7, %v1974_v55, 0.0 }
 0x426   : > { %971 = vadd.xlane.f32.xlu1 %v970_v56 }
 0x437   : > { %1126 = vrot.lane.b32.xlu1 %v2212_v3, %s2019_s30 }
 0x43a   : > { %979 = vrot.lane.b32.xlu0 %v2225_v15, %s2017_s23 }
 0x43b   : > { %1124 = vrot.lane.b32.xlu1 %v2205_v57, %s2019_s30 }
 0x43e   : > { %v837_v58 = vpop.xlane.xlu0 %836 }
 0x43f   : > { %1975 = vrcp.f32 %v837_v58 }
 0x440   : > { %v840_v59 = vpop.xlane.xlu1 %839 }
 0x441   : > { %1977 = vrcp.f32 %v840_v59 }
 0x449   : > { %v1976_v60 = vpop.eup %1975 }
 0x44a   : > { %v842_v62 = vmul.f32 %v1976_v60, %v1968_v43 }
 0x44b   : > { %v1978_v61 = vpop.eup %1977 }
 0x44c   : > { %v844_v63 = vmul.f32 %v1978_v61, %v1970_v45 }
 0x44e   : > { %v845_v2 = vpack.c.bf16 %v844_v63, %v842_v62 }
 0x450   : > { %1858 = vmatmul.mubr.msk.bf16.vlgmr.msra.gmra.mrb[0].mxu0 %vm821_vm6, %v845_v2 }
 0x451   : > { %1869 = vmatprep.mubr.msk.bf16.mxu0 %vm2016_vm2, %v2015_v17 }
 0x4b1   : > { %v969_v7 = vpop.xlane.xlu0 %968 }
 0x4b2   : > { %1979 = vrcp.f32 %v969_v7 }
 0x4b3   : > { %v972_v8 = vpop.xlane.xlu1 %971 }
 0x4b4   : > { %1981 = vrcp.f32 %v972_v8 }
 0x4b5   : > { %v980_v9 = vpop.permute.xlu0 %979 }
 0x4b6   : > { %v985_v10 = vand.u32 %v980_v9, %v2223_v14 }
 0x4b7   : > { %v1127_v29 = vpop.permute.xlu1 %1126 }
 0x4b8   : > { %1868 = vmatpush3.bf16.msra.mxu0 %v985_v10  ;;  %v1132_v33 = vsel %vm771_vm3, %v1127_v29, 0 }
 0x4b9   : > { %1879 = vmatprep.subr.bf16.mxu0 %v2015_v17 }
 0x4bb   : > { %v1125_v34 = vpop.permute.xlu1 %1124 }
 0x4bc   : > { %v1980_v12 = vpop.eup %1979 }
 0x4bd   : > { %v974_v18 = vmul.f32 %v1980_v12, %v1972_v53 }
 0x4be   : > { %v1982_v16 = vpop.eup %1981 }
 0x4bf   : > { %v976_v19 = vmul.f32 %v1982_v16, %v1974_v55  ;;  %v1250_v16 = vpack.c.bf16 %v767_v13, %v767_v13 }
 0x4c1   : > { %v977_v20 = vpack.c.bf16 %v976_v19, %v974_v18  ;;  %v1255_v18 = vsel %vm850_vm4, %v1250_v16, 0 }
 0x4c3   : > { %1870 = vmatmul.mubr.msk.bf16.vlgmr.msra.gmra.mrb[4].mxu0 %vm821_vm6, %v977_v20 }
 0x4c4   : > { %1880 = vmatpush3.bf16.msra.mxu0 %v1081_v21  ;;  %1881 = vmatprep.mubr.msk.bf16.mxu0 %vm2016_vm2, %v2015_v17 }
 0x4c5   : > { %1891 = vmatprep.subr.bf16.mxu0 %v2015_v17 }
 0x523   : > { %v891_v22 = vpop.f32.mrb[0].mxu0 }
 0x524   : > { %v1859_v23 = vpop.f32.mrb[1].mxu0 }
 0x525   : > { %v894_v24 = vpop.f32.mrb[2].mxu0 }
 0x526   : > { %v898_v25 = vpack.c.bf16 %v894_v24, %v891_v22  ;;  %v1860_v26 = vpop.f32.mrb[3].mxu0 }
 0x528   : > { %1882 = vmatmul.mubr.msk.bf16.vlgmr.msra.gmra.mrb[8].mxu0 %vm771_vm3, %v898_v25 }
 0x529   : > { %1893 = vmatprep.mubr.msk.bf16.mxu0 %vm2016_vm2, %v2015_v17 }
 0x596   : > { %v1021_v27 = vpop.f32.mrb[4].mxu0 }
 0x597   : > { %v1871_v28 = vpop.f32.mrb[5].mxu0 }
 0x598   : > { %v1024_v30 = vpop.f32.mrb[6].mxu0 }
 0x599   : > { %v1028_v31 = vpack.c.bf16 %v1024_v30, %v1021_v27  ;;  %v1872_v32 = vpop.f32.mrb[7].mxu0 }
 0x59b   : > { %1876 = vmatmul.mubr.msk.bf16.vlgmr.msra.gmra.mrb[20].mxu1 %vm771_vm3, %v1028_v31 }
 0x59c   : > { %1886 = vmatpush3.bf16.xpose.msra.mxu1 %v1132_v33  ;;  %1887 = vmatprep.mubr.msk.bf16.mxu1 %vm2016_vm2, %v2015_v17 }
 0x59d   : > { %1897 = vmatprep.subr.bf16.mxu1 %v2015_v17 }
 0x5a3   : > { %1888 = vmatmul.mubr.msk.bf16.vlgmr.msra.gmra.mrb[24].mxu1 %vm771_vm3, %v1125_v34 }
 0x5a4   : > { %1899 = vmatprep.mubr.msk.bf16.mxu1 %vm2016_vm2, %v2015_v17  ;;  %1898 = vmatpush3.bf16.msra.mxu1 %v1255_v18 }
 0x5a5   : > { %1909 = vmatprep.subr.bf16.mxu1 %v2015_v17 }
 0x5fb   : > { %v1117_v35 = vpop.f32.mrb[8].mxu0 }
 0x5fc   : > { %v1883_v36 = vpop.f32.mrb[9].mxu0 }
 0x5fd   : > { %v1120_v37 = vpop.f32.mrb[10].mxu0 }
 0x5fe   : > { %v1884_v38 = vpop.f32.mrb[11].mxu0 }
 0x66e   : > { %v1070_v39 = vpop.f32.mrb[20].mxu1 }
 0x66f   : > { %v2282_v40 = vadd.f32 %v1117_v35, %v1070_v39  ;;  %v1877_v41 = vpop.f32.mrb[21].mxu1 }
 0x670   : > { %v1073_v42 = vpop.f32.mrb[22].mxu1 }
 0x671   : > { %v2284_v43 = vadd.f32 %v1120_v37, %v1073_v42  ;;  %v1878_v44 = vpop.f32.mrb[23].mxu1 }
 0x672   : > { %v768_v44 = vld [vmem:[%s2454_s9 + $0x18] sm:$0xff] }
 0x676   : > { %v1168_v45 = vpop.f32.mrb[24].mxu1 }
 0x677   : > { %v1175_v46 = vmul.f32 0.35355338, %v1168_v45  ;;  %v1889_v47 = vpop.f32.mrb[25].mxu1  ;;  %v1426_v45 = vpack.c.bf16 %v768_v44, %v768_v44 }
 0x678   : > { %v1171_v48 = vpop.f32.mrb[26].mxu1 }
 0x679   : > { %v1176_v49 = vmul.f32 0.35355338, %v1171_v48  ;;  %v1890_v50 = vpop.f32.mrb[27].mxu1  ;;  %v1177_v51 = vsel %vm821_vm6, %v1175_v46, -inf }
 0x67a   : > { %1178 = vmax.xlane.f32.xlu1 %v1177_v51 }
 0x67b   : > { %v1180_v52 = vsel %vm825_vm7, %v1176_v49, -inf }
 0x67c   : > { %1181 = vmax.xlane.f32.xlu0 %v1180_v52 }
 0x68b   : > { %1200 = vrot.lane.b32.xlu1 %v2225_v15, %s2019_s30 }
 0x68f   : > { %1300 = vrot.lane.b32.xlu1 %v2205_v57, %s2020_s21 }
 0x707   : > { %v1179_v53 = vpop.xlane.xlu1 %1178 }
 0x708   : > { %v1183_v54 = vsub.f32 %v1175_v46, %v1179_v53  ;;  %v1431_v46 = vsel %vm850_vm4, %v1426_v45, 0  ;;  %v1772_v45 = vld [vmem:[%s2457_s12] ss:$0 sm:$0xff] }
 0x709   : > { %v1182_v55 = vpop.xlane.xlu0 %1181 }
 0x70a   : > { %v1185_v56 = vmul.f32 1.442695, %v1183_v54  ;;  %v1184_v58 = vsub.f32 %v1176_v49, %v1182_v55 }
 0x70b   : > { %v1201_v59 = vpop.permute.xlu1 %1200 }
 0x70c   : > { %1983 = vpow2.f32 %v1185_v56  ;;  %v1187_v60 = vmul.f32 1.442695, %v1184_v58  ;;  %v1206_v61 = vand.u32 %v1201_v59, %v2223_v14 }
 0x70e   : > { %1985 = vpow2.f32 %v1187_v60  ;;  %1892 = vmatpush3.bf16.msra.mxu0 %v1206_v61 }
 0x70f   : > { %1903 = vmatprep.subr.bf16.mxu0 %v2015_v17 }
 0x716   : > { %v1984_v62 = vpop.eup %1983 }
 0x717   : > { %v1189_v63 = vsel %vm821_vm6, %v1984_v62, 0.0 }
 0x718   : > { %v1986_v2 = vpop.eup %1985  ;;  %1190 = vadd.xlane.f32.xlu0 %v1189_v63 }
 0x719   : > { %v1192_v57 = vsel %vm825_vm7, %v1986_v2, 0.0 }
 0x71c   : > { %1193 = vadd.xlane.f32.xlu0 %v1192_v57 }
 0x732   : > { %1302 = vrot.lane.b32.xlu0 %v2212_v3, %s2020_s21  ;;  %v1301_v3 = vpop.permute.xlu1 %1300 }
 0x7a5   : > { %v1191_v4 = vpop.xlane.xlu0 %1190 }
 0x7a6   : > { %1987 = vrcp.f32 %v1191_v4 }
 0x7a9   : > { %v1194_v5 = vpop.xlane.xlu0 %1193 }
 0x7aa   : > { %1989 = vrcp.f32 %v1194_v5  ;;  %v1770_v5 = vld [vmem:[%s2455_s10] ss:$0 sm:$0xff] }
 0x7ad   : > { %v1303_v10 = vpop.permute.xlu0 %1302 }
 0x7ae   : > { %v1308_v12 = vsel %vm771_vm3, %v1303_v10, 0 }
 0x7b0   : > { %v1988_v6 = vpop.eup %1987 }
 0x7b1   : > { %v1196_v8 = vmul.f32 %v1988_v6, %v1984_v62 }
 0x7b4   : > { %v1990_v7 = vpop.eup %1989 }
 0x7b5   : > { %v1198_v9 = vmul.f32 %v1990_v7, %v1986_v2 }
 0x7b7   : > { %v1199_v11 = vpack.c.bf16 %v1198_v9, %v1196_v8 }
 0x7b9   : > { %1894 = vmatmul.mubr.msk.bf16.vlgmr.msra.gmra.mrb[12].mxu0 %vm821_vm6, %v1199_v11 }
 0x7ba   : > { %1904 = vmatpush3.bf16.xpose.msra.mxu0 %v1308_v12  ;;  %1905 = vmatprep.mubr.msk.bf16.mxu0 %vm2016_vm2, %v2015_v17 }
 0x7bb   : > { %1915 = vmatprep.subr.bf16.mxu0 %v2015_v17 }
 0x7c1   : > { %1906 = vmatmul.mubr.msk.bf16.vlgmr.msra.gmra.mrb[16].mxu0 %vm771_vm3, %v1301_v3 }
 0x7c2   : > { %1917 = vmatprep.mubr.msk.bf16.mxu0 %vm2016_vm2, %v2015_v17  ;;  %1916 = vmatpush3.bf16.msra.mxu0 %v1431_v46 }
 0x7c3   : > { %1929 = vmatprep.subr.bf16.mxu0 %v2015_v17 }
 0x88c   : > { %v1242_v19 = vpop.f32.mrb[12].mxu0 }
 0x88d   : > { %v1895_v20 = vpop.f32.mrb[13].mxu0 }
 0x88e   : > { %v1245_v21 = vpop.f32.mrb[14].mxu0 }
 0x88f   : > { %v1249_v22 = vpack.c.bf16 %v1245_v21, %v1242_v19  ;;  %v1896_v23 = vpop.f32.mrb[15].mxu0 }
 0x891   : > { %1900 = vmatmul.mubr.msk.bf16.vlgmr.msra.gmra.mrb[28].mxu1 %vm771_vm3, %v1249_v22 }
 0x892   : > { %1911 = vmatprep.mubr.msk.bf16.mxu1 %vm2016_vm2, %v2015_v17 }
 0x894   : > { %v1344_v24 = vpop.f32.mrb[16].mxu0 }
 0x895   : > { %v1351_v25 = vmul.f32 0.35355338, %v1344_v24  ;;  %v1907_v26 = vpop.f32.mrb[17].mxu0 }
 0x896   : > { %v1347_v27 = vpop.f32.mrb[18].mxu0  ;;  %v1532_v26 = vld [vmem:[%s2458_s13 + $0x8] sm:$0xff] }
 0x897   : > { %v1352_v28 = vmul.f32 0.35355338, %v1347_v27  ;;  %v1908_v29 = vpop.f32.mrb[19].mxu0  ;;  %v1353_v30 = vsel %vm821_vm6, %v1351_v25, -inf }
 0x898   : > { %1354 = vmax.xlane.f32.xlu1 %v1353_v30  ;;  %v1534_v29 = vld [vmem:[%s2458_s13 + $0x18] sm:$0xff] }
 0x899   : > { %v1356_v31 = vsel %vm825_vm7, %v1352_v28, -inf }
 0x89a   : > { %1357 = vmax.xlane.f32.xlu0 %v1356_v31 }
 0x925   : > { %v1355_v32 = vpop.xlane.xlu1 %1354 }
 0x926   : > { %v1359_v33 = vsub.f32 %v1351_v25, %v1355_v32  ;;  %v1531_v25 = vld [vmem:[%s2458_s13] sm:$0xff] }
 0x927   : > { %v1358_v34 = vpop.xlane.xlu0 %1357  ;;  %v1536_v27 = vpack.c.bf16 %v1532_v26, %v1531_v25 }
 0x928   : > { %v1361_v35 = vmul.f32 1.442695, %v1359_v33  ;;  %v1360_v36 = vsub.f32 %v1352_v28, %v1358_v34  ;;  %v1533_v28 = vld [vmem:[%s2458_s13 + $0x10] sm:$0xff] }
 0x929   : > { %v1537_v30 = vpack.c.bf16 %v1534_v29, %v1533_v28 }
 0x92a   : > { %1991 = vpow2.f32 %v1361_v35  ;;  %v1363_v37 = vmul.f32 1.442695, %v1360_v36 }
 0x92c   : > { %1993 = vpow2.f32 %v1363_v37 }
 0x934   : > { %v1992_v38 = vpop.eup %1991 }
 0x935   : > { %v1365_v39 = vsel %vm821_vm6, %v1992_v38, 0.0 }
 0x936   : > { %v1994_v41 = vpop.eup %1993  ;;  %1366 = vadd.xlane.f32.xlu0 %v1365_v39  ;;  %v1771_v39 = vld [vmem:[%s2456_s11] ss:$0 sm:$0xff] }
 0x937   : > { %v1368_v42 = vsel %vm825_vm7, %v1994_v41, 0.0 }
 0x938   : > { %1369 = vadd.xlane.f32.xlu1 %v1368_v42 }
 0x94c   : > { %1376 = vrot.lane.b32.xlu0 %v2225_v15, %s2020_s21 }
 0x964   : > { %v1291_v47 = vpop.f32.mrb[28].mxu1 }
 0x965   : > { %v1298_v48 = vadd.f32 %v1291_v47, %v2282_v40  ;;  %v1901_v49 = vpop.f32.mrb[29].mxu1 }
 0x966   : > { %v1294_v50 = vpop.f32.mrb[30].mxu1 }
 0x967   : > { %v1299_v51 = vadd.f32 %v1294_v50, %v2284_v43  ;;  %v1902_v52 = vpop.f32.mrb[31].mxu1  ;;  %v1607_v50 = vld [vmem:[%s2460_s15] sm:$0xff] }
 0x9c3   : > { %v1367_v53 = vpop.xlane.xlu0 %1366 }
 0x9c4   : > { %1995 = vrcp.f32 %v1367_v53  ;;  %v1609_v53 = vld [vmem:[%s2460_s15 + $0x10] sm:$0xff] }
 0x9c5   : > { %v1370_v15 = vpop.xlane.xlu1 %1369 }
 0x9c6   : > { %1997 = vrcp.f32 %v1370_v15  ;;  %v1610_v15 = vld [vmem:[%s2460_s15 + $0x18] sm:$0xff] }
 0x9c7   : > { %v1377_v54 = vpop.permute.xlu0 %1376 }
 0x9c8   : > { %v1382_v55 = vand.u32 %v1377_v54, %v2223_v14  ;;  %v1625_v54 = vpack.c.bf16 %v1610_v15, %v1609_v53 }
 0x9ca   : > { %1910 = vmatpush3.bf16.msra.mxu1 %v1382_v55  ;;  %v1611_v55 = vld [vmem:[%s2460_s15 + $0x20] sm:$0xff] }
 0x9cb   : > { %1921 = vmatprep.subr.bf16.mxu1 %v2015_v17 }
 0x9ce   : > { %v1996_v56 = vpop.eup %1995 }
 0x9cf   : > { %v1372_v59 = vmul.f32 %v1996_v56, %v1992_v38  ;;  %v1612_v56 = vld [vmem:[%s2460_s15 + $0x28] sm:$0xff] }
 0x9d0   : > { %v1998_v58 = vpop.eup %1997 }
 0x9d1   : > { %v1374_v60 = vmul.f32 %v1998_v58, %v1994_v41  ;;  %v1626_v58 = vpack.c.bf16 %v1612_v56, %v1611_v55 }
 0x9d3   : > { %v1375_v40 = vpack.c.bf16 %v1374_v60, %v1372_v59  ;;  %v1613_v59 = vld [vmem:[%s2460_s15 + $0x30] sm:$0xff]  ;;  %v1614_v60 = vld [vmem:[%s2460_s15 + $0x38] sm:$0xff] }
 0x9d5   : > { %1912 = vmatmul.mubr.msk.bf16.vlgmr.msra.gmra.mrb[32].mxu1 %vm821_vm6, %v1375_v40  ;;  %v1627_v40 = vpack.c.bf16 %v1614_v60, %v1613_v59 }
 0x9d6   : > { %1925 = vmatprep.mubr.msk.bf16.mxu1 %vm2016_vm2, %v2015_v17  ;;  %1922 = vmatpush3.bf16.msra.mxu1 %v1536_v27 }
 0x9d7   : > { %1923 = vmatprep.subr.bf16.mxu1 %v2015_v17 }
 0x9da   : > { %1924 = vmatpush3.bf16.msra.mxu1 %v1537_v30 }
 0xaa8   : > { %v1418_v43 = vpop.f32.mrb[32].mxu1 }
 0xaa9   : > { %v1913_v61 = vpop.f32.mrb[33].mxu1 }
 0xaaa   : > { %v1421_v62 = vpop.f32.mrb[34].mxu1  ;;  %v1616_v61 = vld [vmem:[%s2460_s15 + $0x48] sm:$0xff] }
 0xaab   : > { %v1425_v63 = vpack.c.bf16 %v1421_v62, %v1418_v43  ;;  %v1914_v2 = vpop.f32.mrb[35].mxu1  ;;  %v1615_v43 = vld [vmem:[%s2460_s15 + $0x40] sm:$0xff] }
 0xaac   : > { %v1628_v62 = vpack.c.bf16 %v1616_v61, %v1615_v43  ;;  %v1618_v2 = vld [vmem:[%s2460_s15 + $0x58] sm:$0xff] }
 0xaad   : > { %1918 = vmatmul.mubr.msk.bf16.vlgmr.msra.gmra.mrb[20].mxu0 %vm771_vm3, %v1425_v63  ;;  %v1617_v63 = vld [vmem:[%s2460_s15 + $0x50] sm:$0xff] }
 0xaae   : > { %1945 = vmatprep.mubr.msk.bf16.mxu0 %vm2016_vm2, %v2015_v17 }
 0xb80   : > { %v1467_v14 = vpop.f32.mrb[20].mxu0 }
 0xb81   : > { %v1474_v57 = vadd.f32 %v1467_v14, %v1298_v48  ;;  %v1919_v4 = vpop.f32.mrb[21].mxu0  ;;  %v1629_v14 = vpack.c.bf16 %v1618_v2, %v1617_v63 }
 0xb82   : > { %v1470_v6 = vpop.f32.mrb[22].mxu0  ;;  %v1620_v4 = vld [vmem:[%s2460_s15 + $0x68] sm:$0xff] }
 0xb83   : > { %v1476_v7 = vadd.f32 %v1474_v57, %v2127_v0  ;;  %v1475_v8 = vadd.f32 %v1470_v6, %v1299_v51  ;;  %v1920_v9 = vpop.f32.mrb[23].mxu0  ;;  %v1608_v51 = vld [vmem:[%s2460_s15 + $0x8] sm:$0xff]  ;;  %v1619_v57 = vld [vmem:[%s2460_s15 + $0x60] sm:$0xff]  ;;  %v1621_v6 = vld [vmem:[%s2460_s15 + $0x70] sm:$0xff] }
 0xb84   : > { %v1624_v52 = vpack.c.bf16 %v1608_v51, %v1607_v50  ;;  %v1773_v9 = vld [vmem:[%s2459_s14] ss:$0 sm:$0xff] }
 0xb85   : > { %v2339_v10 = vadd.f32 %v1770_v5, %v1476_v7  ;;  %v1477_v11 = vadd.f32 %v1475_v8, %v2129_v1  ;;  %v1622_v7 = vld [vmem:[%s2460_s15 + $0x78] sm:$0xff] }
 0xb86   : > { %1930 = vmatpush3.bf16.msra.mxu0 %v1624_v52  ;;  %v1631_v8 = vpack.c.bf16 %v1622_v7, %v1621_v6 }
 0xb87   : > { %v2342_v12 = vadd.f32 %v1770_v5, %v1477_v11  ;;  %v1489_v3 = vsel %vm554_vm0, %v2339_v10, 0.0  ;;  %1931 = vmatprep.subr.bf16.mxu0 %v2015_v17  ;;  %v1630_v5 = vpack.c.bf16 %v1620_v4, %v1619_v57 }
 0xb88   : > { %1490 = vadd.xlane.f32.xlu1 %v1489_v3 }
 0xb89   : > { %v1492_v13 = vsel %vm558_vm1, %v2342_v12, 0.0 }
 0xb8a   : > { %1932 = vmatpush3.bf16.msra.mxu0 %v1625_v54 }
 0xb8b   : > { %1933 = vmatprep.subr.bf16.mxu0 %v2015_v17 }
 0xb8c   : > { %1493 = vadd.xlane.f32.xlu1 %v1492_v13 }
 0xb8e   : > { %1934 = vmatpush3.bf16.msra.mxu0 %v1626_v58 }
 0xb8f   : > { %1935 = vmatprep.subr.bf16.mxu0 %v2015_v17 }
 0xb92   : > { %1936 = vmatpush3.bf16.msra.mxu0 %v1627_v40 }
 0xb93   : > { %1937 = vmatprep.subr.bf16.mxu0 %v2015_v17 }
 0xb96   : > { %1938 = vmatpush3.bf16.msra.mxu0 %v1628_v62 }
 0xb97   : > { %1939 = vmatprep.subr.bf16.mxu0 %v2015_v17 }
 0xb9a   : > { %1940 = vmatpush3.bf16.msra.mxu0 %v1629_v14 }
 0xb9b   : > { %1941 = vmatprep.subr.bf16.mxu0 %v2015_v17 }
 0xb9e   : > { %1942 = vmatpush3.bf16.msra.mxu0 %v1630_v5 }
 0xb9f   : > { %1943 = vmatprep.subr.bf16.mxu0 %v2015_v17 }
 0xba2   : > { %1944 = vmatpush3.bf16.msra.mxu0 %v1631_v8 }
 0xc15   : > { %v1491_v16 = vpop.xlane.xlu1 %1490 }
 0xc16   : > { %v1495_v18 = vmul.f32 0.03125, %v1491_v16 }
 0xc18   : > { %v1497_v0 = vsub.f32 %v2339_v10, %v1495_v18 }
 0xc19   : > { %v1494_v19 = vpop.xlane.xlu1 %1493 }
 0xc1a   : > { %v1496_v20 = vmul.f32 0.03125, %v1494_v19  ;;  %v1499_v21 = vmul.f32 %v1497_v0, %v1497_v0 }
 0xc1c   : > { %v1498_v22 = vsub.f32 %v2342_v12, %v1496_v20  ;;  %v1501_v1 = vsel %vm554_vm0, %v1499_v21, 0.0 }
 0xc1d   : > { %1502 = vadd.xlane.f32.xlu1 %v1501_v1 }
 0xc1e   : > { %v1500_v23 = vmul.f32 %v1498_v22, %v1498_v22 }
 0xc20   : > { %v1504_v24 = vsel %vm558_vm1, %v1500_v23, 0.0 }
 0xc21   : > { %1505 = vadd.xlane.f32.xlu1 %v1504_v24 }
 0xcaa   : > { %v1503_v31 = vpop.xlane.xlu1 %1502 }
 0xcab   : > { %v1507_v32 = vmul.f32 0.03125, %v1503_v31 }
 0xcad   : > { %v1509_v33 = vadd.f32 1e-05, %v1507_v32 }
 0xcae   : > { %v1506_v34 = vpop.xlane.xlu1 %1505 }
 0xcaf   : > { %1999 = vrsqrt.f32 %v1509_v33  ;;  %v1508_v35 = vmul.f32 0.03125, %v1506_v34 }
 0xcb1   : > { %v1510_v36 = vadd.f32 1e-05, %v1508_v35 }
 0xcb3   : > { %2001 = vrsqrt.f32 %v1510_v36 }
 0xcb9   : > { %v2000_v37 = vpop.eup %1999 }
 0xcba   : > { %v1513_v38 = vmul.f32 %v2000_v37, %v1497_v0  ;;  %v1775_v37 = vld [vmem:[%s2461_s16] ss:$0 sm:$0xff] }
 0xcbc   : > { %v1521_v42 = vmul.f32 %v1771_v39, %v1513_v38 }
 0xcbd   : > { %v2002_v41 = vpop.eup %2001 }
 0xcbe   : > { %v1514_v44 = vmul.f32 %v2002_v41, %v1498_v22  ;;  %v1529_v47 = vadd.f32 %v1772_v45, %v1521_v42 }
 0xcc0   : > { %v1522_v46 = vmul.f32 %v1771_v39, %v1514_v44 }
 0xcc2   : > { %v1530_v48 = vadd.f32 %v1772_v45, %v1522_v46 }
 0xcc4   : > { %v1535_v49 = vpack.c.bf16 %v1530_v48, %v1529_v47 }
 0xcc6   : > { %1926 = vmatmul.mubr.msk.bf16.vlgmr.msra.gmra.mrb[36].mxu1 %vm554_vm0, %v1535_v49 }
 0xd99   : > { %v1582_v11 = vpop.f32.mrb[36].mxu1 }
 0xd9a   : > { %v1583_v3 = vadd.f32 %v1773_v9, %v1582_v11  ;;  %v1927_v13 = vpop.f32.mrb[37].mxu1 }
 0xd9b   : > { %v1585_v16 = vpop.f32.mrb[38].mxu1 }
 0xd9c   : > { %v1589_v18 = vmul.f32 %v1583_v3, %v1583_v3  ;;  %v1586_v17 = vadd.f32 %v1773_v9, %v1585_v16  ;;  %v1928_v0 = vpop.f32.mrb[39].mxu1 }
 0xd9e   : > { %v1591_v19 = vmul.f32 %v1589_v18, %v1583_v3  ;;  %v1590_v20 = vmul.f32 %v1586_v17, %v1586_v17 }
 0xda0   : > { %v1593_v21 = vmul.f32 0.044715, %v1591_v19  ;;  %v1592_v22 = vmul.f32 %v1590_v20, %v1586_v17 }
 0xda2   : > { %v1595_v1 = vadd.f32 %v1593_v21, %v1583_v3  ;;  %v1594_v23 = vmul.f32 0.044715, %v1592_v22 }
 0xda4   : > { %v1597_v24 = vmul.f32 0.7978846, %v1595_v1  ;;  %v1596_v25 = vadd.f32 %v1594_v23, %v1586_v17 }
 0xda6   : > { %2003 = vtanh.f32 %v1597_v24  ;;  %v1598_v26 = vmul.f32 0.7978846, %v1596_v25 }
 0xda8   : > { %2005 = vtanh.f32 %v1598_v26 }
 0xdb0   : > { %v2004_v27 = vpop.eup %2003 }
 0xdb1   : > { %v1601_v28 = vadd.f32 1.0, %v2004_v27 }
 0xdb2   : > { %v2006_v29 = vpop.eup %2005 }
 0xdb3   : > { %v1603_v30 = vmul.f32 0.5, %v1601_v28  ;;  %v1602_v31 = vadd.f32 1.0, %v2006_v29 }
 0xdb5   : > { %v1604_v32 = vmul.f32 0.5, %v1602_v31  ;;  %v1605_v33 = vmul.f32 %v1603_v30, %v1583_v3 }
 0xdb7   : > { %v1606_v34 = vmul.f32 %v1604_v32, %v1586_v17 }
 0xdb9   : > { %v1623_v35 = vpack.c.bf16 %v1606_v34, %v1605_v33 }
 0xdbb   : > { %1946 = vmatmul.mubr.bf16.vlgmr.msra.gmra.mrb[24].mxu0 %v1623_v35 }
 0xe8e   : > { %v1666_v36 = vpop.f32.mrb[24].mxu0 }
 0xe8f   : > { %v1673_v38 = vadd.f32 %v1666_v36, %v2339_v10  ;;  %v1947_v39 = vpop.f32.mrb[25].mxu0 }
 0xe90   : > { %v1669_v41 = vpop.f32.mrb[26].mxu0 }
 0xe91   : > { %v1682_v42 = vadd.f32 %v1775_v37, %v1673_v38  ;;  %v1674_v44 = vadd.f32 %v1669_v41, %v2342_v12  ;;  %v1948_v45 = vpop.f32.mrb[27].mxu0 }
 0xe93   : > { %1684 = vst.msk [vmem:[%s548_s19] sm:$0xff] %vm554_vm0, %v1682_v42  ;;  %v1683_v46 = vadd.f32 %v1775_v37, %v1674_v44 }
 0xe95   : > { %1685 = vst.msk [vmem:[%s548_s19 + $0x8] sm:$0x1] %vm558_vm1, %v1683_v46 }
 0xe96 PF: > { %s27_s24 = sadd.s32 1, %s2013_s24  }
 0xe97   : > { %p24_p4 = scmp.ge.s32.totalorder %s27_s24, 4  }
 0xe99   :  { %26 = sbr.rel (!%p24_p4) target bundleno = 3 (0x3), region = 118 }

// kernel: llama_adapter_forward.17
= control target key start
LH: loop header
LB: loop body
LE: loop exit
PB: predicated region body
PF: predicated region fallthrough
CT: control target
= control target key end

     0   :  { %s3952_s0 = inlined_call_operand.vmem [shape: f32[2,8,32], index: 0, kind: input, shape index: {}]   ;;  %s3953_s1 = inlined_call_operand.vmem [shape: f32[2,4,32], index: 1, kind: input, shape index: {}]   ;;  %s3954_s2 = inlined_call_operand.vmem [shape: f32[8,4], index: 2, kind: input, shape index: {}]   ;;  %s3955_s3 = inlined_call_operand.vmem [shape: f32[8,4], index: 3, kind: input, shape index: {}]   ;;  %s3956_s4 = inlined_call_operand.vmem [shape: f32[1,32], index: 4, kind: input, shape index: {}]   ;;  %s3957_s5 = inlined_call_operand.vmem [shape: f32[32,32], index: 5, kind: input, shape index: {}]   ;;  %s3958_s6 = inlined_call_operand.vmem [shape: f32[1,32], index: 6, kind: input, shape index: {}]   ;;  %s3959_s7 = inlined_call_operand.vmem [shape: f32[32,32], index: 7, kind: input, shape index: {}]   ;;  %s3960_s8 = inlined_call_operand.vmem [shape: f32[32,32], index: 8, kind: input, shape index: {}]   ;;  %s3961_s9 = inlined_call_operand.vmem [shape: f32[32,32], index: 9, kind: input, shape index: {}]   ;;  %s3962_s10 = inlined_call_operand.vmem [shape: f32[1,32], index: 10, kind: input, shape index: {}]   ;;  %s3963_s11 = inlined_call_operand.vmem [shape: f32[1,4], index: 11, kind: input, shape index: {}]   ;;  %s3964_s12 = inlined_call_operand.vmem [shape: f32[1,32], index: 12, kind: input, shape index: {}]   ;;  %s3965_s13 = inlined_call_operand.vmem [shape: f32[32,96], index: 13, kind: input, shape index: {}]   ;;  %s3966_s14 = inlined_call_operand.vmem [shape: f32[1,96], index: 14, kind: input, shape index: {}]   ;;  %s3967_s15 = inlined_call_operand.vmem [shape: f32[32,96], index: 15, kind: input, shape index: {}]   ;;  %s3968_s16 = inlined_call_operand.vmem [shape: f32[1,96], index: 16, kind: input, shape index: {}]   ;;  %s3969_s17 = inlined_call_operand.vmem [shape: f32[96,32], index: 17, kind: input, shape index: {}]   ;;  %s3970_s18 = inlined_call_operand.vmem [shape: f32[1,32], index: 18, kind: input, shape index: {}]   ;;  %s3971_s19 = inlined_call_operand.vmem [shape: f32[2,8,32], index: 19, kind: output, shape index: {}]  }
   0x1   :  { %3972 = sst [smem:[#allocation2_spill]] %s3952_s0  ;;  %s3427_s0 = smov 0  }
   0x2   :  { %3973 = sst [smem:[#allocation3_spill]] %s3953_s1 }
   0x3   :  { %3974 = sst [smem:[#allocation4_spill]] %s3954_s2 }
   0x4   :  { %3975 = sst [smem:[#allocation5_spill]] %s3955_s3 }
   0x5 LB: > { %s2814_s30 = sadd.s32 4294967295, %s3305_s0   ;;  %p2818_p0 = scmp.ge.s32.totalorder %s3305_s0, 1  ;;  %s3305_s0 = sphi %s3427_s0, %s29_s0  }
   0x6   : > { %p545_p1 = scmp.lt.s32.totalorder %s3305_s0, 3 }
   0x8   : > { %p546_p2 = pnand %p2818_p0, %p545_p1 }
   0x9   : > { %p603_p3 = scmp.lt.s32.totalorder (!%p546_p2), %s2814_s30, 1  ;;  %s3976_s22 = sld [smem:[#allocation2_spill]] (!%p546_p2)  ;;  %vm621_vm0 = vcmask (!%p546_p2), 261120   ;;  %v637_v3 = vld [vmem:[%s3957_s5] sm:$0xff] (!%p546_p2)  ;;  %v638_v4 = vld [vmem:[%s3957_s5 + $0x8] sm:$0xff] (!%p546_p2)  ;;  %v639_v5 = vld [vmem:[%s3957_s5 + $0x10] sm:$0xff] (!%p546_p2) }
   0xa   : > { %549 = sbr.rel (%p546_p2) target bundleno = 4305 (0x10d1), region = 96  ;;  %v3307_v6 = vmov (!%p546_p2), 0.0   ;;  %v642_v7 = vpack.c.bf16 (!%p546_p2), %v638_v4, %v637_v3  ;;  %v640_v8 = vld [vmem:[%s3957_s5 + $0x18] sm:$0xff] (!%p546_p2)  ;;  %vm3308_vm1 = vmmov (!%p546_p2), 0   ;;  %v694_v10 = vld [vmem:[%s3959_s7] sm:$0xff] (!%p546_p2)  ;;  %v695_v11 = vld [vmem:[%s3959_s7 + $0x8] sm:$0xff] (!%p546_p2) }
   0xb   : > { %2953 = vmatprep.subr.bf16.mxu0 (!%p546_p2), %v3307_v6  ;;  %2957 = vmatprep.mubr.msk.bf16.mxu0 (!%p546_p2), %vm3308_vm1, %v3307_v6  ;;  %v643_v9 = vpack.c.bf16 (!%p546_p2), %v640_v8, %v639_v5  ;;  %v698_v12 = vpack.c.bf16 (!%p546_p2), %v695_v11, %v694_v10  ;;  %v696_v13 = vld [vmem:[%s3959_s7 + $0x10] sm:$0xff] (!%p546_p2)  ;;  %v697_v14 = vld [vmem:[%s3959_s7 + $0x18] sm:$0xff] (!%p546_p2)  ;;  %s3977_s21 = sld [smem:[#allocation3_spill]] (!%p546_p2)  ;;  %s3978_s24 = sld [smem:[#allocation5_spill]] (!%p546_p2)  ;;  %v2822_v24 = vld [vmem:[%s3956_s4] ss:$0 sm:$0xff] (!%p546_p2) }
   0xc   : > { %2977 = vmatprep.subr.bf16.mxu1 (!%p546_p2), %v3307_v6  ;;  %2981 = vmatprep.mubr.msk.bf16.mxu1 (!%p546_p2), %vm3308_vm1, %v3307_v6  ;;  %v699_v15 = vpack.c.bf16 (!%p546_p2), %v697_v14, %v696_v13  ;;  %s3979_s26 = sld [smem:[#allocation4_spill]] (!%p546_p2)  ;;  %v740_v28 = vld [vmem:[%s3960_s8] sm:$0xff] (!%p546_p2)  ;;  %v741_v29 = vld [vmem:[%s3960_s8 + $0x8] sm:$0xff] (!%p546_p2)  ;;  %v742_v31 = vld [vmem:[%s3960_s8 + $0x10] sm:$0xff] (!%p546_p2)  ;;  %s3310_s29 = smov (!%p546_p2), 124   ;;  %vm922_vm2 = vcmask (!%p546_p2), 31744  }
   0xd   : > { %2954 = vmatpush3.bf16.msra.mxu0 (!%p546_p2), %v642_v7  ;;  %2978 = vmatpush3.bf16.msra.mxu1 (!%p546_p2), %v698_v12  ;;  %v744_v30 = vpack.c.bf16 (!%p546_p2), %v741_v29, %v740_v28  ;;  %v743_v32 = vld [vmem:[%s3960_s8 + $0x18] sm:$0xff] (!%p546_p2)  ;;  %v2823_v46 = vld [vmem:[%s3958_s6] ss:$0 sm:$0xff] (!%p546_p2)  ;;  %vm1195_vm3 = vcmask (!%p546_p2), 1043456   ;;  %vm1138_vm4 = vcmask (!%p546_p2), 1041408   ;;  %vm1017_vm6 = vcmask (!%p546_p2), 64512  }
   0xe   : > { %2955 = vmatprep.subr.bf16.mxu0 (!%p546_p2), %v3307_v6  ;;  %2979 = vmatprep.subr.bf16.mxu1 (!%p546_p2), %v3307_v6  ;;  %v745_v33 = vpack.c.bf16 (!%p546_p2), %v743_v32, %v742_v31  ;;  %s3314_s23 = smov (!%p546_p2), 120   ;;  %s3316_s25 = smov (!%p546_p2), 16   ;;  %vm2695_vm7 = vcmask (!%p546_p2), 785408  }
   0xf   : > { %s3325_s3 = smov (!%p546_p2), 100  }
  0x11   : > { %s3981_s30 = smov (!%p603_p3, %s2814_s30), 1  ;;  %2956 = vmatpush3.bf16.msra.mxu0 %v643_v9  ;;  %2980 = vmatpush3.bf16.msra.mxu1 %v699_v15  ;;  %v3491_v18 = vld [vmem:[%s3978_s24] sm:$0xff]  ;;  %s3315_s24 = smov 20  }
  0x12   : > { %s2819_s20 = sshll.u32 %s3981_s30, 3  ;;  %2961 = vmatprep.subr.bf16.mxu0 %v3307_v6  ;;  %s2820_s27 = sshll.u32 %s3981_s30, 2  ;;  %2993 = vmatprep.subr.bf16.mxu1 %v3307_v6  ;;  %v3496_v19 = vld [vmem:[%s3979_s26] sm:$0xff] }
  0x13   : > { %s3443_s2 = scalar_lea.vmem %s3976_s22, %s2819_s20  ;;  %s610_s1 = scalar_lea.vmem %s3977_s21, %s2820_s27 }
  0x14   : > { %v616_v0 = vld [vmem:[%s3443_s2] sm:$0xff]  ;;  %s3309_s27 = smov 4   ;;  %s3311_s21 = smov 12  }
  0x15   : > { %v620_v1 = vmul.f32 %v616_v0, %v616_v0  ;;  %v786_v16 = vld [vmem:[%s610_s1] sm:$0xf]  ;;  %884 = vrot.lane.b32.xlu1 %v3491_v18, %s3309_s27  ;;  %s3312_s1 = smov 8   ;;  %s3313_s22 = smov 116  }
  0x16   : > { %v787_v17 = vpack.c.bf16 %v786_v16, %v786_v16 }
  0x17   : > { %v622_v2 = vsel %vm621_vm0, %v620_v1, 0.0 }
  0x18   : > { %623 = vadd.xlane.f32.xlu0 %v622_v2  ;;  %2982 = vmatmul.mubr.msk.bf16.vlgmr.msra.gmra.mrb[0].mxu1 %vm621_vm0, %v787_v17 }
  0x19   : > { %2995 = vmatprep.mubr.msk.bf16.mxu1 %vm3308_vm1, %v3307_v6 }
  0x2e   : > { %895 = vrot.lane.b32.xlu0 %v3496_v19, %s3309_s27 }
  0x87   : > { %v885_v56 = vpop.permute.xlu1 %884 }
  0xa5   : > { %v624_v20 = vpop.xlane.xlu0 %623 }
  0xa6   : > { %v626_v21 = vmul.f32 0.03125, %v624_v20 }
  0xa8   : > { %v627_v22 = vadd.f32 1e-05, %v626_v21 }
  0xa9   : > { %v896_v42 = vpop.permute.xlu0 %895 }
  0xaa   : > { %3258 = vrsqrt.f32 %v627_v22 }
  0xb4   : > { %v3259_v23 = vpop.eup %3258 }
  0xb5   : > { %v629_v25 = vmul.f32 %v3259_v23, %v616_v0 }
  0xb7   : > { %v636_v26 = vmul.f32 %v2822_v24, %v629_v25 }
  0xb9   : > { %v641_v27 = vpack.c.bf16 %v636_v26, %v636_v26 }
  0xbb   : > { %2958 = vmatmul.mubr.msk.bf16.vlgmr.msra.gmra.mrb[0].mxu0 %vm621_vm0, %v641_v27 }
  0xbc   : > { %2962 = vmatpush3.bf16.msra.mxu0 %v698_v12  ;;  %2965 = vmatprep.mubr.msk.bf16.mxu0 %vm3308_vm1, %v3307_v6 }
  0xbd   : > { %2963 = vmatprep.subr.bf16.mxu0 %v3307_v6 }
  0xc0   : > { %2964 = vmatpush3.bf16.msra.mxu0 %v699_v15 }
  0xc1   : > { %2969 = vmatprep.subr.bf16.mxu0 %v3307_v6 }
  0xc3   : > { %2966 = vmatmul.mubr.msk.bf16.vlgmr.msra.gmra.mrb[4].mxu0 %vm621_vm0, %v641_v27 }
  0xc4   : > { %2970 = vmatpush3.bf16.msra.mxu0 %v744_v30  ;;  %2973 = vmatprep.mubr.msk.bf16.mxu0 %vm3308_vm1, %v3307_v6 }
  0xc5   : > { %2971 = vmatprep.subr.bf16.mxu0 %v3307_v6 }
  0xc8   : > { %2972 = vmatpush3.bf16.msra.mxu0 %v745_v33 }
  0xc9   : > { %2985 = vmatprep.subr.bf16.mxu0 %v3307_v6 }
  0xcb   : > { %2974 = vmatmul.mubr.msk.bf16.vlgmr.msra.gmra.mrb[8].mxu0 %vm621_vm0, %v641_v27  ;;  %v872_v27 = vlaneseq }
  0xcc   : > { %2986 = vmatpush3.bf16.msra.mxu0 %v744_v30  ;;  %2989 = vmatprep.mubr.msk.bf16.mxu0 %vm3308_vm1, %v3307_v6 }
  0xcd   : > { %2987 = vmatprep.subr.bf16.mxu0 %v3307_v6  ;;  %v873_v28 = vshrl.u32 %v872_v27, 7  ;;  %v875_v29 = vand.u32 127, %v872_v27 }
  0xcf   : > { %vm876_vm5 = vcmp.gt.s32.totalorder %v875_v29, %v873_v28 }
  0xd0   : > { %2988 = vmatpush3.bf16.msra.mxu0 %v745_v33  ;;  %v3594_v32 = vsel %vm876_vm5, -1e+30, %v3307_v6 }
  0xd1   : > { %3005 = vmatprep.subr.bf16.mxu0 %v3307_v6 }
  0xd3   : > { %2990 = vmatmul.mubr.msk.bf16.vlgmr.msra.gmra.mrb[12].mxu0 %vm621_vm0, %v787_v17 }
  0xd4   : > { %3007 = vmatprep.mubr.msk.bf16.mxu0 %vm3308_vm1, %v3307_v6 }
  0xeb   : > { %v825_v34 = vpop.f32.mrb[0].mxu1 }
  0xec   : > { %v2983_v35 = vpop.f32.mrb[1].mxu1  ;;  %v3539_v48 = vpack.c.bf16 %v825_v34, %v825_v34 }
  0xed   : > { %v828_v36 = vpop.f32.mrb[2].mxu1 }
  0xee   : > { %v2984_v37 = vpop.f32.mrb[3].mxu1  ;;  %v1079_v14 = vsel %vm922_vm2, %v3539_v48, 0 }
 0x18e   : > { %v688_v38 = vpop.f32.mrb[0].mxu0 }
 0x18f   : > { %v2959_v39 = vpop.f32.mrb[1].mxu0  ;;  %v3542_v50 = vadd.f32 %v2823_v46, %v688_v38 }
 0x190   : > { %v691_v40 = vpop.f32.mrb[2].mxu0 }
 0x191   : > { %v2960_v41 = vpop.f32.mrb[3].mxu0  ;;  %v898_v52 = vmul.f32 %v896_v42, %v3542_v50  ;;  %v887_v59 = vmul.f32 %v885_v56, %v3542_v50  ;;  %v893_v7 = vmul.f32 %v3542_v50, %v3491_v18  ;;  %v882_v20 = vmul.f32 %v3542_v50, %v3496_v19 }
 0x196   : > { %v3533_v43 = vpop.f32.mrb[4].mxu0 }
 0x197   : > { %v2967_v44 = vpop.f32.mrb[5].mxu0  ;;  %v912_v45 = vmul.f32 %v896_v42, %v3533_v43  ;;  %v905_v57 = vmul.f32 %v885_v56, %v3533_v43  ;;  %v911_v63 = vmul.f32 %v3533_v43, %v3491_v18  ;;  %v904_v11 = vmul.f32 %v3533_v43, %v3496_v19 }
 0x198   : > { %v737_v47 = vpop.f32.mrb[6].mxu0 }
 0x199   : > { %v2968_v49 = vpop.f32.mrb[7].mxu0  ;;  %914 = vrot.lane.b32.xlu1 %v912_v45, %s3310_s29 }
 0x19d   : > { %1033 = vrot.lane.b32.xlu1 %v3539_v48, %s3310_s29 }
 0x19e   : > { %v780_v51 = vpop.f32.mrb[8].mxu0 }
 0x19f   : > { %v2975_v53 = vpop.f32.mrb[9].mxu0  ;;  %v3577_v22 = vpack.c.bf16 %v780_v51, %v780_v51 }
 0x1a0   : > { %v783_v54 = vpop.f32.mrb[10].mxu0 }
 0x1a1   : > { %v2976_v55 = vpop.f32.mrb[11].mxu0  ;;  %900 = vrot.lane.b32.xlu1 %v898_v52, %s3310_s29  ;;  %v1197_v24 = vsel %vm1195_vm3, %v3577_v22, 0 }
 0x1a5   : > { %907 = vrot.lane.b32.xlu1 %v905_v57, %s3310_s29 }
 0x1a6   : > { %v865_v58 = vpop.f32.mrb[12].mxu0 }
 0x1a7   : > { %v2991_v60 = vpop.f32.mrb[13].mxu0  ;;  %v3588_v25 = vpack.c.bf16 %v865_v58, %v865_v58 }
 0x1a8   : > { %v868_v61 = vpop.f32.mrb[14].mxu0 }
 0x1a9   : > { %889 = vrot.lane.b32.xlu1 %v887_v59, %s3310_s29  ;;  %v2992_v62 = vpop.f32.mrb[15].mxu0  ;;  %v1140_v26 = vsel %vm1138_vm4, %v3588_v25, 0 }
 0x1ad   : > { %1258 = vrot.lane.b32.xlu1 %v3496_v19, %s3311_s21 }
 0x20b   : > { %v915_v0 = vpop.permute.xlu1 %914 }
 0x20c   : > { %v917_v1 = vadd.f32 %v915_v0, %v911_v63 }
 0x20e   : > { %v921_v2 = vpack.c.bf16 %v917_v1, %v917_v1 }
 0x20f   : > { %v1034_v3 = vpop.permute.xlu1 %1033 }
 0x210   : > { %v927_v4 = vsel %vm922_vm2, %v921_v2, 0  ;;  %v1036_v5 = vsel %vm922_vm2, %v1034_v3, 0 }
 0x211   : > { %2994 = vmatpush3.bf16.xpose.msra.mxu1 %v927_v4  ;;  %3006 = vmatpush3.bf16.xpose.msra.mxu0 %v1036_v5 }
 0x212   : > { %3011 = vmatprep.subr.bf16.mxu0 %v3307_v6  ;;  %2999 = vmatprep.subr.bf16.mxu1 %v3307_v6 }
 0x213   : > { %v901_v8 = vpop.permute.xlu1 %900 }
 0x214   : > { %v903_v9 = vadd.f32 %v901_v8, %v893_v7 }
 0x216   : > { %v920_v10 = vpack.c.bf16 %v903_v9, %v903_v9 }
 0x217   : > { %v908_v12 = vpop.permute.xlu1 %907 }
 0x218   : > { %v910_v13 = vsub.f32 %v904_v11, %v908_v12  ;;  %2996 = vmatmul.mubr.msk.bf16.vlgmr.msra.gmra.mrb[4].mxu1 %vm922_vm2, %v920_v10  ;;  %3008 = vmatmul.mubr.msk.bf16.vlgmr.msra.gmra.mrb[16].mxu0 %vm922_vm2, %v920_v10 }
 0x219   : > { %3012 = vmatpush3.bf16.xpose.msra.mxu0 %v1079_v14  ;;  %3001 = vmatprep.mubr.msk.bf16.mxu1 %vm3308_vm1, %v3307_v6 }
 0x21a   : > { %v919_v15 = vpack.c.bf16 %v910_v13, %v910_v13  ;;  %3013 = vmatprep.mubr.msk.bf16.mxu0 %vm3308_vm1, %v3307_v6  ;;  %3023 = vmatprep.subr.bf16.mxu0 %v3307_v6 }
 0x21b   : > { %v890_v16 = vpop.permute.xlu1 %889 }
 0x21c   : > { %v973_v17 = vsel %vm922_vm2, %v919_v15, 0  ;;  %v892_v21 = vsub.f32 %v882_v20, %v890_v16 }
 0x21d   : > { %3000 = vmatpush3.bf16.xpose.msra.mxu1 %v973_v17 }
 0x21e   : > { %3017 = vmatprep.subr.bf16.mxu1 %v3307_v6  ;;  %v918_v23 = vpack.c.bf16 %v892_v21, %v892_v21 }
 0x21f   : > { %v1259_v45 = vpop.permute.xlu1 %1258 }
 0x220   : > { %v1261_v46 = vmul.f32 %v1259_v45, %v3542_v50  ;;  %v1275_v47 = vmul.f32 %v1259_v45, %v3533_v43 }
 0x224   : > { %3002 = vmatmul.mubr.msk.bf16.vlgmr.msra.gmra.mrb[4].mxu1 %vm922_vm2, %v918_v23  ;;  %3014 = vmatmul.mubr.msk.bf16.vlgmr.msra.gmra.mrb[16].mxu0 %vm922_vm2, %v918_v23 }
 0x225   : > { %3024 = vmatpush3.bf16.msra.mxu0 %v1197_v24  ;;  %3019 = vmatprep.mubr.msk.bf16.mxu1 %vm3308_vm1, %v3307_v6 }
 0x226   : > { %3025 = vmatprep.mubr.msk.bf16.mxu0 %vm3308_vm1, %v3307_v6  ;;  %3041 = vmatprep.subr.bf16.mxu0 %v3307_v6 }
 0x227   : > { %3018 = vmatpush3.bf16.msra.mxu1 %v1140_v26 }
 0x228   : > { %3029 = vmatprep.subr.bf16.mxu1 %v3307_v6 }
 0x2f7   : > { %v1009_v30 = vpop.f32.mrb[4].mxu1  ;;  %v1115_v31 = vpop.f32.mrb[16].mxu0 }
 0x2f8   : > { %v1015_v33 = vmul.f32 0.35355338, %v1009_v30  ;;  %v1121_v34 = vmul.f32 0.35355338, %v1115_v31  ;;  %v3003_v35 = vpop.f32.mrb[5].mxu1  ;;  %v3015_v36 = vpop.f32.mrb[17].mxu0 }
 0x2f9   : > { %v1012_v37 = vpop.f32.mrb[6].mxu1  ;;  %v1118_v38 = vpop.f32.mrb[18].mxu0 }
 0x2fa   : > { %v3004_v39 = vpop.f32.mrb[7].mxu1  ;;  %v3016_v40 = vpop.f32.mrb[19].mxu0  ;;  %v1122_v41 = vsel %vm922_vm2, %v1121_v34, -inf  ;;  %v1016_v42 = vadd.f32 %v1015_v33, %v3594_v32 }
 0x2fb   : > { %1123 = vmax.xlane.f32.xlu1 %v1122_v41 }
 0x2fc   : > { %v1018_v44 = vsel %vm1017_vm6, %v1016_v42, -inf }
 0x2fd   : > { %1019 = vmax.xlane.f32.xlu0 %v1018_v44 }
 0x30c   : > { %1254 = vrot.lane.b32.xlu1 %v3491_v18, %s3312_s1 }
 0x310   : > { %1263 = vrot.lane.b32.xlu1 %v1261_v46, %s3310_s29 }
 0x313   : > { %1245 = vrot.lane.b32.xlu0 %v3491_v18, %s3311_s21 }
 0x317   : > { %1277 = vrot.lane.b32.xlu0 %v1275_v47, %s3310_s29 }
 0x31b   : > { %1241 = vrot.lane.b32.xlu0 %v3496_v19, %s3312_s1 }
 0x388   : > { %v1124_v54 = vpop.xlane.xlu1 %1123 }
 0x389   : > { %v1125_v55 = vsub.f32 %v1121_v34, %v1124_v54 }
 0x38a   : > { %v1020_v49 = vpop.xlane.xlu0 %1019 }
 0x38b   : > { %v1126_v56 = vmul.f32 1.442695, %v1125_v55  ;;  %v1021_v57 = vsub.f32 %v1016_v42, %v1020_v49 }
 0x38c   : > { %v1255_v63 = vpop.permute.xlu1 %1254 }
 0x38d   : > { %3260 = vpow2.f32 %v1126_v56  ;;  %v1022_v58 = vmul.f32 1.442695, %v1021_v57  ;;  %v1274_v1 = vmul.f32 %v1255_v63, %v3533_v43  ;;  %v1257_v4 = vmul.f32 %v1255_v63, %v3542_v50 }
 0x38e   : > { %v1246_v51 = vpop.permute.xlu0 %1245 }
 0x38f   : > { %v1248_v52 = vmul.f32 %v1246_v51, %v3542_v50  ;;  %v1268_v53 = vmul.f32 %v1246_v51, %v3533_v43  ;;  %3262 = vpow2.f32 %v1022_v58 }
 0x390   : > { %v1264_v3 = vpop.permute.xlu1 %1263 }
 0x391   : > { %1250 = vrot.lane.b32.xlu0 %v1248_v52, %s3310_s29  ;;  %1270 = vrot.lane.b32.xlu1 %v1268_v53, %s3310_s29  ;;  %v1266_v5 = vadd.f32 %v1264_v3, %v1257_v4 }
 0x392   : > { %v1278_v0 = vpop.permute.xlu0 %1277 }
 0x393   : > { %v1280_v2 = vadd.f32 %v1278_v0, %v1274_v1  ;;  %v1283_v8 = vpack.c.bf16 %v1266_v5, %v1266_v5 }
 0x395   : > { %v1284_v7 = vpack.c.bf16 %v1280_v2, %v1280_v2 }
 0x396   : > { %v1242_v9 = vpop.permute.xlu0 %1241 }
 0x397   : > { %v3261_v59 = vpop.eup %3260  ;;  %v1267_v10 = vmul.f32 %v1242_v9, %v3533_v43  ;;  %v1244_v13 = vmul.f32 %v1242_v9, %v3542_v50 }
 0x398   : > { %v1128_v60 = vsel %vm922_vm2, %v3261_v59, 0.0 }
 0x399   : > { %v3263_v61 = vpop.eup %3262 }
 0x39a   : > { %v1024_v62 = vsel %vm1017_vm6, %v3263_v61, 0.0 }
 0x3b0   : > { %1129 = vadd.xlane.f32.xlu0 %v1128_v60 }
 0x3b5   : > { %1025 = vadd.xlane.f32.xlu1 %v1024_v62 }
 0x3c6   : > { %1403 = vrot.lane.b32.xlu1 %v3539_v48, %s3313_s22  ;;  %1289 = vrot.lane.b32.xlu0 %v1284_v7, %s3314_s23  ;;  %s3319_s22 = smov 112  }
 0x3ca   : > { %1286 = vrot.lane.b32.xlu1 %v1283_v8, %s3314_s23 }
 0x3ce   : > { %1448 = vrot.lane.b32.xlu1 %v3539_v48, %s3314_s23 }
 0x403   : > { %v1251_v11 = vpop.permute.xlu0 %1250  ;;  %v1271_v12 = vpop.permute.xlu1 %1270 }
 0x404   : > { %v1273_v14 = vsub.f32 %v1267_v10, %v1271_v12  ;;  %v1253_v15 = vsub.f32 %v1244_v13, %v1251_v11  ;;  %v3317_v12 = vmov 0   ;;  %v3318_v13 = vmov 1  }
 0x405   : > { %3253 = vset.pattern.permute.xlu1 %v3317_v12  ;;  %3254 = vset.pattern.permute.xlu0 %v3318_v13 }
 0x406   : > { %v1282_v16 = vpack.c.bf16 %v1273_v14, %v1273_v14  ;;  %v1281_v17 = vpack.c.bf16 %v1253_v15, %v1253_v15 }
 0x408   : > { %1341 = vrot.lane.b32.xlu0 %v1282_v16, %s3314_s23 }
 0x40c   : > { %1338 = vrot.lane.b32.xlu0 %v1281_v17, %s3314_s23 }
 0x43d   : > { %v1130_v20 = vpop.xlane.xlu0 %1129 }
 0x43e   : > { %3264 = vrcp.f32 %v1130_v20 }
 0x441   : > { %v1290_v26 = vpop.permute.xlu0 %1289 }
 0x442   : > { %v1026_v21 = vpop.xlane.xlu1 %1025  ;;  %v1295_v30 = vsel %vm922_vm2, %v1290_v26, 0 }
 0x443   : > { %3266 = vrcp.f32 %v1026_v21 }
 0x446   : > { %v1404_v27 = vpop.permute.xlu1 %1403 }
 0x447   : > { %v1406_v35 = vsel %vm922_vm2, %v1404_v27, 0 }
 0x448   : > { %v3265_v23 = vpop.eup %3264 }
 0x449   : > { %v1132_v24 = vmul.f32 %v3265_v23, %v3261_v59 }
 0x44a   : > { %v1287_v34 = vpop.permute.xlu1 %1286 }
 0x44b   : > { %v1133_v28 = vpack.c.bf16 %v1132_v24, %v1132_v24 }
 0x44d   : > { %v3267_v29 = vpop.eup %3266  ;;  %3020 = vmatmul.mubr.msk.bf16.vlgmr.msra.gmra.mrb[8].mxu1 %vm922_vm2, %v1133_v28 }
 0x44e   : > { %v1028_v31 = vmul.f32 %v3267_v29, %v3263_v61  ;;  %3030 = vmatpush3.bf16.xpose.msra.mxu1 %v1295_v30  ;;  %3031 = vmatprep.mubr.msk.bf16.mxu1 %vm3308_vm1, %v3307_v6  ;;  %v1449_v36 = vpop.permute.xlu1 %1448 }
 0x44f   : > { %3035 = vmatprep.subr.bf16.mxu1 %v3307_v6  ;;  %v1451_v37 = vsel %vm922_vm2, %v1449_v36, 0  ;;  %v3686_v36 = vld [vmem:[%s3963_s11] ss:$0 sm:$0xff] }
 0x450   : > { %v1029_v33 = vpack.c.bf16 %v1028_v31, %v1028_v31 }
 0x452   : > { %3026 = vmatmul.mubr.msk.bf16.vlgmr.msra.gmra.mrb[20].mxu0 %vm1017_vm6, %v1029_v33 }
 0x453   : > { %3042 = vmatpush3.bf16.xpose.msra.mxu0 %v1406_v35  ;;  %3043 = vmatprep.mubr.msk.bf16.mxu0 %vm3308_vm1, %v3307_v6 }
 0x454   : > { %3047 = vmatprep.subr.bf16.mxu0 %v3307_v6 }
 0x455   : > { %3032 = vmatmul.mubr.msk.bf16.vlgmr.msra.gmra.mrb[12].mxu1 %vm922_vm2, %v1287_v34 }
 0x456   : > { %3037 = vmatprep.mubr.msk.bf16.mxu1 %vm3308_vm1, %v3307_v6 }
 0x45a   : > { %3044 = vmatmul.mubr.msk.bf16.vlgmr.msra.gmra.mrb[24].mxu0 %vm922_vm2, %v1287_v34 }
 0x45b   : > { %3048 = vmatpush3.bf16.xpose.msra.mxu0 %v1451_v37  ;;  %3049 = vmatprep.mubr.msk.bf16.mxu0 %vm3308_vm1, %v3307_v6 }
 0x45c   : > { %3059 = vmatprep.subr.bf16.mxu0 %v3307_v6 }
 0x47a   : > { %v1342_v38 = vpop.permute.xlu0 %1341 }
 0x47b   : > { %v1347_v39 = vsel %vm922_vm2, %v1342_v38, 0  ;;  %v878_v38 = vld [vmem:[%s3961_s9] sm:$0xff] }
 0x47c   : > { %3036 = vmatpush3.bf16.xpose.msra.mxu1 %v1347_v39  ;;  %v1240_v39 = vpack.c.bf16 %v878_v38, %v878_v38 }
 0x47d   : > { %3053 = vmatprep.subr.bf16.mxu1 %v3307_v6 }
 0x47e   : > { %v1339_v40 = vpop.permute.xlu0 %1338 }
 0x47f   : > { %3050 = vmatmul.mubr.msk.bf16.vlgmr.msra.gmra.mrb[24].mxu0 %vm922_vm2, %v1339_v40 }
 0x480   : > { %3061 = vmatprep.mubr.msk.bf16.mxu0 %vm3308_vm1, %v3307_v6 }
 0x483   : > { %3038 = vmatmul.mubr.msk.bf16.vlgmr.msra.gmra.mrb[12].mxu1 %vm922_vm2, %v1339_v40  ;;  %v1661_v40 = vsel %vm1195_vm3, %v1240_v39, 0 }
 0x484   : > { %3055 = vmatprep.mubr.msk.bf16.mxu1 %vm3308_vm1, %v3307_v6 }
 0x520   : > { %v3650_v41 = vpop.f32.mrb[8].mxu1 }
 0x521   : > { %v3021_v42 = vpop.f32.mrb[9].mxu1 }
 0x522   : > { %v1179_v44 = vpop.f32.mrb[10].mxu1  ;;  %v879_v42 = vld [vmem:[%s3961_s9 + $0x8] sm:$0xff] }
 0x523   : > { %v3022_v45 = vpop.f32.mrb[11].mxu1  ;;  %v1610_v44 = vpack.c.bf16 %v879_v42, %v879_v42 }
 0x525   : > { %v3652_v46 = vpop.f32.mrb[20].mxu0  ;;  %v1615_v45 = vsel %vm1195_vm3, %v1610_v44, 0 }
 0x526   : > { %v3027_v47 = vpop.f32.mrb[21].mxu0 }
 0x527   : > { %v1236_v49 = vpop.f32.mrb[22].mxu0 }
 0x528   : > { %v3028_v51 = vpop.f32.mrb[23].mxu0 }
 0x552   : > { %v1487_v52 = vpop.f32.mrb[24].mxu0 }
 0x553   : > { %v1493_v53 = vmul.f32 0.35355338, %v1487_v52  ;;  %v3051_v54 = vpop.f32.mrb[25].mxu0 }
 0x554   : > { %v1490_v55 = vpop.f32.mrb[26].mxu0 }
 0x555   : > { %v3052_v56 = vpop.f32.mrb[27].mxu0  ;;  %v1494_v57 = vsel %vm922_vm2, %v1493_v53, -inf }
 0x556   : > { %v1383_v58 = vpop.f32.mrb[12].mxu1  ;;  %1495 = vmax.xlane.f32.xlu1 %v1494_v57 }
 0x557   : > { %v1389_v59 = vmul.f32 0.35355338, %v1383_v58  ;;  %v3039_v60 = vpop.f32.mrb[13].mxu1 }
 0x558   : > { %v1386_v61 = vpop.f32.mrb[14].mxu1 }
 0x559   : > { %v3040_v62 = vpop.f32.mrb[15].mxu1  ;;  %v1390_v63 = vadd.f32 %v1389_v59, %v3594_v32 }
 0x55b   : > { %v1391_v0 = vsel %vm1017_vm6, %v1390_v63, -inf }
 0x55c   : > { %1392 = vmax.xlane.f32.xlu0 %v1391_v0 }
 0x5e3   : > { %v1496_v1 = vpop.xlane.xlu1 %1495 }
 0x5e4   : > { %v1497_v2 = vsub.f32 %v1493_v53, %v1496_v1 }
 0x5e6   : > { %v1498_v3 = vmul.f32 1.442695, %v1497_v2 }
 0x5e8   : > { %3268 = vpow2.f32 %v1498_v3 }
 0x5e9   : > { %v1393_v4 = vpop.xlane.xlu0 %1392 }
 0x5ea   : > { %v1394_v5 = vsub.f32 %v1390_v63, %v1393_v4 }
 0x5ec   : > { %v1395_v7 = vmul.f32 1.442695, %v1394_v5 }
 0x5ee   : > { %3270 = vpow2.f32 %v1395_v7 }
 0x5f2   : > { %v3269_v8 = vpop.eup %3268 }
 0x5f3   : > { %v1500_v9 = vsel %vm922_vm2, %v3269_v8, 0.0 }
 0x5f4   : > { %1501 = vadd.xlane.f32.xlu0 %v1500_v9 }
 0x5f8   : > { %v3271_v10 = vpop.eup %3270 }
 0x5f9   : > { %v1397_v11 = vsel %vm1017_vm6, %v3271_v10, 0.0 }
 0x5fa   : > { %1398 = vadd.xlane.f32.xlu1 %v1397_v11 }
 0x60a   : > { %1507 = vrot.lane.b32.xlu0 %v3588_v25, %s3314_s23 }
 0x60b   : > { %1561 = vrot.lane.b32.xlu1 %v3577_v22, %s3314_s23  ;;  %s3320_s23 = smov 108  }
 0x60e   : > { %1707 = vrot.lane.b32.xlu0 %v3491_v18, %s3315_s24 }
 0x60f   : > { %1720 = vrot.lane.b32.xlu1 %v3496_v19, %s3315_s24  ;;  %s3321_s24 = smov 28  }
 0x613   : > { %1716 = vrot.lane.b32.xlu1 %v3491_v18, %s3316_s25 }
 0x681   : > { %v1502_v14 = vpop.xlane.xlu0 %1501 }
 0x682   : > { %3272 = vrcp.f32 %v1502_v14 }
 0x685   : > { %v1508_v15 = vpop.permute.xlu0 %1507 }
 0x686   : > { %v1513_v16 = vsel %vm1138_vm4, %v1508_v15, 0 }
 0x687   : > { %3054 = vmatpush3.bf16.msra.mxu1 %v1513_v16  ;;  %v1399_v17 = vpop.xlane.xlu1 %1398 }
 0x688   : > { %3274 = vrcp.f32 %v1399_v17  ;;  %3065 = vmatprep.subr.bf16.mxu1 %v3307_v6 }
 0x689   : > { %v1708_v30 = vpop.permute.xlu0 %1707 }
 0x68a   : > { %v1730_v34 = vmul.f32 %v1708_v30, %v3533_v43  ;;  %v1710_v37 = vmul.f32 %v1708_v30, %v3542_v50 }
 0x68b   : > { %v1562_v20 = vpop.permute.xlu1 %1561 }
 0x68c   : > { %v3273_v21 = vpop.eup %3272  ;;  %v1567_v23 = vsel %vm1195_vm3, %v1562_v20, 0 }
 0x68d   : > { %v1504_v24 = vmul.f32 %v3273_v21, %v3269_v8  ;;  %3060 = vmatpush3.bf16.msra.mxu0 %v1567_v23 }
 0x68e   : > { %3071 = vmatprep.subr.bf16.mxu0 %v3307_v6 }
 0x68f   : > { %v1721_v26 = vpop.permute.xlu1 %1720  ;;  %v1505_v27 = vpack.c.bf16 %v1504_v24, %v1504_v24 }
 0x690   : > { %v1723_v28 = vmul.f32 %v1721_v26, %v3542_v50  ;;  %v1737_v29 = vmul.f32 %v1721_v26, %v3533_v43 }
 0x691   : > { %3056 = vmatmul.mubr.msk.bf16.vlgmr.msra.gmra.mrb[16].mxu1 %vm922_vm2, %v1505_v27 }
 0x692   : > { %v3275_v31 = vpop.eup %3274  ;;  %1739 = vrot.lane.b32.xlu0 %v1737_v29, %s3310_s29  ;;  %1725 = vrot.lane.b32.xlu1 %v1723_v28, %s3310_s29 }
 0x693   : > { %v1401_v33 = vmul.f32 %v3275_v31, %v3271_v10  ;;  %3067 = vmatprep.mubr.msk.bf16.mxu1 %vm3308_vm1, %v3307_v6  ;;  %3066 = vmatpush3.bf16.msra.mxu1 %v1615_v45  ;;  %v1717_v47 = vpop.permute.xlu1 %1716 }
 0x694   : > { %3077 = vmatprep.subr.bf16.mxu1 %v3307_v6  ;;  %v1719_v49 = vmul.f32 %v1717_v47, %v3542_v50  ;;  %v1736_v51 = vmul.f32 %v1717_v47, %v3533_v43 }
 0x695   : > { %v1402_v35 = vpack.c.bf16 %v1401_v33, %v1401_v33 }
 0x696   : > { %1703 = vrot.lane.b32.xlu0 %v3496_v19, %s3316_s25  ;;  %1732 = vrot.lane.b32.xlu1 %v1730_v34, %s3310_s29  ;;  %s3322_s25 = smov 24  }
 0x697   : > { %3062 = vmatmul.mubr.msk.bf16.vlgmr.msra.gmra.mrb[28].mxu0 %vm1017_vm6, %v1402_v35 }
 0x698   : > { %3073 = vmatprep.mubr.msk.bf16.mxu0 %vm3308_vm1, %v3307_v6  ;;  %3072 = vmatpush3.bf16.msra.mxu0 %v1661_v40 }
 0x699   : > { %3089 = vmatprep.subr.bf16.mxu0 %v3307_v6 }
 0x69a   : > { %1712 = vrot.lane.b32.xlu0 %v1710_v37, %s3310_s29  ;;  %1188 = vperm.xlu1 %3253, %v3686_v36  }
 0x69e   : > { %1556 = vperm.xlu0 %3254, %v3686_v36  }
 0x704   : > { %v1740_v52 = vpop.permute.xlu0 %1739  ;;  %v1726_v53 = vpop.permute.xlu1 %1725 }
 0x705   : > { %v1742_v54 = vadd.f32 %v1740_v52, %v1736_v51  ;;  %v1728_v55 = vadd.f32 %v1726_v53, %v1719_v49 }
 0x707   : > { %v1746_v56 = vpack.c.bf16 %v1742_v54, %v1742_v54  ;;  %v1745_v57 = vpack.c.bf16 %v1728_v55, %v1728_v55 }
 0x708   : > { %v1704_v58 = vpop.permute.xlu0 %1703  ;;  %v1733_v60 = vpop.permute.xlu1 %1732 }
 0x709   : > { %v1729_v59 = vmul.f32 %v1704_v58, %v3533_v43  ;;  %1751 = vrot.lane.b32.xlu1 %v1746_v56, %s3319_s22  ;;  %1748 = vrot.lane.b32.xlu0 %v1745_v57, %s3319_s22  ;;  %v1706_v63 = vmul.f32 %v1704_v58, %v3542_v50 }
 0x70b   : > { %v1735_v61 = vsub.f32 %v1729_v59, %v1733_v60 }
 0x70c   : > { %v1713_v62 = vpop.permute.xlu0 %1712 }
 0x70d   : > { %1865 = vrot.lane.b32.xlu1 %v3539_v48, %s3320_s23  ;;  %1910 = vrot.lane.b32.xlu0 %v3539_v48, %s3319_s22  ;;  %v1744_v0 = vpack.c.bf16 %v1735_v61, %v1735_v61  ;;  %v1715_v1 = vsub.f32 %v1706_v63, %v1713_v62 }
 0x70f   : > { %v1743_v2 = vpack.c.bf16 %v1715_v1, %v1715_v1 }
 0x711   : > { %1803 = vrot.lane.b32.xlu1 %v1744_v0, %s3319_s22 }
 0x715   : > { %1800 = vrot.lane.b32.xlu1 %v1743_v2, %s3319_s22 }
 0x719   : > { %v1189_v3 = vpop.permute.xlu1 %1188 }
 0x71a   : > { %v1191_v4 = vmul.f32 %v1189_v3, %v3650_v41 }
 0x71c   : > { %v1234_v5 = vadd.f32 %v3652_v46, %v1191_v4 }
 0x71d   : > { %v1557_v10 = vpop.permute.xlu0 %1556 }
 0x71e   : > { %v1239_v7 = vpack.c.bf16 %v1234_v5, %v1234_v5 }
 0x720   : > { %3074 = vmatmul.mubr.msk.bf16.vlgmr.msra.gmra.mrb[32].mxu0 %vm1017_vm6, %v1239_v7 }
 0x721   : > { %3091 = vmatprep.mubr.msk.bf16.mxu0 %vm3308_vm1, %v3307_v6 }
 0x764   : > { %v1549_v8 = vpop.f32.mrb[16].mxu1 }
 0x765   : > { %v3057_v9 = vpop.f32.mrb[17].mxu1  ;;  %v1559_v13 = vmul.f32 %v1557_v10, %v1549_v8 }
 0x766   : > { %v1552_v11 = vpop.f32.mrb[18].mxu1 }
 0x767   : > { %v3058_v12 = vpop.f32.mrb[19].mxu1 }
 0x76a   : > { %v1603_v14 = vpop.f32.mrb[28].mxu0 }
 0x76b   : > { %v1604_v15 = vadd.f32 %v1603_v14, %v1559_v13  ;;  %v3063_v16 = vpop.f32.mrb[29].mxu0  ;;  %v3323_v14 = vmov 2  }
 0x76c   : > { %v1606_v17 = vpop.f32.mrb[30].mxu0  ;;  %3255 = vset.pattern.permute.xlu0 %v3323_v14 }
 0x76d   : > { %v1609_v20 = vpack.c.bf16 %v1604_v15, %v1604_v15  ;;  %v3064_v41 = vpop.f32.mrb[31].mxu0 }
 0x76f   : > { %3068 = vmatmul.mubr.msk.bf16.vlgmr.msra.gmra.mrb[20].mxu1 %vm1017_vm6, %v1609_v20 }
 0x770   : > { %3079 = vmatprep.mubr.msk.bf16.mxu1 %vm3308_vm1, %v3307_v6 }
 0x77b   : > { %v1752_v46 = vpop.permute.xlu1 %1751  ;;  %v1749_v23 = vpop.permute.xlu0 %1748 }
 0x77c   : > { %v1757_v21 = vsel %vm922_vm2, %v1752_v46, 0 }
 0x77d   : > { %3078 = vmatpush3.bf16.xpose.msra.mxu1 %v1757_v21 }
 0x77e   : > { %3083 = vmatprep.subr.bf16.mxu1 %v3307_v6 }
 0x77f   : > { %v1866_v24 = vpop.permute.xlu1 %1865  ;;  %v1911_v29 = vpop.permute.xlu0 %1910 }
 0x780   : > { %v1868_v26 = vsel %vm922_vm2, %v1866_v24, 0  ;;  %v1913_v30 = vsel %vm922_vm2, %v1911_v29, 0 }
 0x781   : > { %3090 = vmatpush3.bf16.xpose.msra.mxu0 %v1868_v26 }
 0x782   : > { %3095 = vmatprep.subr.bf16.mxu0 %v3307_v6 }
 0x783   : > { %v1804_v27 = vpop.permute.xlu1 %1803 }
 0x784   : > { %v1809_v28 = vsel %vm922_vm2, %v1804_v27, 0  ;;  %3080 = vmatmul.mubr.msk.bf16.vlgmr.msra.gmra.mrb[24].mxu1 %vm922_vm2, %v1749_v23 }
 0x785   : > { %3084 = vmatpush3.bf16.xpose.msra.mxu1 %v1809_v28  ;;  %3085 = vmatprep.mubr.msk.bf16.mxu1 %vm3308_vm1, %v3307_v6 }
 0x786   : > { %3101 = vmatprep.subr.bf16.mxu1 %v3307_v6 }
 0x787   : > { %v1801_v31 = vpop.permute.xlu1 %1800 }
 0x788   : > { %3092 = vmatmul.mubr.msk.bf16.vlgmr.msra.gmra.mrb[36].mxu0 %vm922_vm2, %v1749_v23 }
 0x789   : > { %3096 = vmatpush3.bf16.xpose.msra.mxu0 %v1913_v30  ;;  %3097 = vmatprep.mubr.msk.bf16.mxu0 %vm3308_vm1, %v3307_v6 }
 0x78a   : > { %3107 = vmatprep.subr.bf16.mxu0 %v3307_v6 }
 0x790   : > { %3086 = vmatmul.mubr.msk.bf16.vlgmr.msra.gmra.mrb[24].mxu1 %vm922_vm2, %v1801_v31 }
 0x791   : > { %3103 = vmatprep.mubr.msk.bf16.mxu1 %vm3308_vm1, %v3307_v6 }
 0x794   : > { %3098 = vmatmul.mubr.msk.bf16.vlgmr.msra.gmra.mrb[36].mxu0 %vm922_vm2, %v1801_v31 }
 0x795   : > { %3109 = vmatprep.mubr.msk.bf16.mxu0 %vm3308_vm1, %v3307_v6 }
 0x7f3   : > { %v1697_v33 = vpop.f32.mrb[32].mxu0 }
 0x7f4   : > { %v3075_v34 = vpop.f32.mrb[33].mxu0 }
 0x7f5   : > { %v1700_v35 = vpop.f32.mrb[34].mxu0 }
 0x7f6   : > { %v3076_v37 = vpop.f32.mrb[35].mxu0 }
 0x842   : > { %v1651_v38 = vpop.f32.mrb[20].mxu1 }
 0x843   : > { %v3743_v39 = vadd.f32 %v1697_v33, %v1651_v38  ;;  %v3069_v40 = vpop.f32.mrb[21].mxu1 }
 0x844   : > { %v1654_v42 = vpop.f32.mrb[22].mxu1 }
 0x845   : > { %v3070_v44 = vpop.f32.mrb[23].mxu1 }
 0x863   : > { %v1845_v45 = vpop.f32.mrb[24].mxu1 }
 0x864   : > { %v1851_v47 = vmul.f32 0.35355338, %v1845_v45  ;;  %v3087_v49 = vpop.f32.mrb[25].mxu1 }
 0x865   : > { %v1848_v51 = vpop.f32.mrb[26].mxu1 }
 0x866   : > { %v3088_v52 = vpop.f32.mrb[27].mxu1  ;;  %v1852_v53 = vadd.f32 %v1851_v47, %v3594_v32 }
 0x867   : > { %v1949_v54 = vpop.f32.mrb[36].mxu0  ;;  %v880_v52 = vld [vmem:[%s3961_s9 + $0x10] sm:$0xff] }
 0x868   : > { %v1955_v55 = vmul.f32 0.35355338, %v1949_v54  ;;  %v3099_v56 = vpop.f32.mrb[37].mxu0  ;;  %v1853_v57 = vsel %vm1017_vm6, %v1852_v53, -inf }
 0x869   : > { %1854 = vmax.xlane.f32.xlu1 %v1853_v57  ;;  %v1952_v58 = vpop.f32.mrb[38].mxu0 }
 0x86a   : > { %v3100_v59 = vpop.f32.mrb[39].mxu0  ;;  %v1956_v60 = vsel %vm922_vm2, %v1955_v55, -inf }
 0x86b   : > { %1957 = vmax.xlane.f32.xlu0 %v1956_v60 }
 0x87a   : > { %1968 = vrot.lane.b32.xlu1 %v3588_v25, %s3319_s22 }
 0x87e   : > { %2135 = vrot.lane.b32.xlu1 %v3496_v19, %s3321_s24 }
 0x882   : > { %2122 = vrot.lane.b32.xlu1 %v3491_v18, %s3321_s24 }
 0x8f6   : > { %v1855_v61 = vpop.xlane.xlu1 %1854 }
 0x8f7   : > { %v1856_v62 = vsub.f32 %v1852_v53, %v1855_v61  ;;  %v2070_v53 = vpack.c.bf16 %v880_v52, %v880_v52 }
 0x8f8   : > { %v1958_v63 = vpop.xlane.xlu0 %1957 }
 0x8f9   : > { %v1959_v0 = vsub.f32 %v1955_v55, %v1958_v63  ;;  %v1857_v2 = vmul.f32 1.442695, %v1856_v62 }
 0x8fa   : > { %v1969_v1 = vpop.permute.xlu1 %1968 }
 0x8fb   : > { %v1960_v3 = vmul.f32 1.442695, %v1959_v0  ;;  %v1974_v4 = vsel %vm1138_vm4, %v1969_v1, 0 }
 0x8fc   : > { %3102 = vmatpush3.bf16.msra.mxu1 %v1974_v4 }
 0x8fd   : > { %3276 = vpow2.f32 %v1960_v3  ;;  %3113 = vmatprep.subr.bf16.mxu1 %v3307_v6 }
 0x8fe   : > { %v2136_v5 = vpop.permute.xlu1 %2135  ;;  %3278 = vpow2.f32 %v1857_v2 }
 0x8ff   : > { %v2152_v7 = vmul.f32 %v2136_v5, %v3533_v43 }
 0x901   : > { %2154 = vrot.lane.b32.xlu1 %v2152_v7, %s3310_s29 }
 0x902   : > { %v2123_v8 = vpop.permute.xlu1 %2122 }
 0x903   : > { %v2125_v10 = vmul.f32 %v2123_v8, %v3542_v50  ;;  %v2145_v15 = vmul.f32 %v2123_v8, %v3533_v43 }
 0x905   : > { %2118 = vrot.lane.b32.xlu1 %v3496_v19, %s3322_s25  ;;  %v2138_v19 = vmul.f32 %v2136_v5, %v3542_v50 }
 0x907   : > { %v3277_v9 = vpop.eup %3276 }
 0x908   : > { %v1962_v11 = vsel %vm922_vm2, %v3277_v9, 0.0  ;;  %v3279_v12 = vpop.eup %3278 }
 0x909   : > { %2127 = vrot.lane.b32.xlu1 %v2125_v10, %s3310_s29  ;;  %1963 = vadd.xlane.f32.xlu0 %v1962_v11  ;;  %v1859_v13 = vsel %vm1017_vm6, %v3279_v12, 0.0 }
 0x90d   : > { %1860 = vadd.xlane.f32.xlu0 %v1859_v13 }
 0x923   : > { %2021 = vrot.lane.b32.xlu0 %v3577_v22, %s3319_s22 }
 0x927   : > { %2131 = vrot.lane.b32.xlu0 %v3491_v18, %s3322_s25  ;;  %s614_s25 = scalar_lea.vmem %s3971_s19, %s2819_s20 }
 0x92b   : > { %2140 = vrot.lane.b32.xlu0 %v2138_v19, %s3310_s29 }
 0x92f   : > { %2147 = vrot.lane.b32.xlu0 %v2145_v15, %s3310_s29  ;;  %s3324_s29 = smov 104  }
 0x933   : > { %2017 = vperm.xlu0 %3255, %v3686_v36  }
 0x973   : > { %v2155_v46 = vpop.permute.xlu1 %2154 }
 0x977   : > { %v2119_v30 = vpop.permute.xlu1 %2118 }
 0x978   : > { %v2144_v38 = vmul.f32 %v2119_v30, %v3533_v43  ;;  %v2121_v47 = vmul.f32 %v2119_v30, %v3542_v50 }
 0x97b   : > { %v2128_v45 = vpop.permute.xlu1 %2127 }
 0x996   : > { %v1964_v16 = vpop.xlane.xlu0 %1963 }
 0x997   : > { %3280 = vrcp.f32 %v1964_v16 }
 0x99a   : > { %v1861_v17 = vpop.xlane.xlu0 %1860 }
 0x99b   : > { %3282 = vrcp.f32 %v1861_v17 }
 0x99e   : > { %v2022_v20 = vpop.permute.xlu0 %2021 }
 0x99f   : > { %v2027_v41 = vsel %vm1195_vm3, %v2022_v20, 0 }
 0x9a0   : > { %3108 = vmatpush3.bf16.msra.mxu0 %v2027_v41 }
 0x9a1   : > { %v3281_v18 = vpop.eup %3280  ;;  %3119 = vmatprep.subr.bf16.mxu0 %v3307_v6 }
 0x9a2   : > { %v1966_v21 = vmul.f32 %v3281_v18, %v3277_v9  ;;  %v2132_v23 = vpop.permute.xlu0 %2131 }
 0x9a3   : > { %v2151_v24 = vmul.f32 %v2132_v23, %v3533_v43  ;;  %v2134_v28 = vmul.f32 %v2132_v23, %v3542_v50  ;;  %v2130_v43 = vsub.f32 %v2121_v47, %v2128_v45  ;;  %v2075_v50 = vsel %vm1195_vm3, %v2070_v53, 0 }
 0x9a4   : > { %v1967_v26 = vpack.c.bf16 %v1966_v21, %v1966_v21 }
 0x9a5   : > { %v3283_v27 = vpop.eup %3282  ;;  %v2157_v29 = vadd.f32 %v2155_v46, %v2151_v24  ;;  %v2158_v51 = vpack.c.bf16 %v2130_v43, %v2130_v43 }
 0x9a6   : > { %v1863_v31 = vmul.f32 %v3283_v27, %v3279_v12  ;;  %3104 = vmatmul.mubr.msk.bf16.vlgmr.msra.gmra.mrb[28].mxu1 %vm922_vm2, %v1967_v26  ;;  %v2141_v33 = vpop.permute.xlu0 %2140 }
 0x9a7   : > { %v2143_v34 = vadd.f32 %v2141_v33, %v2134_v28  ;;  %v2161_v35 = vpack.c.bf16 %v2157_v29, %v2157_v29  ;;  %3115 = vmatprep.mubr.msk.bf16.mxu1 %vm3308_vm1, %v3307_v6  ;;  %3114 = vmatpush3.bf16.msra.mxu1 %v2075_v50 }
 0x9a8   : > { %v1864_v37 = vpack.c.bf16 %v1863_v31, %v1863_v31  ;;  %3131 = vmatprep.subr.bf16.mxu1 %v3307_v6 }
 0x9a9   : > { %v2160_v40 = vpack.c.bf16 %v2143_v34, %v2143_v34  ;;  %2166 = vrot.lane.b32.xlu1 %v2161_v35, %s3324_s29 }
 0x9aa   : > { %3110 = vmatmul.mubr.msk.bf16.vlgmr.msra.gmra.mrb[40].mxu0 %vm1017_vm6, %v1864_v37  ;;  %v2148_v42 = vpop.permute.xlu0 %2147 }
 0x9ab   : > { %v2150_v44 = vsub.f32 %v2144_v38, %v2148_v42  ;;  %2163 = vrot.lane.b32.xlu0 %v2160_v40, %s3324_s29  ;;  %3121 = vmatprep.mubr.msk.bf16.mxu0 %vm3308_vm1, %v3307_v6 }
 0x9ad   : > { %2280 = vrot.lane.b32.xlu1 %v3539_v48, %s3325_s3  ;;  %v2159_v49 = vpack.c.bf16 %v2150_v44, %v2150_v44  ;;  %v3326_v44 = vmov 3  }
 0x9ae   : > { %3256 = vset.pattern.permute.xlu1 %v3326_v44  ;;  %3257 = vset.pattern.permute.xlu0 %v3326_v44  ;;  %v2680_v44 = vld [vmem:[%s3969_s17 + $0x20] sm:$0xff] }
 0x9af   : > { %2325 = vrot.lane.b32.xlu0 %v3539_v48, %s3324_s29 }
 0x9b1   : > { %2218 = vrot.lane.b32.xlu1 %v2159_v49, %s3324_s29 }
 0x9b2   : > { %v2018_v56 = vpop.permute.xlu0 %2017 }
 0x9b5   : > { %2215 = vrot.lane.b32.xlu1 %v2158_v51, %s3324_s29 }
 0xa1b   : > { %v2167_v54 = vpop.permute.xlu1 %2166 }
 0xa1c   : > { %v2172_v55 = vsel %vm922_vm2, %v2167_v54, 0  ;;  %v881_v54 = vld [vmem:[%s3961_s9 + $0x18] sm:$0xff] }
 0xa1d   : > { %3120 = vmatpush3.bf16.xpose.msra.mxu0 %v2172_v55  ;;  %v2164_v57 = vpop.permute.xlu0 %2163  ;;  %v2485_v55 = vpack.c.bf16 %v881_v54, %v881_v54 }
 0xa1e   : > { %3125 = vmatprep.subr.bf16.mxu0 %v3307_v6 }
 0xa1f   : > { %v2281_v48 = vpop.permute.xlu1 %2280 }
 0xa20   : > { %v2283_v9 = vsel %vm922_vm2, %v2281_v48, 0 }
 0xa21   : > { %v2326_v10 = vpop.permute.xlu0 %2325 }
 0xa22   : > { %v2328_v11 = vsel %vm922_vm2, %v2326_v10, 0  ;;  %v3298_v10 = vld [vmem:[%s3443_s2] sm:$0xff] }
 0xa23   : > { %v2219_v58 = vpop.permute.xlu1 %2218 }
 0xa24   : > { %v2224_v59 = vsel %vm922_vm2, %v2219_v58, 0  ;;  %3122 = vmatmul.mubr.msk.bf16.vlgmr.msra.gmra.mrb[44].mxu0 %vm922_vm2, %v2164_v57 }
 0xa25   : > { %3126 = vmatpush3.bf16.xpose.msra.mxu0 %v2224_v59  ;;  %3127 = vmatprep.mubr.msk.bf16.mxu0 %vm3308_vm1, %v3307_v6 }
 0xa26   : > { %3143 = vmatprep.subr.bf16.mxu0 %v3307_v6 }
 0xa27   : > { %v2216_v60 = vpop.permute.xlu1 %2215 }
 0xa30   : > { %3128 = vmatmul.mubr.msk.bf16.vlgmr.msra.gmra.mrb[44].mxu0 %vm922_vm2, %v2216_v60 }
 0xa31   : > { %3145 = vmatprep.mubr.msk.bf16.mxu0 %vm3308_vm1, %v3307_v6 }
 0xa79   : > { %v2010_v61 = vpop.f32.mrb[28].mxu1 }
 0xa7a   : > { %v3105_v62 = vpop.f32.mrb[29].mxu1  ;;  %v2020_v0 = vmul.f32 %v2018_v56, %v2010_v61  ;;  %v2490_v56 = vsel %vm1195_vm3, %v2485_v55, 0  ;;  %v2860_v55 = vld [vmem:[%s3966_s14] ss:$0 sm:$0xff] }
 0xa7b   : > { %v2013_v63 = vpop.f32.mrb[30].mxu1 }
 0xa7c   : > { %v3106_v1 = vpop.f32.mrb[31].mxu1 }
 0xa7d   : > { %v2063_v2 = vpop.f32.mrb[40].mxu0 }
 0xa7e   : > { %v2064_v3 = vadd.f32 %v2063_v2, %v2020_v0  ;;  %v3111_v4 = vpop.f32.mrb[41].mxu0 }
 0xa7f   : > { %v2066_v5 = vpop.f32.mrb[42].mxu0 }
 0xa80   : > { %v2069_v7 = vpack.c.bf16 %v2064_v3, %v2064_v3  ;;  %v3112_v8 = vpop.f32.mrb[43].mxu0 }
 0xa81   : > { %v2858_v8 = vld [vmem:[%s3962_s10] ss:$0 sm:$0xff] }
 0xa82   : > { %3116 = vmatmul.mubr.msk.bf16.vlgmr.msra.gmra.mrb[32].mxu1 %vm1017_vm6, %v2069_v7 }
 0xa83   : > { %3132 = vmatpush3.bf16.xpose.msra.mxu1 %v2283_v9  ;;  %3133 = vmatprep.mubr.msk.bf16.mxu1 %vm3308_vm1, %v3307_v6 }
 0xa84   : > { %3137 = vmatprep.subr.bf16.mxu1 %v3307_v6 }
 0xa8a   : > { %3134 = vmatmul.mubr.msk.bf16.vlgmr.msra.gmra.mrb[36].mxu1 %vm922_vm2, %v2164_v57 }
 0xa8b   : > { %3138 = vmatpush3.bf16.xpose.msra.mxu1 %v2328_v11  ;;  %3139 = vmatprep.mubr.msk.bf16.mxu1 %vm3308_vm1, %v3307_v6 }
 0xa8c   : > { %3149 = vmatprep.subr.bf16.mxu1 %v3307_v6 }
 0xa96   : > { %3140 = vmatmul.mubr.msk.bf16.vlgmr.msra.gmra.mrb[36].mxu1 %vm922_vm2, %v2216_v60 }
 0xa97   : > { %3151 = vmatprep.mubr.msk.bf16.mxu1 %vm3308_vm1, %v3307_v6 }
 0xb03   : > { %v2260_v12 = vpop.f32.mrb[44].mxu0 }
 0xb04   : > { %v2266_v13 = vmul.f32 0.35355338, %v2260_v12  ;;  %v3129_v14 = vpop.f32.mrb[45].mxu0 }
 0xb05   : > { %v2263_v19 = vpop.f32.mrb[46].mxu0 }
 0xb06   : > { %v3130_v15 = vpop.f32.mrb[47].mxu0  ;;  %v2267_v16 = vadd.f32 %v2266_v13, %v3594_v32 }
 0xb07   : > { %v2558_v15 = vld [vmem:[%s3965_s13] sm:$0xff] }
 0xb08   : > { %v2268_v17 = vsel %vm1017_vm6, %v2267_v16, -inf }
 0xb09   : > { %2269 = vmax.xlane.f32.xlu1 %v2268_v17  ;;  %v2622_v17 = vld [vmem:[%s3967_s15] sm:$0xff] }
 0xb1a   : > { %2383 = vrot.lane.b32.xlu1 %v3588_v25, %s3324_s29 }
 0xb1e   : > { %2432 = vperm.xlu1 %3256, %v3686_v36  }
 0xb55   : > { %v2111_v20 = vpop.f32.mrb[32].mxu1 }
 0xb56   : > { %v3821_v41 = vadd.f32 %v2111_v20, %v3743_v39  ;;  %v3117_v46 = vpop.f32.mrb[33].mxu1 }
 0xb57   : > { %v2114_v18 = vpop.f32.mrb[34].mxu1 }
 0xb58   : > { %v3118_v21 = vpop.f32.mrb[35].mxu1  ;;  %v2560_v18 = vld [vmem:[%s3965_s13 + $0x10] sm:$0xff] }
 0xb59   : > { %v2561_v21 = vld [vmem:[%s3965_s13 + $0x18] sm:$0xff] }
 0xb69   : > { %v2364_v23 = vpop.f32.mrb[36].mxu1 }
 0xb6a   : > { %v2370_v24 = vmul.f32 0.35355338, %v2364_v23  ;;  %v3141_v26 = vpop.f32.mrb[37].mxu1  ;;  %v2624_v23 = vld [vmem:[%s3967_s15 + $0x10] sm:$0xff] }
 0xb6b   : > { %v2367_v27 = vpop.f32.mrb[38].mxu1  ;;  %v2625_v26 = vld [vmem:[%s3967_s15 + $0x18] sm:$0xff] }
 0xb6c   : > { %v3142_v28 = vpop.f32.mrb[39].mxu1  ;;  %v2371_v32 = vsel %vm922_vm2, %v2370_v24, -inf  ;;  %v2627_v27 = vpack.c.bf16 %v2625_v26, %v2624_v23 }
 0xb6d   : > { %2372 = vmax.xlane.f32.xlu0 %v2371_v32 }
 0xb96   : > { %v2270_v29 = vpop.xlane.xlu1 %2269 }
 0xb97   : > { %v2271_v30 = vsub.f32 %v2267_v16, %v2270_v29  ;;  %v2559_v16 = vld [vmem:[%s3965_s13 + $0x8] sm:$0xff] }
 0xb98   : > { %v2563_v20 = vpack.c.bf16 %v2559_v16, %v2558_v15 }
 0xb99   : > { %v2272_v31 = vmul.f32 1.442695, %v2271_v30 }
 0xb9a   : > { %v2384_v33 = vpop.permute.xlu1 %2383 }
 0xb9b   : > { %3284 = vpow2.f32 %v2272_v31  ;;  %v2389_v25 = vsel %vm1138_vm4, %v2384_v33, 0  ;;  %v2859_v31 = vld [vmem:[%s3964_s12] ss:$0 sm:$0xff] }
 0xb9c   : > { %3144 = vmatpush3.bf16.msra.mxu0 %v2389_v25 }
 0xb9d   : > { %3155 = vmatprep.subr.bf16.mxu0 %v3307_v6 }
 0xb9e   : > { %v2433_v60 = vpop.permute.xlu1 %2432 }
 0xba5   : > { %v3285_v39 = vpop.eup %3284 }
 0xba6   : > { %v2274_v34 = vsel %vm1017_vm6, %v3285_v39, 0.0 }
 0xba7   : > { %2275 = vadd.xlane.f32.xlu0 %v2274_v34  ;;  %v2676_v34 = vld [vmem:[%s3969_s17] sm:$0xff] }
 0xbfa   : > { %v2373_v35 = vpop.xlane.xlu0 %2372 }
 0xbfb   : > { %v2374_v37 = vsub.f32 %v2370_v24, %v2373_v35  ;;  %v2564_v24 = vpack.c.bf16 %v2561_v21, %v2560_v18  ;;  %v2677_v35 = vld [vmem:[%s3969_s17 + $0x8] sm:$0xff] }
 0xbfd   : > { %v2375_v38 = vmul.f32 1.442695, %v2374_v37  ;;  %v2689_v37 = vpack.c.bf16 %v2677_v35, %v2676_v34 }
 0xbff   : > { %3286 = vpow2.f32 %v2375_v38  ;;  %v2678_v38 = vld [vmem:[%s3969_s17 + $0x10] sm:$0xff] }
 0xc09   : > { %v3287_v40 = vpop.eup %3286 }
 0xc0a   : > { %v2377_v42 = vsel %vm922_vm2, %v3287_v40, 0.0 }
 0xc0b   : > { %2378 = vadd.xlane.f32.xlu0 %v2377_v42 }
 0xc21   : > { %2436 = vrot.lane.b32.xlu0 %v3577_v22, %s3324_s29 }
 0xc34   : > { %v2276_v45 = vpop.xlane.xlu0 %2275 }
 0xc35   : > { %3288 = vrcp.f32 %v2276_v45  ;;  %v2681_v45 = vld [vmem:[%s3969_s17 + $0x28] sm:$0xff] }
 0xc3f   : > { %v3289_v47 = vpop.eup %3288 }
 0xc40   : > { %v2278_v49 = vmul.f32 %v3289_v47, %v3285_v39  ;;  %v2691_v47 = vpack.c.bf16 %v2681_v45, %v2680_v44 }
 0xc42   : > { %v2279_v53 = vpack.c.bf16 %v2278_v49, %v2278_v49  ;;  %v2683_v49 = vld [vmem:[%s3969_s17 + $0x38] sm:$0xff] }
 0xc98   : > { %v2379_v43 = vpop.xlane.xlu0 %2378 }
 0xc99   : > { %3290 = vrcp.f32 %v2379_v43  ;;  %v2682_v43 = vld [vmem:[%s3969_s17 + $0x30] sm:$0xff] }
 0xc9c   : > { %v2437_v51 = vpop.permute.xlu0 %2436 }
 0xc9d   : > { %v2442_v52 = vsel %vm1195_vm3, %v2437_v51, 0  ;;  %v2692_v51 = vpack.c.bf16 %v2683_v49, %v2682_v43 }
 0xc9e   : > { %3150 = vmatpush3.bf16.msra.mxu1 %v2442_v52  ;;  %v2684_v52 = vld [vmem:[%s3969_s17 + $0x40] sm:$0xff] }
 0xc9f   : > { %3161 = vmatprep.subr.bf16.mxu1 %v3307_v6 }
 0xca1   : > { %3152 = vmatmul.mubr.msk.bf16.vlgmr.msra.gmra.mrb[40].mxu1 %vm1017_vm6, %v2279_v53  ;;  %v2685_v53 = vld [vmem:[%s3969_s17 + $0x48] sm:$0xff] }
 0xca2   : > { %3165 = vmatprep.mubr.msk.bf16.mxu1 %vm3308_vm1, %v3307_v6  ;;  %3162 = vmatpush3.bf16.msra.mxu1 %v2563_v20 }
 0xca3   : > { %v3291_v22 = vpop.eup %3290  ;;  %3163 = vmatprep.subr.bf16.mxu1 %v3307_v6 }
 0xca4   : > { %v2381_v36 = vmul.f32 %v3291_v22, %v3287_v40  ;;  %v2679_v40 = vld [vmem:[%s3969_s17 + $0x18] sm:$0xff]  ;;  %v2693_v22 = vpack.c.bf16 %v2685_v53, %v2684_v52 }
 0xca5   : > { %v2690_v42 = vpack.c.bf16 %v2679_v40, %v2678_v38 }
 0xca6   : > { %v2382_v50 = vpack.c.bf16 %v2381_v36, %v2381_v36  ;;  %3164 = vmatpush3.bf16.msra.mxu1 %v2564_v24  ;;  %v2686_v36 = vld [vmem:[%s3969_s17 + $0x50] sm:$0xff] }
 0xca7   : > { %3177 = vmatprep.subr.bf16.mxu1 %v3307_v6 }
 0xca8   : > { %3146 = vmatmul.mubr.msk.bf16.vlgmr.msra.gmra.mrb[48].mxu0 %vm922_vm2, %v2382_v50  ;;  %v2687_v50 = vld [vmem:[%s3969_s17 + $0x58] sm:$0xff] }
 0xca9   : > { %3157 = vmatprep.mubr.msk.bf16.mxu0 %vm3308_vm1, %v3307_v6  ;;  %3156 = vmatpush3.bf16.msra.mxu0 %v2490_v56  ;;  %v2694_v54 = vpack.c.bf16 %v2687_v50, %v2686_v36 }
 0xcaa   : > { %3169 = vmatprep.subr.bf16.mxu0 %v3307_v6 }
 0xd74   : > { %v2478_v48 = vpop.f32.mrb[40].mxu1 }
 0xd75   : > { %v3153_v57 = vpop.f32.mrb[41].mxu1 }
 0xd76   : > { %v2481_v58 = vpop.f32.mrb[42].mxu1 }
 0xd77   : > { %v3154_v59 = vpop.f32.mrb[43].mxu1 }
 0xd7b   : > { %v2425_v61 = vpop.f32.mrb[48].mxu0 }
 0xd7c   : > { %v2435_v62 = vmul.f32 %v2433_v60, %v2425_v61  ;;  %v3147_v63 = vpop.f32.mrb[49].mxu0 }
 0xd7d   : > { %v2428_v0 = vpop.f32.mrb[50].mxu0 }
 0xd7e   : > { %v2479_v1 = vadd.f32 %v2478_v48, %v2435_v62  ;;  %v3148_v2 = vpop.f32.mrb[51].mxu0 }
 0xd7f   : > { %v2863_v2 = vld [vmem:[%s3968_s16] ss:$0 sm:$0xff] }
 0xd80   : > { %v2484_v3 = vpack.c.bf16 %v2479_v1, %v2479_v1 }
 0xd82   : > { %3158 = vmatmul.mubr.msk.bf16.vlgmr.msra.gmra.mrb[52].mxu0 %vm1017_vm6, %v2484_v3 }
 0xd83   : > { %3173 = vmatprep.mubr.msk.bf16.mxu0 %vm3308_vm1, %v3307_v6 }
 0xe55   : > { %v2526_v4 = vpop.f32.mrb[52].mxu0 }
 0xe56   : > { %v2532_v5 = vadd.f32 %v2526_v4, %v3821_v41  ;;  %v3159_v7 = vpop.f32.mrb[53].mxu0  ;;  %v2623_v41 = vld [vmem:[%s3967_s15 + $0x8] sm:$0xff] }
 0xe57   : > { %v2529_v9 = vpop.f32.mrb[54].mxu0  ;;  %v2626_v46 = vpack.c.bf16 %v2623_v41, %v2622_v17 }
 0xe58   : > { %v2533_v11 = vadd.f32 %v3298_v10, %v2532_v5  ;;  %v3160_v12 = vpop.f32.mrb[55].mxu0  ;;  %v2866_v10 = vld [vmem:[%s3970_s18] ss:$0 sm:$0xff] }
 0xe59   : > { %3170 = vmatpush3.bf16.msra.mxu0 %v2626_v46 }
 0xe5a   : > { %v3852_v13 = vadd.f32 %v2858_v8, %v2533_v11  ;;  %3171 = vmatprep.subr.bf16.mxu0 %v3307_v6 }
 0xe5c   : > { %v2543_v14 = vmul.f32 %v3852_v13, %v3852_v13 }
 0xe5d   : > { %3172 = vmatpush3.bf16.msra.mxu0 %v2627_v27 }
 0xe5e   : > { %v2544_v19 = vsel %vm621_vm0, %v2543_v14, 0.0 }
 0xe5f   : > { %2545 = vadd.xlane.f32.xlu1 %v2544_v19 }
 0xeec   : > { %v2546_v28 = vpop.xlane.xlu1 %2545 }
 0xeed   : > { %v2547_v32 = vmul.f32 0.03125, %v2546_v28 }
 0xeef   : > { %v2548_v29 = vadd.f32 1e-05, %v2547_v32 }
 0xef1   : > { %3292 = vrsqrt.f32 %v2548_v29 }
 0xefb   : > { %v3293_v30 = vpop.eup %3292 }
 0xefc   : > { %v2550_v33 = vmul.f32 %v3293_v30, %v3852_v13 }
 0xefe   : > { %v2557_v25 = vmul.f32 %v2859_v31, %v2550_v33 }
 0xf00   : > { %v2562_v39 = vpack.c.bf16 %v2557_v25, %v2557_v25 }
 0xf02   : > { %3166 = vmatmul.mubr.msk.bf16.vlgmr.msra.gmra.mrb[44].mxu1 %vm621_vm0, %v2562_v39  ;;  %3174 = vmatmul.mubr.msk.bf16.vlgmr.msra.gmra.mrb[56].mxu0 %vm621_vm0, %v2562_v39 }
 0xf03   : > { %3189 = vmatprep.mubr.msk.bf16.mxu1 %vm3308_vm1, %v3307_v6  ;;  %3178 = vmatpush3.bf16.msra.mxu1 %v2689_v37 }
 0xf04   : > { %3179 = vmatprep.subr.bf16.mxu1 %v3307_v6 }
 0xf07   : > { %3180 = vmatpush3.bf16.msra.mxu1 %v2690_v42 }
 0xf08   : > { %3181 = vmatprep.subr.bf16.mxu1 %v3307_v6 }
 0xf0b   : > { %3182 = vmatpush3.bf16.msra.mxu1 %v2691_v47 }
 0xf0c   : > { %3183 = vmatprep.subr.bf16.mxu1 %v3307_v6 }
 0xf0f   : > { %3184 = vmatpush3.bf16.msra.mxu1 %v2692_v51 }
 0xf10   : > { %3185 = vmatprep.subr.bf16.mxu1 %v3307_v6 }
 0xf13   : > { %3186 = vmatpush3.bf16.msra.mxu1 %v2693_v22 }
 0xf14   : > { %3187 = vmatprep.subr.bf16.mxu1 %v3307_v6 }
 0xf17   : > { %3188 = vmatpush3.bf16.msra.mxu1 %v2694_v54 }
 0xfd5   : > { %v2609_v56 = vpop.f32.mrb[44].mxu1  ;;  %v2669_v48 = vpop.f32.mrb[56].mxu0 }
 0xfd6   : > { %v2610_v57 = vadd.f32 %v2860_v55, %v2609_v56  ;;  %v3167_v58 = vpop.f32.mrb[45].mxu1  ;;  %v3175_v59 = vpop.f32.mrb[57].mxu0  ;;  %v2670_v5 = vadd.f32 %v2863_v2, %v2669_v48 }
 0xfd7   : > { %v2612_v6 = vpop.f32.mrb[46].mxu1  ;;  %v2672_v60 = vpop.f32.mrb[58].mxu0 }
 0xfd8   : > { %v2862_v61 = vmul.f32 -1.442695, %v2610_v57  ;;  %v3168_v62 = vpop.f32.mrb[47].mxu1  ;;  %v3176_v63 = vpop.f32.mrb[59].mxu0 }
 0xfda   : > { %3294 = vpow2.f32 %v2862_v61 }
 0xfe4   : > { %v3295_v0 = vpop.eup %3294 }
 0xfe5   : > { %v2618_v1 = vadd.f32 1.0, %v3295_v0 }
 0xfe7   : > { %3296 = vrcp.f32 %v2618_v1 }
 0xff1   : > { %v3297_v3 = vpop.eup %3296 }
 0xff2   : > { %v2621_v4 = vmul.f32 %v3297_v3, %v2610_v57 }
 0xff4   : > { %v2675_v7 = vmul.f32 %v2670_v5, %v2621_v4 }
 0xff6   : > { %v2688_v8 = vpack.c.bf16 %v2675_v7, %v2675_v7 }
 0xff8   : > { %3190 = vmatmul.mubr.msk.bf16.vlgmr.msra.gmra.mrb[48].mxu1 %vm2695_vm7, %v2688_v8 }
0x10cb   : > { %v2733_v9 = vpop.f32.mrb[48].mxu1 }
0x10cc   : > { %v2739_v11 = vadd.f32 %v2733_v9, %v3852_v13  ;;  %v3191_v12 = vpop.f32.mrb[49].mxu1 }
0x10cd   : > { %v2736_v14 = vpop.f32.mrb[50].mxu1 }
0x10ce   : > { %v2747_v19 = vadd.f32 %v2866_v10, %v2739_v11  ;;  %v3192_v15 = vpop.f32.mrb[51].mxu1 }
0x10d0   : > { %2748 = vst.msk [vmem:[%s614_s25] sm:$0xff] %vm621_vm0, %v2747_v19 }
0x10d1 PF: > { %s29_s0 = sadd.s32 1, %s3305_s0  }
0x10d2   : > { %p26_p4 = scmp.ge.s32.totalorder %s29_s0, 4  }
0x10d4   :  { %28 = sbr.rel (!%p26_p4) target bundleno = 5 (0x5), region = 129 }

</bundles_post_ra>
